<compile_context>
chip_gen: v5e
topology: v5e:2x2
jax: 0.10.0
libtpu: 0.0.40
codegen_flags: <defaults>
</compile_context>

<pallas_src>
import functools

import jax
import jax.numpy as jnp
from jax.experimental import pallas as pl
from jax.experimental.pallas import tpu as pltpu


# ---------------------------------------------------------------------------
# Fused kernel: conv1 + ReLU -> conv2 + ReLU -> global sum pool -> neck linear
# block_b images per grid step; activations never leave VMEM.
#
#   p1_ref   : (Bt, H*W, K1)   bf16  im2col patches of the pad=1 input
#                                    (K1 = 9*Cin zero-padded to 128)
#   mask_ref : (Bt*H*W, 9)     f32   conv2 boundary masks, one column per tap
#   w1_ref   : (K1, C1)        bf16  conv1 weight, rows (kh, kw, cin) + zero pad
#   b1_ref   : (1, C1)         f32
#   w2_ref   : (9*C1, C2)      bf16  conv2 weight, rows (kh, kw, cin)
#   b2_ref   : (1, C2)         f32
#   w3_ref   : (C2, E_pad)     bf16  neck weight, pre-scaled by 1/(H*W), lane-
#                                    padded to 128
#   b3_ref   : (1, E_pad)      f32
#   o_ref    : (Bt, E_pad)     f32   padded embedding (sliced outside)
# ---------------------------------------------------------------------------
def fused_encoder_neck_kernel(p1_ref, mask_ref, w1_ref, b1_ref, w2_ref, b2_ref,
                              w3_ref, b3_ref, o_ref, *, H, W):
    Bt, HW, K1 = p1_ref.shape
    C1 = w1_ref.shape[1]
    C2 = w2_ref.shape[1]
    M = Bt * HW

    # ---- conv1 (3x3, pad=1) + bias + ReLU: one lane-dense K=128 matmul -----
    p1 = p1_ref[...].reshape(M, K1)                               # free reshape
    h = jnp.dot(p1, w1_ref[...], preferred_element_type=jnp.float32)
    h = jnp.maximum(h + b1_ref[...], 0.0)                         # (M, C1) f32
    h_bf = h.astype(jnp.bfloat16)                                 # cast once

    # ---- conv2 (3x3, pad=1) + bias + ReLU: 9 tap-accumulated K=C1 dots -----
    # Tap (dy, dx): roll the flat (M, C1) activation by -(dy-1)*W-(dx-1) rows
    # (XLU), zero out-of-image rows with the precomputed mask (VPU), matmul
    # against the matching 128-row block of w2 (MXU).  No im2col buffer, no
    # halo scratch, no in-kernel stores besides the final output.
    acc = jnp.zeros((M, C2), jnp.float32)
    for dy in range(3):
        for dx in range(3):
            t = 3 * dy + dx
            off = (dy - 1) * W + (dx - 1)
            if off == 0:
                tap = h_bf
            else:
                rolled = pltpu.roll(h, shift=(-off) % M, axis=0)   # f32 roll
                m = mask_ref[:, pl.ds(t, 1)]                       # (M, 1) f32
                tap = (rolled * m).astype(jnp.bfloat16)
            acc = acc + jnp.dot(tap, w2_ref[pl.ds(t * C1, C1), :],
                                preferred_element_type=jnp.float32)
    y = jnp.maximum(acc + b2_ref[...], 0.0)                        # (M, C2) f32

    # ---- global average pool: per-image sum (1/(H*W) folded into w3) -------
    e = jnp.sum(y.reshape(Bt, HW, C2), axis=1)                     # (Bt, C2)

    # ---- neck / embedding layer: Linear (M = Bt) ----------------------------
    # TODO(synk): NeckLayer definition not provided; plain Linear stand-in.
    z = jnp.dot(e.astype(jnp.bfloat16), w3_ref[...],
                preferred_element_type=jnp.float32) + b3_ref[...]
    o_ref[...] = z


# ---------------------------------------------------------------------------
# Wrapper-side layout plumbing
# ---------------------------------------------------------------------------
def _im2col_3x3(x_nhwc, k_out):
    """3x3, pad=1 patch extraction for the tiny input layer; K padded to k_out."""
    B, H, W, C = x_nhwc.shape
    xp = jnp.pad(x_nhwc, ((0, 0), (1, 1), (1, 1), (0, 0)))
    taps = [xp[:, dy:dy + H, dx:dx + W, :]
            for dy in range(3) for dx in range(3)]
    p = jnp.concatenate(taps, axis=-1).reshape(B, H * W, 9 * C)
    if k_out > 9 * C:
        p = jnp.pad(p, ((0, 0), (0, 0), (0, k_out - 9 * C)))
    return p


def _conv2_tap_masks(block_b, H, W):
    """mask[q, t] = 1 iff conv2 tap t=(3*dy+dx) is inside the image at row q."""
    i = jnp.arange(H)[:, None]
    j = jnp.arange(W)[None, :]
    cols = []
    for dy in range(3):
        for dx in range(3):
            oy, ox = dy - 1, dx - 1
            valid = ((i + oy >= 0) & (i + oy < H) &
                     (j + ox >= 0) & (j + ox < W))
            cols.append(valid.reshape(H * W))
    m = jnp.stack(cols, axis=-1).astype(jnp.float32)       # (H*W, 9)
    return jnp.tile(m, (block_b, 1))                        # (block_b*H*W, 9)


@functools.partial(jax.jit, static_argnames=("embedding_dim", "block_b"))
def metric_learning_forward(x_nchw, params, *, embedding_dim, block_b=None):
    """forward(x) = embedding_layer(encoder(x)); x is NCHW (PyTorch layout)."""
    x = jnp.transpose(x_nchw, (0, 2, 3, 1))                 # NCHW -> NHWC
    B, H, W, Cin = x.shape

    w1, b1 = params["w1"], params["b1"]
    w2, b2 = params["w2"], params["b2"]
    w3, b3 = params["w3"], params["b3"]
    K1 = w1.shape[0]
    E_pad = w3.shape[1]

    # Images per grid step: whole batch if small, else 8 (keeps the (8,128)
    # block rule satisfied and splits evenly across v7x's two TensorCores).
    if block_b is None:
        block_b = B if B <= 8 else 8
    assert B % block_b == 0, (B, block_b)

    p1 = _im2col_3x3(x, K1).astype(jnp.bfloat16)            # (B, H*W, K1)
    masks = _conv2_tap_masks(block_b, H, W)                 # (block_b*H*W, 9)

    kernel = functools.partial(fused_encoder_neck_kernel, H=H, W=W)

    out = pl.pallas_call(
        kernel,
        out_shape=jax.ShapeDtypeStruct((B, E_pad), jnp.float32),
        grid=(B // block_b,),
        in_specs=[
            pl.BlockSpec((block_b, H * W, K1), lambda g: (g, 0, 0)),
            pl.BlockSpec(masks.shape, lambda g: (0, 0)),
            pl.BlockSpec(w1.shape, lambda g: (0, 0)),
            pl.BlockSpec(b1.shape, lambda g: (0, 0)),
            pl.BlockSpec(w2.shape, lambda g: (0, 0)),
            pl.BlockSpec(b2.shape, lambda g: (0, 0)),
            pl.BlockSpec(w3.shape, lambda g: (0, 0)),
            pl.BlockSpec(b3.shape, lambda g: (0, 0)),
        ],
        out_specs=pl.BlockSpec((block_b, E_pad), lambda g: (g, 0)),
        compiler_params=pltpu.CompilerParams(
            dimension_semantics=("parallel",)),
    )(p1, masks, w1, b1, w2, b2, w3, b3)

    return out[:, :embedding_dim]


# ---------------------------------------------------------------------------
# Parameter construction (PyTorch layouts -> kernel layouts)
# ---------------------------------------------------------------------------
def init_params(key, *, c_in=4, c_hidden=128, c_feat=128, embedding_dim=64,
                hw=256, e_pad=128, k1_pad=128):
    k1, k2, k3, k4, k5, k6 = jax.random.split(key, 6)

    # PyTorch Conv2d weight layout: (Cout, Cin, kh, kw)
    w1 = jax.random.normal(k1, (c_hidden, c_in, 3, 3), jnp.float32) * 0.1
    b1 = jax.random.normal(k2, (c_hidden,), jnp.float32) * 0.01
    w2 = jax.random.normal(k3, (c_feat, c_hidden, 3, 3), jnp.float32) * 0.05
    b2 = jax.random.normal(k4, (c_feat,), jnp.float32) * 0.01
    # PyTorch Linear weight layout: (out_features, in_features)
    w3 = jax.random.normal(k5, (embedding_dim, c_feat), jnp.float32) * 0.05
    b3 = jax.random.normal(k6, (embedding_dim,), jnp.float32) * 0.01

    def conv_w(w, k_pad=None):
        cout, cin = w.shape[0], w.shape[1]
        # (Cout, Cin, kh, kw) -> (kh, kw, Cin, Cout) -> (9*Cin, Cout)
        wk = jnp.transpose(w, (2, 3, 1, 0)).reshape(9 * cin, cout)
        if k_pad is not None and k_pad > 9 * cin:
            wk = jnp.pad(wk, ((0, k_pad - 9 * cin), (0, 0)))
        return wk

    # Neck weight: (out, in) -> (in, out), 1/(H*W) of the avg-pool folded in,
    # lane-padded to e_pad (sliced back outside the kernel).
    w3_t = jnp.transpose(w3) / float(hw)                    # (c_feat, emb)
    w3_p = jnp.zeros((c_feat, e_pad), jnp.float32).at[:, :embedding_dim].set(w3_t)
    b3_p = jnp.zeros((1, e_pad), jnp.float32).at[0, :embedding_dim].set(b3)

    return {
        "w1": conv_w(w1, k1_pad).astype(jnp.bfloat16),
        "b1": b1.reshape(1, -1),
        "w2": conv_w(w2).astype(jnp.bfloat16),
        "b2": b2.reshape(1, -1),
        "w3": w3_p.astype(jnp.bfloat16),
        "b3": b3_p,
    }


if __name__ == "__main__":
    key = jax.random.PRNGKey(0)
    k_x, k_p = jax.random.split(key)

    B, C, H, W = 2, 4, 16, 16
    embedding_dim = 64

    x = jax.random.normal(k_x, (B, C, H, W), jnp.float32)
    params = init_params(k_p, c_in=C, c_hidden=128, c_feat=128,
                         embedding_dim=embedding_dim, hw=H * W)

    emb = metric_learning_forward(x, params, embedding_dim=embedding_dim)
    emb = jax.block_until_ready(emb)

    assert emb.shape == (B, embedding_dim), emb.shape
    assert emb.dtype == jnp.float32
    assert bool(jnp.all(jnp.isfinite(emb)))
    print("KERNEL_OK")
</pallas_src>

<mosaic_0001>
module attributes {stable_mosaic.version = 11 : i64} {
  func.func @fused_encoder_neck_kernel(%arg0: i32, %arg1: memref<2x256x128xbf16, #tpu.memory_space<vmem>>, %arg2: memref<512x9xf32, #tpu.memory_space<vmem>>, %arg3: memref<128x128xbf16, #tpu.memory_space<vmem>>, %arg4: memref<1x128xf32, #tpu.memory_space<vmem>>, %arg5: memref<1152x128xbf16, #tpu.memory_space<vmem>>, %arg6: memref<1x128xf32, #tpu.memory_space<vmem>>, %arg7: memref<128x128xbf16, #tpu.memory_space<vmem>>, %arg8: memref<1x128xf32, #tpu.memory_space<vmem>>, %arg9: memref<2x128xf32, #tpu.memory_space<vmem>>) attributes {dimension_semantics = [#tpu.dimension_semantics<parallel>], iteration_bounds = array<i64: 1>, scalar_prefetch = 0 : i64, scratch_operands = 0 : i64, tpu.core_type = #tpu.core_type<tc>, window_params = [{transform_indices = @transform_0, window_bounds = array<i64: 2, 256, 128>}, {pipeline_mode = #tpu.pipeline_mode<synchronous>, transform_indices = @transform_1, window_bounds = array<i64: 512, 9>}, {pipeline_mode = #tpu.pipeline_mode<synchronous>, transform_indices = @transform_2, window_bounds = array<i64: 128, 128>}, {pipeline_mode = #tpu.pipeline_mode<synchronous>, transform_indices = @transform_3, window_bounds = array<i64: 1, 128>}, {pipeline_mode = #tpu.pipeline_mode<synchronous>, transform_indices = @transform_4, window_bounds = array<i64: 1152, 128>}, {pipeline_mode = #tpu.pipeline_mode<synchronous>, transform_indices = @transform_5, window_bounds = array<i64: 1, 128>}, {pipeline_mode = #tpu.pipeline_mode<synchronous>, transform_indices = @transform_6, window_bounds = array<i64: 128, 128>}, {pipeline_mode = #tpu.pipeline_mode<synchronous>, transform_indices = @transform_7, window_bounds = array<i64: 1, 128>}, {transform_indices = @transform_8, window_bounds = array<i64: 2, 128>}]} {
    %c0 = arith.constant 0 : index
    %c0_0 = arith.constant 0 : index
    %c0_1 = arith.constant 0 : index
    %0 = vector.load %arg1[%c0, %c0_0, %c0_1] : memref<2x256x128xbf16, #tpu.memory_space<vmem>>, vector<2x256x128xbf16>
    %1 = vector.shape_cast %0 : vector<2x256x128xbf16> to vector<512x128xbf16>
    %c0_2 = arith.constant 0 : index
    %c0_3 = arith.constant 0 : index
    %2 = vector.load %arg3[%c0_2, %c0_3] : memref<128x128xbf16, #tpu.memory_space<vmem>>, vector<128x128xbf16>
    %cst = arith.constant dense<0.000000e+00> : vector<512x128xf32>
    %3 = tpu.matmul %1, %2, %cst {dimension_numbers = #tpu.dot_dimension_numbers<[1], [0], [0], [1], [0, 0, 1, 1], [], []>} : vector<512x128xbf16>, vector<128x128xbf16>, vector<512x128xf32> -> vector<512x128xf32>
    %c0_4 = arith.constant 0 : index
    %c0_5 = arith.constant 0 : index
    %4 = vector.load %arg4[%c0_4, %c0_5] : memref<1x128xf32, #tpu.memory_space<vmem>>, vector<1x128xf32>
    %5 = vector.broadcast %4 : vector<1x128xf32> to vector<512x128xf32>
    %6 = arith.addf %3, %5 : vector<512x128xf32>
    %cst_6 = arith.constant 0.000000e+00 : f32
    %7 = vector.broadcast %cst_6 : f32 to vector<512x128xf32>
    %8 = arith.maximumf %6, %7 : vector<512x128xf32>
    %9 = arith.truncf %8 : vector<512x128xf32> to vector<512x128xbf16>
    %cst_7 = arith.constant 0.000000e+00 : f32
    %10 = vector.broadcast %cst_7 : f32 to vector<512x128xf32>
    %c17_i32 = arith.constant 17 : i32
    %11 = tpu.dynamic_rotate %8 by %c17_i32 dim 0 : vector<512x128xf32>, i32 -> vector<512x128xf32>
    %c0_8 = arith.constant 0 : index
    %c0_9 = arith.constant 0 : index
    %12 = vector.load %arg2[%c0_8, %c0_9] : memref<512x9xf32, #tpu.memory_space<vmem>>, vector<512x1xf32>
    %13 = vector.broadcast %12 : vector<512x1xf32> to vector<512x128xf32>
    %14 = arith.mulf %11, %13 : vector<512x128xf32>
    %15 = arith.truncf %14 : vector<512x128xf32> to vector<512x128xbf16>
    %c0_10 = arith.constant 0 : index
    %c0_11 = arith.constant 0 : index
    %16 = vector.load %arg5[%c0_10, %c0_11] : memref<1152x128xbf16, #tpu.memory_space<vmem>>, vector<128x128xbf16>
    %cst_12 = arith.constant dense<0.000000e+00> : vector<512x128xf32>
    %17 = tpu.matmul %15, %16, %cst_12 {dimension_numbers = #tpu.dot_dimension_numbers<[1], [0], [0], [1], [0, 0, 1, 1], [], []>} : vector<512x128xbf16>, vector<128x128xbf16>, vector<512x128xf32> -> vector<512x128xf32>
    %18 = arith.addf %10, %17 : vector<512x128xf32>
    %c16_i32 = arith.constant 16 : i32
    %19 = tpu.dynamic_rotate %8 by %c16_i32 dim 0 : vector<512x128xf32>, i32 -> vector<512x128xf32>
    %c0_13 = arith.constant 0 : index
    %c1 = arith.constant 1 : index
    %20 = vector.load %arg2[%c0_13, %c1] : memref<512x9xf32, #tpu.memory_space<vmem>>, vector<512x1xf32>
    %21 = vector.broadcast %20 : vector<512x1xf32> to vector<512x128xf32>
    %22 = arith.mulf %19, %21 : vector<512x128xf32>
    %23 = arith.truncf %22 : vector<512x128xf32> to vector<512x128xbf16>
    %c128 = arith.constant 128 : index
    %c0_14 = arith.constant 0 : index
    %24 = vector.load %arg5[%c128, %c0_14] : memref<1152x128xbf16, #tpu.memory_space<vmem>>, vector<128x128xbf16>
    %cst_15 = arith.constant dense<0.000000e+00> : vector<512x128xf32>
    %25 = tpu.matmul %23, %24, %cst_15 {dimension_numbers = #tpu.dot_dimension_numbers<[1], [0], [0], [1], [0, 0, 1, 1], [], []>} : vector<512x128xbf16>, vector<128x128xbf16>, vector<512x128xf32> -> vector<512x128xf32>
    %26 = arith.addf %18, %25 : vector<512x128xf32>
    %c15_i32 = arith.constant 15 : i32
    %27 = tpu.dynamic_rotate %8 by %c15_i32 dim 0 : vector<512x128xf32>, i32 -> vector<512x128xf32>
    %c0_16 = arith.constant 0 : index
    %c2 = arith.constant 2 : index
    %28 = vector.load %arg2[%c0_16, %c2] : memref<512x9xf32, #tpu.memory_space<vmem>>, vector<512x1xf32>
    %29 = vector.broadcast %28 : vector<512x1xf32> to vector<512x128xf32>
    %30 = arith.mulf %27, %29 : vector<512x128xf32>
    %31 = arith.truncf %30 : vector<512x128xf32> to vector<512x128xbf16>
    %c256 = arith.constant 256 : index
    %c0_17 = arith.constant 0 : index
    %32 = vector.load %arg5[%c256, %c0_17] : memref<1152x128xbf16, #tpu.memory_space<vmem>>, vector<128x128xbf16>
    %cst_18 = arith.constant dense<0.000000e+00> : vector<512x128xf32>
    %33 = tpu.matmul %31, %32, %cst_18 {dimension_numbers = #tpu.dot_dimension_numbers<[1], [0], [0], [1], [0, 0, 1, 1], [], []>} : vector<512x128xbf16>, vector<128x128xbf16>, vector<512x128xf32> -> vector<512x128xf32>
    %34 = arith.addf %26, %33 : vector<512x128xf32>
    %c1_i32 = arith.constant 1 : i32
    %35 = tpu.dynamic_rotate %8 by %c1_i32 dim 0 : vector<512x128xf32>, i32 -> vector<512x128xf32>
    %c0_19 = arith.constant 0 : index
    %c3 = arith.constant 3 : index
    %36 = vector.load %arg2[%c0_19, %c3] : memref<512x9xf32, #tpu.memory_space<vmem>>, vector<512x1xf32>
    %37 = vector.broadcast %36 : vector<512x1xf32> to vector<512x128xf32>
    %38 = arith.mulf %35, %37 : vector<512x128xf32>
    %39 = arith.truncf %38 : vector<512x128xf32> to vector<512x128xbf16>
    %c384 = arith.constant 384 : index
    %c0_20 = arith.constant 0 : index
    %40 = vector.load %arg5[%c384, %c0_20] : memref<1152x128xbf16, #tpu.memory_space<vmem>>, vector<128x128xbf16>
    %cst_21 = arith.constant dense<0.000000e+00> : vector<512x128xf32>
    %41 = tpu.matmul %39, %40, %cst_21 {dimension_numbers = #tpu.dot_dimension_numbers<[1], [0], [0], [1], [0, 0, 1, 1], [], []>} : vector<512x128xbf16>, vector<128x128xbf16>, vector<512x128xf32> -> vector<512x128xf32>
    %42 = arith.addf %34, %41 : vector<512x128xf32>
    %c512 = arith.constant 512 : index
    %c0_22 = arith.constant 0 : index
    %43 = vector.load %arg5[%c512, %c0_22] : memref<1152x128xbf16, #tpu.memory_space<vmem>>, vector<128x128xbf16>
    %cst_23 = arith.constant dense<0.000000e+00> : vector<512x128xf32>
    %44 = tpu.matmul %9, %43, %cst_23 {dimension_numbers = #tpu.dot_dimension_numbers<[1], [0], [0], [1], [0, 0, 1, 1], [], []>} : vector<512x128xbf16>, vector<128x128xbf16>, vector<512x128xf32> -> vector<512x128xf32>
    %45 = arith.addf %42, %44 : vector<512x128xf32>
    %c511_i32 = arith.constant 511 : i32
    %46 = tpu.dynamic_rotate %8 by %c511_i32 dim 0 : vector<512x128xf32>, i32 -> vector<512x128xf32>
    %c0_24 = arith.constant 0 : index
    %c5 = arith.constant 5 : index
    %47 = vector.load %arg2[%c0_24, %c5] : memref<512x9xf32, #tpu.memory_space<vmem>>, vector<512x1xf32>
    %48 = vector.broadcast %47 : vector<512x1xf32> to vector<512x128xf32>
    %49 = arith.mulf %46, %48 : vector<512x128xf32>
    %50 = arith.truncf %49 : vector<512x128xf32> to vector<512x128xbf16>
    %c640 = arith.constant 640 : index
    %c0_25 = arith.constant 0 : index
    %51 = vector.load %arg5[%c640, %c0_25] : memref<1152x128xbf16, #tpu.memory_space<vmem>>, vector<128x128xbf16>
    %cst_26 = arith.constant dense<0.000000e+00> : vector<512x128xf32>
    %52 = tpu.matmul %50, %51, %cst_26 {dimension_numbers = #tpu.dot_dimension_numbers<[1], [0], [0], [1], [0, 0, 1, 1], [], []>} : vector<512x128xbf16>, vector<128x128xbf16>, vector<512x128xf32> -> vector<512x128xf32>
    %53 = arith.addf %45, %52 : vector<512x128xf32>
    %c497_i32 = arith.constant 497 : i32
    %54 = tpu.dynamic_rotate %8 by %c497_i32 dim 0 : vector<512x128xf32>, i32 -> vector<512x128xf32>
    %c0_27 = arith.constant 0 : index
    %c6 = arith.constant 6 : index
    %55 = vector.load %arg2[%c0_27, %c6] : memref<512x9xf32, #tpu.memory_space<vmem>>, vector<512x1xf32>
    %56 = vector.broadcast %55 : vector<512x1xf32> to vector<512x128xf32>
    %57 = arith.mulf %54, %56 : vector<512x128xf32>
    %58 = arith.truncf %57 : vector<512x128xf32> to vector<512x128xbf16>
    %c768 = arith.constant 768 : index
    %c0_28 = arith.constant 0 : index
    %59 = vector.load %arg5[%c768, %c0_28] : memref<1152x128xbf16, #tpu.memory_space<vmem>>, vector<128x128xbf16>
    %cst_29 = arith.constant dense<0.000000e+00> : vector<512x128xf32>
    %60 = tpu.matmul %58, %59, %cst_29 {dimension_numbers = #tpu.dot_dimension_numbers<[1], [0], [0], [1], [0, 0, 1, 1], [], []>} : vector<512x128xbf16>, vector<128x128xbf16>, vector<512x128xf32> -> vector<512x128xf32>
    %61 = arith.addf %53, %60 : vector<512x128xf32>
    %c496_i32 = arith.constant 496 : i32
    %62 = tpu.dynamic_rotate %8 by %c496_i32 dim 0 : vector<512x128xf32>, i32 -> vector<512x128xf32>
    %c0_30 = arith.constant 0 : index
    %c7 = arith.constant 7 : index
    %63 = vector.load %arg2[%c0_30, %c7] : memref<512x9xf32, #tpu.memory_space<vmem>>, vector<512x1xf32>
    %64 = vector.broadcast %63 : vector<512x1xf32> to vector<512x128xf32>
    %65 = arith.mulf %62, %64 : vector<512x128xf32>
    %66 = arith.truncf %65 : vector<512x128xf32> to vector<512x128xbf16>
    %c896 = arith.constant 896 : index
    %c0_31 = arith.constant 0 : index
    %67 = vector.load %arg5[%c896, %c0_31] : memref<1152x128xbf16, #tpu.memory_space<vmem>>, vector<128x128xbf16>
    %cst_32 = arith.constant dense<0.000000e+00> : vector<512x128xf32>
    %68 = tpu.matmul %66, %67, %cst_32 {dimension_numbers = #tpu.dot_dimension_numbers<[1], [0], [0], [1], [0, 0, 1, 1], [], []>} : vector<512x128xbf16>, vector<128x128xbf16>, vector<512x128xf32> -> vector<512x128xf32>
    %69 = arith.addf %61, %68 : vector<512x128xf32>
    %c495_i32 = arith.constant 495 : i32
    %70 = tpu.dynamic_rotate %8 by %c495_i32 dim 0 : vector<512x128xf32>, i32 -> vector<512x128xf32>
    %c0_33 = arith.constant 0 : index
    %c8 = arith.constant 8 : index
    %71 = vector.load %arg2[%c0_33, %c8] : memref<512x9xf32, #tpu.memory_space<vmem>>, vector<512x1xf32>
    %72 = vector.broadcast %71 : vector<512x1xf32> to vector<512x128xf32>
    %73 = arith.mulf %70, %72 : vector<512x128xf32>
    %74 = arith.truncf %73 : vector<512x128xf32> to vector<512x128xbf16>
    %c1024 = arith.constant 1024 : index
    %c0_34 = arith.constant 0 : index
    %75 = vector.load %arg5[%c1024, %c0_34] : memref<1152x128xbf16, #tpu.memory_space<vmem>>, vector<128x128xbf16>
    %cst_35 = arith.constant dense<0.000000e+00> : vector<512x128xf32>
    %76 = tpu.matmul %74, %75, %cst_35 {dimension_numbers = #tpu.dot_dimension_numbers<[1], [0], [0], [1], [0, 0, 1, 1], [], []>} : vector<512x128xbf16>, vector<128x128xbf16>, vector<512x128xf32> -> vector<512x128xf32>
    %77 = arith.addf %69, %76 : vector<512x128xf32>
    %c0_36 = arith.constant 0 : index
    %c0_37 = arith.constant 0 : index
    %78 = vector.load %arg6[%c0_36, %c0_37] : memref<1x128xf32, #tpu.memory_space<vmem>>, vector<1x128xf32>
    %79 = vector.broadcast %78 : vector<1x128xf32> to vector<512x128xf32>
    %80 = arith.addf %77, %79 : vector<512x128xf32>
    %cst_38 = arith.constant 0.000000e+00 : f32
    %81 = vector.broadcast %cst_38 : f32 to vector<512x128xf32>
    %82 = arith.maximumf %80, %81 : vector<512x128xf32>
    %83 = vector.shape_cast %82 : vector<512x128xf32> to vector<2x256x128xf32>
    %cst_39 = arith.constant dense<0.000000e+00> : vector<2x128xf32>
    %84 = vector.multi_reduction <add>, %83, %cst_39 [1] : vector<2x256x128xf32> to vector<2x128xf32>
    %85 = arith.truncf %84 : vector<2x128xf32> to vector<2x128xbf16>
    %c0_40 = arith.constant 0 : index
    %c0_41 = arith.constant 0 : index
    %86 = vector.load %arg7[%c0_40, %c0_41] : memref<128x128xbf16, #tpu.memory_space<vmem>>, vector<128x128xbf16>
    %cst_42 = arith.constant dense<0.000000e+00> : vector<2x128xf32>
    %87 = tpu.matmul %85, %86, %cst_42 {dimension_numbers = #tpu.dot_dimension_numbers<[1], [0], [0], [1], [0, 0, 1, 1], [], []>} : vector<2x128xbf16>, vector<128x128xbf16>, vector<2x128xf32> -> vector<2x128xf32>
    %c0_43 = arith.constant 0 : index
    %c0_44 = arith.constant 0 : index
    %88 = vector.load %arg8[%c0_43, %c0_44] : memref<1x128xf32, #tpu.memory_space<vmem>>, vector<1x128xf32>
    %89 = vector.broadcast %88 : vector<1x128xf32> to vector<2x128xf32>
    %90 = arith.addf %87, %89 : vector<2x128xf32>
    %c0_45 = arith.constant 0 : index
    %c0_46 = arith.constant 0 : index
    %91 = vector.load %arg9[%c0_45, %c0_46] : memref<2x128xf32, #tpu.memory_space<vmem>>, vector<2x128xf32>
    tpu.vector_store %arg9[%c0_45, %c0_46], %90 {strides = array<i32>} : memref<2x128xf32, #tpu.memory_space<vmem>>, vector<2x128xf32>,
    return
  }
  func.func @transform_0(%arg0: i32) -> (i32, i32, i32) {
    %c0_i32 = arith.constant 0 : i32
    %c0_i32_0 = arith.constant 0 : i32
    %c0_i32_1 = arith.constant 0 : i32
    return %arg0, %c0_i32, %c0_i32_0 : i32, i32, i32
  }
  func.func @transform_1(%arg0: i32) -> (i32, i32) {
    %c0_i32 = arith.constant 0 : i32
    %c0_i32_0 = arith.constant 0 : i32
    %c0_i32_1 = arith.constant 0 : i32
    return %c0_i32, %c0_i32_0 : i32, i32
  }
  func.func @transform_2(%arg0: i32) -> (i32, i32) {
    %c0_i32 = arith.constant 0 : i32
    %c0_i32_0 = arith.constant 0 : i32
    %c0_i32_1 = arith.constant 0 : i32
    return %c0_i32, %c0_i32_0 : i32, i32
  }
  func.func @transform_3(%arg0: i32) -> (i32, i32) {
    %c0_i32 = arith.constant 0 : i32
    %c0_i32_0 = arith.constant 0 : i32
    %c0_i32_1 = arith.constant 0 : i32
    return %c0_i32, %c0_i32_0 : i32, i32
  }
  func.func @transform_4(%arg0: i32) -> (i32, i32) {
    %c0_i32 = arith.constant 0 : i32
    %c0_i32_0 = arith.constant 0 : i32
    %c0_i32_1 = arith.constant 0 : i32
    return %c0_i32, %c0_i32_0 : i32, i32
  }
  func.func @transform_5(%arg0: i32) -> (i32, i32) {
    %c0_i32 = arith.constant 0 : i32
    %c0_i32_0 = arith.constant 0 : i32
    %c0_i32_1 = arith.constant 0 : i32
    return %c0_i32, %c0_i32_0 : i32, i32
  }
  func.func @transform_6(%arg0: i32) -> (i32, i32) {
    %c0_i32 = arith.constant 0 : i32
    %c0_i32_0 = arith.constant 0 : i32
    %c0_i32_1 = arith.constant 0 : i32
    return %c0_i32, %c0_i32_0 : i32, i32
  }
  func.func @transform_7(%arg0: i32) -> (i32, i32) {
    %c0_i32 = arith.constant 0 : i32
    %c0_i32_0 = arith.constant 0 : i32
    %c0_i32_1 = arith.constant 0 : i32
    return %c0_i32, %c0_i32_0 : i32, i32
  }
  func.func @transform_8(%arg0: i32) -> (i32, i32) {
    %c0_i32 = arith.constant 0 : i32
    %c0_i32_0 = arith.constant 0 : i32
    return %arg0, %c0_i32 : i32, i32
  }
}

</mosaic_0001>

<bundles_post_ra>
// kernel: metric_learning_forward.1
= control target key start
LH: loop header
LB: loop body
LE: loop exit
PB: predicated region body
PF: predicated region fallthrough
CT: control target
= control target key end

     0   :  { %v7674_v3 = vmov 0   ;;  %s14118_s0 = inlined_call_operand.vmem [shape: bf16[2,256,128], index: 0, kind: input, shape index: {}]   ;;  %s14119_s1 = inlined_call_operand.vmem [shape: f32[512,9], index: 1, kind: input, shape index: {}]   ;;  %s14120_s2 = inlined_call_operand.vmem [shape: bf16[128,128], index: 2, kind: input, shape index: {}]   ;;  %s14121_s3 = inlined_call_operand.vmem [shape: f32[1,128], index: 3, kind: input, shape index: {}]   ;;  %s14122_s4 = inlined_call_operand.vmem [shape: bf16[1152,128], index: 4, kind: input, shape index: {}]   ;;  %s14123_s5 = inlined_call_operand.vmem [shape: f32[1,128], index: 5, kind: input, shape index: {}]   ;;  %s14124_s6 = inlined_call_operand.vmem [shape: bf16[128,128], index: 6, kind: input, shape index: {}]   ;;  %s14125_s7 = inlined_call_operand.vmem [shape: f32[1,128], index: 7, kind: input, shape index: {}]   ;;  %s14126_s8 = inlined_call_operand.hbm [shape: f32[2,128], index: 8, kind: output, shape index: {}]  }
   0x1   :  { %v7731_v0 = vld [vmem:[%s14119_s1 + $0x20] sm:$0xff]  ;;  %v7736_v1 = vld [vmem:[%s14119_s1 + $0x10] sm:$0xff]  ;;  %7309 = vset.pattern.permute.xlu2 %v7674_v3  ;;  %7308 = vset.pattern.permute.xlu1 %v7674_v3  ;;  %v7201_v4 = vld [vmem:[%s14120_s2 + $0x38] sm:$0xff] }
   0x2   :  { %v7741_v2 = vld [vmem:[%s14119_s1] sm:$0xff]  ;;  %7307 = vset.pattern.permute.xlu0 %v7674_v3  ;;  %836 = vperm.xlu2 %7309, %v7731_v0   ;;  %v7200_v5 = vld [vmem:[%s14120_s2 + $0x30] sm:$0xff]  ;;  %v7755_v6 = vld [vmem:[%s14119_s1 + $0x28] sm:$0xff] }
   0x3   :  { %826 = vperm.xlu1 %7308, %v7736_v1   ;;  %816 = vperm.xlu0 %7307, %v7741_v2   ;;  %v7760_v7 = vld [vmem:[%s14119_s1 + $0x18] sm:$0xff]  ;;  %v7765_v8 = vld [vmem:[%s14119_s1 + $0x8] sm:$0xff] }
   0x4   :  { %354 = vmatpush.bf16.msra.mxu0 %v7201_v4  ;;  %7282 = vmatpush.bf16.msra.mxu3 %v7201_v4  ;;  %14567 = vst [vmem:[#allocation5_spill] sm:$0xff] %v7765_v8  ;;  %v7199_v9 = vld [vmem:[%s14120_s2 + $0x28] sm:$0xff] }
   0x8   :  { %355 = vmatpush.bf16.msra.mxu0 %v7200_v5  ;;  %7283 = vmatpush.bf16.msra.mxu3 %v7200_v5 }
   0x9   :  { %13 = vsyncpa [#allocation3], 0  ;;  %v7198_v10 = vld [vmem:[%s14120_s2 + $0x20] sm:$0xff]  ;;  %v7784_v12 = vld [vmem:[%s14119_s1 + $0x38] sm:$0xff]  ;;  %vm6600_vm2 = vcmask 1041409   ;;  %s7682_s11 = smov [#allocation2]  }
   0xa   :  { %841 = vperm.xlu2 %7309, %v7755_v6   ;;  %v7779_v11 = vld [vmem:[%s14119_s1 + $0x40] sm:$0xff]  ;;  %v7789_v13 = vld [vmem:[%s14119_s1 + $0x30] sm:$0xff]  ;;  %v7197_v14 = vld [vmem:[%s14120_s2 + $0x18] sm:$0xff]  ;;  %s6671_s12 = sshll.u32 %s7682_s11, 4  ;;  %s6673_s15 = sshll.u32 %s14126_s8, 4  ;;  %s6672_s12 = int_to_ptr.vmem [resolvable:$true] %s6671_s12  ;;  %s6674_s15 = int_to_ptr.hbm [resolvable:$true] %s6673_s15 }
   0xb   :  { %831 = vperm.xlu1 %7308, %v7760_v7   ;;  %821 = vperm.xlu0 %7307, %v7765_v8   ;;  %v7196_v15 = vld [vmem:[%s14120_s2 + $0x10] sm:$0xff]  ;;  %v7803_v16 = vld [vmem:[%s14119_s1 + $0x58] sm:$0xff]  ;;  %v7813_v18 = vld [vmem:[%s14119_s1 + $0x48] sm:$0xff] }
   0xc   :  { %356 = vmatpush.bf16.msra.mxu0 %v7199_v9  ;;  %7284 = vmatpush.bf16.msra.mxu3 %v7199_v9  ;;  %v7808_v17 = vld [vmem:[%s14119_s1 + $0x50] sm:$0xff]  ;;  %v7195_v19 = vld [vmem:[%s14120_s2 + $0x8] sm:$0xff]  ;;  %v7194_v20 = vld [vmem:[%s14120_s2] sm:$0xff] }
   0xd   :  { %v7827_v21 = vld [vmem:[%s14119_s1 + $0x70] sm:$0xff]  ;;  %v7832_v22 = vld [vmem:[%s14119_s1 + $0x68] sm:$0xff]  ;;  %v7837_v23 = vld [vmem:[%s14119_s1 + $0x60] sm:$0xff] }
   0xe   :  { %v7162_v24 = vld [vmem:[%s14118_s0] sm:$0xff]  ;;  %v7179_v25 = vld [vmem:[%s14118_s0 + $0x88] sm:$0xff]  ;;  %v7861_v28 = vld [vmem:[%s14119_s1 + $0x78] sm:$0xff] }
   0xf   :  { %v7851_v26 = vld [vmem:[%s14119_s1 + $0x88] sm:$0xff]  ;;  %v7856_v27 = vld [vmem:[%s14119_s1 + $0x80] sm:$0xff]  ;;  %v7874_v30 = vld [vmem:[%s14119_s1 + $0x98] sm:$0xff] }
  0x10   :  { %357 = vmatpush.bf16.msra.mxu0 %v7198_v10  ;;  %7285 = vmatpush.bf16.msra.mxu3 %v7198_v10  ;;  %v7869_v29 = vld [vmem:[%s14119_s1 + $0xa0] sm:$0xff]  ;;  %v7879_v31 = vld [vmem:[%s14119_s1 + $0x90] sm:$0xff]  ;;  %v7163_v32 = vld [vmem:[%s14118_s0 + $0x8] sm:$0xff] }
  0x11   :  { %v7180_v33 = vld [vmem:[%s14118_s0 + $0x90] sm:$0xff]  ;;  %v7893_v34 = vld [vmem:[%s14119_s1 + $0xb8] sm:$0xff]  ;;  %v7903_v36 = vld [vmem:[%s14119_s1 + $0xa8] sm:$0xff] }
  0x12   :  { %856 = vperm.xlu2 %7309, %v7779_v11   ;;  %v7898_v35 = vld [vmem:[%s14119_s1 + $0xb0] sm:$0xff]  ;;  %v7916_v38 = vld [vmem:[%s14119_s1 + $0xc8] sm:$0xff]  ;;  %v7921_v39 = vld [vmem:[%s14119_s1 + $0xc0] sm:$0xff] }
  0x13   :  { %851 = vperm.xlu1 %7308, %v7784_v12   ;;  %846 = vperm.xlu0 %7307, %v7789_v13   ;;  %v7911_v37 = vld [vmem:[%s14119_s1 + $0xd0] sm:$0xff]  ;;  %v7181_v41 = vld [vmem:[%s14118_s0 + $0x98] sm:$0xff]  ;;  %v7935_v42 = vld [vmem:[%s14119_s1 + $0xe8] sm:$0xff] }
  0x14   :  { %358 = vmatpush.bf16.msra.mxu0 %v7197_v14  ;;  %7286 = vmatpush.bf16.msra.mxu3 %v7197_v14  ;;  %v7164_v40 = vld [vmem:[%s14118_s0 + $0x10] sm:$0xff]  ;;  %v7940_v43 = vld [vmem:[%s14119_s1 + $0xe0] sm:$0xff]  ;;  %v7945_v44 = vld [vmem:[%s14119_s1 + $0xd8] sm:$0xff] }
  0x15   :  { %v7953_v45 = vld [vmem:[%s14119_s1 + $0x100] sm:$0xff]  ;;  %v7958_v46 = vld [vmem:[%s14119_s1 + $0xf8] sm:$0xff]  ;;  %v7963_v47 = vld [vmem:[%s14119_s1 + $0xf0] sm:$0xff] }
  0x16   :  { %v7165_v48 = vld [vmem:[%s14118_s0 + $0x18] sm:$0xff]  ;;  %v7182_v49 = vld [vmem:[%s14118_s0 + $0xa0] sm:$0xff]  ;;  %v7982_v51 = vld [vmem:[%s14119_s1 + $0x110] sm:$0xff] }
  0x17   :  { %v7977_v50 = vld [vmem:[%s14119_s1 + $0x118] sm:$0xff]  ;;  %v7987_v52 = vld [vmem:[%s14119_s1 + $0x108] sm:$0xff]  ;;  %v7997_v54 = vld [vmem:[%s14119_s1 + $0x130] sm:$0xff] }
  0x18   :  { %359 = vmatpush.bf16.msra.mxu0 %v7196_v15  ;;  %7287 = vmatpush.bf16.msra.mxu3 %v7196_v15  ;;  %v8002_v55 = vld [vmem:[%s14119_s1 + $0x128] sm:$0xff]  ;;  %v8007_v56 = vld [vmem:[%s14119_s1 + $0x120] sm:$0xff]  ;;  %v8033_v62 = vld [vmem:[%s14119_s1 + $0x138] sm:$0xff] }
  0x19   :  { %v7166_v57 = vld [vmem:[%s14118_s0 + $0x20] sm:$0xff]  ;;  %v7183_v58 = vld [vmem:[%s14118_s0 + $0xa8] sm:$0xff]  ;;  %14570 = vst [vmem:[#allocation8_spill] sm:$0xff] %v8033_v62  ;;  %v8048_v4 = vld [vmem:[%s14119_s1 + $0x158] sm:$0xff] }
  0x1a   :  { %871 = vperm.xlu2 %7309, %v7803_v16   ;;  %v8023_v60 = vld [vmem:[%s14119_s1 + $0x148] sm:$0xff]  ;;  %v8028_v61 = vld [vmem:[%s14119_s1 + $0x140] sm:$0xff]  ;;  %v8053_v5 = vld [vmem:[%s14119_s1 + $0x150] sm:$0xff] }
  0x1b   :  { %866 = vperm.xlu1 %7308, %v7808_v17   ;;  %861 = vperm.xlu0 %7307, %v7813_v18   ;;  %v8043_v3 = vld [vmem:[%s14119_s1 + $0x160] sm:$0xff]  ;;  %v7167_v9 = vld [vmem:[%s14118_s0 + $0x28] sm:$0xff]  ;;  %v7184_v10 = vld [vmem:[%s14118_s0 + $0xb0] sm:$0xff] }
  0x1c   :  { %360 = vmatpush.bf16.msra.mxu0 %v7195_v19  ;;  %7288 = vmatpush.bf16.msra.mxu3 %v7195_v19 }
  0x20   :  { %361 = vmatpush.bf16.msra.mxu0 %v7194_v20  ;;  %7289 = vmatpush.bf16.msra.mxu3 %v7194_v20  ;;  %v8073_v20 = vld [vmem:[%s14119_s1 + $0x178] sm:$0xff] }
  0x22   :  { %886 = vperm.xlu2 %7309, %v7827_v21  }
  0x23   :  { %881 = vperm.xlu1 %7308, %v7832_v22   ;;  %876 = vperm.xlu0 %7307, %v7837_v23  }
  0x24   :  { %362 = vmatmul.bf16.vlgmr.msra.gmra.mxu0 %v7162_v24  ;;  %447 = vmatmul.bf16.vlgmr.msra.gmra.mxu3 %v7179_v25  ;;  %v8078_v24 = vld [vmem:[%s14119_s1 + $0x170] sm:$0xff]  ;;  %v8083_v25 = vld [vmem:[%s14119_s1 + $0x168] sm:$0xff] }
  0x2a   :  { %901 = vperm.xlu2 %7309, %v7851_v26  }
  0x2b   :  { %896 = vperm.xlu1 %7308, %v7856_v27   ;;  %891 = vperm.xlu0 %7307, %v7861_v28  }
  0x32   :  { %916 = vperm.xlu2 %7309, %v7869_v29  }
  0x33   :  { %911 = vperm.xlu1 %7308, %v7874_v30   ;;  %906 = vperm.xlu0 %7307, %v7879_v31  }
  0x34   :  { %367 = vmatmul.bf16.gmra.mxu0 %v7163_v32  ;;  %452 = vmatmul.bf16.gmra.mxu3 %v7180_v33 }
  0x3a   :  { %931 = vperm.xlu2 %7309, %v7893_v34  }
  0x3b   :  { %926 = vperm.xlu1 %7308, %v7898_v35   ;;  %921 = vperm.xlu0 %7307, %v7903_v36  }
  0x42   :  { %946 = vperm.xlu2 %7309, %v7911_v37  }
  0x43   :  { %941 = vperm.xlu1 %7308, %v7916_v38   ;;  %936 = vperm.xlu0 %7307, %v7921_v39  }
  0x44   :  { %372 = vmatmul.bf16.gmra.mxu0 %v7164_v40  ;;  %457 = vmatmul.bf16.gmra.mxu3 %v7181_v41  ;;  %v8097_v41 = vld [vmem:[%s14119_s1 + $0x190] sm:$0xff] }
  0x4a   :  { %961 = vperm.xlu2 %7309, %v7935_v42  }
  0x4b   :  { %956 = vperm.xlu1 %7308, %v7940_v43   ;;  %951 = vperm.xlu0 %7307, %v7945_v44  }
  0x52   :  { %976 = vperm.xlu2 %7309, %v7953_v45  }
  0x53   :  { %971 = vperm.xlu1 %7308, %v7958_v46   ;;  %966 = vperm.xlu0 %7307, %v7963_v47  }
  0x54   :  { %377 = vmatmul.bf16.gmra.mxu0 %v7165_v48  ;;  %462 = vmatmul.bf16.gmra.mxu3 %v7182_v49  ;;  %v8102_v48 = vld [vmem:[%s14119_s1 + $0x188] sm:$0xff]  ;;  %v8107_v49 = vld [vmem:[%s14119_s1 + $0x180] sm:$0xff] }
  0x5a   :  { %991 = vperm.xlu2 %7309, %v7977_v50  }
  0x5b   :  { %986 = vperm.xlu1 %7308, %v7982_v51   ;;  %981 = vperm.xlu0 %7307, %v7987_v52  }
  0x5c   :  { %v7992_v53 = vpop.permute.xlu2 %836 }
  0x5d   :  { %14568 = vst [vmem:[#allocation6_spill] sm:$0xff] %v7992_v53  ;;  %v8156_v53 = vld [vmem:[%s14119_s1 + $0x1b8] sm:$0xff] }
  0x5e   :  { %14586 = vst [vmem:[#allocation24_spill] sm:$0xff] %v8156_v53 }
  0x62   :  { %1006 = vperm.xlu2 %7309, %v7997_v54  }
  0x63   :  { %1001 = vperm.xlu1 %7308, %v8002_v55   ;;  %996 = vperm.xlu0 %7307, %v8007_v56  }
  0x64   :  { %382 = vmatmul.bf16.gmra.mxu0 %v7166_v57  ;;  %467 = vmatmul.bf16.gmra.mxu3 %v7183_v58  ;;  %v8018_v59 = vpop.permute.xlu2 %841  ;;  %v7168_v57 = vld [vmem:[%s14118_s0 + $0x30] sm:$0xff]  ;;  %v7185_v58 = vld [vmem:[%s14118_s0 + $0xb8] sm:$0xff] }
  0x65   :  { %14569 = vst [vmem:[#allocation7_spill] sm:$0xff] %v8018_v59  ;;  %v8161_v59 = vld [vmem:[%s14119_s1 + $0x1b0] sm:$0xff] }
  0x6a   :  { %1021 = vperm.xlu2 %7309, %v8023_v60  }
  0x6b   :  { %1016 = vperm.xlu1 %7308, %v8028_v61   ;;  %1011 = vperm.xlu0 %7307, %v8033_v62  }
  0x6c   :  { %v8038_v63 = vpop.permute.xlu2 %856 }
  0x6d   :  { %14571 = vst [vmem:[#allocation9_spill] sm:$0xff] %v8038_v63  ;;  %v8132_v63 = vld [vmem:[%s14119_s1 + $0x1a0] sm:$0xff] }
  0x72   :  { %1036 = vperm.xlu2 %7309, %v8043_v3  }
  0x73   :  { %1031 = vperm.xlu1 %7308, %v8048_v4   ;;  %1026 = vperm.xlu0 %7307, %v8053_v5  }
  0x74   :  { %387 = vmatmul.bf16.gmra.mxu0 %v7167_v9  ;;  %472 = vmatmul.bf16.gmra.mxu3 %v7184_v10  ;;  %v8064_v14 = vpop.permute.xlu2 %871 }
  0x75   :  { %14572 = vst [vmem:[#allocation10_spill] sm:$0xff] %v8064_v14  ;;  %v8066_v15 = vpop.permute.xlu1 %826  ;;  %v8068_v19 = vpop.permute.xlu0 %816  ;;  %v8127_v14 = vld [vmem:[%s14119_s1 + $0x1a8] sm:$0xff] }
  0x76   :  { %14573 = vst [vmem:[#allocation11_spill] sm:$0xff] %v8066_v15 }
  0x77   :  { %14574 = vst [vmem:[#allocation12_spill] sm:$0xff] %v8068_v19  ;;  %v8181_v19 = vld [vmem:[%s14119_s1 + $0x1d8] sm:$0xff] }
  0x78   :  { %14581 = vst [vmem:[#allocation19_spill] sm:$0xff] %v8127_v14 }
  0x79   :  { %14590 = vst [vmem:[#allocation28_spill] sm:$0xff] %v8181_v19 }
  0x7a   :  { %1051 = vperm.xlu2 %7309, %v8073_v20  }
  0x7b   :  { %1046 = vperm.xlu1 %7308, %v8078_v24   ;;  %1041 = vperm.xlu0 %7307, %v8083_v25  }
  0x7c   :  { %v8088_v32 = vpop.permute.xlu2 %886 }
  0x7d   :  { %14575 = vst [vmem:[#allocation13_spill] sm:$0xff] %v8088_v32  ;;  %v8090_v33 = vpop.permute.xlu1 %831  ;;  %v8092_v40 = vpop.permute.xlu0 %821 }
  0x7e   :  { %14576 = vst [vmem:[#allocation14_spill] sm:$0xff] %v8090_v33 }
  0x7f   :  { %14577 = vst [vmem:[#allocation15_spill] sm:$0xff] %v8092_v40  ;;  %v8186_v40 = vld [vmem:[%s14119_s1 + $0x1d0] sm:$0xff] }
  0x80   :  { %14591 = vst [vmem:[#allocation29_spill] sm:$0xff] %v8186_v40 }
  0x82   :  { %1066 = vperm.xlu2 %7309, %v8097_v41  }
  0x83   :  { %1061 = vperm.xlu1 %7308, %v8102_v48   ;;  %1056 = vperm.xlu0 %7307, %v8107_v49  }
  0x84   :  { %392 = vmatmul.bf16.gmra.mxu0 %v7168_v57  ;;  %477 = vmatmul.bf16.gmra.mxu3 %v7185_v58  ;;  %v8118_v9 = vpop.permute.xlu2 %901  ;;  %v8137_v57 = vld [vmem:[%s14119_s1 + $0x198] sm:$0xff] }
  0x85   :  { %14578 = vst [vmem:[#allocation16_spill] sm:$0xff] %v8118_v9  ;;  %v8120_v10 = vpop.permute.xlu1 %851  ;;  %v8122_v32 = vpop.permute.xlu0 %846 }
  0x86   :  { %14579 = vst [vmem:[#allocation17_spill] sm:$0xff] %v8120_v10  ;;  %v8151_v10 = vld [vmem:[%s14119_s1 + $0x1c0] sm:$0xff] }
  0x87   :  { %14580 = vst [vmem:[#allocation18_spill] sm:$0xff] %v8122_v32 }
  0x88   :  { %14585 = vst [vmem:[#allocation23_spill] sm:$0xff] %v8151_v10 }
  0x8a   :  { %1081 = vperm.xlu2 %7309, %v8127_v14  }
  0x8b   :  { %1076 = vperm.xlu1 %7308, %v8132_v63   ;;  %1071 = vperm.xlu0 %7307, %v8137_v57  }
  0x8c   :  { %v8142_v58 = vpop.permute.xlu2 %916 }
  0x8d   :  { %14582 = vst [vmem:[#allocation20_spill] sm:$0xff] %v8142_v58  ;;  %v8144_v9 = vpop.permute.xlu1 %866  ;;  %v8146_v32 = vpop.permute.xlu0 %861  ;;  %v7169_v58 = vld [vmem:[%s14118_s0 + $0x38] sm:$0xff] }
  0x8e   :  { %14583 = vst [vmem:[#allocation21_spill] sm:$0xff] %v8144_v9  ;;  %v7186_v9 = vld [vmem:[%s14118_s0 + $0xc0] sm:$0xff] }
  0x8f   :  { %14584 = vst [vmem:[#allocation22_spill] sm:$0xff] %v8146_v32 }
  0x92   :  { %1096 = vperm.xlu2 %7309, %v8151_v10   ;;  %v7170_v10 = vld [vmem:[%s14118_s0 + $0x40] sm:$0xff] }
  0x93   :  { %1091 = vperm.xlu1 %7308, %v8156_v53   ;;  %1086 = vperm.xlu0 %7307, %v8161_v59  }
  0x94   :  { %397 = vmatmul.bf16.gmra.mxu0 %v7169_v58  ;;  %482 = vmatmul.bf16.gmra.mxu3 %v7186_v9  ;;  %v8172_v32 = vpop.permute.xlu2 %931  ;;  %v8191_v9 = vld [vmem:[%s14119_s1 + $0x1c8] sm:$0xff] }
  0x95   :  { %14587 = vst [vmem:[#allocation25_spill] sm:$0xff] %v8172_v32  ;;  %v8174_v33 = vpop.permute.xlu1 %881  ;;  %v8176_v15 = vpop.permute.xlu0 %876 }
  0x96   :  { %14588 = vst [vmem:[#allocation26_spill] sm:$0xff] %v8174_v33  ;;  %v8205_v33 = vld [vmem:[%s14119_s1 + $0x1f0] sm:$0xff] }
  0x97   :  { %14589 = vst [vmem:[#allocation27_spill] sm:$0xff] %v8176_v15 }
  0x98   :  { %14592 = vst [vmem:[#allocation30_spill] sm:$0xff] %v8191_v9 }
  0x99   :  { %14596 = vst [vmem:[#allocation34_spill] sm:$0xff] %v8205_v33 }
  0x9a   :  { %1111 = vperm.xlu2 %7309, %v8181_v19   ;;  %v8213_v19 = vld [vmem:[%s14119_s1 + $0x1e8] sm:$0xff] }
  0x9b   :  { %1106 = vperm.xlu1 %7308, %v8186_v40   ;;  %1101 = vperm.xlu0 %7307, %v8191_v9   ;;  %14597 = vst [vmem:[#allocation35_spill] sm:$0xff] %v8213_v19 }
  0x9c   :  { %v8196_v58 = vpop.permute.xlu2 %946 }
  0x9d   :  { %14593 = vst [vmem:[#allocation31_spill] sm:$0xff] %v8196_v58  ;;  %v8198_v32 = vpop.permute.xlu1 %896  ;;  %v8200_v15 = vpop.permute.xlu0 %891  ;;  %v8218_v58 = vld [vmem:[%s14119_s1 + $0x1e0] sm:$0xff] }
  0x9e   :  { %14594 = vst [vmem:[#allocation32_spill] sm:$0xff] %v8198_v32  ;;  %v7187_v32 = vld [vmem:[%s14118_s0 + $0xc8] sm:$0xff] }
  0x9f   :  { %14595 = vst [vmem:[#allocation33_spill] sm:$0xff] %v8200_v15 }
  0xa1   :  { %v8223_v15 = vpop.f32.mrf.mxu0 }
  0xa2   :  { %14598 = vst [vmem:[#allocation36_spill] sm:$0xff] %v8223_v15  ;;  %1126 = vperm.xlu2 %7309, %v8205_v33   ;;  %v8239_v15 = vld [vmem:[%s14119_s1 + $0x1f8] sm:$0xff] }
  0xa3   :  { %1121 = vperm.xlu1 %7308, %v8213_v19   ;;  %1116 = vperm.xlu0 %7307, %v8218_v58   ;;  %v7675_v19 = vmov 1  }
  0xa4   :  { %402 = vmatmul.bf16.gmra.mxu0 %v7170_v10  ;;  %487 = vmatmul.bf16.gmra.mxu3 %v7187_v32  ;;  %v8228_v40 = vpop.permute.xlu2 %961 }
  0xa5   :  { %14599 = vst [vmem:[#allocation37_spill] sm:$0xff] %v8228_v40  ;;  %v8230_v9 = vpop.permute.xlu1 %911  ;;  %v8232_v53 = vpop.permute.xlu0 %906 }
  0xa6   :  { %14600 = vst [vmem:[#allocation38_spill] sm:$0xff] %v8230_v9  ;;  %v7171_v9 = vld [vmem:[%s14118_s0 + $0x48] sm:$0xff] }
  0xa7   :  { %14601 = vst [vmem:[#allocation39_spill] sm:$0xff] %v8232_v53  ;;  %v8234_v14 = vpop.f32.mrf.mxu3 }
  0xa8   :  { %14602 = vst [vmem:[#allocation40_spill] sm:$0xff] %v8234_v14  ;;  %v7188_v14 = vld [vmem:[%s14118_s0 + $0xd0] sm:$0xff] }
  0xa9   :  { %v8241_v33 = vpop.f32.mrf.mxu0 }
  0xaa   :  { %14603 = vst [vmem:[#allocation41_spill] sm:$0xff] %v8241_v33  ;;  %7311 = vset.pattern.permute.xlu2 %v7675_v19 }
  0xab   :  { %7310 = vset.pattern.permute.xlu1 %v7675_v19  ;;  %1131 = vperm.xlu0 %7307, %v8239_v15  }
  0xac   :  { %1251 = vperm.xlu2 %7311, %v7765_v8   ;;  %1247 = vperm.xlu1 %7310, %v7741_v2   ;;  %v8246_v32 = vpop.permute.xlu2 %976 }
  0xad   :  { %14604 = vst [vmem:[#allocation42_spill] sm:$0xff] %v8246_v32  ;;  %v8248_v10 = vpop.permute.xlu1 %926  ;;  %v8250_v40 = vpop.permute.xlu0 %921 }
  0xae   :  { %14605 = vst [vmem:[#allocation43_spill] sm:$0xff] %v8248_v10 }
  0xaf   :  { %14606 = vst [vmem:[#allocation44_spill] sm:$0xff] %v8250_v40  ;;  %v8252_v53 = vpop.f32.mrf.mxu3 }
  0xb0   :  { %14607 = vst [vmem:[#allocation45_spill] sm:$0xff] %v8252_v53 }
  0xb1   :  { %v8260_v33 = vpop.f32.mrf.mxu0 }
  0xb2   :  { %14608 = vst [vmem:[#allocation46_spill] sm:$0xff] %v8260_v33 }
  0xb3   :  { %7312 = vset.pattern.permute.xlu0 %v7675_v19 }
  0xb4   :  { %407 = vmatmul.bf16.gmra.mxu0 %v7171_v9  ;;  %492 = vmatmul.bf16.gmra.mxu3 %v7188_v14  ;;  %v8262_v32 = vpop.permute.xlu2 %991 }
  0xb5   :  { %14609 = vst [vmem:[#allocation47_spill] sm:$0xff] %v8262_v32  ;;  %1263 = vperm.xlu2 %7311, %v7731_v0   ;;  %1259 = vperm.xlu1 %7310, %v7760_v7   ;;  %v8266_v10 = vpop.permute.xlu1 %941  ;;  %v8268_v40 = vpop.permute.xlu0 %936  ;;  %v7172_v32 = vld [vmem:[%s14118_s0 + $0x50] sm:$0xff] }
  0xb6   :  { %14610 = vst [vmem:[#allocation48_spill] sm:$0xff] %v8266_v10  ;;  %1255 = vperm.xlu0 %7312, %v7736_v1  }
  0xb7   :  { %14611 = vst [vmem:[#allocation49_spill] sm:$0xff] %v8268_v40  ;;  %v8271_v53 = vpop.f32.mrf.mxu3 }
  0xb8   :  { %14612 = vst [vmem:[#allocation50_spill] sm:$0xff] %v8271_v53 }
  0xb9   :  { %v8273_v8 = vpop.f32.mrf.mxu0 }
  0xba   :  { %14613 = vst [vmem:[#allocation51_spill] sm:$0xff] %v8273_v8 }
  0xbc   :  { %v8275_v33 = vpop.permute.xlu2 %1006 }
  0xbd   :  { %14614 = vst [vmem:[#allocation52_spill] sm:$0xff] %v8275_v33  ;;  %1271 = vperm.xlu2 %7311, %v7789_v13   ;;  %1267 = vperm.xlu1 %7310, %v7755_v6   ;;  %v8279_v14 = vpop.permute.xlu1 %956  ;;  %v8281_v19 = vpop.permute.xlu0 %951  ;;  %v7189_v33 = vld [vmem:[%s14118_s0 + $0xd8] sm:$0xff] }
  0xbe   :  { %14615 = vst [vmem:[#allocation53_spill] sm:$0xff] %v8279_v14  ;;  %1275 = vperm.xlu0 %7312, %v7784_v12  }
  0xbf   :  { %14616 = vst [vmem:[#allocation54_spill] sm:$0xff] %v8281_v19  ;;  %v8284_v9 = vpop.f32.mrf.mxu3 }
  0xc0   :  { %14617 = vst [vmem:[#allocation55_spill] sm:$0xff] %v8284_v9 }
  0xc1   :  { %v8292_v40 = vpop.f32.mrf.mxu0 }
  0xc2   :  { %14618 = vst [vmem:[#allocation56_spill] sm:$0xff] %v8292_v40 }
  0xc4   :  { %412 = vmatmul.bf16.gmra.mxu0 %v7172_v32  ;;  %497 = vmatmul.bf16.gmra.mxu3 %v7189_v33  ;;  %v8294_v10 = vpop.permute.xlu2 %1021 }
  0xc5   :  { %14619 = vst [vmem:[#allocation57_spill] sm:$0xff] %v8294_v10  ;;  %1283 = vperm.xlu2 %7311, %v7813_v18   ;;  %1279 = vperm.xlu1 %7310, %v7779_v11   ;;  %v8298_v14 = vpop.permute.xlu1 %971  ;;  %v8300_v19 = vpop.permute.xlu0 %966 }
  0xc6   :  { %14620 = vst [vmem:[#allocation58_spill] sm:$0xff] %v8298_v14  ;;  %1287 = vperm.xlu0 %7312, %v7808_v17  }
  0xc7   :  { %14621 = vst [vmem:[#allocation59_spill] sm:$0xff] %v8300_v19  ;;  %v8303_v9 = vpop.f32.mrf.mxu3  ;;  %v7173_v19 = vld [vmem:[%s14118_s0 + $0x58] sm:$0xff] }
  0xc8   :  { %14622 = vst [vmem:[#allocation60_spill] sm:$0xff] %v8303_v9 }
  0xc9   :  { %v8305_v53 = vpop.f32.mrf.mxu0 }
  0xca   :  { %14623 = vst [vmem:[#allocation61_spill] sm:$0xff] %v8305_v53 }
  0xcc   :  { %v8307_v8 = vpop.permute.xlu2 %1036 }
  0xcd   :  { %14624 = vst [vmem:[#allocation62_spill] sm:$0xff] %v8307_v8  ;;  %1295 = vperm.xlu2 %7311, %v7837_v23   ;;  %1291 = vperm.xlu1 %7310, %v7803_v16   ;;  %v8311_v33 = vpop.permute.xlu1 %986  ;;  %v8313_v32 = vpop.permute.xlu0 %981  ;;  %v7190_v8 = vld [vmem:[%s14118_s0 + $0xe0] sm:$0xff] }
  0xce   :  { %14625 = vst [vmem:[#allocation63_spill] sm:$0xff] %v8311_v33  ;;  %1299 = vperm.xlu0 %7312, %v7832_v22  }
  0xcf   :  { %14626 = vst [vmem:[#allocation64_spill] sm:$0xff] %v8313_v32  ;;  %v8316_v10 = vpop.f32.mrf.mxu3 }
  0xd0   :  { %14627 = vst [vmem:[#allocation65_spill] sm:$0xff] %v8316_v10 }
  0xd1   :  { %v8324_v14 = vpop.f32.mrf.mxu0 }
  0xd2   :  { %14628 = vst [vmem:[#allocation66_spill] sm:$0xff] %v8324_v14 }
  0xd4   :  { %417 = vmatmul.bf16.gmra.mxu0 %v7173_v19  ;;  %502 = vmatmul.bf16.gmra.mxu3 %v7190_v8  ;;  %v8326_v9 = vpop.permute.xlu2 %1051 }
  0xd5   :  { %14629 = vst [vmem:[#allocation67_spill] sm:$0xff] %v8326_v9  ;;  %1307 = vperm.xlu2 %7311, %v7861_v28   ;;  %1303 = vperm.xlu1 %7310, %v7827_v21   ;;  %v8330_v33 = vpop.permute.xlu1 %1001  ;;  %v8332_v32 = vpop.permute.xlu0 %996 }
  0xd6   :  { %14630 = vst [vmem:[#allocation68_spill] sm:$0xff] %v8330_v33  ;;  %1311 = vperm.xlu0 %7312, %v7856_v27   ;;  %v7174_v33 = vld [vmem:[%s14118_s0 + $0x60] sm:$0xff] }
  0xd7   :  { %14631 = vst [vmem:[#allocation69_spill] sm:$0xff] %v8332_v32  ;;  %v8335_v10 = vpop.f32.mrf.mxu3 }
  0xd8   :  { %14632 = vst [vmem:[#allocation70_spill] sm:$0xff] %v8335_v10 }
  0xd9   :  { %v8337_v40 = vpop.f32.mrf.mxu0 }
  0xda   :  { %14633 = vst [vmem:[#allocation71_spill] sm:$0xff] %v8337_v40 }
  0xdc   :  { %v8339_v53 = vpop.permute.xlu2 %1066 }
  0xdd   :  { %14634 = vst [vmem:[#allocation72_spill] sm:$0xff] %v8339_v53  ;;  %1319 = vperm.xlu2 %7311, %v7879_v31   ;;  %1315 = vperm.xlu1 %7310, %v7851_v26   ;;  %v8343_v8 = vpop.permute.xlu1 %1016  ;;  %v8345_v19 = vpop.permute.xlu0 %1011  ;;  %v7191_v53 = vld [vmem:[%s14118_s0 + $0xe8] sm:$0xff] }
  0xde   :  { %14635 = vst [vmem:[#allocation73_spill] sm:$0xff] %v8343_v8  ;;  %1323 = vperm.xlu0 %7312, %v7874_v30  }
  0xdf   :  { %14636 = vst [vmem:[#allocation74_spill] sm:$0xff] %v8345_v19  ;;  %v8348_v9 = vpop.f32.mrf.mxu3 }
  0xe0   :  { %14637 = vst [vmem:[#allocation75_spill] sm:$0xff] %v8348_v9 }
  0xe1   :  { %v8356_v32 = vpop.f32.mrf.mxu0 }
  0xe2   :  { %14638 = vst [vmem:[#allocation76_spill] sm:$0xff] %v8356_v32 }
  0xe4   :  { %422 = vmatmul.bf16.gmra.mxu0 %v7174_v33  ;;  %507 = vmatmul.bf16.gmra.mxu3 %v7191_v53  ;;  %v8358_v10 = vpop.permute.xlu2 %1081 }
  0xe5   :  { %14639 = vst [vmem:[#allocation77_spill] sm:$0xff] %v8358_v10  ;;  %1331 = vperm.xlu2 %7311, %v7903_v36   ;;  %1327 = vperm.xlu1 %7310, %v7869_v29   ;;  %v8362_v8 = vpop.permute.xlu1 %1031  ;;  %v8364_v19 = vpop.permute.xlu0 %1026 }
  0xe6   :  { %14640 = vst [vmem:[#allocation78_spill] sm:$0xff] %v8362_v8  ;;  %1335 = vperm.xlu0 %7312, %v7898_v35  }
  0xe7   :  { %14641 = vst [vmem:[#allocation79_spill] sm:$0xff] %v8364_v19  ;;  %v8367_v9 = vpop.f32.mrf.mxu3  ;;  %v7175_v19 = vld [vmem:[%s14118_s0 + $0x68] sm:$0xff] }
  0xe8   :  { %14642 = vst [vmem:[#allocation80_spill] sm:$0xff] %v8367_v9 }
  0xe9   :  { %v8369_v40 = vpop.f32.mrf.mxu0 }
  0xea   :  { %14643 = vst [vmem:[#allocation81_spill] sm:$0xff] %v8369_v40 }
  0xec   :  { %v8371_v14 = vpop.permute.xlu2 %1096 }
  0xed   :  { %14644 = vst [vmem:[#allocation82_spill] sm:$0xff] %v8371_v14  ;;  %1343 = vperm.xlu2 %7311, %v7921_v39   ;;  %1339 = vperm.xlu1 %7310, %v7893_v34   ;;  %v8375_v53 = vpop.permute.xlu1 %1046  ;;  %v8377_v33 = vpop.permute.xlu0 %1041  ;;  %v7192_v14 = vld [vmem:[%s14118_s0 + $0xf0] sm:$0xff] }
  0xee   :  { %14645 = vst [vmem:[#allocation83_spill] sm:$0xff] %v8375_v53  ;;  %1347 = vperm.xlu0 %7312, %v7916_v38  }
  0xef   :  { %14646 = vst [vmem:[#allocation84_spill] sm:$0xff] %v8377_v33  ;;  %v8380_v10 = vpop.f32.mrf.mxu3 }
  0xf0   :  { %14647 = vst [vmem:[#allocation85_spill] sm:$0xff] %v8380_v10 }
  0xf1   :  { %v8388_v8 = vpop.f32.mrf.mxu0 }
  0xf2   :  { %14648 = vst [vmem:[#allocation86_spill] sm:$0xff] %v8388_v8 }
  0xf4   :  { %427 = vmatmul.bf16.gmra.mxu0 %v7175_v19  ;;  %512 = vmatmul.bf16.gmra.mxu3 %v7192_v14  ;;  %v8390_v9 = vpop.permute.xlu2 %1111 }
  0xf5   :  { %14649 = vst [vmem:[#allocation87_spill] sm:$0xff] %v8390_v9  ;;  %1355 = vperm.xlu2 %7311, %v7945_v44   ;;  %1351 = vperm.xlu1 %7310, %v7911_v37   ;;  %v8394_v53 = vpop.permute.xlu1 %1061  ;;  %v8396_v33 = vpop.permute.xlu0 %1056 }
  0xf6   :  { %14650 = vst [vmem:[#allocation88_spill] sm:$0xff] %v8394_v53  ;;  %1359 = vperm.xlu0 %7312, %v7940_v43  }
  0xf7   :  { %14651 = vst [vmem:[#allocation89_spill] sm:$0xff] %v8396_v33  ;;  %v8399_v10 = vpop.f32.mrf.mxu3  ;;  %v7176_v33 = vld [vmem:[%s14118_s0 + $0x70] sm:$0xff] }
  0xf8   :  { %14652 = vst [vmem:[#allocation90_spill] sm:$0xff] %v8399_v10 }
  0xf9   :  { %v8401_v32 = vpop.f32.mrf.mxu0 }
  0xfa   :  { %14653 = vst [vmem:[#allocation91_spill] sm:$0xff] %v8401_v32 }
  0xfc   :  { %v8403_v40 = vpop.permute.xlu2 %1126 }
  0xfd   :  { %14654 = vst [vmem:[#allocation92_spill] sm:$0xff] %v8403_v40  ;;  %1367 = vperm.xlu2 %7311, %v7963_v47   ;;  %1363 = vperm.xlu1 %7310, %v7935_v42   ;;  %v8407_v14 = vpop.permute.xlu1 %1076  ;;  %v8409_v19 = vpop.permute.xlu0 %1071  ;;  %v7193_v40 = vld [vmem:[%s14118_s0 + $0xf8] sm:$0xff] }
  0xfe   :  { %14655 = vst [vmem:[#allocation93_spill] sm:$0xff] %v8407_v14  ;;  %1371 = vperm.xlu0 %7312, %v7958_v46  }
  0xff   :  { %14656 = vst [vmem:[#allocation94_spill] sm:$0xff] %v8409_v19  ;;  %v8412_v9 = vpop.f32.mrf.mxu3 }
 0x100   :  { %14657 = vst [vmem:[#allocation95_spill] sm:$0xff] %v8412_v9 }
 0x101   :  { %v8420_v53 = vpop.f32.mrf.mxu0 }
 0x102   :  { %14658 = vst [vmem:[#allocation96_spill] sm:$0xff] %v8420_v53 }
 0x104   :  { %432 = vmatmul.bf16.gmra.mxu0 %v7176_v33  ;;  %517 = vmatmul.bf16.gmra.mxu3 %v7193_v40 }
 0x105   :  { %1379 = vperm.xlu2 %7311, %v7987_v52   ;;  %1375 = vperm.xlu1 %7310, %v7953_v45   ;;  %v8424_v14 = vpop.permute.xlu1 %1091  ;;  %v8426_v19 = vpop.permute.xlu0 %1086 }
 0x106   :  { %14659 = vst [vmem:[#allocation97_spill] sm:$0xff] %v8424_v14  ;;  %1383 = vperm.xlu0 %7312, %v7982_v51   ;;  %v8429_v10 = vpop.permute.xlu2 %1251 }
 0x107   :  { %14660 = vst [vmem:[#allocation98_spill] sm:$0xff] %v8426_v19  ;;  %v8431_v9 = vpop.f32.mrf.mxu3 }
 0x108   :  { %14661 = vst [vmem:[#allocation99_spill] sm:$0xff] %v8431_v9  ;;  %v7177_v9 = vld [vmem:[%s14118_s0 + $0x78] sm:$0xff] }
 0x109   :  { %v8433_v8 = vpop.f32.mrf.mxu0 }
 0x10a   :  { %14662 = vst [vmem:[#allocation100_spill] sm:$0xff] %v8433_v8 }
 0x10d   :  { %1391 = vperm.xlu2 %7311, %v8007_v56   ;;  %1387 = vperm.xlu1 %7310, %v7977_v50   ;;  %v8437_v40 = vpop.permute.xlu1 %1106  ;;  %v8439_v33 = vpop.permute.xlu0 %1101 }
 0x10e   :  { %14663 = vst [vmem:[#allocation101_spill] sm:$0xff] %v8437_v40  ;;  %1395 = vperm.xlu0 %7312, %v8002_v55  }
 0x10f   :  { %14664 = vst [vmem:[#allocation102_spill] sm:$0xff] %v8439_v33  ;;  %v8442_v14 = vpop.permute.xlu2 %1263  ;;  %v8444_v19 = vpop.f32.mrf.mxu3 }
 0x110   :  { %14665 = vst [vmem:[#allocation103_spill] sm:$0xff] %v8444_v19 }
 0x111   :  { %v8449_v53 = vpop.f32.mrf.mxu0 }
 0x112   :  { %14666 = vst [vmem:[#allocation104_spill] sm:$0xff] %v8449_v53 }
 0x114   :  { %437 = vmatmul.bf16.gmra.mxu0 %v7177_v9 }
 0x115   :  { %1403 = vperm.xlu2 %7311, %v8033_v62   ;;  %1399 = vperm.xlu1 %7310, %v7997_v54   ;;  %v8453_v40 = vpop.permute.xlu1 %1121  ;;  %v8455_v33 = vpop.permute.xlu0 %1116 }
 0x116   :  { %14667 = vst [vmem:[#allocation105_spill] sm:$0xff] %v8453_v40  ;;  %1407 = vperm.xlu0 %7312, %v8028_v61  }
 0x117   :  { %14668 = vst [vmem:[#allocation106_spill] sm:$0xff] %v8455_v33  ;;  %v8458_v8 = vpop.permute.xlu2 %1271  ;;  %v8460_v19 = vpop.f32.mrf.mxu3 }
 0x118   :  { %14669 = vst [vmem:[#allocation107_spill] sm:$0xff] %v8460_v19  ;;  %v7178_v19 = vld [vmem:[%s14118_s0 + $0x80] sm:$0xff] }
 0x119   :  { %v8462_v32 = vpop.f32.mrf.mxu0 }
 0x11a   :  { %14670 = vst [vmem:[#allocation108_spill] sm:$0xff] %v8462_v32 }
 0x11d   :  { %1415 = vperm.xlu2 %7311, %v8053_v5   ;;  %1411 = vperm.xlu1 %7310, %v8023_v60   ;;  %v8467_v9 = vpop.permute.xlu0 %1131 }
 0x11e   :  { %1419 = vperm.xlu0 %7312, %v8048_v4   ;;  %14671 = vst [vmem:[#allocation109_spill] sm:$0xff] %v8467_v9  ;;  %v8469_v53 = vpop.permute.xlu1 %1247 }
 0x11f   :  { %v8471_v40 = vpop.permute.xlu2 %1283  ;;  %v8473_v33 = vpop.f32.mrf.mxu3 }
 0x120   :  { %14672 = vst [vmem:[#allocation110_spill] sm:$0xff] %v8471_v40 }
 0x121   :  { %14673 = vst [vmem:[#allocation111_spill] sm:$0xff] %v8473_v33  ;;  %v8478_v62 = vpop.f32.mrf.mxu0 }
 0x122   :  { %14674 = vst [vmem:[#allocation112_spill] sm:$0xff] %v8478_v62 }
 0x124   :  { %442 = vmatmul.bf16.gmra.mxu0 %v7178_v19 }
 0x125   :  { %1427 = vperm.xlu2 %7311, %v8083_v25   ;;  %1423 = vperm.xlu1 %7310, %v8043_v3  }
 0x126   :  { %1431 = vperm.xlu0 %7312, %v8078_v24  }
 0x127   :  { %v8483_v4 = vpop.permute.xlu2 %1295  ;;  %v8485_v5 = vpop.permute.xlu1 %1259 }
 0x128   :  { %14675 = vst [vmem:[#allocation113_spill] sm:$0xff] %v8483_v4  ;;  %v8487_v9 = vpop.permute.xlu0 %1255  ;;  %v8489_v33 = vpop.f32.mrf.mxu3 }
 0x129   :  { %14676 = vst [vmem:[#allocation114_spill] sm:$0xff] %v8489_v33  ;;  %v8491_v32 = vpop.f32.mrf.mxu0 }
 0x12a   :  { %14677 = vst [vmem:[#allocation115_spill] sm:$0xff] %v8491_v32 }
 0x12d   :  { %1439 = vperm.xlu2 %7311, %v8107_v49   ;;  %1435 = vperm.xlu1 %7310, %v8073_v20  }
 0x12e   :  { %1443 = vperm.xlu0 %7312, %v8102_v48  }
 0x12f   :  { %v8496_v25 = vpop.permute.xlu2 %1307  ;;  %v8498_v19 = vpop.permute.xlu1 %1267 }
 0x130   :  { %14678 = vst [vmem:[#allocation116_spill] sm:$0xff] %v8496_v25  ;;  %v8500_v24 = vpop.permute.xlu0 %1275  ;;  %v8502_v62 = vpop.f32.mrf.mxu3 }
 0x131   :  { %14679 = vst [vmem:[#allocation117_spill] sm:$0xff] %v8502_v62  ;;  %v8504_v4 = vpop.f32.mrf.mxu0  ;;  %v14685_v62 = vld [vmem:[#allocation19_spill] sm:$0xff] }
 0x132   :  { %14680 = vst [vmem:[#allocation118_spill] sm:$0xff] %v8504_v4  ;;  %v14686_v4 = vld [vmem:[#allocation24_spill] sm:$0xff] }
 0x135   :  { %1451 = vperm.xlu2 %7311, %v8137_v57   ;;  %1447 = vperm.xlu1 %7310, %v8097_v41  }
 0x136   :  { %1455 = vperm.xlu0 %7312, %v8132_v63  }
 0x137   :  { %v8509_v49 = vpop.permute.xlu2 %1319  ;;  %v8511_v33 = vpop.permute.xlu1 %1279 }
 0x138   :  { %14681 = vst [vmem:[#allocation119_spill] sm:$0xff] %v8509_v49  ;;  %v8513_v48 = vpop.permute.xlu0 %1287  ;;  %v8515_v32 = vpop.f32.mrf.mxu3 }
 0x139   :  { %14682 = vst [vmem:[#allocation120_spill] sm:$0xff] %v8513_v48  ;;  %v8517_v25 = vpop.f32.mrf.mxu0  ;;  %v14691_v48 = vld [vmem:[#allocation30_spill] sm:$0xff] }
 0x13a   :  { %14683 = vst [vmem:[#allocation121_spill] sm:$0xff] %v8515_v32  ;;  %v14692_v32 = vld [vmem:[#allocation23_spill] sm:$0xff] }
 0x13b   :  { %14684 = vst [vmem:[#allocation122_spill] sm:$0xff] %v8517_v25  ;;  %v14693_v25 = vld [vmem:[#allocation29_spill] sm:$0xff] }
 0x13d   :  { %1463 = vperm.xlu2 %7311, %v8161_v59   ;;  %1459 = vperm.xlu1 %7310, %v14685_v62  }
 0x13e   :  { %1467 = vperm.xlu0 %7312, %v14686_v4  }
 0x13f   :  { %v8522_v57 = vpop.permute.xlu2 %1331  ;;  %v8524_v41 = vpop.permute.xlu1 %1291 }
 0x140   :  { %14687 = vst [vmem:[#allocation19_spill] sm:$0xff] %v8522_v57  ;;  %v8526_v63 = vpop.permute.xlu0 %1299  ;;  %v8528_v49 = vpop.f32.mrf.mxu3 }
 0x141   :  { %14688 = vst [vmem:[#allocation24_spill] sm:$0xff] %v8524_v41  ;;  %v8530_v40 = vpop.f32.mrf.mxu0 }
 0x142   :  { %14689 = vst [vmem:[#allocation123_spill] sm:$0xff] %v8528_v49  ;;  %v14698_v49 = vld [vmem:[#allocation28_spill] sm:$0xff] }
 0x143   :  { %14690 = vst [vmem:[#allocation124_spill] sm:$0xff] %v8530_v40  ;;  %v14699_v40 = vld [vmem:[#allocation35_spill] sm:$0xff] }
 0x145   :  { %1475 = vperm.xlu2 %7311, %v14691_v48   ;;  %1471 = vperm.xlu1 %7310, %v14692_v32  }
 0x146   :  { %1479 = vperm.xlu0 %7312, %v14693_v25  }
 0x147   :  { %v8535_v59 = vpop.permute.xlu2 %1343  ;;  %v8537_v62 = vpop.permute.xlu1 %1303 }
 0x148   :  { %14694 = vst [vmem:[#allocation30_spill] sm:$0xff] %v8535_v59  ;;  %v8539_v4 = vpop.permute.xlu0 %1311  ;;  %v8541_v57 = vpop.f32.mrf.mxu3 }
 0x149   :  { %14695 = vst [vmem:[#allocation23_spill] sm:$0xff] %v8537_v62  ;;  %v8543_v41 = vpop.f32.mrf.mxu0 }
 0x14a   :  { %14696 = vst [vmem:[#allocation29_spill] sm:$0xff] %v8541_v57  ;;  %v14703_v57 = vld [vmem:[#allocation34_spill] sm:$0xff] }
 0x14b   :  { %14697 = vst [vmem:[#allocation125_spill] sm:$0xff] %v8543_v41  ;;  %v7676_v41 = vmov 2  }
 0x14d   :  { %1487 = vperm.xlu2 %7311, %v8218_v58   ;;  %1483 = vperm.xlu1 %7310, %v14698_v49  }
 0x14e   :  { %1491 = vperm.xlu0 %7312, %v14699_v40  }
 0x14f   :  { %v8548_v48 = vpop.permute.xlu2 %1355  ;;  %v8550_v32 = vpop.permute.xlu1 %1315 }
 0x150   :  { %14700 = vst [vmem:[#allocation28_spill] sm:$0xff] %v8548_v48  ;;  %v8552_v25 = vpop.permute.xlu0 %1323  ;;  %v8554_v59 = vpop.f32.mrf.mxu3 }
 0x151   :  { %14701 = vst [vmem:[#allocation35_spill] sm:$0xff] %v8554_v59  ;;  %v8556_v62 = vpop.f32.mrf.mxu0  ;;  %v7217_v59 = vld [vmem:[%s14122_s4 + $0x78] sm:$0xff] }
 0x152   :  { %14702 = vst [vmem:[#allocation126_spill] sm:$0xff] %v8556_v62  ;;  %1662 = vmatpush.bf16.msra.mxu1 %v7217_v59  ;;  %7290 = vmatpush.bf16.msra.mxu2 %v7217_v59 }
 0x155   :  { %1499 = vperm.xlu2 %7311, %v8239_v15   ;;  %1495 = vperm.xlu1 %7310, %v14703_v57   ;;  %v14707_v15 = vld [vmem:[#allocation5_spill] sm:$0xff] }
 0x156   :  { %7313 = vset.pattern.permute.xlu0 %v7676_v41 }
 0x157   :  { %2178 = vperm.xlu0 %7313, %v7741_v2   ;;  %v8561_v58 = vpop.permute.xlu2 %1367  ;;  %v8563_v40 = vpop.permute.xlu1 %1327  ;;  %v7216_v2 = vld [vmem:[%s14122_s4 + $0x70] sm:$0xff] }
 0x158   :  { %14704 = vst [vmem:[#allocation34_spill] sm:$0xff] %v8561_v58  ;;  %v8565_v49 = vpop.permute.xlu0 %1335  ;;  %v8567_v48 = vpop.f32.mrf.mxu3  ;;  %1663 = vmatpush.bf16.msra.mxu1 %v7216_v2  ;;  %7291 = vmatpush.bf16.msra.mxu2 %v7216_v2 }
 0x159   :  { %14705 = vst [vmem:[#allocation127_spill] sm:$0xff] %v8567_v48  ;;  %v8572_v62 = vpop.f32.mrf.mxu0 }
 0x15a   :  { %14706 = vst [vmem:[#allocation128_spill] sm:$0xff] %v8572_v62  ;;  %v7215_v62 = vld [vmem:[%s14122_s4 + $0x68] sm:$0xff] }
 0x15c   :  { %1664 = vmatpush.bf16.msra.mxu1 %v7215_v62  ;;  %7292 = vmatpush.bf16.msra.mxu2 %v7215_v62 }
 0x15d   :  { %7315 = vset.pattern.permute.xlu2 %v7676_v41  ;;  %7314 = vset.pattern.permute.xlu1 %v7676_v41 }
 0x15e   :  { %2186 = vperm.xlu2 %7315, %v7736_v1   ;;  %2182 = vperm.xlu1 %7314, %v14707_v15   ;;  %v7214_v1 = vld [vmem:[%s14122_s4 + $0x60] sm:$0xff] }
 0x15f   :  { %2198 = vperm.xlu0 %7313, %v7755_v6   ;;  %v8580_v57 = vpop.permute.xlu2 %1379  ;;  %v8582_v58 = vpop.permute.xlu1 %1339 }
 0x160   :  { %14708 = vst [vmem:[#allocation5_spill] sm:$0xff] %v8580_v57  ;;  %v8584_v48 = vpop.permute.xlu0 %1347  ;;  %v8586_v59 = vpop.f32.mrf.mxu3  ;;  %1665 = vmatpush.bf16.msra.mxu1 %v7214_v1  ;;  %7293 = vmatpush.bf16.msra.mxu2 %v7214_v1 }
 0x161   :  { %14709 = vst [vmem:[#allocation129_spill] sm:$0xff] %v8586_v59  ;;  %v8591_v41 = vpop.f32.mrf.mxu0  ;;  %v7213_v59 = vld [vmem:[%s14122_s4 + $0x58] sm:$0xff] }
 0x162   :  { %14710 = vst [vmem:[#allocation130_spill] sm:$0xff] %v8591_v41 }
 0x164   :  { %1666 = vmatpush.bf16.msra.mxu1 %v7213_v59  ;;  %7294 = vmatpush.bf16.msra.mxu2 %v7213_v59 }
 0x166   :  { %2194 = vperm.xlu2 %7315, %v7731_v0   ;;  %2190 = vperm.xlu1 %7314, %v7760_v7   ;;  %v7212_v0 = vld [vmem:[%s14122_s4 + $0x50] sm:$0xff] }
 0x167   :  { %2210 = vperm.xlu0 %7313, %v7779_v11   ;;  %v8599_v6 = vpop.permute.xlu2 %1391  ;;  %v8601_v15 = vpop.permute.xlu1 %1351 }
 0x168   :  { %14711 = vst [vmem:[#allocation131_spill] sm:$0xff] %v8601_v15  ;;  %v8603_v2 = vpop.permute.xlu0 %1359  ;;  %v8605_v57 = vpop.f32.mrf.mxu3  ;;  %1667 = vmatpush.bf16.msra.mxu1 %v7212_v0  ;;  %7295 = vmatpush.bf16.msra.mxu2 %v7212_v0 }
 0x169   :  { %14712 = vst [vmem:[#allocation132_spill] sm:$0xff] %v8603_v2  ;;  %v8610_v62 = vpop.f32.mrf.mxu0  ;;  %v7211_v2 = vld [vmem:[%s14122_s4 + $0x48] sm:$0xff] }
 0x16a   :  { %14713 = vst [vmem:[#allocation133_spill] sm:$0xff] %v8605_v57 }
 0x16c   :  { %1668 = vmatpush.bf16.msra.mxu1 %v7211_v2  ;;  %7296 = vmatpush.bf16.msra.mxu2 %v7211_v2 }
 0x16e   :  { %2206 = vperm.xlu2 %7315, %v7784_v12   ;;  %2202 = vperm.xlu1 %7314, %v7789_v13   ;;  %v7210_v12 = vld [vmem:[%s14122_s4 + $0x40] sm:$0xff] }
 0x16f   :  { %2222 = vperm.xlu0 %7313, %v7803_v16   ;;  %v8618_v7 = vpop.permute.xlu2 %1403  ;;  %v8620_v11 = vpop.permute.xlu1 %1363 }
 0x170   :  { %14714 = vst [vmem:[#allocation134_spill] sm:$0xff] %v8620_v11  ;;  %v8622_v1 = vpop.permute.xlu0 %1371  ;;  %v8624_v57 = vpop.f32.mrf.mxu3  ;;  %1669 = vmatpush.bf16.msra.mxu1 %v7210_v12  ;;  %7297 = vmatpush.bf16.msra.mxu2 %v7210_v12 }
 0x171   :  { %14715 = vst [vmem:[#allocation135_spill] sm:$0xff] %v8622_v1  ;;  %v8629_v59 = vpop.f32.mrf.mxu0 }
 0x172   :  { %14716 = vst [vmem:[#allocation136_spill] sm:$0xff] %v8624_v57 }
 0x173   :  { %14717 = vst [vmem:[#allocation137_spill] sm:$0xff] %v8629_v59 }
 0x176   :  { %2218 = vperm.xlu2 %7315, %v7808_v17   ;;  %2214 = vperm.xlu1 %7314, %v7813_v18   ;;  %v7233_v17 = vld [vmem:[%s14122_s4 + $0xf8] sm:$0xff] }
 0x177   :  { %2234 = vperm.xlu0 %7313, %v7827_v21   ;;  %v8637_v13 = vpop.permute.xlu2 %1415  ;;  %v8639_v16 = vpop.permute.xlu1 %1375  ;;  %v7241_v18 = vld [vmem:[%s14122_s4 + $0x138] sm:$0xff]  ;;  %3242 = vmatpush.bf16.msrb.mxu0 %v7233_v17 }
 0x178   :  { %14718 = vst [vmem:[#allocation138_spill] sm:$0xff] %v8639_v16  ;;  %v8641_v0 = vpop.permute.xlu0 %1383  ;;  %v8643_v1 = vpop.f32.mrf.mxu3  ;;  %3539 = vmatpush.bf16.msrb.mxu1 %v7241_v18  ;;  %v8680_v18 = vld [vmem:[%s14121_s3] ss:$0 sm:$0xff] }
 0x179   :  { %14719 = vst [vmem:[#allocation139_spill] sm:$0xff] %v8643_v1  ;;  %v8645_v57 = vpop.f32.mrf.mxu0 }
 0x17a   :  { %14720 = vst [vmem:[#allocation140_spill] sm:$0xff] %v8645_v57 }
 0x17e   :  { %2230 = vperm.xlu2 %7315, %v7832_v22   ;;  %2226 = vperm.xlu1 %7314, %v7837_v23  }
 0x17f   :  { %2246 = vperm.xlu0 %7313, %v7851_v26   ;;  %v8656_v21 = vpop.permute.xlu2 %1427  ;;  %v8658_v2 = vpop.permute.xlu1 %1387 }
 0x180   :  { %v8660_v12 = vpop.permute.xlu0 %1395  ;;  %v8662_v16 = vpop.f32.mrf.mxu3 }
 0x181   :  { %14721 = vst [vmem:[#allocation141_spill] sm:$0xff] %v8662_v16  ;;  %v8664_v1 = vpop.f32.mrf.mxu0 }
 0x182   :  { %14722 = vst [vmem:[#allocation142_spill] sm:$0xff] %v8664_v1 }
 0x186   :  { %2242 = vperm.xlu2 %7315, %v7856_v27   ;;  %2238 = vperm.xlu1 %7314, %v7861_v28  }
 0x187   :  { %2258 = vperm.xlu0 %7313, %v7869_v29   ;;  %v8669_v22 = vpop.permute.xlu2 %1439  ;;  %v8671_v23 = vpop.permute.xlu1 %1399 }
 0x188   :  { %v8673_v26 = vpop.permute.xlu0 %1407  ;;  %v518_v17 = vpop.f32.mrf.mxu3 }
 0x189   :  { %v8675_v11 = vpop.f32.mrf.mxu0  ;;  %v519_v27 = vadd.f32 %v8680_v18, %v518_v17 }
 0x18a   :  { %14723 = vst [vmem:[#allocation143_spill] sm:$0xff] %v8675_v11 }
 0x18b   :  { %v8692_v11 = vmax.f32 %v519_v27, 0.0 }
 0x18d   :  { %14724 = vst [vmem:[#allocation144_spill] sm:$0xff] %v8692_v11  ;;  %v1502_v17 = vmul.f32 %v8469_v53, %v8692_v11  ;;  %v14729_v53 = vld [vmem:[#allocation41_spill] sm:$0xff] }
 0x18e   :  { %2254 = vperm.xlu2 %7315, %v7874_v30   ;;  %2250 = vperm.xlu1 %7314, %v7879_v31   ;;  %v7209_v30 = vld [vmem:[%s14122_s4 + $0x38] sm:$0xff] }
 0x18f   :  { %2270 = vperm.xlu0 %7313, %v7893_v34   ;;  %v8686_v28 = vpop.permute.xlu2 %1451  ;;  %v8688_v29 = vpop.permute.xlu1 %1411  ;;  %v7225_v31 = vld [vmem:[%s14122_s4 + $0xb8] sm:$0xff]  ;;  %1879 = vmatpush.bf16.msrb.mxu2 %v7209_v30 }
 0x190   :  { %v8690_v16 = vpop.permute.xlu0 %1419  ;;  %v520_v1 = vpop.f32.mrf.mxu3  ;;  %2593 = vmatpush.bf16.msrb.mxu3 %v7225_v31  ;;  %v7223_v31 = vld [vmem:[%s14122_s4 + $0xa8] sm:$0xff] }
 0x191   :  { %v521_v59 = vadd.f32 %v8680_v18, %v520_v1  ;;  %v8695_v57 = vpop.f32.mrf.mxu0 }
 0x192   :  { %14725 = vst [vmem:[#allocation145_spill] sm:$0xff] %v8695_v57 }
 0x193   :  { %v8703_v34 = vmax.f32 %v521_v59, 0.0 }
 0x195   :  { %14726 = vst [vmem:[#allocation146_spill] sm:$0xff] %v8703_v34  ;;  %v1503_v1 = vmul.f32 %v8429_v10, %v8703_v34  ;;  %v7224_v10 = vld [vmem:[%s14122_s4 + $0xb0] sm:$0xff] }
 0x196   :  { %2266 = vperm.xlu2 %7315, %v7898_v35   ;;  %2262 = vperm.xlu1 %7314, %v7903_v36   ;;  %v14728_v35 = vld [vmem:[#allocation36_spill] sm:$0xff] }
 0x197   :  { %2282 = vperm.xlu0 %7313, %v7911_v37   ;;  %v8712_v27 = vpop.permute.xlu2 %1463  ;;  %v8714_v57 = vpop.permute.xlu1 %1423  ;;  %v1566_v59 = vpack.c.bf16 %v1503_v1, %v1502_v17  ;;  %2594 = vmatpush.bf16.msrb.mxu3 %v7224_v10  ;;  %v364_v36 = vadd.f32 %v8680_v18, %v14728_v35  ;;  %v366_v37 = vadd.f32 %v8680_v18, %v14729_v53 }
 0x198   :  { %v8716_v15 = vpop.permute.xlu0 %1431 }
 0x199   :  { %1670 = vmatmul.bf16.vlgmr.msra.gmra.mxu1 %v1566_v59  ;;  %v8718_v30 = vpop.f32.mrf.mxu0  ;;  %v7232_v59 = vld [vmem:[%s14122_s4 + $0xf0] sm:$0xff] }
 0x19a   :  { %14727 = vst [vmem:[#allocation147_spill] sm:$0xff] %v8718_v30  ;;  %3243 = vmatpush.bf16.msrb.mxu0 %v7232_v59 }
 0x19b   :  { %2595 = vmatpush.bf16.msrb.mxu3 %v7223_v31  ;;  %v7240_v31 = vld [vmem:[%s14122_s4 + $0x130] sm:$0xff] }
 0x19c   :  { %3540 = vmatpush.bf16.msrb.mxu1 %v7240_v31 }
 0x19e   :  { %2278 = vperm.xlu2 %7315, %v7916_v38   ;;  %2274 = vperm.xlu1 %7314, %v7921_v39   ;;  %v8742_v38 = vmax.f32 %v364_v36, 0.0  ;;  %v8744_v39 = vmax.f32 %v366_v37, 0.0  ;;  %v7221_v37 = vld [vmem:[%s14122_s4 + $0x98] sm:$0xff] }
 0x19f   :  { %2294 = vperm.xlu0 %7313, %v7935_v42   ;;  %v8733_v17 = vpop.permute.xlu2 %1475  ;;  %v8735_v1 = vpop.permute.xlu1 %1435  ;;  %v7222_v42 = vld [vmem:[%s14122_s4 + $0xa0] sm:$0xff] }
 0x1a0   :  { %v8740_v10 = vpop.permute.xlu0 %1443  ;;  %14730 = vst [vmem:[#allocation36_spill] sm:$0xff] %v8742_v38  ;;  %v1505_v53 = vmul.f32 %v8485_v5, %v8744_v39  ;;  %v1504_v30 = vmul.f32 %v8487_v9, %v8742_v38  ;;  %2596 = vmatpush.bf16.msrb.mxu3 %v7222_v42 }
 0x1a1   :  { %14731 = vst [vmem:[#allocation41_spill] sm:$0xff] %v8744_v39  ;;  %v443_v35 = vpop.f32.mrf.mxu0 }
 0x1a2   :  { %v444_v36 = vadd.f32 %v8680_v18, %v443_v35  ;;  %v1567_v59 = vpack.c.bf16 %v1505_v53, %v1504_v30 }
 0x1a4   :  { %2597 = vmatpush.bf16.msrb.mxu3 %v7221_v37  ;;  %v8769_v42 = vmax.f32 %v444_v36, 0.0  ;;  %v7219_v36 = vld [vmem:[%s14122_s4 + $0x88] sm:$0xff] }
 0x1a5   :  { %v14736_v37 = vld [vmem:[#allocation46_spill] sm:$0xff] }
 0x1a6   :  { %2290 = vperm.xlu2 %7315, %v7940_v43   ;;  %2286 = vperm.xlu1 %7314, %v7945_v44   ;;  %14733 = vst [vmem:[#allocation149_spill] sm:$0xff] %v8769_v42  ;;  %v7220_v44 = vld [vmem:[%s14122_s4 + $0x90] sm:$0xff]  ;;  %v1536_v30 = vmul.f32 %v8641_v0, %v8769_v42 }
 0x1a7   :  { %2306 = vperm.xlu0 %7313, %v7953_v45   ;;  %v8763_v5 = vpop.permute.xlu2 %1487  ;;  %v8765_v9 = vpop.permute.xlu1 %1447  ;;  %v14735_v45 = vld [vmem:[#allocation51_spill] sm:$0xff] }
 0x1a8   :  { %14732 = vst [vmem:[#allocation148_spill] sm:$0xff] %v8763_v5  ;;  %v8767_v41 = vpop.permute.xlu0 %1455  ;;  %2598 = vmatpush.bf16.msrb.mxu3 %v7220_v44  ;;  %v371_v5 = vadd.f32 %v8680_v18, %v14735_v45 }
 0x1a9   :  { %1675 = vmatmul.bf16.gmra.mxu1 %v1567_v59  ;;  %v445_v35 = vpop.f32.mrf.mxu0  ;;  %v369_v59 = vadd.f32 %v8680_v18, %v14736_v37 }
 0x1aa   :  { %v446_v43 = vadd.f32 %v8680_v18, %v445_v35 }
 0x1ab   :  { %v8805_v44 = vmax.f32 %v369_v59, 0.0 }
 0x1ac   :  { %v8775_v31 = vmax.f32 %v446_v43, 0.0  ;;  %2599 = vmatpush.bf16.msrb.mxu3 %v7219_v36  ;;  %v8800_v43 = vmax.f32 %v371_v5, 0.0  ;;  %v14741_v36 = vld [vmem:[#allocation40_spill] sm:$0xff] }
 0x1ad   :  { %14739 = vst [vmem:[#allocation151_spill] sm:$0xff] %v8805_v44  ;;  %v1506_v37 = vmul.f32 %v8442_v14, %v8805_v44  ;;  %v449_v59 = vadd.f32 %v8680_v18, %v14741_v36 }
 0x1ae   :  { %14734 = vst [vmem:[#allocation150_spill] sm:$0xff] %v8775_v31  ;;  %2302 = vperm.xlu2 %7315, %v7958_v46   ;;  %2298 = vperm.xlu1 %7314, %v7963_v47   ;;  %v1537_v53 = vmul.f32 %v8658_v2, %v8775_v31  ;;  %v7208_v47 = vld [vmem:[%s14122_s4 + $0x30] sm:$0xff]  ;;  %v1507_v45 = vmul.f32 %v8498_v19, %v8800_v43  ;;  %v14740_v31 = vld [vmem:[#allocation45_spill] sm:$0xff] }
 0x1af   :  { %2318 = vperm.xlu0 %7313, %v7977_v50   ;;  %v8791_v35 = vpop.permute.xlu2 %1499  ;;  %v8793_v46 = vpop.permute.xlu1 %1459  ;;  %14738 = vst [vmem:[#allocation46_spill] sm:$0xff] %v8800_v43  ;;  %1880 = vmatpush.bf16.msrb.mxu2 %v7208_v47  ;;  %v7218_v50 = vld [vmem:[%s14122_s4 + $0x80] sm:$0xff] }
 0x1b0   :  { %14737 = vst [vmem:[#allocation51_spill] sm:$0xff] %v8791_v35  ;;  %v8798_v0 = vpop.permute.xlu0 %1467  ;;  %v1583_v2 = vpack.c.bf16 %v1537_v53, %v1536_v30  ;;  %2600 = vmatpush.bf16.msrb.mxu3 %v7218_v50  ;;  %v451_v30 = vadd.f32 %v8680_v18, %v14740_v31  ;;  %v1568_v53 = vpack.c.bf16 %v1507_v45, %v1506_v37  ;;  %v8826_v31 = vmax.f32 %v449_v59, 0.0  ;;  %v14745_v50 = vld [vmem:[#allocation56_spill] sm:$0xff] }
 0x1b1   :  { %v374_v45 = vadd.f32 %v8680_v18, %v14745_v50 }
 0x1b2   :  { %1755 = vmatmul.bf16.vlgmr.msra.gmra.mxu2 %v1583_v2  ;;  %v8824_v14 = vmax.f32 %v451_v30, 0.0  ;;  %14743 = vst [vmem:[#allocation40_spill] sm:$0xff] %v8826_v31  ;;  %v1538_v2 = vmul.f32 %v8599_v6, %v8826_v31 }
 0x1b3   :  { %v8847_v6 = vmax.f32 %v374_v45, 0.0  ;;  %v14752_v45 = vld [vmem:[#allocation55_spill] sm:$0xff] }
 0x1b4   :  { %14742 = vst [vmem:[#allocation45_spill] sm:$0xff] %v8824_v14 }
 0x1b5   :  { %14748 = vst [vmem:[#allocation152_spill] sm:$0xff] %v8847_v6  ;;  %v1508_v59 = vmul.f32 %v8458_v8, %v8847_v6 }
 0x1b6   :  { %2314 = vperm.xlu2 %7315, %v7982_v51   ;;  %2310 = vperm.xlu1 %7314, %v7987_v52   ;;  %v1539_v51 = vmul.f32 %v8660_v12, %v8824_v14  ;;  %v14744_v52 = vld [vmem:[#allocation61_spill] sm:$0xff] }
 0x1b7   :  { %2330 = vperm.xlu0 %7313, %v7997_v54   ;;  %v8816_v5 = vpop.permute.xlu1 %1471  ;;  %v376_v54 = vadd.f32 %v8680_v18, %v14744_v52 }
 0x1b8   :  { %v8820_v19 = vpop.permute.xlu0 %1479  ;;  %v8822_v47 = vpop.permute.xlu2 %2186 }
 0x1b9   :  { %1680 = vmatmul.bf16.gmra.mxu1 %v1568_v53  ;;  %v1584_v53 = vpack.c.bf16 %v1539_v51, %v1538_v2  ;;  %v8845_v36 = vmax.f32 %v376_v54, 0.0  ;;  %v14749_v51 = vld [vmem:[#allocation50_spill] sm:$0xff]  ;;  %v14750_v54 = vld [vmem:[#allocation8_spill] sm:$0xff]  ;;  %v683_v2 = vlaneseq }
 0x1ba   :  { %v454_v52 = vadd.f32 %v8680_v18, %v14749_v51 }
 0x1bb   :  { %14747 = vst [vmem:[#allocation56_spill] sm:$0xff] %v8845_v36 }
 0x1bc   :  { %v8870_v51 = vmax.f32 %v454_v52, 0.0 }
 0x1be   :  { %2326 = vperm.xlu2 %7315, %v8002_v55   ;;  %2322 = vperm.xlu1 %7314, %v8007_v56   ;;  %v1509_v55 = vmul.f32 %v8500_v24, %v8845_v36  ;;  %v7231_v56 = vld [vmem:[%s14122_s4 + $0xe8] sm:$0xff]  ;;  %14753 = vst [vmem:[#allocation8_spill] sm:$0xff] %v8870_v51 }
 0x1bf   :  { %2342 = vperm.xlu0 %7313, %v8023_v60   ;;  %v8839_v37 = vpop.permute.xlu1 %1483  ;;  %v7239_v60 = vld [vmem:[%s14122_s4 + $0x128] sm:$0xff]  ;;  %3244 = vmatpush.bf16.msrb.mxu0 %v7231_v56  ;;  %v2111_v56 = vrot.slane %v8703_v34, 1 }
 0x1c0   :  { %v8841_v30 = vpop.permute.xlu0 %1491  ;;  %v8843_v12 = vpop.permute.xlu2 %2194  ;;  %v1569_v50 = vpack.c.bf16 %v1509_v55, %v1508_v59  ;;  %3541 = vmatpush.bf16.msrb.mxu1 %v7239_v60  ;;  %v1540_v55 = vmul.f32 %v8671_v23, %v8870_v51  ;;  %v14755_v59 = vld [vmem:[#allocation66_spill] sm:$0xff] }
 0x1c1   :  { %14746 = vst [vmem:[#allocation61_spill] sm:$0xff] %v8841_v30  ;;  %v379_v60 = vadd.f32 %v8680_v18, %v14755_v59  ;;  %v8897_v23 = vld [vmem:[%s14119_s1 + $0x150] sm:$0xff] }
 0x1c2   :  { %1760 = vmatmul.bf16.gmra.mxu2 %v1584_v53  ;;  %v456_v53 = vadd.f32 %v8680_v18, %v14752_v45  ;;  %v8891_v45 = vld [vmem:[%s14119_s1 + $0x158] sm:$0xff] }
 0x1c3   :  { %14756 = vst [vmem:[#allocation66_spill] sm:$0xff] %v8891_v45  ;;  %v8916_v42 = vmax.f32 %v379_v60, 0.0 }
 0x1c5   :  { %14760 = vst [vmem:[#allocation154_spill] sm:$0xff] %v8916_v42 }
 0x1c6   :  { %2338 = vperm.xlu2 %7315, %v8028_v61   ;;  %2334 = vperm.xlu1 %7314, %v14750_v54   ;;  %v8872_v61 = vshrl.u32 %v683_v2, 7  ;;  %v8877_v54 = vmax.f32 %v456_v53, 0.0  ;;  %v2048_v2 = vrot.slane %v8742_v38, 1  ;;  %v14757_v53 = vld [vmem:[#allocation71_spill] sm:$0xff]  ;;  %v14797_v38 = vld [vmem:[#allocation80_spill] sm:$0xff] }
 0x1c7   :  { %2354 = vperm.xlu0 %7313, %v8043_v3   ;;  %v8864_v24 = vpop.permute.xlu1 %1495  ;;  %v7207_v3 = vld [vmem:[%s14122_s4 + $0x28] sm:$0xff] }
 0x1c8   :  { %14751 = vst [vmem:[#allocation50_spill] sm:$0xff] %v8864_v24  ;;  %v8868_v14 = vpop.permute.xlu2 %2206  ;;  %1881 = vmatpush.bf16.msrb.mxu2 %v7207_v3  ;;  %v1541_v52 = vmul.f32 %v8618_v7, %v8877_v54  ;;  %v381_v7 = vadd.f32 %v8680_v18, %v14757_v53  ;;  %vm2112_vm0 = vcmp.lt.s32.totalorder %v8872_v61, 7  ;;  %vm685_vm1 = vcmp.lt.s32.totalorder %v8872_v61, 1  ;;  %v7593_v61 = vld [vmem:[%s14119_s1 + $0x78] sm:$0xff] }
 0x1c9   :  { %v2179_v8 = vpop.permute.xlu0 %2178  ;;  %1685 = vmatmul.bf16.gmra.mxu1 %v1569_v50  ;;  %14754 = vst [vmem:[#allocation55_spill] sm:$0xff] %v8877_v54  ;;  %v14151_v50 = vrot.slane %v8692_v11, 1  ;;  %v8914_v51 = vsel %vm2112_vm0, %v2111_v56, %v2048_v2 }
 0x1ca   :  { %14759 = vst [vmem:[#allocation153_spill] sm:$0xff] %v8914_v51  ;;  %v1585_v31 = vpack.c.bf16 %v1541_v52, %v1540_v55  ;;  %v8922_v11 = vmax.f32 %v381_v7, 0.0  ;;  %v14763_v55 = vld [vmem:[#allocation65_spill] sm:$0xff] }
 0x1cb   :  { %v8908_v3 = vsel %vm2112_vm0, %v14151_v50, %v2111_v56  ;;  %v1510_v50 = vmul.f32 %v8511_v33, %v8916_v42  ;;  %v461_v60 = vadd.f32 %v8680_v18, %v14763_v55  ;;  %v8945_v33 = vld [vmem:[%s14119_s1 + $0x190] sm:$0xff]  ;;  %v14158_v55 = vrot.slane %v8805_v44, 1 }
 0x1cc   :  { %14758 = vst [vmem:[#allocation71_spill] sm:$0xff] %v8908_v3  ;;  %v2433_v53 = vmul.f32 %v2179_v8, %v8908_v3  ;;  %v8933_v8 = vld [vmem:[%s14119_s1 + $0x170] sm:$0xff] }
 0x1cd   :  { %14761 = vst [vmem:[#allocation155_spill] sm:$0xff] %v8922_v11 }
 0x1ce   :  { %2350 = vperm.xlu2 %7315, %v8891_v45   ;;  %2346 = vperm.xlu1 %7314, %v8897_v23   ;;  %v14762_v45 = vld [vmem:[#allocation110_spill] sm:$0xff]  ;;  %14766 = vst [vmem:[#allocation156_spill] sm:$0xff] %v8945_v33 }
 0x1cf   :  { %2366 = vperm.xlu0 %7313, %v8073_v20   ;;  %v1511_v56 = vmul.f32 %v14762_v45, %v8922_v11  ;;  %14764 = vst [vmem:[#allocation110_spill] sm:$0xff] %v8933_v8 }
 0x1d0   :  { %v8910_v59 = vpop.permute.xlu2 %2218  ;;  %v2183_v54 = vpop.permute.xlu1 %2182 }
 0x1d1   :  { %v2434_v20 = vmul.f32 %v2183_v54, %v8914_v51  ;;  %v8920_v35 = vpop.permute.xlu0 %2198  ;;  %v14767_v54 = vld [vmem:[#allocation60_spill] sm:$0xff] }
 0x1d2   :  { %1765 = vmatmul.bf16.gmra.mxu2 %v1585_v31  ;;  %v8939_v31 = vld [vmem:[%s14119_s1 + $0x168] sm:$0xff]  ;;  %v459_v52 = vadd.f32 %v8680_v18, %v14767_v54 }
 0x1d3   :  { %v2497_v24 = vpack.c.bf16 %v2434_v20, %v2433_v53  ;;  %14765 = vst [vmem:[#allocation65_spill] sm:$0xff] %v8939_v31  ;;  %v8954_v20 = vmax.f32 %v461_v60, 0.0 }
 0x1d4   :  { %v8957_v3 = vmax.f32 %v459_v52, 0.0 }
 0x1d5   :  { %2601 = vmatmul.bf16.vlgmr.msrb.gmra.mxu3 %v2497_v24  ;;  %v1570_v24 = vpack.c.bf16 %v1511_v56, %v1510_v50  ;;  %14768 = vst [vmem:[#allocation60_spill] sm:$0xff] %v8954_v20  ;;  %v1543_v51 = vmul.f32 %v8688_v29, %v8954_v20  ;;  %v2049_v50 = vrot.slane %v8744_v39, 1  ;;  %v14770_v56 = vld [vmem:[#allocation81_spill] sm:$0xff] }
 0x1d6   :  { %2362 = vperm.xlu2 %7315, %v8933_v8   ;;  %2358 = vperm.xlu1 %7314, %v8939_v31   ;;  %14769 = vst [vmem:[#allocation157_spill] sm:$0xff] %v8957_v3  ;;  %v386_v54 = vadd.f32 %v8680_v18, %v14770_v56  ;;  %v8981_v29 = vld [vmem:[%s14119_s1 + $0x180] sm:$0xff] }
 0x1d7   :  { %2378 = vperm.xlu0 %7313, %v8945_v33   ;;  %v1542_v33 = vmul.f32 %v8673_v26, %v8957_v3  ;;  %v8970_v60 = vsel %vm2112_vm0, %v2049_v50, %v14158_v55  ;;  %14773 = vst [vmem:[#allocation159_spill] sm:$0xff] %v8981_v29  ;;  %v14774_v26 = vld [vmem:[#allocation76_spill] sm:$0xff]  ;;  %v7435_v55 = vld [vmem:[%s14119_s1 + $0x1a8] sm:$0xff]  ;;  %v8992_v20 = vsel %vm2112_vm0, %v2048_v2, %v2049_v50 }
 0x1d8   :  { %v8950_v45 = vpop.permute.xlu2 %2230  ;;  %v2191_v7 = vpop.permute.xlu1 %2190  ;;  %14771 = vst [vmem:[#allocation81_spill] sm:$0xff] %v8970_v60  ;;  %v384_v52 = vadd.f32 %v8680_v18, %v14774_v26  ;;  %v8998_v30 = vmax.f32 %v386_v54, 0.0  ;;  %v2435_v26 = vmul.f32 %v8822_v47, %v8992_v20  ;;  %v7230_v50 = vld [vmem:[%s14122_s4 + $0xe0] sm:$0xff]  ;;  %v14780_v54 = vld [vmem:[#allocation75_spill] sm:$0xff] }
 0x1d9   :  { %v8952_v53 = vpop.permute.xlu0 %2210  ;;  %1690 = vmatmul.bf16.gmra.mxu1 %v1570_v24  ;;  %v8975_v24 = vld [vmem:[%s14119_s1 + $0x188] sm:$0xff]  ;;  %v2436_v56 = vmul.f32 %v2191_v7, %v8970_v60  ;;  %14775 = vst [vmem:[#allocation76_spill] sm:$0xff] %v8992_v20  ;;  %v1586_v8 = vpack.c.bf16 %v1543_v51, %v1542_v33  ;;  %v7238_v51 = vld [vmem:[%s14122_s4 + $0x120] sm:$0xff]  ;;  %3245 = vmatpush.bf16.msrb.mxu0 %v7230_v50 }
 0x1da   :  { %14772 = vst [vmem:[#allocation158_spill] sm:$0xff] %v8975_v24  ;;  %v9004_v60 = vmax.f32 %v384_v52, 0.0  ;;  %v14779_v33 = vld [vmem:[#allocation120_spill] sm:$0xff]  ;;  %3542 = vmatpush.bf16.msrb.mxu1 %v7238_v51 }
 0x1db   :  { %14776 = vst [vmem:[#allocation160_spill] sm:$0xff] %v8998_v30  ;;  %v2498_v2 = vpack.c.bf16 %v2436_v56, %v2435_v26  ;;  %v9021_v52 = vld [vmem:[%s14119_s1 + $0x1a0] sm:$0xff]  ;;  %v9027_v56 = vld [vmem:[%s14119_s1 + $0x198] sm:$0xff] }
 0x1dc   :  { %14777 = vst [vmem:[#allocation161_spill] sm:$0xff] %v9004_v60  ;;  %v1512_v47 = vmul.f32 %v14779_v33, %v9004_v60  ;;  %v7438_v26 = vld [vmem:[%s14119_s1 + $0x1c0] sm:$0xff] }
 0x1dd   :  { %14782 = vst [vmem:[#allocation120_spill] sm:$0xff] %v9027_v56 }
 0x1de   :  { %2374 = vperm.xlu2 %7315, %v8975_v24   ;;  %2370 = vperm.xlu1 %7314, %v8981_v29  }
 0x1df   :  { %2390 = vperm.xlu0 %7313, %v7435_v55   ;;  %v14778_v55 = vld [vmem:[#allocation24_spill] sm:$0xff] }
 0x1e0   :  { %v8994_v3 = vpop.permute.xlu2 %2242  ;;  %v8996_v24 = vpop.permute.xlu1 %2202  ;;  %v1513_v29 = vmul.f32 %v14778_v55, %v8998_v30  ;;  %14781 = vst [vmem:[#allocation24_spill] sm:$0xff] %v9021_v52 }
 0x1e1   :  { %v9002_v7 = vpop.permute.xlu0 %2222 }
 0x1e2   :  { %1770 = vmatmul.bf16.gmra.mxu2 %v1586_v8  ;;  %v466_v8 = vadd.f32 %v8680_v18, %v14780_v54  ;;  %v1571_v55 = vpack.c.bf16 %v1513_v29, %v1512_v47  ;;  %v7206_v29 = vld [vmem:[%s14122_s4 + $0x20] sm:$0xff] }
 0x1e3   :  { %1882 = vmatpush.bf16.msrb.mxu2 %v7206_v29  ;;  %v14790_v29 = vld [vmem:[#allocation86_spill] sm:$0xff] }
 0x1e4   :  { %v9041_v31 = vmax.f32 %v466_v8, 0.0 }
 0x1e5   :  { %2606 = vmatmul.bf16.gmra.mxu3 %v2498_v2  ;;  %v14783_v2 = vld [vmem:[#allocation70_spill] sm:$0xff] }
 0x1e6   :  { %2386 = vperm.xlu2 %7315, %v9021_v52   ;;  %2382 = vperm.xlu1 %7314, %v9027_v56   ;;  %v464_v33 = vadd.f32 %v8680_v18, %v14783_v2  ;;  %14784 = vst [vmem:[#allocation75_spill] sm:$0xff] %v9041_v31  ;;  %v2052_v56 = vrot.slane %v8847_v6, 1  ;;  %v1545_v47 = vmul.f32 %v8690_v16, %v9041_v31  ;;  %v14786_v2 = vld [vmem:[#allocation91_spill] sm:$0xff] }
 0x1e7   :  { %2402 = vperm.xlu0 %7313, %v7438_v26   ;;  %v2051_v26 = vrot.slane %v8800_v43, 1  ;;  %v391_v51 = vadd.f32 %v8680_v18, %v14786_v2  ;;  %v9069_v16 = vld [vmem:[%s14119_s1 + $0x1b0] sm:$0xff]  ;;  %v7441_v31 = vld [vmem:[%s14119_s1 + $0x1d8] sm:$0xff] }
 0x1e8   :  { %v9035_v54 = vpop.permute.xlu2 %2254  ;;  %v9037_v20 = vpop.permute.xlu1 %2214  ;;  %v9047_v50 = vmax.f32 %v464_v33, 0.0  ;;  %v9063_v33 = vld [vmem:[%s14119_s1 + $0x1b8] sm:$0xff]  ;;  %14789 = vst [vmem:[#allocation163_spill] sm:$0xff] %v9069_v16 }
 0x1e9   :  { %v9039_v52 = vpop.permute.xlu0 %2234  ;;  %1695 = vmatmul.bf16.gmra.mxu1 %v1571_v55  ;;  %v9058_v55 = vsel %vm2112_vm0, %v2051_v26, %v2052_v56  ;;  %14788 = vst [vmem:[#allocation162_spill] sm:$0xff] %v9063_v33 }
 0x1ea   :  { %14785 = vst [vmem:[#allocation70_spill] sm:$0xff] %v9047_v50  ;;  %v1544_v8 = vmul.f32 %v8637_v13, %v9047_v50  ;;  %v389_v13 = vadd.f32 %v8680_v18, %v14790_v29  ;;  %v2438_v2 = vmul.f32 %v8920_v35, %v9058_v55  ;;  %v14791_v50 = vrot.slane %v8805_v44, 1 }
 0x1eb   :  { %14787 = vst [vmem:[#allocation91_spill] sm:$0xff] %v9058_v55  ;;  %v9089_v29 = vmax.f32 %v391_v51, 0.0  ;;  %v14800_v51 = vld [vmem:[#allocation85_spill] sm:$0xff] }
 0x1ec   :  { %v1587_v43 = vpack.c.bf16 %v1545_v47, %v1544_v8  ;;  %v469_v47 = vadd.f32 %v8680_v18, %v14797_v38  ;;  %v471_v8 = vadd.f32 %v8680_v18, %v14800_v51 }
 0x1ed   :  { %14794 = vst [vmem:[#allocation165_spill] sm:$0xff] %v9089_v29  ;;  %v1515_v44 = vmul.f32 %v8526_v63, %v9089_v29  ;;  %v7444_v63 = vld [vmem:[%s14119_s1 + $0x1f0] sm:$0xff] }
 0x1ee   :  { %2398 = vperm.xlu2 %7315, %v9063_v33   ;;  %2394 = vperm.xlu1 %7314, %v9069_v16   ;;  %v9083_v33 = vsel %vm2112_vm0, %v14791_v50, %v2051_v26  ;;  %v14796_v26 = vld [vmem:[#allocation113_spill] sm:$0xff] }
 0x1ef   :  { %2414 = vperm.xlu0 %7313, %v7441_v31   ;;  %14792 = vst [vmem:[#allocation86_spill] sm:$0xff] %v9083_v33  ;;  %v2437_v35 = vmul.f32 %v8843_v12, %v9083_v33  ;;  %v9095_v31 = vmax.f32 %v389_v13, 0.0  ;;  %v9106_v12 = vld [vmem:[%s14119_s1 + $0x1d0] sm:$0xff]  ;;  %v9129_v33 = vmax.f32 %v471_v8, 0.0  ;;  %v14808_v8 = vld [vmem:[#allocation100_spill] sm:$0xff] }
 0x1f0   :  { %v9085_v6 = vpop.permute.xlu2 %2266  ;;  %v9087_v16 = vpop.permute.xlu1 %2226  ;;  %14798 = vst [vmem:[#allocation113_spill] sm:$0xff] %v9106_v12 }
 0x1f1   :  { %14793 = vst [vmem:[#allocation164_spill] sm:$0xff] %v9085_v6  ;;  %v9093_v55 = vpop.permute.xlu0 %2246  ;;  %v2499_v50 = vpack.c.bf16 %v2438_v2, %v2437_v35  ;;  %v1514_v6 = vmul.f32 %v14796_v26, %v9095_v31  ;;  %v2053_v26 = vrot.slane %v8845_v36, 1 }
 0x1f2   :  { %1775 = vmatmul.bf16.gmra.mxu2 %v1587_v43  ;;  %14795 = vst [vmem:[#allocation166_spill] sm:$0xff] %v9095_v31  ;;  %v9112_v43 = vld [vmem:[%s14119_s1 + $0x1c8] sm:$0xff] }
 0x1f3   :  { %14799 = vst [vmem:[#allocation80_spill] sm:$0xff] %v9112_v43  ;;  %v1572_v38 = vpack.c.bf16 %v1515_v44, %v1514_v6  ;;  %v14200_v44 = vrot.slane %v8916_v42, 1  ;;  %v14804_v6 = vld [vmem:[#allocation96_spill] sm:$0xff] }
 0x1f4   :  { %14803 = vst [vmem:[#allocation168_spill] sm:$0xff] %v9129_v33  ;;  %v394_v51 = vadd.f32 %v8680_v18, %v14804_v6  ;;  %v7677_v6 = vmov 3  }
 0x1f5   :  { %2611 = vmatmul.bf16.gmra.mxu3 %v2499_v50  ;;  %v9126_v50 = vmax.f32 %v469_v47, 0.0  ;;  %v9145_v47 = vld [vmem:[%s14119_s1 + $0x1e8] sm:$0xff] }
 0x1f6   :  { %2410 = vperm.xlu2 %7315, %v9106_v12   ;;  %2406 = vperm.xlu1 %7314, %v9112_v43   ;;  %v1547_v12 = vmul.f32 %v8656_v21, %v9129_v33  ;;  %14806 = vst [vmem:[#allocation169_spill] sm:$0xff] %v9145_v47  ;;  %v396_v21 = vadd.f32 %v8680_v18, %v14808_v8 }
 0x1f7   :  { %2426 = vperm.xlu0 %7313, %v7444_v63   ;;  %14802 = vst [vmem:[#allocation167_spill] sm:$0xff] %v9126_v50  ;;  %v1546_v63 = vmul.f32 %v8714_v57, %v9126_v50  ;;  %v9151_v57 = vld [vmem:[%s14119_s1 + $0x1e0] sm:$0xff]  ;;  %v9162_v33 = vsel %vm2112_vm0, %v2053_v26, %v14200_v44  ;;  %v7447_v50 = vld [vmem:[%s14119_s1 + $0x8] sm:$0xff]  ;;  %v14813_v44 = vld [vmem:[#allocation23_spill] sm:$0xff] }
 0x1f8   :  { %v9120_v13 = vpop.permute.xlu2 %2278  ;;  %v9122_v2 = vpop.permute.xlu1 %2238  ;;  %14807 = vst [vmem:[#allocation170_spill] sm:$0xff] %v9151_v57 }
 0x1f9   :  { %14801 = vst [vmem:[#allocation85_spill] sm:$0xff] %v9120_v13  ;;  %v9124_v35 = vpop.permute.xlu0 %2258  ;;  %1700 = vmatmul.bf16.gmra.mxu1 %v1572_v38  ;;  %v9140_v38 = vsel %vm2112_vm0, %v2052_v56, %v2053_v26  ;;  %v1588_v8 = vpack.c.bf16 %v1547_v12, %v1546_v63  ;;  %v9171_v13 = vmax.f32 %v394_v51, 0.0  ;;  %v9177_v26 = vmax.f32 %v396_v21, 0.0  ;;  %v14814_v12 = vld [vmem:[#allocation116_spill] sm:$0xff]  ;;  %v14815_v51 = vld [vmem:[#allocation95_spill] sm:$0xff] }
 0x1fa   :  { %14805 = vst [vmem:[#allocation96_spill] sm:$0xff] %v9140_v38  ;;  %v2439_v56 = vmul.f32 %v8996_v24, %v9140_v38  ;;  %v2440_v24 = vmul.f32 %v8868_v14, %v9162_v33  ;;  %v476_v14 = vadd.f32 %v8680_v18, %v14815_v51  ;;  %v9191_v21 = vld [vmem:[%s14119_s1 + $0x1f8] sm:$0xff] }
 0x1fb   :  { %14809 = vst [vmem:[#allocation100_spill] sm:$0xff] %v9162_v33  ;;  %v1516_v43 = vmul.f32 %v14813_v44, %v9171_v13  ;;  %v1517_v63 = vmul.f32 %v14814_v12, %v9177_v26  ;;  %v7237_v44 = vld [vmem:[%s14122_s4 + $0x118] sm:$0xff]  ;;  %v7450_v12 = vld [vmem:[%s14119_s1 + $0x30] sm:$0xff] }
 0x1fc   :  { %14811 = vst [vmem:[#allocation172_spill] sm:$0xff] %v9171_v13  ;;  %v2500_v36 = vpack.c.bf16 %v2440_v24, %v2439_v56  ;;  %v9200_v56 = vld [vmem:[%s14119_s1] sm:$0xff]  ;;  %3543 = vmatpush.bf16.msrb.mxu1 %v7237_v44 }
 0x1fd   :  { %14812 = vst [vmem:[#allocation173_spill] sm:$0xff] %v9177_v26 }
 0x1fe   :  { %2422 = vperm.xlu2 %7315, %v9145_v47   ;;  %2418 = vperm.xlu1 %7314, %v9151_v57   ;;  %14816 = vst [vmem:[#allocation23_spill] sm:$0xff] %v9191_v21 }
 0x1ff   :  { %7317 = vset.pattern.permute.xlu0 %v7677_v6  ;;  %14817 = vst [vmem:[#allocation116_spill] sm:$0xff] %v9200_v56 }
 0x200   :  { %2831 = vperm.xlu0 %7317, %v7447_v50   ;;  %v9167_v47 = vpop.permute.xlu2 %2290  ;;  %v9169_v57 = vpop.permute.xlu1 %2250  ;;  %v7229_v50 = vld [vmem:[%s14122_s4 + $0xd8] sm:$0xff] }
 0x201   :  { %14810 = vst [vmem:[#allocation171_spill] sm:$0xff] %v9167_v47  ;;  %v9175_v38 = vpop.permute.xlu0 %2270  ;;  %3246 = vmatpush.bf16.msrb.mxu0 %v7229_v50  ;;  %v7205_v50 = vld [vmem:[%s14122_s4 + $0x18] sm:$0xff] }
 0x202   :  { %1780 = vmatmul.bf16.gmra.mxu2 %v1588_v8  ;;  %v14818_v8 = vld [vmem:[#allocation90_spill] sm:$0xff] }
 0x203   :  { %v474_v24 = vadd.f32 %v8680_v18, %v14818_v8  ;;  %1883 = vmatpush.bf16.msrb.mxu2 %v7205_v50 }
 0x205   :  { %2616 = vmatmul.bf16.gmra.mxu3 %v2500_v36  ;;  %v1573_v36 = vpack.c.bf16 %v1517_v63, %v1516_v43  ;;  %v2056_v43 = vrot.slane %v9004_v60, 1  ;;  %v9220_v63 = vmax.f32 %v474_v24, 0.0 }
 0x206   :  { %7316 = vset.pattern.permute.xlu2 %v7677_v6  ;;  %2430 = vperm.xlu1 %7314, %v9191_v21   ;;  %v9214_v21 = vmax.f32 %v476_v14, 0.0 }
 0x207   :  { %2827 = vperm.xlu2 %7316, %v9200_v56   ;;  %14821 = vst [vmem:[#allocation174_spill] sm:$0xff] %v9220_v63  ;;  %v1548_v14 = vmul.f32 %v8716_v15, %v9220_v63  ;;  %v14824_v56 = vld [vmem:[#allocation104_spill] sm:$0xff]  ;;  %v9246_v15 = vld [vmem:[%s14119_s1 + $0x10] sm:$0xff] }
 0x208   :  { %2851 = vperm.xlu0 %7317, %v7450_v12   ;;  %v9208_v51 = vpop.permute.xlu2 %2302  ;;  %v9210_v33 = vpop.permute.xlu1 %2262  ;;  %14820 = vst [vmem:[#allocation90_spill] sm:$0xff] %v9214_v21  ;;  %v1549_v8 = vmul.f32 %v8735_v1, %v9214_v21  ;;  %v2055_v12 = vrot.slane %v8922_v11, 1  ;;  %v399_v24 = vadd.f32 %v8680_v18, %v14824_v56  ;;  %v9240_v21 = vld [vmem:[%s14119_s1 + $0x18] sm:$0xff] }
 0x209   :  { %14819 = vst [vmem:[#allocation95_spill] sm:$0xff] %v9208_v51  ;;  %v9212_v47 = vpop.permute.xlu0 %2282  ;;  %1705 = vmatmul.bf16.gmra.mxu1 %v1573_v36  ;;  %v14822_v51 = vld [vmem:[#allocation108_spill] sm:$0xff] }
 0x20a   :  { %v401_v44 = vadd.f32 %v8680_v18, %v14822_v51  ;;  %v9231_v36 = vsel %vm2112_vm0, %v2055_v12, %v2056_v43  ;;  %14825 = vst [vmem:[#allocation104_spill] sm:$0xff] %v9240_v21 }
 0x20b   :  { %14823 = vst [vmem:[#allocation108_spill] sm:$0xff] %v9231_v36  ;;  %v2442_v1 = vmul.f32 %v9037_v20, %v9231_v36  ;;  %v7453_v20 = vld [vmem:[%s14119_s1 + $0x48] sm:$0xff]  ;;  %v1589_v36 = vpack.c.bf16 %v1549_v8, %v1548_v14 }
 0x20c   :  { %14826 = vst [vmem:[#allocation175_spill] sm:$0xff] %v9246_v15  ;;  %v9262_v63 = vmax.f32 %v401_v44, 0.0 }
 0x20e   :  { %7318 = vset.pattern.permute.xlu1 %v7677_v6  ;;  %v14827_v6 = vrot.slane %v8916_v42, 1  ;;  %14830 = vst [vmem:[#allocation178_spill] sm:$0xff] %v9262_v63 }
 0x20f   :  { %2839 = vperm.xlu2 %7316, %v9240_v21   ;;  %2835 = vperm.xlu1 %7318, %v9246_v15  }
 0x210   :  { %v9253_v56 = vsel %vm2112_vm0, %v14827_v6, %v2055_v12  ;;  %2863 = vperm.xlu0 %7317, %v7453_v20   ;;  %v9258_v51 = vpop.permute.xlu2 %2314  ;;  %v9260_v50 = vpop.permute.xlu1 %2274  ;;  %v9268_v12 = vmax.f32 %v399_v24, 0.0  ;;  %v1519_v6 = vmul.f32 %v8550_v32, %v9262_v63  ;;  %v9287_v32 = vld [vmem:[%s14119_s1 + $0x20] sm:$0xff] }
 0x211   :  { %14828 = vst [vmem:[#allocation176_spill] sm:$0xff] %v9253_v56  ;;  %v2441_v21 = vmul.f32 %v8952_v53, %v9253_v56  ;;  %v9266_v60 = vpop.permute.xlu0 %2294  ;;  %v9281_v53 = vld [vmem:[%s14119_s1 + $0x28] sm:$0xff]  ;;  %v2058_v56 = vrot.slane %v9095_v31, 1 }
 0x212   :  { %14829 = vst [vmem:[#allocation177_spill] sm:$0xff] %v9258_v51  ;;  %1785 = vmatmul.bf16.gmra.mxu2 %v1589_v36  ;;  %v1518_v20 = vmul.f32 %v8539_v4, %v9268_v12  ;;  %v14832_v51 = vld [vmem:[#allocation103_spill] sm:$0xff]  ;;  %v7456_v36 = vld [vmem:[%s14119_s1 + $0x60] sm:$0xff] }
 0x213   :  { %14831 = vst [vmem:[#allocation179_spill] sm:$0xff] %v9268_v12  ;;  %v2501_v15 = vpack.c.bf16 %v2442_v1, %v2441_v21  ;;  %v481_v8 = vadd.f32 %v8680_v18, %v14832_v51  ;;  %v14836_v21 = vld [vmem:[#allocation99_spill] sm:$0xff] }
 0x214   :  { %14834 = vst [vmem:[#allocation180_spill] sm:$0xff] %v9281_v53  ;;  %v1574_v4 = vpack.c.bf16 %v1519_v6, %v1518_v20  ;;  %v479_v14 = vadd.f32 %v8680_v18, %v14836_v21  ;;  %v2057_v21 = vrot.slane %v8998_v30, 1 }
 0x215   :  { %2621 = vmatmul.bf16.gmra.mxu3 %v2501_v15  ;;  %14835 = vst [vmem:[#allocation181_spill] sm:$0xff] %v9287_v32  ;;  %v9301_v51 = vmax.f32 %v481_v8, 0.0 }
 0x216   :  { %v9276_v44 = vpop.f32.mrf.mxu1  ;;  %v9304_v6 = vmax.f32 %v479_v14, 0.0 }
 0x217   :  { %14833 = vst [vmem:[#allocation103_spill] sm:$0xff] %v9276_v44  ;;  %2847 = vperm.xlu2 %7316, %v9281_v53   ;;  %2843 = vperm.xlu1 %7318, %v9287_v32   ;;  %v1551_v20 = vmul.f32 %v8740_v10, %v9301_v51  ;;  %v14841_v44 = vld [vmem:[#allocation115_spill] sm:$0xff] }
 0x218   :  { %2875 = vperm.xlu0 %7317, %v7456_v36   ;;  %v9295_v24 = vpop.permute.xlu2 %2326  ;;  %v9297_v1 = vpop.permute.xlu1 %2286  ;;  %14839 = vst [vmem:[#allocation183_spill] sm:$0xff] %v9301_v51  ;;  %v406_v36 = vadd.f32 %v8680_v18, %v14841_v44  ;;  %v7457_v51 = vld [vmem:[%s14119_s1 + $0x40] sm:$0xff]  ;;  %v9334_v44 = vsel %vm2112_vm0, %v2056_v43, %v2057_v21 }
 0x219   :  { %14837 = vst [vmem:[#allocation99_spill] sm:$0xff] %v9295_v24  ;;  %v9299_v15 = vpop.permute.xlu0 %2306  ;;  %1710 = vmatmul.bf16.gmra.mxu1 %v1574_v4  ;;  %v1550_v24 = vmul.f32 %v8669_v22, %v9304_v6  ;;  %v9315_v4 = vsel %vm2112_vm0, %v2057_v21, %v2058_v56  ;;  %v9329_v22 = vld [vmem:[%s14119_s1 + $0x38] sm:$0xff] }
 0x21a   :  { %14838 = vst [vmem:[#allocation182_spill] sm:$0xff] %v9299_v15  ;;  %v14844_v15 = vld [vmem:[#allocation112_spill] sm:$0xff]  ;;  %v2444_v10 = vmul.f32 %v9002_v7, %v9315_v4 }
 0x21b   :  { %14840 = vst [vmem:[#allocation184_spill] sm:$0xff] %v9304_v6  ;;  %v404_v14 = vadd.f32 %v8680_v18, %v14844_v15  ;;  %v7459_v7 = vld [vmem:[%s14119_s1 + $0x78] sm:$0xff]  ;;  %v9343_v6 = vmax.f32 %v406_v36, 0.0 }
 0x21c   :  { %14842 = vst [vmem:[#allocation115_spill] sm:$0xff] %v9315_v4  ;;  %v7460_v36 = vld [vmem:[%s14119_s1 + $0x58] sm:$0xff] }
 0x21d   :  { %14845 = vst [vmem:[#allocation112_spill] sm:$0xff] %v9334_v44  ;;  %v9349_v43 = vmax.f32 %v404_v14, 0.0  ;;  %v1521_v21 = vmul.f32 %v8552_v25, %v9343_v6  ;;  %v9368_v25 = vld [vmem:[%s14119_s1 + $0x50] sm:$0xff] }
 0x21e   :  { %v9317_v8 = vpop.f32.mrf.mxu1  ;;  %14848 = vst [vmem:[#allocation188_spill] sm:$0xff] %v9343_v6  ;;  %v7462_v14 = vld [vmem:[%s14119_s1 + $0x90] sm:$0xff] }
 0x21f   :  { %14843 = vst [vmem:[#allocation185_spill] sm:$0xff] %v9317_v8  ;;  %2859 = vperm.xlu2 %7316, %v7457_v51   ;;  %2855 = vperm.xlu1 %7318, %v9329_v22   ;;  %v1590_v51 = vpack.c.bf16 %v1551_v20, %v1550_v24  ;;  %v2443_v8 = vmul.f32 %v8910_v59, %v9334_v44  ;;  %v7228_v59 = vld [vmem:[%s14122_s4 + $0xd0] sm:$0xff]  ;;  %v2060_v44 = vrot.slane %v9171_v13, 1 }
 0x220   :  { %2887 = vperm.xlu0 %7317, %v7459_v7   ;;  %v9339_v15 = vpop.permute.xlu2 %2338  ;;  %v9341_v4 = vpop.permute.xlu1 %2298  ;;  %14850 = vst [vmem:[#allocation190_spill] sm:$0xff] %v9349_v43  ;;  %v14851_v7 = vld [vmem:[#allocation119_spill] sm:$0xff]  ;;  %3247 = vmatpush.bf16.msrb.mxu0 %v7228_v59 }
 0x221   :  { %14846 = vst [vmem:[#allocation186_spill] sm:$0xff] %v9339_v15  ;;  %v9347_v53 = vpop.permute.xlu0 %2318  ;;  %v2502_v32 = vpack.c.bf16 %v2444_v10, %v2443_v8  ;;  %v1520_v15 = vmul.f32 %v14851_v7, %v9349_v43  ;;  %v7204_v7 = vld [vmem:[%s14122_s4 + $0x10] sm:$0xff] }
 0x222   :  { %14847 = vst [vmem:[#allocation187_spill] sm:$0xff] %v9341_v4  ;;  %1790 = vmatmul.bf16.gmra.mxu2 %v1590_v51  ;;  %v14852_v4 = vld [vmem:[#allocation107_spill] sm:$0xff] }
 0x223   :  { %14849 = vst [vmem:[#allocation189_spill] sm:$0xff] %v9347_v53  ;;  %v484_v24 = vadd.f32 %v8680_v18, %v14852_v4  ;;  %v14854_v4 = vld [vmem:[#allocation111_spill] sm:$0xff]  ;;  %1884 = vmatpush.bf16.msrb.mxu2 %v7204_v7  ;;  %v14863_v7 = vld [vmem:[#allocation122_spill] sm:$0xff] }
 0x224   :  { %v486_v8 = vadd.f32 %v8680_v18, %v14854_v4  ;;  %v2059_v4 = vrot.slane %v9089_v29, 1 }
 0x225   :  { %2626 = vmatmul.bf16.gmra.mxu3 %v2502_v32  ;;  %v1575_v32 = vpack.c.bf16 %v1521_v21, %v1520_v15  ;;  %v7236_v15 = vld [vmem:[%s14122_s4 + $0x110] sm:$0xff] }
 0x226   :  { %v9357_v20 = vpop.f32.mrf.mxu1  ;;  %3544 = vmatpush.bf16.msrb.mxu1 %v7236_v15  ;;  %v7463_v15 = vld [vmem:[%s14119_s1 + $0x70] sm:$0xff] }
 0x227   :  { %14853 = vst [vmem:[#allocation119_spill] sm:$0xff] %v9357_v20  ;;  %2871 = vperm.xlu2 %7316, %v7460_v36   ;;  %2867 = vperm.xlu1 %7318, %v9368_v25   ;;  %v9388_v36 = vmax.f32 %v484_v24, 0.0  ;;  %v14860_v20 = vld [vmem:[#allocation118_spill] sm:$0xff]  ;;  %v9402_v24 = vsel %vm2112_vm0, %v2058_v56, %v2059_v4  ;;  %v9421_v56 = vsel %vm2112_vm0, %v2059_v4, %v2060_v44 }
 0x228   :  { %2899 = vperm.xlu0 %7317, %v7462_v14   ;;  %v9376_v10 = vpop.permute.xlu2 %2350  ;;  %v9378_v51 = vpop.permute.xlu1 %2310  ;;  %v9391_v14 = vmax.f32 %v486_v8, 0.0  ;;  %14861 = vst [vmem:[#allocation118_spill] sm:$0xff] %v9402_v24  ;;  %v411_v8 = vadd.f32 %v8680_v18, %v14863_v7 }
 0x229   :  { %14855 = vst [vmem:[#allocation107_spill] sm:$0xff] %v9376_v10  ;;  %v9386_v21 = vpop.permute.xlu0 %2330  ;;  %1715 = vmatmul.bf16.gmra.mxu1 %v1575_v32  ;;  %v1552_v59 = vmul.f32 %v8765_v9, %v9388_v36  ;;  %v409_v10 = vadd.f32 %v8680_v18, %v14860_v20  ;;  %v2445_v9 = vmul.f32 %v9087_v16, %v9402_v24  ;;  %v7465_v16 = vld [vmem:[%s14119_s1 + $0xa8] sm:$0xff] }
 0x22a   :  { %14856 = vst [vmem:[#allocation111_spill] sm:$0xff] %v9378_v51  ;;  %v9436_v4 = vmax.f32 %v411_v8, 0.0 }
 0x22b   :  { %14857 = vst [vmem:[#allocation191_spill] sm:$0xff] %v9386_v21  ;;  %v1553_v21 = vmul.f32 %v8686_v28, %v9391_v14  ;;  %v9416_v28 = vld [vmem:[%s14119_s1 + $0x68] sm:$0xff]  ;;  %v9430_v24 = vmax.f32 %v409_v10, 0.0 }
 0x22c   :  { %14858 = vst [vmem:[#allocation192_spill] sm:$0xff] %v9388_v36  ;;  %v14872_v10 = vld [vmem:[#allocation117_spill] sm:$0xff] }
 0x22d   :  { %14859 = vst [vmem:[#allocation193_spill] sm:$0xff] %v9391_v14  ;;  %v2446_v14 = vmul.f32 %v8950_v45, %v9421_v56  ;;  %v9451_v45 = vld [vmem:[%s14119_s1 + $0x88] sm:$0xff] }
 0x22e   :  { %v9404_v32 = vpop.f32.mrf.mxu1  ;;  %14864 = vst [vmem:[#allocation122_spill] sm:$0xff] %v9421_v56 }
 0x22f   :  { %14862 = vst [vmem:[#allocation194_spill] sm:$0xff] %v9404_v32  ;;  %2883 = vperm.xlu2 %7316, %v7463_v15   ;;  %2879 = vperm.xlu1 %7318, %v9416_v28   ;;  %v1591_v15 = vpack.c.bf16 %v1553_v21, %v1552_v59  ;;  %v1522_v32 = vmul.f32 %v8563_v40, %v9430_v24  ;;  %v9457_v40 = vld [vmem:[%s14119_s1 + $0x80] sm:$0xff] }
 0x230   :  { %2911 = vperm.xlu0 %7317, %v7465_v16   ;;  %v9426_v20 = vpop.permute.xlu2 %2362  ;;  %v9428_v7 = vpop.permute.xlu1 %2322  ;;  %14867 = vst [vmem:[#allocation197_spill] sm:$0xff] %v9430_v24  ;;  %v2503_v53 = vpack.c.bf16 %v2446_v14, %v2445_v9  ;;  %v14870_v16 = vld [vmem:[#allocation19_spill] sm:$0xff]  ;;  %v491_v21 = vadd.f32 %v8680_v18, %v14872_v10  ;;  %v14875_v14 = vld [vmem:[#allocation114_spill] sm:$0xff]  ;;  %v7468_v9 = vld [vmem:[%s14119_s1 + $0xc0] sm:$0xff] }
 0x231   :  { %14865 = vst [vmem:[#allocation195_spill] sm:$0xff] %v9426_v20  ;;  %v9434_v36 = vpop.permute.xlu0 %2342  ;;  %v1523_v20 = vmul.f32 %v14870_v16, %v9436_v4  ;;  %v489_v8 = vadd.f32 %v8680_v18, %v14875_v14  ;;  %v2061_v14 = vrot.slane %v9177_v26, 1 }
 0x232   :  { %14866 = vst [vmem:[#allocation196_spill] sm:$0xff] %v9428_v7  ;;  %1795 = vmatmul.bf16.gmra.mxu2 %v1591_v15  ;;  %v9471_v56 = vmax.f32 %v491_v21, 0.0 }
 0x233   :  { %14868 = vst [vmem:[#allocation198_spill] sm:$0xff] %v9434_v36 }
 0x234   :  { %14869 = vst [vmem:[#allocation199_spill] sm:$0xff] %v9436_v4 }
 0x235   :  { %v9442_v51 = vpop.f32.mrf.mxu2  ;;  %2631 = vmatmul.bf16.gmra.mxu3 %v2503_v53  ;;  %14874 = vst [vmem:[#allocation200_spill] sm:$0xff] %v9451_v45  ;;  %v1576_v53 = vpack.c.bf16 %v1523_v20, %v1522_v32  ;;  %v9474_v32 = vmax.f32 %v489_v8, 0.0  ;;  %v1555_v20 = vmul.f32 %v8793_v46, %v9471_v56  ;;  %v14885_v8 = vld [vmem:[#allocation124_spill] sm:$0xff] }
 0x236   :  { %14871 = vst [vmem:[#allocation19_spill] sm:$0xff] %v9442_v51  ;;  %v9446_v59 = vpop.f32.mrf.mxu1  ;;  %v14240_v51 = vrot.slane %v9268_v12, 1  ;;  %v414_v46 = vadd.f32 %v8680_v18, %v14885_v8 }
 0x237   :  { %14873 = vst [vmem:[#allocation117_spill] sm:$0xff] %v9446_v59  ;;  %2895 = vperm.xlu2 %7316, %v9451_v45   ;;  %2891 = vperm.xlu1 %7318, %v9457_v40   ;;  %v14881_v59 = vld [vmem:[#allocation125_spill] sm:$0xff]  ;;  %v15039_v45 = vld [vmem:[#allocation80_spill] sm:$0xff] }
 0x238   :  { %2923 = vperm.xlu0 %7317, %v7468_v9   ;;  %v9465_v15 = vpop.permute.xlu2 %2374  ;;  %v9467_v16 = vpop.permute.xlu1 %2334  ;;  %14879 = vst [vmem:[#allocation203_spill] sm:$0xff] %v9471_v56  ;;  %v416_v9 = vadd.f32 %v8680_v18, %v14881_v59  ;;  %v9489_v21 = vsel %vm2112_vm0, %v2061_v14, %v14240_v51  ;;  %v7469_v59 = vld [vmem:[%s14119_s1 + $0xa0] sm:$0xff]  ;;  %v9508_v51 = vsel %vm2112_vm0, %v2060_v44, %v2061_v14  ;;  %v9523_v44 = vmax.f32 %v414_v46, 0.0  ;;  %v7474_v46 = vld [vmem:[%s14119_s1 + $0xf0] sm:$0xff] }
 0x239   :  { %14876 = vst [vmem:[#allocation114_spill] sm:$0xff] %v9465_v15  ;;  %v9469_v10 = vpop.permute.xlu0 %2354  ;;  %1720 = vmatmul.bf16.gmra.mxu1 %v1576_v53  ;;  %v2448_v56 = vmul.f32 %v9122_v2, %v9489_v21  ;;  %v7471_v2 = vld [vmem:[%s14119_s1 + $0xd8] sm:$0xff] }
 0x23a   :  { %14877 = vst [vmem:[#allocation201_spill] sm:$0xff] %v9467_v16 }
 0x23b   :  { %14878 = vst [vmem:[#allocation202_spill] sm:$0xff] %v9469_v10  ;;  %v1554_v10 = vmul.f32 %v8767_v41, %v9474_v32  ;;  %v9503_v41 = vld [vmem:[%s14119_s1 + $0x98] sm:$0xff] }
 0x23c   :  { %14880 = vst [vmem:[#allocation204_spill] sm:$0xff] %v9474_v32  ;;  %v2447_v32 = vmul.f32 %v9039_v52, %v9508_v51  ;;  %v7203_v52 = vld [vmem:[%s14122_s4 + $0x8] sm:$0xff] }
 0x23d   :  { %v9481_v15 = vpop.f32.mrf.mxu2  ;;  %14883 = vst [vmem:[#allocation205_spill] sm:$0xff] %v9489_v21  ;;  %1885 = vmatpush.bf16.msrb.mxu2 %v7203_v52 }
 0x23e   :  { %14882 = vst [vmem:[#allocation125_spill] sm:$0xff] %v9481_v15  ;;  %v9491_v53 = vpop.f32.mrf.mxu1  ;;  %v9517_v15 = vmax.f32 %v416_v9, 0.0  ;;  %v2504_v36 = vpack.c.bf16 %v2448_v56, %v2447_v32  ;;  %v14896_v56 = vld [vmem:[#allocation121_spill] sm:$0xff] }
 0x23f   :  { %14884 = vst [vmem:[#allocation206_spill] sm:$0xff] %v9491_v53  ;;  %2907 = vperm.xlu2 %7316, %v7469_v59   ;;  %2903 = vperm.xlu1 %7318, %v9503_v41   ;;  %v1592_v59 = vpack.c.bf16 %v1555_v20, %v1554_v10  ;;  %v14893_v10 = vld [vmem:[#allocation123_spill] sm:$0xff]  ;;  %v494_v32 = vadd.f32 %v8680_v18, %v14896_v56  ;;  %v7235_v56 = vld [vmem:[%s14122_s4 + $0x108] sm:$0xff] }
 0x240   :  { %14886 = vst [vmem:[#allocation124_spill] sm:$0xff] %v9508_v51  ;;  %2935 = vperm.xlu0 %7317, %v7471_v2   ;;  %v9513_v8 = vpop.permute.xlu2 %2386  ;;  %v9515_v21 = vpop.permute.xlu1 %2346  ;;  %v1525_v14 = vmul.f32 %v8582_v58, %v9517_v15  ;;  %v1524_v2 = vmul.f32 %v8565_v49, %v9523_v44  ;;  %v496_v20 = vadd.f32 %v8680_v18, %v14893_v10  ;;  %v9541_v58 = vld [vmem:[%s14119_s1 + $0xb8] sm:$0xff]  ;;  %v9547_v49 = vld [vmem:[%s14119_s1 + $0xb0] sm:$0xff] }
 0x241   :  { %14887 = vst [vmem:[#allocation207_spill] sm:$0xff] %v9513_v8  ;;  %v9521_v53 = vpop.permute.xlu0 %2366  ;;  %3545 = vmatpush.bf16.msrb.mxu1 %v7235_v56 }
 0x242   :  { %14888 = vst [vmem:[#allocation208_spill] sm:$0xff] %v9515_v21  ;;  %1800 = vmatmul.bf16.gmra.mxu2 %v1592_v59 }
 0x243   :  { %14889 = vst [vmem:[#allocation209_spill] sm:$0xff] %v9517_v15 }
 0x244   :  { %14890 = vst [vmem:[#allocation210_spill] sm:$0xff] %v9521_v53 }
 0x245   :  { %14891 = vst [vmem:[#allocation211_spill] sm:$0xff] %v9523_v44  ;;  %v9529_v8 = vpop.f32.mrf.mxu2  ;;  %2636 = vmatmul.bf16.gmra.mxu3 %v2504_v36  ;;  %v1577_v36 = vpack.c.bf16 %v1525_v14, %v1524_v2  ;;  %v2064_v14 = vrot.slane %v9349_v43, 1  ;;  %v7227_v2 = vld [vmem:[%s14122_s4 + $0xc8] sm:$0xff] }
 0x246   :  { %14892 = vst [vmem:[#allocation212_spill] sm:$0xff] %v9529_v8  ;;  %v9533_v9 = vpop.f32.mrf.mxu1  ;;  %v9561_v8 = vmax.f32 %v496_v20, 0.0  ;;  %3248 = vmatpush.bf16.msrb.mxu0 %v7227_v2  ;;  %v14909_v2 = vrot.slane %v9268_v12, 1 }
 0x247   :  { %14894 = vst [vmem:[#allocation123_spill] sm:$0xff] %v9533_v9  ;;  %2919 = vperm.xlu2 %7316, %v9541_v58   ;;  %2915 = vperm.xlu1 %7318, %v9547_v49  }
 0x248   :  { %14895 = vst [vmem:[#allocation213_spill] sm:$0xff] %v9541_v58  ;;  %2947 = vperm.xlu0 %7317, %v7474_v46   ;;  %v9555_v59 = vpop.permute.xlu2 %2398  ;;  %v9557_v10 = vpop.permute.xlu1 %2358  ;;  %v9570_v46 = vmax.f32 %v494_v32, 0.0  ;;  %v1557_v52 = vmul.f32 %v8798_v0, %v9561_v8 }
 0x249   :  { %14897 = vst [vmem:[#allocation121_spill] sm:$0xff] %v9555_v59  ;;  %v9559_v51 = vpop.permute.xlu0 %2378  ;;  %1725 = vmatmul.bf16.gmra.mxu1 %v1577_v36  ;;  %v2063_v59 = vrot.slane %v9262_v63, 1  ;;  %v14902_v36 = vld [vmem:[#allocation126_spill] sm:$0xff] }
 0x24a   :  { %14898 = vst [vmem:[#allocation214_spill] sm:$0xff] %v9557_v10  ;;  %v419_v20 = vadd.f32 %v8680_v18, %v14902_v36  ;;  %v1556_v10 = vmul.f32 %v8712_v27, %v9570_v46  ;;  %v9600_v27 = vld [vmem:[%s14119_s1 + $0xc8] sm:$0xff] }
 0x24b   :  { %14899 = vst [vmem:[#allocation215_spill] sm:$0xff] %v9559_v51  ;;  %v14903_v51 = vld [vmem:[#allocation128_spill] sm:$0xff]  ;;  %v9585_v32 = vsel %vm2112_vm0, %v2063_v59, %v2064_v14  ;;  %v9607_v56 = vsel %vm2112_vm0, %v14909_v2, %v2063_v59 }
 0x24c   :  { %14900 = vst [vmem:[#allocation216_spill] sm:$0xff] %v9561_v8  ;;  %v421_v9 = vadd.f32 %v8680_v18, %v14903_v51  ;;  %v2450_v8 = vmul.f32 %v9093_v55, %v9585_v32  ;;  %v9594_v51 = vld [vmem:[%s14119_s1 + $0xd0] sm:$0xff]  ;;  %v7477_v55 = vld [vmem:[%s14119_s1 + $0x108] sm:$0xff]  ;;  %v2449_v21 = vmul.f32 %v8994_v3, %v9607_v56 }
 0x24d   :  { %14901 = vst [vmem:[#allocation217_spill] sm:$0xff] %v9570_v46  ;;  %v9579_v53 = vpop.f32.mrf.mxu2  ;;  %v9616_v46 = vmax.f32 %v419_v20, 0.0 }
 0x24e   :  { %14904 = vst [vmem:[#allocation126_spill] sm:$0xff] %v9579_v53  ;;  %v9587_v0 = vpop.f32.mrf.mxu1  ;;  %v1593_v53 = vpack.c.bf16 %v1557_v52, %v1556_v10  ;;  %v2505_v2 = vpack.c.bf16 %v2450_v8, %v2449_v21  ;;  %v14916_v10 = vld [vmem:[#allocation30_spill] sm:$0xff]  ;;  %v9646_v21 = vld [vmem:[%s14119_s1 + $0xe0] sm:$0xff]  ;;  %v14922_v8 = vld [vmem:[#allocation35_spill] sm:$0xff] }
 0x24f   :  { %14905 = vst [vmem:[#allocation128_spill] sm:$0xff] %v9585_v32  ;;  %2931 = vperm.xlu2 %7316, %v9594_v51   ;;  %2927 = vperm.xlu1 %7318, %v9600_v27   ;;  %v1526_v52 = vmul.f32 %v14916_v10, %v9616_v46  ;;  %v15028_v43 = vrot.slane %v9616_v46, 1 }
 0x250   :  { %14906 = vst [vmem:[#allocation218_spill] sm:$0xff] %v9587_v0  ;;  %2959 = vperm.xlu0 %7317, %v7477_v55   ;;  %v9612_v36 = vpop.permute.xlu2 %2410  ;;  %v9614_v32 = vpop.permute.xlu1 %2370  ;;  %v9618_v0 = vmax.f32 %v421_v9, 0.0  ;;  %v7226_v55 = vld [vmem:[%s14122_s4 + $0xc0] sm:$0xff] }
 0x251   :  { %14907 = vst [vmem:[#allocation219_spill] sm:$0xff] %v9594_v51  ;;  %v9622_v51 = vpop.permute.xlu0 %2390  ;;  %3249 = vmatpush.bf16.msrb.mxu0 %v7226_v55  ;;  %v14918_v9 = vld [vmem:[#allocation29_spill] sm:$0xff] }
 0x252   :  { %14908 = vst [vmem:[#allocation220_spill] sm:$0xff] %v9600_v27  ;;  %1805 = vmatmul.bf16.gmra.mxu2 %v1593_v53  ;;  %v1527_v59 = vmul.f32 %v8584_v48, %v9618_v0  ;;  %v499_v3 = vadd.f32 %v8680_v18, %v14918_v9  ;;  %v9640_v48 = vld [vmem:[%s14119_s1 + $0xe8] sm:$0xff] }
 0x253   :  { %14910 = vst [vmem:[#allocation221_spill] sm:$0xff] %v9607_v56 }
 0x254   :  { %14911 = vst [vmem:[#allocation222_spill] sm:$0xff] %v9612_v36  ;;  %v1578_v53 = vpack.c.bf16 %v1527_v59, %v1526_v52  ;;  %v7480_v59 = vld [vmem:[%s14119_s1 + $0x120] sm:$0xff]  ;;  %v2065_v36 = vrot.slane %v9343_v6, 1 }
 0x255   :  { %14912 = vst [vmem:[#allocation223_spill] sm:$0xff] %v9614_v32  ;;  %v9631_v20 = vpop.f32.mrf.mxu2  ;;  %2641 = vmatmul.bf16.gmra.mxu3 %v2505_v2  ;;  %v501_v2 = vadd.f32 %v8680_v18, %v14922_v8  ;;  %v426_v8 = vadd.f32 %v8680_v18, %v8610_v62  ;;  %v9685_v62 = vld [vmem:[%s14121_s3] ss:$0 sm:$0xff]  ;;  %v14932_v18 = vld [vmem:[#allocation130_spill] sm:$0xff] }
 0x256   :  { %14913 = vst [vmem:[#allocation224_spill] sm:$0xff] %v9616_v46  ;;  %v9635_v56 = vpop.f32.mrf.mxu1 }
 0x257   :  { %14914 = vst [vmem:[#allocation225_spill] sm:$0xff] %v9618_v0  ;;  %2943 = vperm.xlu2 %7316, %v9640_v48   ;;  %2939 = vperm.xlu1 %7318, %v9646_v21  }
 0x258   :  { %14915 = vst [vmem:[#allocation226_spill] sm:$0xff] %v9622_v51  ;;  %2971 = vperm.xlu0 %7317, %v7480_v59   ;;  %v9654_v55 = vpop.permute.xlu2 %2422  ;;  %v9656_v10 = vpop.permute.xlu1 %2382  ;;  %v9667_v51 = vmax.f32 %v501_v2, 0.0  ;;  %v9689_v2 = vmax.f32 %v426_v8, 0.0 }
 0x259   :  { %14917 = vst [vmem:[#allocation30_spill] sm:$0xff] %v9631_v20  ;;  %v9658_v52 = vpop.permute.xlu0 %2402  ;;  %1730 = vmatmul.bf16.gmra.mxu1 %v1578_v53  ;;  %v9660_v9 = vpop.f32.mrf.mxu3  ;;  %v9662_v20 = vmax.f32 %v499_v3, 0.0  ;;  %v9678_v3 = vsel %vm2112_vm0, %v2064_v14, %v2065_v36  ;;  %v9699_v14 = vld [vmem:[%s14119_s1 + $0xf8] sm:$0xff] }
 0x25a   :  { %14919 = vst [vmem:[#allocation29_spill] sm:$0xff] %v9635_v56  ;;  %v1559_v53 = vmul.f32 %v8733_v17, %v9667_v51  ;;  %v7482_v17 = vld [vmem:[%s14119_s1 + $0x100] sm:$0xff] }
 0x25b   :  { %14920 = vst [vmem:[#allocation227_spill] sm:$0xff] %v9640_v48  ;;  %v1558_v59 = vmul.f32 %v8816_v5, %v9662_v20  ;;  %v424_v5 = vadd.f32 %v9685_v62, %v14932_v18 }
 0x25c   :  { %14921 = vst [vmem:[#allocation228_spill] sm:$0xff] %v9646_v21 }
 0x25d   :  { %14923 = vst [vmem:[#allocation35_spill] sm:$0xff] %v9654_v55  ;;  %v9672_v56 = vpop.f32.mrf.mxu2  ;;  %v2451_v55 = vmul.f32 %v9169_v57, %v9678_v3  ;;  %v7484_v57 = vld [vmem:[%s14119_s1 + $0x138] sm:$0xff] }
 0x25e   :  { %14924 = vst [vmem:[#allocation229_spill] sm:$0xff] %v9656_v10  ;;  %v9719_v10 = vmax.f32 %v424_v5, 0.0 }
 0x25f   :  { %14925 = vst [vmem:[#allocation230_spill] sm:$0xff] %v9658_v52  ;;  %v9680_v52 = vpop.f32.mrf.mxu1  ;;  %2955 = vperm.xlu2 %7316, %v7482_v17   ;;  %2951 = vperm.xlu1 %7318, %v9699_v14   ;;  %v1594_v17 = vpack.c.bf16 %v1559_v53, %v1558_v59  ;;  %v14944_v59 = vld [vmem:[#allocation129_spill] sm:$0xff] }
 0x260   :  { %14926 = vst [vmem:[#allocation231_spill] sm:$0xff] %v9660_v9  ;;  %2983 = vperm.xlu0 %7317, %v7484_v57   ;;  %v9711_v18 = vpop.permute.xlu1 %2394  ;;  %v14942_v57 = vld [vmem:[#allocation131_spill] sm:$0xff]  ;;  %v506_v53 = vadd.f32 %v9685_v62, %v14944_v59 }
 0x261   :  { %14927 = vst [vmem:[#allocation232_spill] sm:$0xff] %v9662_v20  ;;  %v9717_v20 = vpop.f32.mrf.mxu3  ;;  %v1528_v9 = vmul.f32 %v14942_v57, %v9719_v10 }
 0x262   :  { %14928 = vst [vmem:[#allocation233_spill] sm:$0xff] %v9667_v51  ;;  %v9715_v51 = vpop.permute.xlu0 %2414  ;;  %1810 = vmatmul.bf16.gmra.mxu2 %v1594_v17 }
 0x263   :  { %14929 = vst [vmem:[#allocation234_spill] sm:$0xff] %v9672_v56  ;;  %v14935_v56 = vrot.slane %v9430_v24, 1 }
 0x264   :  { %14930 = vst [vmem:[#allocation235_spill] sm:$0xff] %v9678_v3 }
 0x265   :  { %14931 = vst [vmem:[#allocation236_spill] sm:$0xff] %v9680_v52  ;;  %v9706_v8 = vsel %vm2112_vm0, %v2065_v36, %v14935_v56  ;;  %v2828_v52 = vpop.permute.xlu2 %2827  ;;  %v14941_v36 = vld [vmem:[#allocation28_spill] sm:$0xff] }
 0x266   :  { %14933 = vst [vmem:[#allocation130_spill] sm:$0xff] %v9689_v2  ;;  %v2452_v3 = vmul.f32 %v9035_v54, %v9706_v8  ;;  %v1529_v32 = vmul.f32 %v14941_v36, %v9689_v2  ;;  %v7202_v54 = vld [vmem:[%s14122_s4] sm:$0xff] }
 0x267   :  { %14934 = vst [vmem:[#allocation237_spill] sm:$0xff] %v9699_v14  ;;  %v9732_v17 = vpop.f32.mrf.mxu1  ;;  %1886 = vmatpush.bf16.msrb.mxu2 %v7202_v54  ;;  %v2067_v54 = vrot.slane %v9436_v4, 1  ;;  %v14992_v4 = vld [vmem:[#allocation148_spill] sm:$0xff]  ;;  %v15012_v14 = vld [vmem:[#allocation139_spill] sm:$0xff] }
 0x268   :  { %14936 = vst [vmem:[#allocation238_spill] sm:$0xff] %v9706_v8  ;;  %v2506_v56 = vpack.c.bf16 %v2452_v3, %v2451_v55  ;;  %v7485_v55 = vld [vmem:[%s14119_s1 + $0x118] sm:$0xff]  ;;  %v9740_v3 = vld [vmem:[%s14119_s1 + $0x110] sm:$0xff]  ;;  %v1579_v5 = vpack.c.bf16 %v1529_v32, %v1528_v9  ;;  %2995 = vperm.xlu0 %7317, %v8897_v23   ;;  %v9746_v57 = vpop.permute.xlu1 %2406  ;;  %v9752_v8 = vmax.f32 %v506_v53, 0.0  ;;  %v14954_v53 = vld [vmem:[#allocation137_spill] sm:$0xff] }
 0x269   :  { %14937 = vst [vmem:[#allocation239_spill] sm:$0xff] %v9711_v18  ;;  %v9725_v18 = vpop.f32.mrf.mxu2  ;;  %2967 = vperm.xlu2 %7316, %v7485_v55   ;;  %2963 = vperm.xlu1 %7318, %v9740_v3   ;;  %v9750_v55 = vpop.f32.mrf.mxu3  ;;  %v14952_v32 = vld [vmem:[#allocation140_spill] sm:$0xff] }
 0x26a   :  { %14938 = vst [vmem:[#allocation240_spill] sm:$0xff] %v9715_v51  ;;  %2646 = vmatmul.bf16.gmra.mxu3 %v2506_v56  ;;  %v14947_v56 = vld [vmem:[#allocation127_spill] sm:$0xff]  ;;  %v9748_v59 = vpop.permute.xlu0 %2426  ;;  %1735 = vmatmul.bf16.gmra.mxu1 %v1579_v5  ;;  %v431_v9 = vadd.f32 %v9685_v62, %v14952_v32  ;;  %v1561_v23 = vmul.f32 %v8839_v37, %v9752_v8  ;;  %v7234_v5 = vld [vmem:[%s14122_s4 + $0x100] sm:$0xff] }
 0x26b   :  { %14939 = vst [vmem:[#allocation241_spill] sm:$0xff] %v9717_v20  ;;  %v504_v36 = vadd.f32 %v9685_v62, %v14947_v56  ;;  %3546 = vmatpush.bf16.msrb.mxu1 %v7234_v5 }
 0x26c   :  { %14940 = vst [vmem:[#allocation242_spill] sm:$0xff] %v9719_v10 }
 0x26d   :  { %14943 = vst [vmem:[#allocation28_spill] sm:$0xff] %v9725_v18  ;;  %v9755_v51 = vpop.permute.xlu2 %2839  ;;  %v9759_v56 = vmax.f32 %v504_v36, 0.0  ;;  %v14956_v36 = vrot.slane %v9523_v44, 1 }
 0x26e   :  { %14945 = vst [vmem:[#allocation131_spill] sm:$0xff] %v9732_v17  ;;  %v14964_v17 = vld [vmem:[#allocation36_spill] sm:$0xff] }
 0x26f   :  { %14946 = vst [vmem:[#allocation129_spill] sm:$0xff] %v9740_v3  ;;  %v9777_v32 = vsel %vm2112_vm0, %v2067_v54, %v14956_v36  ;;  %v9797_v36 = vld [vmem:[%s14119_s1 + $0x128] sm:$0xff]  ;;  %v619_v37 = vrot.slane %v14964_v17, 7 }
 0x270   :  { %14948 = vst [vmem:[#allocation127_spill] sm:$0xff] %v9746_v57  ;;  %v1560_v57 = vmul.f32 %v8820_v19, %v9759_v56  ;;  %v2454_v19 = vmul.f32 %v9210_v33, %v9777_v32 }
 0x271   :  { %14949 = vst [vmem:[#allocation243_spill] sm:$0xff] %v9748_v59  ;;  %v429_v59 = vadd.f32 %v9685_v62, %v14954_v53  ;;  %v9769_v18 = vpop.f32.mrf.mxu2  ;;  %v9784_v53 = vmax.f32 %v431_v9, 0.0  ;;  %2975 = vperm.xlu1 %7318, %v9797_v36   ;;  %v14962_v9 = vrot.slane %v9430_v24, 1  ;;  %v9814_v20 = vpop.f32.mrf.mxu3  ;;  %v14976_v24 = vld [vmem:[#allocation136_spill] sm:$0xff] }
 0x272   :  { %14950 = vst [vmem:[#allocation244_spill] sm:$0xff] %v9750_v55  ;;  %v1595_v5 = vpack.c.bf16 %v1561_v23, %v1560_v57  ;;  %v14969_v57 = vrot.slane %v8703_v34, 7 }
 0x273   :  { %14951 = vst [vmem:[#allocation245_spill] sm:$0xff] %v9752_v8  ;;  %v9780_v8 = vpop.f32.mrf.mxu1  ;;  %v9804_v33 = vsel %vm2112_vm0, %v14962_v9, %v2067_v54  ;;  %v2832_v9 = vpop.permute.xlu0 %2831 }
 0x274   :  { %14953 = vst [vmem:[#allocation140_spill] sm:$0xff] %v9759_v56  ;;  %v9808_v56 = vpop.permute.xlu1 %2418  ;;  %v2453_v55 = vmul.f32 %v9124_v35, %v9804_v33  ;;  %v9820_v23 = vsel %vm685_vm1, %v14969_v57, %v619_v37  ;;  %1815 = vmatmul.bf16.gmra.mxu2 %v1595_v5 }
 0x275   :  { %14955 = vst [vmem:[#allocation137_spill] sm:$0xff] %v9769_v18  ;;  %v9791_v18 = vld [vmem:[%s14119_s1 + $0x130] sm:$0xff]  ;;  %v9822_v54 = vpop.permute.xlu2 %2847  ;;  %v3082_v35 = vmul.f32 %v2828_v52, %v9820_v23  ;;  %v9845_v52 = vld [vmem:[%s14119_s1 + $0x148] sm:$0xff] }
 0x276   :  { %14957 = vst [vmem:[#allocation246_spill] sm:$0xff] %v9777_v32  ;;  %2979 = vperm.xlu2 %7316, %v9791_v18   ;;  %v14965_v32 = vld [vmem:[#allocation65_spill] sm:$0xff] }
 0x277   :  { %14958 = vst [vmem:[#allocation247_spill] sm:$0xff] %v9780_v8  ;;  %3007 = vperm.xlu0 %7317, %v14965_v32   ;;  %v9810_v8 = vmax.f32 %v429_v59, 0.0  ;;  %v14971_v32 = vrot.slane %v8744_v39, 7 }
 0x278   :  { %14959 = vst [vmem:[#allocation248_spill] sm:$0xff] %v9784_v53 }
 0x279   :  { %14960 = vst [vmem:[#allocation249_spill] sm:$0xff] %v9791_v18  ;;  %v9828_v59 = vsel %vm685_vm1, %v619_v37, %v14971_v32  ;;  %v9834_v48 = vpop.f32.mrf.mxu2  ;;  %v511_v37 = vadd.f32 %v9685_v62, %v14976_v24  ;;  %v14981_v24 = vld [vmem:[#allocation159_spill] sm:$0xff]  ;;  %v9859_v5 = vpop.f32.mrf.mxu3 }
 0x27a   :  { %14961 = vst [vmem:[#allocation250_spill] sm:$0xff] %v9797_v36  ;;  %v14975_v36 = vld [vmem:[#allocation132_spill] sm:$0xff] }
 0x27b   :  { %14963 = vst [vmem:[#allocation251_spill] sm:$0xff] %v9804_v33  ;;  %v3083_v33 = vmul.f32 %v2832_v9, %v9828_v59  ;;  %v1530_v16 = vmul.f32 %v14975_v36, %v9810_v8  ;;  %v9840_v32 = vpop.f32.mrf.mxu1  ;;  %v9866_v9 = vpop.permute.xlu0 %2851 }
 0x27c   :  { %14966 = vst [vmem:[#allocation65_spill] sm:$0xff] %v9808_v56  ;;  %v2507_v56 = vpack.c.bf16 %v2454_v19, %v2453_v55  ;;  %v14979_v55 = vld [vmem:[#allocation133_spill] sm:$0xff]  ;;  %v9857_v36 = vpop.permute.xlu1 %2430 }
 0x27d   :  { %14967 = vst [vmem:[#allocation252_spill] sm:$0xff] %v9810_v8  ;;  %v3146_v57 = vpack.c.bf16 %v3083_v33, %v3082_v35  ;;  %v9853_v19 = vld [vmem:[%s14119_s1 + $0x140] sm:$0xff]  ;;  %v9861_v33 = vmax.f32 %v511_v37, 0.0  ;;  %v14985_v35 = vld [vmem:[#allocation143_spill] sm:$0xff] }
 0x27e   :  { %14968 = vst [vmem:[#allocation253_spill] sm:$0xff] %v9814_v20  ;;  %v14973_v20 = vld [vmem:[#allocation134_spill] sm:$0xff]  ;;  %2651 = vmatmul.bf16.gmra.mxu3 %v2507_v56  ;;  %2991 = vperm.xlu2 %7316, %v9845_v52   ;;  %v509_v56 = vadd.f32 %v9685_v62, %v14979_v55 }
 0x27f   :  { %14970 = vst [vmem:[#allocation254_spill] sm:$0xff] %v9820_v23  ;;  %v1531_v18 = vmul.f32 %v14973_v20, %v9784_v53  ;;  %3250 = vmatmul.bf16.vlgmr.msrb.gmra.mxu0 %v3146_v57  ;;  %2987 = vperm.xlu1 %7318, %v9853_v19   ;;  %v436_v57 = vadd.f32 %v9685_v62, %v14985_v35 }
 0x280   :  { %14972 = vst [vmem:[#allocation255_spill] sm:$0xff] %v9828_v59  ;;  %3019 = vperm.xlu0 %7317, %v14981_v24   ;;  %v9870_v55 = vmax.f32 %v509_v56, 0.0  ;;  %v14987_v24 = vld [vmem:[#allocation61_spill] sm:$0xff]  ;;  %v14993_v56 = vrot.slane %v9616_v46, 1 }
 0x281   :  { %14974 = vst [vmem:[#allocation134_spill] sm:$0xff] %v9834_v48  ;;  %v1580_v20 = vpack.c.bf16 %v1531_v18, %v1530_v16  ;;  %v9864_v18 = vpop.permute.xlu2 %2859  ;;  %v1563_v48 = vmul.f32 %v14987_v24, %v9861_v33  ;;  %v14990_v16 = vld [vmem:[#allocation46_spill] sm:$0xff] }
 0x282   :  { %14977 = vst [vmem:[#allocation132_spill] sm:$0xff] %v9840_v32  ;;  %v14989_v32 = vld [vmem:[#allocation151_spill] sm:$0xff]  ;;  %v1562_v3 = vmul.f32 %v14992_v4, %v9870_v55 }
 0x283   :  { %14978 = vst [vmem:[#allocation136_spill] sm:$0xff] %v9845_v52  ;;  %1740 = vmatmul.bf16.gmra.mxu1 %v1580_v20  ;;  %v2069_v20 = vrot.slane %v9517_v15, 1  ;;  %v9889_v24 = vpop.f32.mrf.mxu1  ;;  %v9898_v52 = vld [vmem:[%s14119_s1 + $0x160] sm:$0xff]  ;;  %v15004_v15 = vrot.slane %v14990_v16, 7 }
 0x284   :  { %14980 = vst [vmem:[#allocation133_spill] sm:$0xff] %v9853_v19  ;;  %v9879_v19 = vpop.f32.mrf.mxu2  ;;  %v1596_v4 = vpack.c.bf16 %v1563_v48, %v1562_v3  ;;  %v9919_v3 = vpop.f32.mrf.mxu3 }
 0x285   :  { %14982 = vst [vmem:[#allocation159_spill] sm:$0xff] %v9857_v36  ;;  %v14988_v36 = vld [vmem:[#allocation142_spill] sm:$0xff]  ;;  %v9887_v35 = vsel %vm2112_vm0, %v2069_v20, %v14993_v56 }
 0x286   :  { %14983 = vst [vmem:[#allocation256_spill] sm:$0xff] %v9859_v5  ;;  %v434_v37 = vadd.f32 %v9685_v62, %v14988_v36  ;;  %v621_v5 = vrot.slane %v14989_v32, 7  ;;  %v2456_v36 = vmul.f32 %v9175_v38, %v9887_v35  ;;  %3003 = vperm.xlu2 %7316, %v9898_v52   ;;  %v15003_v38 = vld [vmem:[#allocation164_spill] sm:$0xff]  ;;  %1820 = vmatmul.bf16.gmra.mxu2 %v1596_v4 }
 0x287   :  { %14984 = vst [vmem:[#allocation257_spill] sm:$0xff] %v9861_v33  ;;  %v9891_v33 = vmax.f32 %v436_v57, 0.0  ;;  %v15001_v57 = vld [vmem:[#allocation120_spill] sm:$0xff] }
 0x288   :  { %14986 = vst [vmem:[#allocation143_spill] sm:$0xff] %v9870_v55  ;;  %v15000_v55 = vld [vmem:[#allocation66_spill] sm:$0xff]  ;;  %3031 = vperm.xlu0 %7317, %v15001_v57   ;;  %v9917_v48 = vsel %vm685_vm1, %v621_v5, %v15004_v15 }
 0x289   :  { %14991 = vst [vmem:[#allocation61_spill] sm:$0xff] %v9879_v19  ;;  %v14998_v19 = vrot.slane %v9523_v44, 1  ;;  %2999 = vperm.xlu1 %7318, %v15000_v55  }
 0x28a   :  { %14994 = vst [vmem:[#allocation142_spill] sm:$0xff] %v9887_v35 }
 0x28b   :  { %14995 = vst [vmem:[#allocation148_spill] sm:$0xff] %v9889_v24  ;;  %v9905_v56 = vsel %vm2112_vm0, %v14998_v19, %v2069_v20  ;;  %v9909_v24 = vmax.f32 %v434_v37, 0.0  ;;  %v15007_v19 = vrot.slane %v8744_v39, 7  ;;  %v3085_v20 = vmul.f32 %v9755_v51, %v9917_v48  ;;  %v9929_v37 = vpop.permute.xlu2 %2871  ;;  %v7249_v51 = vld [vmem:[%s14122_s4 + $0x178] sm:$0xff]  ;;  %v9945_v7 = vpop.f32.mrf.mxu1 }
 0x28c   :  { %14996 = vst [vmem:[#allocation258_spill] sm:$0xff] %v9891_v33  ;;  %v2455_v35 = vmul.f32 %v15003_v38, %v9905_v56  ;;  %v9932_v38 = vpop.permute.xlu0 %2863  ;;  %v9936_v58 = vpop.f32.mrf.mxu2  ;;  %4188 = vmatpush.bf16.msra.mxu2 %v7249_v51  ;;  %v15024_v51 = vld [vmem:[#allocation152_spill] sm:$0xff] }
 0x28d   :  { %14997 = vst [vmem:[#allocation259_spill] sm:$0xff] %v9898_v52  ;;  %v2836_v52 = vpop.permute.xlu1 %2835  ;;  %v9925_v55 = vsel %vm685_vm1, %v15007_v19, %v621_v5  ;;  %v15011_v5 = vld [vmem:[#allocation34_spill] sm:$0xff] }
 0x28e   :  { %14999 = vst [vmem:[#allocation260_spill] sm:$0xff] %v9905_v56  ;;  %v3084_v57 = vmul.f32 %v2836_v52, %v9925_v55  ;;  %v2508_v15 = vpack.c.bf16 %v2456_v36, %v2455_v35  ;;  %v15009_v56 = vld [vmem:[#allocation135_spill] sm:$0xff]  ;;  %v1532_v19 = vmul.f32 %v15011_v5, %v9909_v24  ;;  %v514_v52 = vadd.f32 %v9685_v62, %v15012_v14 }
 0x28f   :  { %15002 = vst [vmem:[#allocation66_spill] sm:$0xff] %v9909_v24  ;;  %v7257_v35 = vld [vmem:[%s14122_s4 + $0x1b8] sm:$0xff] }
 0x290   :  { %15005 = vst [vmem:[#allocation120_spill] sm:$0xff] %v9917_v48  ;;  %v3147_v44 = vpack.c.bf16 %v3085_v20, %v3084_v57  ;;  %2656 = vmatmul.bf16.gmra.mxu3 %v2508_v15  ;;  %v9953_v36 = vld [vmem:[%s14119_s1 + $0x178] sm:$0xff]  ;;  %v15016_v57 = vld [vmem:[#allocation110_spill] sm:$0xff]  ;;  %v9960_v15 = vpop.f32.mrf.mxu3 }
 0x291   :  { %15006 = vst [vmem:[#allocation164_spill] sm:$0xff] %v9919_v3  ;;  %v1533_v3 = vmul.f32 %v15009_v56, %v9891_v33  ;;  %3015 = vperm.xlu2 %7316, %v9953_v36   ;;  %v15015_v56 = vld [vmem:[#allocation141_spill] sm:$0xff]  ;;  %3011 = vperm.xlu1 %7318, %v15016_v57   ;;  %v15017_v14 = vld [vmem:[#allocation163_spill] sm:$0xff] }
 0x292   :  { %15008 = vst [vmem:[#allocation261_spill] sm:$0xff] %v9925_v55  ;;  %3255 = vmatmul.bf16.gmra.mxu0 %v3147_v44  ;;  %v516_v20 = vadd.f32 %v9685_v62, %v15015_v56  ;;  %3043 = vperm.xlu0 %7317, %v15017_v14   ;;  %v9962_v44 = vmax.f32 %v514_v52, 0.0  ;;  %v623_v52 = vrot.slane %v15024_v51, 7  ;;  %v15030_v14 = vld [vmem:[#allocation56_spill] sm:$0xff] }
 0x293   :  { %15010 = vst [vmem:[#allocation135_spill] sm:$0xff] %v9936_v58  ;;  %v1581_v4 = vpack.c.bf16 %v1533_v3, %v1532_v19  ;;  %v2071_v58 = vrot.slane %v9618_v0, 1  ;;  %4837 = vmatpush.bf16.msra.mxu3 %v7257_v35  ;;  %v15021_v3 = vld [vmem:[#allocation147_spill] sm:$0xff]  ;;  %v15025_v0 = vld [vmem:[#allocation145_spill] sm:$0xff]  ;;  %v9993_v21 = vpop.f32.mrf.mxu1 }
 0x294   :  { %15013 = vst [vmem:[#allocation34_spill] sm:$0xff] %v9945_v7  ;;  %v9965_v7 = vpop.permute.xlu2 %2883  ;;  %v441_v19 = vadd.f32 %v9685_v62, %v15021_v3  ;;  %v9971_v56 = vmax.f32 %v516_v20, 0.0  ;;  %v439_v6 = vadd.f32 %v9685_v62, %v15025_v0  ;;  %v9982_v35 = vpop.f32.mrf.mxu2  ;;  %v15027_v3 = vld [vmem:[#allocation51_spill] sm:$0xff] }
 0x295   :  { %15014 = vst [vmem:[#allocation139_spill] sm:$0xff] %v9953_v36  ;;  %1745 = vmatmul.bf16.gmra.mxu1 %v1581_v4  ;;  %v2844_v5 = vpop.permute.xlu1 %2843  ;;  %v9967_v36 = vpop.permute.xlu0 %2875  ;;  %v15023_v4 = vld [vmem:[#allocation50_spill] sm:$0xff]  ;;  %v7273_v0 = vld [vmem:[%s14122_s4 + $0x238] sm:$0xff] }
 0x296   :  { %15018 = vst [vmem:[#allocation141_spill] sm:$0xff] %v9960_v15  ;;  %v1564_v57 = vmul.f32 %v15023_v4, %v9962_v44  ;;  %v7265_v15 = vld [vmem:[%s14122_s4 + $0x1f8] sm:$0xff]  ;;  %v1565_v20 = vmul.f32 %v15027_v3, %v9971_v56  ;;  %v9990_v4 = vsel %vm2112_vm0, %v15028_v43, %v2071_v58  ;;  %v9998_v62 = vmax.f32 %v441_v19, 0.0  ;;  %v15038_v19 = vld [vmem:[#allocation158_spill] sm:$0xff]  ;;  %6135 = vmatpush.bf16.msra.mxu1 %v7273_v0 }
 0x297   :  { %15019 = vst [vmem:[#allocation110_spill] sm:$0xff] %v9962_v44  ;;  %5486 = vmatpush.bf16.msra.mxu0 %v7265_v15  ;;  %v2457_v3 = vmul.f32 %v9260_v50, %v9990_v4  ;;  %v15034_v43 = vrot.slane %v9719_v10, 1  ;;  %v15036_v15 = vrot.slane %v14990_v16, 7  ;;  %v10017_v50 = vmax.f32 %v439_v6, 0.0 }
 0x298   :  { %15020 = vst [vmem:[#allocation163_spill] sm:$0xff] %v9965_v7  ;;  %v1597_v46 = vpack.c.bf16 %v1565_v20, %v1564_v57  ;;  %v15041_v57 = vld [vmem:[#allocation85_spill] sm:$0xff]  ;;  %v15048_v7 = vld [vmem:[#allocation138_spill] sm:$0xff] }
 0x299   :  { %15022 = vst [vmem:[#allocation147_spill] sm:$0xff] %v9971_v56  ;;  %v10007_v44 = vsel %vm2112_vm0, %v2071_v58, %v15034_v43  ;;  %3023 = vperm.xlu1 %7318, %v15038_v19   ;;  %v15043_v43 = vrot.slane %v15030_v14, 7 }
 0x29a   :  { %15026 = vst [vmem:[#allocation50_spill] sm:$0xff] %v9982_v35  ;;  %v15033_v35 = vld [vmem:[#allocation156_spill] sm:$0xff]  ;;  %3055 = vperm.xlu0 %7317, %v15039_v45   ;;  %1825 = vmatmul.bf16.gmra.mxu2 %v1597_v46  ;;  %v10048_v46 = vld [vmem:[%s14119_s1 + $0x1a8] sm:$0xff] }
 0x29b   :  { %15029 = vst [vmem:[#allocation145_spill] sm:$0xff] %v9990_v4  ;;  %3027 = vperm.xlu2 %7316, %v15033_v35   ;;  %v2458_v35 = vmul.f32 %v15041_v57, %v10007_v44  ;;  %v10022_v4 = vpop.f32.mrf.mxu3 }
 0x29c   :  { %15031 = vst [vmem:[#allocation51_spill] sm:$0xff] %v9993_v21  ;;  %v10013_v21 = vsel %vm685_vm1, %v15036_v15, %v623_v52  ;;  %v10028_v15 = vsel %vm685_vm1, %v623_v52, %v15043_v43  ;;  %v10030_v19 = vpop.permute.xlu2 %2895  ;;  %v10038_v0 = vpop.f32.mrf.mxu2  ;;  %v1534_v52 = vmul.f32 %v15048_v7, %v10017_v50 }
 0x29d   :  { %15032 = vst [vmem:[#allocation262_spill] sm:$0xff] %v9998_v62  ;;  %v3086_v20 = vmul.f32 %v2844_v5, %v10013_v21  ;;  %v2856_v58 = vpop.permute.xlu1 %2855  ;;  %v10032_v45 = vpop.permute.xlu0 %2887  ;;  %v2509_v6 = vpack.c.bf16 %v2458_v35, %v2457_v3  ;;  %v3087_v57 = vmul.f32 %v9822_v54, %v10028_v15  ;;  %v15046_v5 = vld [vmem:[#allocation5_spill] sm:$0xff]  ;;  %v15052_v3 = vld [vmem:[#allocation24_spill] sm:$0xff]  ;;  %v15053_v35 = vld [vmem:[#allocation170_spill] sm:$0xff] }
 0x29e   :  { %15035 = vst [vmem:[#allocation156_spill] sm:$0xff] %v10007_v44  ;;  %v1535_v44 = vmul.f32 %v15046_v5, %v9998_v62  ;;  %v10042_v43 = vpop.f32.mrf.mxu1  ;;  %v2074_v5 = vrot.slane %v9810_v8, 1 }
 0x29f   :  { %15037 = vst [vmem:[#allocation263_spill] sm:$0xff] %v10013_v21 }
 0x2a0   :  { %15040 = vst [vmem:[#allocation158_spill] sm:$0xff] %v10017_v50  ;;  %2661 = vmatmul.bf16.gmra.mxu3 %v2509_v6  ;;  %v1582_v54 = vpack.c.bf16 %v1535_v44, %v1534_v52 }
 0x2a1   :  { %15042 = vst [vmem:[#allocation80_spill] sm:$0xff] %v10022_v4  ;;  %v3148_v4 = vpack.c.bf16 %v3087_v57, %v3086_v20  ;;  %3035 = vperm.xlu1 %7318, %v15052_v3   ;;  %v14319_v20 = vrot.slane %v9971_v56, 7  ;;  %v2073_v3 = vrot.slane %v9689_v2, 1 }
 0x2a2   :  { %15044 = vst [vmem:[#allocation85_spill] sm:$0xff] %v10028_v15  ;;  %3067 = vperm.xlu0 %7317, %v15053_v35   ;;  %v15064_v35 = vrot.slane %v9719_v10, 1 }
 0x2a3   :  { %15045 = vst [vmem:[#allocation264_spill] sm:$0xff] %v10030_v19  ;;  %v15050_v19 = vld [vmem:[#allocation144_spill] sm:$0xff]  ;;  %3260 = vmatmul.bf16.gmra.mxu0 %v3148_v4  ;;  %3039 = vperm.xlu2 %7316, %v10048_v46   ;;  %v10054_v7 = vpop.f32.mrf.mxu3  ;;  %v15055_v4 = vrot.slane %v8703_v34, 7  ;;  %v15058_v34 = vld [vmem:[#allocation15_spill] sm:$0xff] }
 0x2a4   :  { %15047 = vst [vmem:[#allocation5_spill] sm:$0xff] %v10038_v0  ;;  %v681_v27 = vrot.slane %v15050_v19, 7  ;;  %v10065_v44 = vpop.permute.xlu2 %2907  ;;  %v10079_v0 = vpop.f32.mrf.mxu2  ;;  %v10083_v19 = vsel %vm2112_vm0, %v2073_v3, %v2074_v5 }
 0x2a5   :  { %15049 = vst [vmem:[#allocation138_spill] sm:$0xff] %v10042_v43  ;;  %1750 = vmatmul.bf16.gmra.mxu1 %v1582_v54  ;;  %v10056_v6 = vpop.permute.xlu1 %2867  ;;  %v10067_v52 = vpop.permute.xlu0 %2899  ;;  %v625_v43 = vrot.slane %v8916_v42, 7 }
 0x2a6   :  { %15051 = vst [vmem:[#allocation265_spill] sm:$0xff] %v10048_v46  ;;  %v10062_v57 = vsel %vm685_vm1, %v681_v27, %v15055_v4  ;;  %v10073_v54 = vsel %vm685_vm1, %v14319_v20, %v681_v27  ;;  %v10086_v56 = vpop.f32.mrf.mxu1  ;;  %v15062_v27 = vld [vmem:[#allocation12_spill] sm:$0xff] }
 0x2a7   :  { %15054 = vst [vmem:[#allocation24_spill] sm:$0xff] %v10054_v7  ;;  %v1135_v4 = vmul.f32 %v15058_v34, %v10062_v57  ;;  %v1134_v20 = vmul.f32 %v15062_v27, %v10073_v54  ;;  %v2460_v7 = vmul.f32 %v9297_v1, %v10083_v19  ;;  %v10095_v34 = vld [vmem:[%s14119_s1 + $0x1c0] sm:$0xff]  ;;  %v15068_v1 = vld [vmem:[#allocation162_spill] sm:$0xff] }
 0x2a8   :  { %15056 = vst [vmem:[#allocation170_spill] sm:$0xff] %v10062_v57  ;;  %v15066_v57 = vrot.slane %v8922_v11, 7 }
 0x2a9   :  { %15057 = vst [vmem:[#allocation266_spill] sm:$0xff] %v10073_v54  ;;  %3047 = vperm.xlu1 %7318, %v15068_v1   ;;  %v1198_v54 = vpack.c.bf16 %v1135_v4, %v1134_v20 }
 0x2aa   :  { %15059 = vst [vmem:[#allocation15_spill] sm:$0xff] %v10079_v0  ;;  %v10102_v0 = vsel %vm2112_vm0, %v15064_v35, %v2073_v3  ;;  %v10108_v27 = vsel %vm685_vm1, %v625_v43, %v15066_v57  ;;  %v15071_v35 = vrot.slane %v15030_v14, 7 }
 0x2ab   :  { %15060 = vst [vmem:[#allocation267_spill] sm:$0xff] %v10083_v19  ;;  %3051 = vperm.xlu2 %7316, %v10095_v34   ;;  %v15069_v19 = vld [vmem:[#allocation23_spill] sm:$0xff]  ;;  %v10115_v46 = vpop.f32.mrf.mxu3  ;;  %1887 = vmatmul.bf16.vlgmr.msrb.gmra.mxu2 %v1198_v54 }
 0x2ac   :  { %15061 = vst [vmem:[#allocation268_spill] sm:$0xff] %v10086_v56  ;;  %3079 = vperm.xlu0 %7317, %v15069_v19   ;;  %v2459_v56 = vmul.f32 %v9212_v47, %v10102_v0  ;;  %v10123_v57 = vsel %vm685_vm1, %v15071_v35, %v625_v43  ;;  %v10125_v8 = vpop.permute.xlu2 %2919  ;;  %v10131_v20 = vpop.f32.mrf.mxu2  ;;  %v10138_v43 = vld [vmem:[%s14119_s1 + $0x1d8] sm:$0xff] }
 0x2ad   :  { %15063 = vst [vmem:[#allocation12_spill] sm:$0xff] %v10095_v34  ;;  %v3089_v34 = vmul.f32 %v2856_v58, %v10108_v27  ;;  %v10117_v3 = vpop.permute.xlu1 %2879  ;;  %v10127_v1 = vpop.permute.xlu0 %2911  ;;  %v3088_v47 = vmul.f32 %v9866_v9, %v10123_v57  ;;  %v7678_v9 = vmov 5   ;;  %v15077_v54 = vld [vmem:[#allocation175_spill] sm:$0xff] }
 0x2ae   :  { %15065 = vst [vmem:[#allocation269_spill] sm:$0xff] %v10102_v0  ;;  %v2510_v19 = vpack.c.bf16 %v2460_v7, %v2459_v56  ;;  %v10133_v4 = vpop.f32.mrf.mxu1  ;;  %v587_v56 = vpack.c.bf16 %v8744_v39, %v14964_v17  ;;  %v15076_v7 = vld [vmem:[#allocation113_spill] sm:$0xff]  ;;  %v2075_v0 = vrot.slane %v9784_v53, 1  ;;  %v628_v17 = vrot.slane %v8998_v30, 7 }
 0x2af   :  { %15067 = vst [vmem:[#allocation270_spill] sm:$0xff] %v10108_v27  ;;  %v3149_v58 = vpack.c.bf16 %v3089_v34, %v3088_v47 }
 0x2b0   :  { %15070 = vst [vmem:[#allocation162_spill] sm:$0xff] %v10115_v46  ;;  %2666 = vmatmul.bf16.gmra.mxu3 %v2510_v19  ;;  %v2076_v19 = vrot.slane %v9909_v24, 1  ;;  %v15085_v46 = vld [vmem:[#allocation14_spill] sm:$0xff] }
 0x2b1   :  { %15072 = vst [vmem:[#allocation23_spill] sm:$0xff] %v10123_v57  ;;  %3059 = vperm.xlu1 %7318, %v15076_v7   ;;  %v15080_v7 = vld [vmem:[#allocation11_spill] sm:$0xff] }
 0x2b2   :  { %15073 = vst [vmem:[#allocation271_spill] sm:$0xff] %v10131_v20  ;;  %v1136_v39 = vmul.f32 %v15080_v7, %v9820_v23  ;;  %v7496_v7 = vld [vmem:[%s14119_s1 + $0x1f0] sm:$0xff]  ;;  %v10176_v23 = vsel %vm2112_vm0, %v2074_v5, %v2075_v0 }
 0x2b3   :  { %15074 = vst [vmem:[#allocation272_spill] sm:$0xff] %v10133_v4  ;;  %3265 = vmatmul.bf16.gmra.mxu0 %v3149_v58  ;;  %3063 = vperm.xlu2 %7316, %v10138_v43   ;;  %v10145_v34 = vpop.f32.mrf.mxu3 }
 0x2b4   :  { %15075 = vst [vmem:[#allocation273_spill] sm:$0xff] %v10138_v43  ;;  %7321 = vset.pattern.permute.xlu0 %v7678_v9  ;;  %v10150_v47 = vpop.permute.xlu2 %2931  ;;  %v10158_v20 = vpop.f32.mrf.mxu2  ;;  %v1137_v43 = vmul.f32 %v15085_v46, %v9828_v59  ;;  %v15089_v46 = vld [vmem:[#allocation171_spill] sm:$0xff] }
 0x2b5   :  { %3781 = vperm.xlu0 %7321, %v15077_v54   ;;  %15078 = vst [vmem:[#allocation113_spill] sm:$0xff] %v10145_v34  ;;  %3547 = vmatmul.bf16.vlgmr.msrb.gmra.mxu1 %v587_v56  ;;  %v10147_v35 = vpop.permute.xlu1 %2891  ;;  %v10152_v58 = vpop.permute.xlu0 %2923  ;;  %v10162_v56 = vsel %vm2112_vm0, %v2075_v0, %v2076_v19  ;;  %v15083_v54 = vld [vmem:[#allocation161_spill] sm:$0xff]  ;;  %v2461_v59 = vmul.f32 %v15089_v46, %v10176_v23  ;;  %v15091_v0 = vrot.slane %v8922_v11, 7 }
 0x2b6   :  { %15079 = vst [vmem:[#allocation175_spill] sm:$0xff] %v10150_v47  ;;  %v627_v4 = vrot.slane %v15083_v54, 7  ;;  %v10165_v34 = vpop.f32.mrf.mxu1  ;;  %v2462_v24 = vmul.f32 %v9266_v60, %v10162_v56  ;;  %v1199_v47 = vpack.c.bf16 %v1137_v43, %v1136_v39 }
 0x2b7   :  { %15081 = vst [vmem:[#allocation11_spill] sm:$0xff] %v10158_v20 }
 0x2b8   :  { %15082 = vst [vmem:[#allocation274_spill] sm:$0xff] %v10162_v56  ;;  %v10180_v20 = vsel %vm685_vm1, %v627_v4, %v628_v17  ;;  %v10196_v5 = vsel %vm685_vm1, %v15091_v0, %v627_v4  ;;  %v2511_v43 = vpack.c.bf16 %v2462_v24, %v2461_v59  ;;  %v7497_v4 = vld [vmem:[%s14119_s1 + $0x8] sm:$0xff]  ;;  %v588_v59 = vpack.c.bf16 %v14990_v16, %v14989_v32  ;;  %v15095_v24 = vld [vmem:[#allocation116_spill] sm:$0xff] }
 0x2b9   :  { %15084 = vst [vmem:[#allocation275_spill] sm:$0xff] %v10165_v34  ;;  %v15088_v34 = vld [vmem:[#allocation169_spill] sm:$0xff]  ;;  %v3091_v60 = vmul.f32 %v9932_v38, %v10180_v20  ;;  %v3090_v38 = vmul.f32 %v9864_v18, %v10196_v5  ;;  %v15101_v16 = vld [vmem:[#allocation6_spill] sm:$0xff] }
 0x2ba   :  { %15086 = vst [vmem:[#allocation14_spill] sm:$0xff] %v10176_v23  ;;  %3071 = vperm.xlu1 %7318, %v15088_v34   ;;  %v1138_v32 = vmul.f32 %v15101_v16, %v9925_v55  ;;  %v15107_v55 = vld [vmem:[#allocation104_spill] sm:$0xff] }
 0x2bb   :  { %3075 = vperm.xlu2 %7316, %v7496_v7   ;;  %15087 = vst [vmem:[#allocation276_spill] sm:$0xff] %v10180_v20  ;;  %v10188_v7 = vpop.f32.mrf.mxu3  ;;  %1892 = vmatmul.bf16.gmra.mxu2 %v1199_v47 }
 0x2bc   :  { %15090 = vst [vmem:[#allocation169_spill] sm:$0xff] %v10188_v7  ;;  %v10198_v34 = vpop.permute.xlu2 %2943  ;;  %v10204_v46 = vpop.f32.mrf.mxu2 }
 0x2bd   :  { %3801 = vperm.xlu0 %7321, %v9329_v22   ;;  %v10190_v56 = vpop.permute.xlu1 %2903  ;;  %15092 = vst [vmem:[#allocation171_spill] sm:$0xff] %v10196_v5  ;;  %v10200_v39 = vpop.permute.xlu0 %2935  ;;  %v3150_v22 = vpack.c.bf16 %v3091_v60, %v3090_v38  ;;  %v2077_v60 = vrot.slane %v9891_v33, 1  ;;  %v629_v38 = vrot.slane %v9095_v31, 7 }
 0x2be   :  { %15093 = vst [vmem:[#allocation277_spill] sm:$0xff] %v10204_v46  ;;  %v10206_v23 = vpop.f32.mrf.mxu1  ;;  %v15106_v46 = vld [vmem:[#allocation95_spill] sm:$0xff] }
 0x2bf   :  { %15094 = vst [vmem:[#allocation278_spill] sm:$0xff] %v10206_v23  ;;  %v15102_v23 = vld [vmem:[#allocation187_spill] sm:$0xff] }
 0x2c0   :  { %2671 = vmatmul.bf16.gmra.mxu3 %v2511_v43  ;;  %v2078_v43 = vrot.slane %v10017_v50, 1 }
 0x2c2   :  { %7319 = vset.pattern.permute.xlu1 %v7678_v9  ;;  %v10243_v7 = vsel %vm2112_vm0, %v2077_v60, %v2078_v43 }
 0x2c3   :  { %3270 = vmatmul.bf16.gmra.mxu0 %v3150_v22  ;;  %7320 = vset.pattern.permute.xlu2 %v7678_v9  ;;  %v10215_v18 = vpop.f32.mrf.mxu3  ;;  %v15097_v22 = vld [vmem:[#allocation7_spill] sm:$0xff]  ;;  %15103 = vst [vmem:[#allocation6_spill] sm:$0xff] %v10243_v7 }
 0x2c4   :  { %3777 = vperm.xlu2 %7320, %v7497_v4   ;;  %3773 = vperm.xlu1 %7319, %v15095_v24   ;;  %15096 = vst [vmem:[#allocation116_spill] sm:$0xff] %v10215_v18  ;;  %v10220_v9 = vpop.permute.xlu2 %2955  ;;  %v1139_v4 = vmul.f32 %v15097_v22, %v9917_v48  ;;  %v10228_v24 = vpop.f32.mrf.mxu2  ;;  %v10247_v22 = vsel %vm685_vm1, %v628_v17, %v629_v38  ;;  %v15109_v17 = vrot.slane %v9089_v29, 7 }
 0x2c5   :  { %3813 = vperm.xlu0 %7321, %v9368_v25   ;;  %v10217_v47 = vpop.permute.xlu1 %2915  ;;  %3552 = vmatmul.bf16.gmra.mxu1 %v588_v59  ;;  %v10222_v0 = vpop.permute.xlu0 %2947  ;;  %15098 = vst [vmem:[#allocation7_spill] sm:$0xff] %v10228_v24  ;;  %v10232_v25 = vsel %vm2112_vm0, %v2076_v19, %v2077_v60  ;;  %v15105_v19 = vld [vmem:[#allocation181_spill] sm:$0xff]  ;;  %v2464_v48 = vmul.f32 %v15106_v46, %v10243_v7 }
 0x2c6   :  { %15099 = vst [vmem:[#allocation279_spill] sm:$0xff] %v10232_v25  ;;  %v10235_v59 = vpop.f32.mrf.mxu1  ;;  %v2463_v18 = vmul.f32 %v15102_v23, %v10232_v25  ;;  %v1200_v24 = vpack.c.bf16 %v1139_v4, %v1138_v32  ;;  %v3092_v16 = vmul.f32 %v10056_v6, %v10247_v22  ;;  %v7248_v25 = vld [vmem:[%s14122_s4 + $0x170] sm:$0xff] }
 0x2c7   :  { %15100 = vst [vmem:[#allocation280_spill] sm:$0xff] %v10235_v59  ;;  %4189 = vmatpush.bf16.msra.mxu2 %v7248_v25 }
 0x2c8   :  { %15104 = vst [vmem:[#allocation187_spill] sm:$0xff] %v10247_v22  ;;  %v2512_v6 = vpack.c.bf16 %v2464_v48, %v2463_v18  ;;  %v7498_v48 = vld [vmem:[%s14119_s1 + $0x30] sm:$0xff]  ;;  %v15114_v18 = vld [vmem:[#allocation180_spill] sm:$0xff] }
 0x2cb   :  { %v10256_v23 = vpop.f32.mrf.mxu3  ;;  %1897 = vmatmul.bf16.gmra.mxu2 %v1200_v24 }
 0x2cc   :  { %3789 = vperm.xlu2 %7320, %v15105_v19   ;;  %3785 = vperm.xlu1 %7319, %v15107_v55   ;;  %15108 = vst [vmem:[#allocation181_spill] sm:$0xff] %v10256_v23  ;;  %v10264_v19 = vsel %vm685_vm1, %v629_v38, %v15109_v17  ;;  %v10266_v32 = vpop.permute.xlu2 %2967  ;;  %v10272_v4 = vpop.f32.mrf.mxu2  ;;  %v7256_v38 = vld [vmem:[%s14122_s4 + $0x1b0] sm:$0xff] }
 0x2cd   :  { %3825 = vperm.xlu0 %7321, %v9416_v28   ;;  %v10258_v60 = vpop.permute.xlu1 %2927  ;;  %15110 = vst [vmem:[#allocation95_spill] sm:$0xff] %v10264_v19  ;;  %v10268_v46 = vpop.permute.xlu0 %2959  ;;  %v3093_v55 = vmul.f32 %v9929_v37, %v10264_v19  ;;  %v589_v37 = vpack.c.bf16 %v15030_v14, %v15024_v51  ;;  %4838 = vmatpush.bf16.msra.mxu3 %v7256_v38  ;;  %v15119_v38 = vld [vmem:[#allocation17_spill] sm:$0xff]  ;;  %v631_v14 = vrot.slane %v9171_v13, 7 }
 0x2ce   :  { %15111 = vst [vmem:[#allocation104_spill] sm:$0xff] %v10266_v32  ;;  %v10280_v17 = vpop.f32.mrf.mxu1 }
 0x2cf   :  { %v3151_v28 = vpack.c.bf16 %v3093_v55, %v3092_v16  ;;  %15112 = vst [vmem:[#allocation281_spill] sm:$0xff] %v10272_v4 }
 0x2d0   :  { %2676 = vmatmul.bf16.gmra.mxu3 %v2512_v6  ;;  %15113 = vst [vmem:[#allocation282_spill] sm:$0xff] %v10280_v17  ;;  %v15116_v6 = vld [vmem:[#allocation149_spill] sm:$0xff]  ;;  %v15123_v17 = vld [vmem:[#allocation18_spill] sm:$0xff] }
 0x2d1   :  { %v2080_v55 = vrot.slane %v15116_v6, 1  ;;  %v1140_v7 = vmul.f32 %v15123_v17, %v10013_v21  ;;  %v7499_v17 = vld [vmem:[%s14119_s1 + $0x48] sm:$0xff] }
 0x2d3   :  { %3275 = vmatmul.bf16.gmra.mxu0 %v3151_v28  ;;  %v10289_v24 = vpop.f32.mrf.mxu3 }
 0x2d4   :  { %3797 = vperm.xlu2 %7320, %v7498_v48   ;;  %3793 = vperm.xlu1 %7319, %v15114_v18   ;;  %15115 = vst [vmem:[#allocation180_spill] sm:$0xff] %v10289_v24  ;;  %v10294_v25 = vpop.permute.xlu2 %2979  ;;  %v2079_v48 = vrot.slane %v9998_v62, 1  ;;  %v1141_v18 = vmul.f32 %v15119_v38, %v10028_v15  ;;  %v10302_v4 = vpop.f32.mrf.mxu2  ;;  %v7272_v38 = vld [vmem:[%s14122_s4 + $0x230] sm:$0xff] }
 0x2d5   :  { %3837 = vperm.xlu0 %7321, %v9457_v40   ;;  %v10291_v16 = vpop.permute.xlu1 %2939  ;;  %3557 = vmatmul.bf16.gmra.mxu1 %v589_v37  ;;  %15117 = vst [vmem:[#allocation283_spill] sm:$0xff] %v10294_v25  ;;  %v10296_v28 = vpop.permute.xlu0 %2971  ;;  %v7264_v40 = vld [vmem:[%s14122_s4 + $0x1f0] sm:$0xff]  ;;  %v15126_v25 = vrot.slane %v9177_v26, 7 }
 0x2d6   :  { %15118 = vst [vmem:[#allocation284_spill] sm:$0xff] %v10296_v28  ;;  %v10309_v37 = vsel %vm2112_vm0, %v2079_v48, %v2080_v55  ;;  %v10312_v51 = vpop.f32.mrf.mxu1  ;;  %5487 = vmatpush.bf16.msra.mxu0 %v7264_v40  ;;  %v10323_v59 = vsel %vm2112_vm0, %v2078_v43, %v2079_v48  ;;  %v1201_v21 = vpack.c.bf16 %v1141_v18, %v1140_v7  ;;  %v10341_v48 = vld [vmem:[%s14119_s1 + $0x40] sm:$0xff]  ;;  %v15130_v7 = vrot.slane %v9089_v29, 7 }
 0x2d7   :  { %15120 = vst [vmem:[#allocation17_spill] sm:$0xff] %v10302_v4  ;;  %v15124_v4 = vld [vmem:[#allocation111_spill] sm:$0xff]  ;;  %6136 = vmatpush.bf16.msra.mxu1 %v7272_v38 }
 0x2d8   :  { %15121 = vst [vmem:[#allocation285_spill] sm:$0xff] %v10309_v37  ;;  %v2466_v15 = vmul.f32 %v15124_v4, %v10309_v37  ;;  %v15128_v4 = vld [vmem:[#allocation182_spill] sm:$0xff]  ;;  %v10353_v18 = vsel %vm685_vm1, %v15130_v7, %v631_v14  ;;  %v590_v7 = vpack.c.bf16 %v8922_v11, %v8916_v42 }
 0x2d9   :  { %15122 = vst [vmem:[#allocation286_spill] sm:$0xff] %v10312_v51  ;;  %v10329_v51 = vsel %vm685_vm1, %v631_v14, %v15126_v25  ;;  %v2465_v40 = vmul.f32 %v15128_v4, %v10323_v59  ;;  %v3094_v37 = vmul.f32 %v9967_v36, %v10353_v18  ;;  %v7501_v14 = vld [vmem:[%s14119_s1 + $0x60] sm:$0xff]  ;;  %v15142_v42 = vld [vmem:[#allocation22_spill] sm:$0xff] }
 0x2da   :  { %15125 = vst [vmem:[#allocation18_spill] sm:$0xff] %v10323_v59  ;;  %v3095_v43 = vmul.f32 %v10117_v3, %v10329_v51  ;;  %v1143_v11 = vmul.f32 %v15142_v42, %v10108_v27 }
 0x2db   :  { %15127 = vst [vmem:[#allocation111_spill] sm:$0xff] %v10329_v51  ;;  %v10345_v25 = vpop.f32.mrf.mxu3  ;;  %1902 = vmatmul.bf16.gmra.mxu2 %v1201_v21  ;;  %v2513_v4 = vpack.c.bf16 %v2466_v15, %v2465_v40  ;;  %v10373_v21 = vld [vmem:[%s14119_s1 + $0x58] sm:$0xff] }
 0x2dc   :  { %3809 = vperm.xlu2 %7320, %v7499_v17   ;;  %3805 = vperm.xlu1 %7319, %v10341_v48   ;;  %15129 = vst [vmem:[#allocation182_spill] sm:$0xff] %v10345_v25  ;;  %v10355_v3 = vpop.permute.xlu2 %2991  ;;  %v10361_v59 = vpop.f32.mrf.mxu2 }
 0x2dd   :  { %3849 = vperm.xlu0 %7321, %v9503_v41   ;;  %v10347_v17 = vpop.permute.xlu1 %2951  ;;  %15131 = vst [vmem:[#allocation287_spill] sm:$0xff] %v10353_v18  ;;  %v10357_v38 = vpop.permute.xlu0 %2983  ;;  %v3152_v41 = vpack.c.bf16 %v3095_v43, %v3094_v37  ;;  %v15138_v37 = vld [vmem:[#allocation150_spill] sm:$0xff] }
 0x2de   :  { %15132 = vst [vmem:[#allocation288_spill] sm:$0xff] %v10355_v3  ;;  %v10363_v25 = vpop.f32.mrf.mxu1  ;;  %v2081_v40 = vrot.slane %v15138_v37, 1  ;;  %v633_v3 = vrot.slane %v9268_v12, 7 }
 0x2df   :  { %15133 = vst [vmem:[#allocation289_spill] sm:$0xff] %v10357_v38 }
 0x2e0   :  { %15134 = vst [vmem:[#allocation290_spill] sm:$0xff] %v10361_v59  ;;  %2681 = vmatmul.bf16.gmra.mxu3 %v2513_v4  ;;  %v634_v59 = vrot.slane %v9262_v63, 7  ;;  %v10405_v24 = vsel %vm2112_vm0, %v2080_v55, %v2081_v40  ;;  %v10421_v55 = vld [vmem:[%s14119_s1 + $0x70] sm:$0xff] }
 0x2e1   :  { %15135 = vst [vmem:[#allocation291_spill] sm:$0xff] %v10363_v25 }
 0x2e2   :  { %v10409_v42 = vsel %vm685_vm1, %v633_v3, %v634_v59 }
 0x2e3   :  { %3280 = vmatmul.bf16.gmra.mxu0 %v3152_v41  ;;  %v10377_v36 = vpop.f32.mrf.mxu3  ;;  %v15141_v41 = vld [vmem:[#allocation40_spill] sm:$0xff] }
 0x2e4   :  { %3821 = vperm.xlu2 %7320, %v7501_v14   ;;  %3817 = vperm.xlu1 %7319, %v10373_v21   ;;  %15136 = vst [vmem:[#allocation292_spill] sm:$0xff] %v10377_v36  ;;  %v10382_v43 = vpop.permute.xlu2 %3003  ;;  %v2082_v14 = vrot.slane %v15141_v41, 1  ;;  %v10390_v25 = vpop.f32.mrf.mxu2  ;;  %v15147_v36 = vld [vmem:[#allocation189_spill] sm:$0xff] }
 0x2e5   :  { %3861 = vperm.xlu0 %7321, %v9547_v49   ;;  %v10379_v15 = vpop.permute.xlu1 %2963  ;;  %3562 = vmatmul.bf16.gmra.mxu1 %v590_v7  ;;  %15139 = vst [vmem:[#allocation294_spill] sm:$0xff] %v10382_v43  ;;  %v10384_v4 = vpop.permute.xlu0 %2995  ;;  %v15146_v43 = vld [vmem:[#allocation9_spill] sm:$0xff] }
 0x2e6   :  { %15137 = vst [vmem:[#allocation293_spill] sm:$0xff] %v10379_v15  ;;  %v10394_v49 = vsel %vm2112_vm0, %v2081_v40, %v2082_v14  ;;  %v10397_v7 = vpop.f32.mrf.mxu1  ;;  %v15151_v40 = vld [vmem:[#allocation220_spill] sm:$0xff] }
 0x2e7   :  { %15140 = vst [vmem:[#allocation295_spill] sm:$0xff] %v10384_v4  ;;  %v1142_v4 = vmul.f32 %v15146_v43, %v10123_v57  ;;  %v2468_v38 = vmul.f32 %v15147_v36, %v10394_v49  ;;  %v3097_v36 = vmul.f32 %v10032_v45, %v10409_v42 }
 0x2e8   :  { %15143 = vst [vmem:[#allocation22_spill] sm:$0xff] %v10390_v25  ;;  %v7503_v25 = vld [vmem:[%s14119_s1 + $0x78] sm:$0xff] }
 0x2e9   :  { %15144 = vst [vmem:[#allocation296_spill] sm:$0xff] %v10394_v49  ;;  %v1202_v27 = vpack.c.bf16 %v1143_v11, %v1142_v4  ;;  %v15154_v11 = vrot.slane %v9177_v26, 7 }
 0x2ea   :  { %15145 = vst [vmem:[#allocation297_spill] sm:$0xff] %v10397_v7  ;;  %v15150_v7 = vld [vmem:[#allocation177_spill] sm:$0xff] }
 0x2eb   :  { %15148 = vst [vmem:[#allocation9_spill] sm:$0xff] %v10405_v24  ;;  %v2467_v43 = vmul.f32 %v15150_v7, %v10405_v24  ;;  %v10425_v49 = vpop.f32.mrf.mxu3  ;;  %1907 = vmatmul.bf16.gmra.mxu2 %v1202_v27  ;;  %v15158_v24 = vld [vmem:[#allocation163_spill] sm:$0xff]  ;;  %v15161_v27 = vld [vmem:[#allocation200_spill] sm:$0xff] }
 0x2ec   :  { %15149 = vst [vmem:[#allocation189_spill] sm:$0xff] %v10409_v42  ;;  %3833 = vperm.xlu2 %7320, %v7503_v25   ;;  %3829 = vperm.xlu1 %7319, %v10421_v55   ;;  %v10433_v25 = vsel %vm685_vm1, %v15154_v11, %v633_v3  ;;  %v10435_v45 = vpop.permute.xlu2 %3015  ;;  %v10441_v23 = vpop.f32.mrf.mxu2  ;;  %v7505_v3 = vld [vmem:[%s14119_s1 + $0x90] sm:$0xff]  ;;  %v591_v11 = vpack.c.bf16 %v8998_v30, %v15083_v54 }
 0x2ed   :  { %3873 = vperm.xlu0 %7321, %v15151_v40   ;;  %15152 = vst [vmem:[#allocation177_spill] sm:$0xff] %v10425_v49  ;;  %v10427_v57 = vpop.permute.xlu1 %2975  ;;  %v10437_v4 = vpop.permute.xlu0 %3007  ;;  %v2514_v7 = vpack.c.bf16 %v2468_v38, %v2467_v43  ;;  %v3096_v28 = vmul.f32 %v15158_v24, %v10433_v25  ;;  %v15162_v38 = vld [vmem:[#allocation228_spill] sm:$0xff]  ;;  %v15170_v30 = vld [vmem:[#allocation10_spill] sm:$0xff] }
 0x2ee   :  { %15153 = vst [vmem:[#allocation220_spill] sm:$0xff] %v10427_v57  ;;  %v10443_v49 = vpop.f32.mrf.mxu1 }
 0x2ef   :  { %15155 = vst [vmem:[#allocation298_spill] sm:$0xff] %v10433_v25  ;;  %v3153_v40 = vpack.c.bf16 %v3097_v36, %v3096_v28  ;;  %v15164_v28 = vld [vmem:[#allocation45_spill] sm:$0xff] }
 0x2f0   :  { %15156 = vst [vmem:[#allocation299_spill] sm:$0xff] %v10435_v45  ;;  %2686 = vmatmul.bf16.gmra.mxu3 %v2514_v7  ;;  %v2083_v43 = vrot.slane %v15164_v28, 1 }
 0x2f1   :  { %15157 = vst [vmem:[#allocation300_spill] sm:$0xff] %v10437_v4 }
 0x2f2   :  { %15159 = vst [vmem:[#allocation163_spill] sm:$0xff] %v10441_v23  ;;  %v15168_v23 = vld [vmem:[#allocation8_spill] sm:$0xff] }
 0x2f3   :  { %15160 = vst [vmem:[#allocation301_spill] sm:$0xff] %v10443_v49  ;;  %3285 = vmatmul.bf16.gmra.mxu0 %v3153_v40  ;;  %v10452_v24 = vpop.f32.mrf.mxu3  ;;  %v15169_v49 = vld [vmem:[#allocation190_spill] sm:$0xff] }
 0x2f4   :  { %3845 = vperm.xlu2 %7320, %v7505_v3   ;;  %3841 = vperm.xlu1 %7319, %v15161_v27   ;;  %15163 = vst [vmem:[#allocation200_spill] sm:$0xff] %v10452_v24  ;;  %v2084_v3 = vrot.slane %v15168_v23, 1  ;;  %v635_v45 = vrot.slane %v15169_v49, 7  ;;  %v1145_v27 = vmul.f32 %v15170_v30, %v10180_v20  ;;  %v10465_v54 = vpop.f32.mrf.mxu2  ;;  %v15175_v24 = vld [vmem:[#allocation21_spill] sm:$0xff]  ;;  %v15179_v20 = vld [vmem:[#allocation99_spill] sm:$0xff] }
 0x2f5   :  { %3885 = vperm.xlu0 %7321, %v15162_v38   ;;  %3567 = vmatmul.bf16.gmra.mxu1 %v591_v11  ;;  %v10455_v36 = vpop.permute.xlu2 %3027  ;;  %v10457_v7 = vpop.permute.xlu1 %2987  ;;  %15171 = vst [vmem:[#allocation10_spill] sm:$0xff] %v10465_v54  ;;  %v10469_v38 = vsel %vm2112_vm0, %v2082_v14, %v2083_v43  ;;  %v15173_v11 = vld [vmem:[#allocation188_spill] sm:$0xff]  ;;  %v7506_v14 = vld [vmem:[%s14119_s1 + $0xa8] sm:$0xff] }
 0x2f6   :  { %15165 = vst [vmem:[#allocation228_spill] sm:$0xff] %v10455_v36  ;;  %v10459_v40 = vpop.permute.xlu0 %3019  ;;  %v636_v4 = vrot.slane %v15173_v11, 7  ;;  %v10472_v36 = vpop.f32.mrf.mxu1  ;;  %v10480_v23 = vsel %vm2112_vm0, %v2083_v43, %v2084_v3  ;;  %v10484_v30 = vsel %vm685_vm1, %v634_v59, %v635_v45  ;;  %v10496_v43 = vld [vmem:[%s14119_s1 + $0xa0] sm:$0xff] }
 0x2f7   :  { %15166 = vst [vmem:[#allocation302_spill] sm:$0xff] %v10457_v7  ;;  %v15176_v7 = vld [vmem:[#allocation196_spill] sm:$0xff]  ;;  %v15180_v59 = vld [vmem:[#allocation237_spill] sm:$0xff] }
 0x2f8   :  { %15167 = vst [vmem:[#allocation303_spill] sm:$0xff] %v10459_v40  ;;  %v1144_v40 = vmul.f32 %v15175_v24, %v10196_v5  ;;  %v2469_v57 = vmul.f32 %v15176_v7, %v10469_v38  ;;  %v2470_v24 = vmul.f32 %v15179_v20, %v10480_v23  ;;  %v3098_v7 = vmul.f32 %v10147_v35, %v10484_v30 }
 0x2f9   :  { %15172 = vst [vmem:[#allocation304_spill] sm:$0xff] %v10469_v38 }
 0x2fa   :  { %15174 = vst [vmem:[#allocation305_spill] sm:$0xff] %v10472_v36  ;;  %v1203_v54 = vpack.c.bf16 %v1145_v27, %v1144_v40  ;;  %v10504_v40 = vsel %vm685_vm1, %v635_v45, %v636_v4  ;;  %v2515_v35 = vpack.c.bf16 %v2470_v24, %v2469_v57  ;;  %v7508_v45 = vld [vmem:[%s14119_s1 + $0xc0] sm:$0xff]  ;;  %v592_v57 = vpack.c.bf16 %v9089_v29, %v9095_v31 }
 0x2fb   :  { %15177 = vst [vmem:[#allocation21_spill] sm:$0xff] %v10480_v23  ;;  %v10500_v38 = vpop.f32.mrf.mxu3  ;;  %v15190_v24 = vld [vmem:[#allocation129_spill] sm:$0xff] }
 0x2fc   :  { %15178 = vst [vmem:[#allocation196_spill] sm:$0xff] %v10484_v30  ;;  %3857 = vperm.xlu2 %7320, %v7506_v14   ;;  %3853 = vperm.xlu1 %7319, %v10496_v43   ;;  %v15185_v14 = vld [vmem:[#allocation264_spill] sm:$0xff]  ;;  %v10514_v36 = vpop.f32.mrf.mxu0  ;;  %v10516_v32 = vpop.f32.mrf.mxu2 }
 0x2fd   :  { %3897 = vperm.xlu0 %7321, %v15180_v59   ;;  %15181 = vst [vmem:[#allocation99_spill] sm:$0xff] %v10500_v38  ;;  %v10506_v27 = vpop.permute.xlu2 %3039  ;;  %v10508_v20 = vpop.permute.xlu1 %2999  ;;  %1912 = vmatmul.bf16.gmra.mxu2 %v1203_v54  ;;  %v3099_v23 = vmul.f32 %v15185_v14, %v10504_v40  ;;  %v15189_v54 = vld [vmem:[#allocation213_spill] sm:$0xff] }
 0x2fe   :  { %15182 = vst [vmem:[#allocation237_spill] sm:$0xff] %v10504_v40  ;;  %v10512_v5 = vpop.permute.xlu0 %3031 }
 0x2ff   :  { %15183 = vst [vmem:[#allocation306_spill] sm:$0xff] %v10506_v27  ;;  %v3154_v59 = vpack.c.bf16 %v3099_v23, %v3098_v7  ;;  %v15192_v23 = vld [vmem:[#allocation157_spill] sm:$0xff]  ;;  %v15196_v27 = vld [vmem:[#allocation55_spill] sm:$0xff] }
 0x300   :  { %15184 = vst [vmem:[#allocation307_spill] sm:$0xff] %v10508_v20  ;;  %2691 = vmatmul.bf16.gmra.mxu3 %v2515_v35  ;;  %v10518_v38 = vpop.f32.mrf.mxu1  ;;  %v14377_v7 = vrot.slane %v15192_v23, 1  ;;  %v15204_v20 = vld [vmem:[#allocation201_spill] sm:$0xff] }
 0x301   :  { %15186 = vst [vmem:[#allocation264_spill] sm:$0xff] %v10512_v5 }
 0x302   :  { %15187 = vst [vmem:[#allocation308_spill] sm:$0xff] %v10516_v32 }
 0x303   :  { %15188 = vst [vmem:[#allocation309_spill] sm:$0xff] %v10518_v38  ;;  %3290 = vmatmul.bf16.gmra.mxu0 %v3154_v59  ;;  %v10527_v14 = vpop.f32.mrf.mxu3  ;;  %v15197_v38 = vld [vmem:[#allocation199_spill] sm:$0xff] }
 0x304   :  { %3869 = vperm.xlu2 %7320, %v7508_v45   ;;  %3865 = vperm.xlu1 %7319, %v15189_v54   ;;  %15191 = vst [vmem:[#allocation213_spill] sm:$0xff] %v10527_v14  ;;  %v2085_v45 = vrot.slane %v15196_v27, 1  ;;  %v10538_v29 = vpop.f32.mrf.mxu0  ;;  %v15198_v54 = vld [vmem:[#allocation26_spill] sm:$0xff]  ;;  %v10542_v31 = vpop.f32.mrf.mxu2  ;;  %v15203_v14 = vld [vmem:[#allocation27_spill] sm:$0xff] }
 0x305   :  { %3909 = vperm.xlu0 %7321, %v15190_v24   ;;  %3572 = vmatmul.bf16.gmra.mxu1 %v592_v57  ;;  %v10530_v35 = vpop.permute.xlu2 %3051  ;;  %v10532_v59 = vpop.permute.xlu1 %3011  ;;  %v1147_v24 = vmul.f32 %v15198_v54, %v10264_v19  ;;  %15199 = vst [vmem:[#allocation26_spill] sm:$0xff] %v10542_v31  ;;  %v1146_v5 = vmul.f32 %v15203_v14, %v10247_v22  ;;  %v15206_v31 = vrot.slane %v15197_v38, 7  ;;  %v7509_v19 = vld [vmem:[%s14119_s1 + $0xd8] sm:$0xff] }
 0x306   :  { %15193 = vst [vmem:[#allocation129_spill] sm:$0xff] %v10530_v35  ;;  %v10534_v32 = vpop.permute.xlu0 %3043  ;;  %v10548_v57 = vsel %vm2112_vm0, %v2085_v45, %v14377_v7  ;;  %v15201_v35 = vld [vmem:[#allocation197_spill] sm:$0xff]  ;;  %v10559_v54 = vsel %vm2112_vm0, %v2084_v3, %v2085_v45  ;;  %v15208_v14 = vld [vmem:[#allocation191_spill] sm:$0xff]  ;;  %v15210_v45 = vld [vmem:[#allocation250_spill] sm:$0xff] }
 0x307   :  { %15194 = vst [vmem:[#allocation310_spill] sm:$0xff] %v10532_v59  ;;  %v637_v59 = vrot.slane %v15201_v35, 7  ;;  %v2472_v27 = vmul.f32 %v15204_v20, %v10548_v57  ;;  %v2471_v22 = vmul.f32 %v15208_v14, %v10559_v54  ;;  %v15209_v3 = vld [vmem:[#allocation219_spill] sm:$0xff] }
 0x308   :  { %15195 = vst [vmem:[#allocation311_spill] sm:$0xff] %v10534_v32  ;;  %v10551_v32 = vpop.f32.mrf.mxu1 }
 0x309   :  { %15200 = vst [vmem:[#allocation312_spill] sm:$0xff] %v10548_v57  ;;  %v10565_v7 = vsel %vm685_vm1, %v637_v59, %v15206_v31  ;;  %v10580_v31 = vsel %vm685_vm1, %v636_v4, %v637_v59  ;;  %v7247_v4 = vld [vmem:[%s14122_s4 + $0x168] sm:$0xff] }
 0x30a   :  { %15202 = vst [vmem:[#allocation313_spill] sm:$0xff] %v10551_v32  ;;  %v1204_v32 = vpack.c.bf16 %v1147_v24, %v1146_v5  ;;  %v3101_v20 = vmul.f32 %v10190_v56, %v10565_v7  ;;  %v2516_v5 = vpack.c.bf16 %v2472_v27, %v2471_v22  ;;  %v3100_v24 = vmul.f32 %v10067_v52, %v10580_v31  ;;  %v7255_v22 = vld [vmem:[%s14122_s4 + $0x1a8] sm:$0xff]  ;;  %v7510_v52 = vld [vmem:[%s14119_s1 + $0xf0] sm:$0xff] }
 0x30b   :  { %15205 = vst [vmem:[#allocation27_spill] sm:$0xff] %v10559_v54  ;;  %v10576_v57 = vpop.f32.mrf.mxu3  ;;  %4190 = vmatpush.bf16.msra.mxu2 %v7247_v4  ;;  %v15218_v27 = vld [vmem:[#allocation227_spill] sm:$0xff]  ;;  %v15219_v59 = vld [vmem:[#allocation133_spill] sm:$0xff]  ;;  %4839 = vmatpush.bf16.msra.mxu3 %v7255_v22 }
 0x30c   :  { %15207 = vst [vmem:[#allocation201_spill] sm:$0xff] %v10565_v7  ;;  %3881 = vperm.xlu2 %7320, %v7509_v19   ;;  %3877 = vperm.xlu1 %7319, %v15209_v3   ;;  %v3155_v3 = vpack.c.bf16 %v3101_v20, %v3100_v24  ;;  %v15230_v22 = vld [vmem:[#allocation211_spill] sm:$0xff] }
 0x30d   :  { %3921 = vperm.xlu0 %7321, %v15210_v45   ;;  %15211 = vst [vmem:[#allocation191_spill] sm:$0xff] %v10576_v57  ;;  %v10582_v15 = vpop.permute.xlu2 %3063  ;;  %v10584_v19 = vpop.permute.xlu1 %3023  ;;  %1917 = vmatmul.bf16.gmra.mxu2 %v1204_v32  ;;  %v593_v32 = vpack.c.bf16 %v9177_v26, %v9171_v13  ;;  %v15226_v26 = vld [vmem:[#allocation209_spill] sm:$0xff] }
 0x30e   :  { %15212 = vst [vmem:[#allocation219_spill] sm:$0xff] %v10580_v31  ;;  %v10588_v56 = vpop.permute.xlu0 %3055  ;;  %v10592_v45 = vpop.f32.mrf.mxu2 }
 0x30f   :  { %15213 = vst [vmem:[#allocation250_spill] sm:$0xff] %v10582_v15  ;;  %v10590_v14 = vpop.f32.mrf.mxu0 }
 0x310   :  { %15214 = vst [vmem:[#allocation314_spill] sm:$0xff] %v10584_v19  ;;  %2696 = vmatmul.bf16.gmra.mxu3 %v2516_v5  ;;  %v15221_v5 = vld [vmem:[#allocation70_spill] sm:$0xff] }
 0x311   :  { %15215 = vst [vmem:[#allocation315_spill] sm:$0xff] %v10588_v56  ;;  %v14387_v24 = vrot.slane %v15221_v5, 1  ;;  %v7263_v19 = vld [vmem:[%s14122_s4 + $0x1e8] sm:$0xff] }
 0x312   :  { %15216 = vst [vmem:[#allocation316_spill] sm:$0xff] %v10592_v45  ;;  %v10594_v54 = vpop.f32.mrf.mxu1  ;;  %5488 = vmatpush.bf16.msra.mxu0 %v7263_v19  ;;  %v15241_v19 = vrot.slane %v15197_v38, 7 }
 0x313   :  { %15217 = vst [vmem:[#allocation317_spill] sm:$0xff] %v10594_v54  ;;  %3295 = vmatmul.bf16.gmra.mxu0 %v3155_v3  ;;  %v10609_v20 = vpop.f32.mrf.mxu3 }
 0x314   :  { %3893 = vperm.xlu2 %7320, %v7510_v52   ;;  %3889 = vperm.xlu1 %7319, %v15218_v27   ;;  %15220 = vst [vmem:[#allocation227_spill] sm:$0xff] %v10609_v20  ;;  %v15225_v52 = vld [vmem:[#allocation60_spill] sm:$0xff]  ;;  %v15227_v27 = vld [vmem:[#allocation33_spill] sm:$0xff]  ;;  %v15236_v20 = vrot.slane %v15226_v26, 7 }
 0x315   :  { %3933 = vperm.xlu0 %7321, %v15219_v59   ;;  %3577 = vmatmul.bf16.gmra.mxu1 %v593_v32  ;;  %v10612_v45 = vpop.permute.xlu2 %3075  ;;  %v10614_v3 = vpop.permute.xlu1 %3035  ;;  %v2087_v56 = vrot.slane %v15225_v52, 1  ;;  %v1149_v59 = vmul.f32 %v15227_v27, %v10329_v51  ;;  %v15233_v27 = vld [vmem:[#allocation198_spill] sm:$0xff]  ;;  %v15234_v51 = vrot.slane %v15192_v23, 1 }
 0x316   :  { %15222 = vst [vmem:[#allocation133_spill] sm:$0xff] %v10612_v45  ;;  %v10616_v15 = vpop.permute.xlu0 %3067  ;;  %v10624_v54 = vpop.f32.mrf.mxu2  ;;  %v639_v45 = vrot.slane %v15230_v22, 7 }
 0x317   :  { %15223 = vst [vmem:[#allocation318_spill] sm:$0xff] %v10614_v3  ;;  %v10620_v13 = vpop.f32.mrf.mxu0  ;;  %v10630_v32 = vsel %vm2112_vm0, %v2087_v56, %v14387_v24  ;;  %v15232_v3 = vld [vmem:[#allocation13_spill] sm:$0xff]  ;;  %v10646_v24 = vsel %vm2112_vm0, %v15234_v51, %v2087_v56 }
 0x318   :  { %15224 = vst [vmem:[#allocation319_spill] sm:$0xff] %v10616_v15  ;;  %v1148_v4 = vmul.f32 %v15232_v3, %v10353_v18  ;;  %v7511_v3 = vld [vmem:[%s14119_s1 + $0x108] sm:$0xff]  ;;  %v10664_v56 = vld [vmem:[%s14119_s1 + $0x100] sm:$0xff] }
 0x319   :  { %15228 = vst [vmem:[#allocation33_spill] sm:$0xff] %v10624_v54  ;;  %v2474_v54 = vmul.f32 %v15233_v27, %v10630_v32  ;;  %v15238_v27 = vld [vmem:[#allocation186_spill] sm:$0xff] }
 0x31a   :  { %15229 = vst [vmem:[#allocation320_spill] sm:$0xff] %v10630_v32  ;;  %v10633_v15 = vpop.f32.mrf.mxu1  ;;  %v1205_v18 = vpack.c.bf16 %v1149_v59, %v1148_v4  ;;  %v2473_v32 = vmul.f32 %v15238_v27, %v10646_v24  ;;  %v10676_v59 = vsel %vm685_vm1, %v15241_v19, %v639_v45 }
 0x31b   :  { %15231 = vst [vmem:[#allocation321_spill] sm:$0xff] %v10633_v15  ;;  %v10652_v15 = vsel %vm685_vm1, %v639_v45, %v15236_v20  ;;  %v7513_v20 = vld [vmem:[%s14119_s1 + $0x158] sm:$0xff]  ;;  %v10670_v4 = vpop.f32.mrf.mxu3 }
 0x31c   :  { %15235 = vst [vmem:[#allocation13_spill] sm:$0xff] %v10646_v24  ;;  %3905 = vperm.xlu2 %7320, %v7511_v3   ;;  %v3103_v51 = vmul.f32 %v10127_v1, %v10652_v15  ;;  %3901 = vperm.xlu1 %7319, %v10664_v56   ;;  %v2517_v27 = vpack.c.bf16 %v2474_v54, %v2473_v32  ;;  %v10703_v54 = vld [vmem:[%s14119_s1 + $0x118] sm:$0xff] }
 0x31d   :  { %15237 = vst [vmem:[#allocation198_spill] sm:$0xff] %v10652_v15  ;;  %3945 = vperm.xlu0 %7321, %v7513_v20   ;;  %v10678_v1 = vpop.permute.xlu1 %3047  ;;  %1922 = vmatmul.bf16.gmra.mxu2 %v1205_v18  ;;  %v3102_v24 = vmul.f32 %v10065_v44, %v10676_v59  ;;  %v7514_v44 = vld [vmem:[%s14119_s1 + $0x120] sm:$0xff]  ;;  %v594_v18 = vpack.c.bf16 %v9262_v63, %v9268_v12  ;;  %v15250_v32 = vld [vmem:[#allocation75_spill] sm:$0xff] }
 0x31e   :  { %15239 = vst [vmem:[#allocation186_spill] sm:$0xff] %v10664_v56  ;;  %v10680_v3 = vpop.permute.xlu2 %3777  ;;  %v10684_v57 = vpop.permute.xlu0 %3079  ;;  %v15255_v63 = vld [vmem:[#allocation224_spill] sm:$0xff] }
 0x31f   :  { %15240 = vst [vmem:[#allocation322_spill] sm:$0xff] %v10670_v4  ;;  %v7271_v4 = vld [vmem:[%s14122_s4 + $0x228] sm:$0xff]  ;;  %v3156_v23 = vpack.c.bf16 %v3103_v51, %v3102_v24  ;;  %v10691_v45 = vpop.f32.mrf.mxu2  ;;  %v7516_v24 = vld [vmem:[%s14119_s1 + $0x170] sm:$0xff]  ;;  %v2089_v51 = vrot.slane %v15250_v32, 1 }
 0x320   :  { %15242 = vst [vmem:[#allocation323_spill] sm:$0xff] %v10676_v59  ;;  %v10686_v20 = vpop.f32.mrf.mxu0  ;;  %2701 = vmatmul.bf16.gmra.mxu3 %v2517_v27  ;;  %6137 = vmatpush.bf16.msra.mxu1 %v7271_v4 }
 0x321   :  { %15243 = vst [vmem:[#allocation324_spill] sm:$0xff] %v10678_v1 }
 0x322   :  { %15244 = vst [vmem:[#allocation325_spill] sm:$0xff] %v10680_v3  ;;  %v10693_v19 = vpop.f32.mrf.mxu1  ;;  %v641_v3 = vrot.slane %v15255_v63, 7 }
 0x323   :  { %15245 = vst [vmem:[#allocation326_spill] sm:$0xff] %v10684_v57  ;;  %3300 = vmatmul.bf16.gmra.mxu0 %v3156_v23  ;;  %v10709_v23 = vpop.f32.mrf.mxu3 }
 0x324   :  { %15246 = vst [vmem:[#allocation327_spill] sm:$0xff] %v10691_v45  ;;  %3917 = vperm.xlu2 %7320, %v7514_v44   ;;  %3913 = vperm.xlu1 %7319, %v10703_v54   ;;  %v15254_v45 = vld [vmem:[#allocation167_spill] sm:$0xff] }
 0x325   :  { %15247 = vst [vmem:[#allocation328_spill] sm:$0xff] %v10693_v19  ;;  %3957 = vperm.xlu0 %7321, %v7516_v24   ;;  %3582 = vmatmul.bf16.gmra.mxu1 %v594_v18  ;;  %v10712_v4 = vpop.permute.xlu1 %3059  ;;  %v2090_v12 = vrot.slane %v15254_v45, 1  ;;  %v15256_v19 = vld [vmem:[#allocation16_spill] sm:$0xff] }
 0x326   :  { %15248 = vst [vmem:[#allocation329_spill] sm:$0xff] %v10703_v54  ;;  %v10714_v27 = vpop.permute.xlu2 %3789  ;;  %v1151_v24 = vmul.f32 %v15256_v19, %v10409_v42  ;;  %v15262_v45 = vld [vmem:[#allocation32_spill] sm:$0xff] }
 0x327   :  { %15249 = vst [vmem:[#allocation330_spill] sm:$0xff] %v10709_v23  ;;  %v10716_v44 = vpop.permute.xlu0 %3781  ;;  %v10724_v1 = vpop.f32.mrf.mxu2  ;;  %v15258_v23 = vrot.slane %v15221_v5, 1  ;;  %v1150_v32 = vmul.f32 %v15262_v45, %v10433_v25  ;;  %v15263_v54 = vld [vmem:[#allocation208_spill] sm:$0xff]  ;;  %v10741_v19 = vsel %vm2112_vm0, %v2089_v51, %v2090_v12  ;;  %v15267_v45 = vld [vmem:[#allocation107_spill] sm:$0xff] }
 0x328   :  { %15251 = vst [vmem:[#allocation331_spill] sm:$0xff] %v10712_v4  ;;  %v10720_v57 = vpop.f32.mrf.mxu0  ;;  %v7517_v4 = vld [vmem:[%s14119_s1 + $0x138] sm:$0xff]  ;;  %v2476_v25 = vmul.f32 %v15267_v45, %v10741_v19 }
 0x329   :  { %15252 = vst [vmem:[#allocation332_spill] sm:$0xff] %v10714_v27  ;;  %v10730_v18 = vsel %vm2112_vm0, %v15258_v23, %v2089_v51  ;;  %v15260_v27 = vld [vmem:[#allocation225_spill] sm:$0xff]  ;;  %v1206_v42 = vpack.c.bf16 %v1151_v24, %v1150_v32  ;;  %v15275_v5 = vld [vmem:[#allocation103_spill] sm:$0xff] }
 0x32a   :  { %15253 = vst [vmem:[#allocation333_spill] sm:$0xff] %v10716_v44  ;;  %v10733_v44 = vpop.f32.mrf.mxu1  ;;  %v2475_v52 = vmul.f32 %v15263_v54, %v10730_v18  ;;  %v15268_v51 = vld [vmem:[#allocation249_spill] sm:$0xff] }
 0x32b   :  { %15257 = vst [vmem:[#allocation16_spill] sm:$0xff] %v10724_v1  ;;  %v15265_v1 = vrot.slane %v15226_v26, 7 }
 0x32c   :  { %15259 = vst [vmem:[#allocation334_spill] sm:$0xff] %v10730_v18  ;;  %3929 = vperm.xlu2 %7320, %v7517_v4   ;;  %3925 = vperm.xlu1 %7319, %v15268_v51   ;;  %v7518_v18 = vld [vmem:[%s14119_s1 + $0x188] sm:$0xff] }
 0x32d   :  { %15261 = vst [vmem:[#allocation335_spill] sm:$0xff] %v10733_v44  ;;  %v10747_v23 = vsel %vm685_vm1, %v15265_v1, %v641_v3  ;;  %3969 = vperm.xlu0 %7321, %v7518_v18   ;;  %v10760_v1 = vpop.f32.mrf.mxu3  ;;  %v15270_v44 = vrot.slane %v15260_v27, 7  ;;  %v10768_v4 = vpop.permute.xlu1 %3071  ;;  %1927 = vmatmul.bf16.gmra.mxu2 %v1206_v42  ;;  %v7519_v42 = vld [vmem:[%s14119_s1 + $0x150] sm:$0xff] }
 0x32e   :  { %15264 = vst [vmem:[#allocation32_spill] sm:$0xff] %v10741_v19  ;;  %v3104_v54 = vmul.f32 %v10217_v47, %v10747_v23  ;;  %v10770_v24 = vpop.permute.xlu2 %3797  ;;  %v2518_v47 = vpack.c.bf16 %v2476_v25, %v2475_v52  ;;  %v15277_v25 = vld [vmem:[#allocation136_spill] sm:$0xff] }
 0x32f   :  { %15266 = vst [vmem:[#allocation208_spill] sm:$0xff] %v10747_v23  ;;  %v10766_v32 = vsel %vm685_vm1, %v641_v3, %v15270_v44  ;;  %v10774_v51 = vpop.permute.xlu0 %3801  ;;  %v15276_v44 = vld [vmem:[#allocation231_spill] sm:$0xff]  ;;  %v7520_v52 = vld [vmem:[%s14119_s1 + $0x1a0] sm:$0xff] }
 0x330   :  { %15269 = vst [vmem:[#allocation107_spill] sm:$0xff] %v10760_v1  ;;  %v3105_v45 = vmul.f32 %v10125_v8, %v10766_v32  ;;  %v10776_v18 = vpop.f32.mrf.mxu0  ;;  %v1888_v1 = vpop.f32.mrf.mxu2  ;;  %2706 = vmatmul.bf16.gmra.mxu3 %v2518_v47  ;;  %v595_v8 = vpack.c.bf16 %v15173_v11, %v15169_v49  ;;  %v15285_v49 = vld [vmem:[#allocation38_spill] sm:$0xff] }
 0x331   :  { %15271 = vst [vmem:[#allocation249_spill] sm:$0xff] %v10766_v32  ;;  %v1889_v56 = vadd.f32 %v1888_v1, %v15275_v5 }
 0x332   :  { %15272 = vst [vmem:[#allocation336_spill] sm:$0xff] %v10768_v4  ;;  %v3157_v19 = vpack.c.bf16 %v3105_v45, %v3104_v54  ;;  %v3548_v3 = vpop.f32.mrf.mxu1  ;;  %v1153_v54 = vmul.f32 %v15285_v49, %v10504_v40  ;;  %v15294_v40 = vld [vmem:[#allocation241_spill] sm:$0xff] }
 0x333   :  { %15273 = vst [vmem:[#allocation337_spill] sm:$0xff] %v10770_v24  ;;  %v2762_v4 = vadd.f32 %v15276_v44, %v1889_v56  ;;  %v15283_v44 = vld [vmem:[#allocation168_spill] sm:$0xff] }
 0x334   :  { %15274 = vst [vmem:[#allocation338_spill] sm:$0xff] %v10774_v51  ;;  %3305 = vmatmul.bf16.gmra.mxu0 %v3157_v19  ;;  %3941 = vperm.xlu2 %7320, %v7519_v42   ;;  %v15279_v19 = vld [vmem:[#allocation174_spill] sm:$0xff]  ;;  %v2091_v42 = vrot.slane %v15283_v44, 1 }
 0x335   :  { %3937 = vperm.xlu1 %7319, %v15277_v25   ;;  %3981 = vperm.xlu0 %7321, %v7520_v52   ;;  %v10789_v5 = vpop.f32.mrf.mxu3  ;;  %v3411_v56 = vadd.f32 %v10514_v36, %v2762_v4  ;;  %v15286_v36 = vrot.slane %v15279_v19, 1  ;;  %v15290_v25 = vld [vmem:[#allocation214_spill] sm:$0xff] }
 0x336   :  { %15278 = vst [vmem:[#allocation103_spill] sm:$0xff] %v10789_v5  ;;  %3587 = vmatmul.bf16.gmra.mxu1 %v595_v8  ;;  %v10793_v1 = vpop.permute.xlu2 %3809  ;;  %v10795_v47 = vpop.permute.xlu1 %3773  ;;  %v643_v8 = vrot.slane %v9719_v10, 7  ;;  %v10821_v49 = vsel %vm2112_vm0, %v2090_v12, %v2091_v42 }
 0x337   :  { %15280 = vst [vmem:[#allocation231_spill] sm:$0xff] %v10793_v1  ;;  %v10797_v45 = vpop.permute.xlu0 %3813  ;;  %v10801_v11 = vadd.f32 %v3548_v3, %v3411_v56  ;;  %v10811_v4 = vsel %vm2112_vm0, %v2091_v42, %v15286_v36  ;;  %v15289_v3 = vld [vmem:[#allocation39_spill] sm:$0xff] }
 0x338   :  { %15281 = vst [vmem:[#allocation136_spill] sm:$0xff] %v10795_v47  ;;  %v10803_v52 = vpop.f32.mrf.mxu0  ;;  %v1890_v51 = vpop.f32.mrf.mxu2  ;;  %v1152_v56 = vmul.f32 %v15289_v3, %v10484_v30  ;;  %v15292_v47 = vrot.slane %v9689_v2, 7  ;;  %v15296_v42 = vld [vmem:[#allocation259_spill] sm:$0xff] }
 0x339   :  { %15282 = vst [vmem:[#allocation339_spill] sm:$0xff] %v10797_v45  ;;  %v15288_v45 = vld [vmem:[#allocation185_spill] sm:$0xff] }
 0x33a   :  { %15284 = vst [vmem:[#allocation340_spill] sm:$0xff] %v10801_v11  ;;  %v1891_v1 = vadd.f32 %v1890_v51, %v15288_v45  ;;  %v3550_v24 = vpop.f32.mrf.mxu1  ;;  %v2478_v11 = vmul.f32 %v15290_v25, %v10811_v4  ;;  %v10827_v36 = vsel %vm685_vm1, %v643_v8, %v15292_v47  ;;  %v7521_v51 = vld [vmem:[%s14119_s1 + $0x168] sm:$0xff]  ;;  %v1207_v45 = vpack.c.bf16 %v1153_v54, %v1152_v56  ;;  %v7522_v47 = vld [vmem:[%s14119_s1 + $0x1b8] sm:$0xff] }
 0x33b   :  { %15287 = vst [vmem:[#allocation38_spill] sm:$0xff] %v10811_v4  ;;  %v15295_v25 = vld [vmem:[#allocation202_spill] sm:$0xff]  ;;  %v3107_v12 = vmul.f32 %v10258_v60, %v10827_v36 }
 0x33c   :  { %15291 = vst [vmem:[#allocation185_spill] sm:$0xff] %v10821_v49  ;;  %v2763_v5 = vadd.f32 %v15294_v40, %v1891_v1  ;;  %3953 = vperm.xlu2 %7320, %v7521_v51   ;;  %v2477_v3 = vmul.f32 %v15295_v25, %v10821_v49  ;;  %v15298_v1 = vrot.slane %v15260_v27, 7 }
 0x33d   :  { %15293 = vst [vmem:[#allocation39_spill] sm:$0xff] %v10827_v36  ;;  %3949 = vperm.xlu1 %7319, %v15296_v42   ;;  %3993 = vperm.xlu0 %7321, %v7522_v47   ;;  %v10841_v40 = vpop.f32.mrf.mxu3 }
 0x33e   :  { %15297 = vst [vmem:[#allocation214_spill] sm:$0xff] %v10841_v40  ;;  %v10847_v54 = vsel %vm685_vm1, %v15298_v1, %v643_v8  ;;  %v3412_v56 = vadd.f32 %v10538_v29, %v2763_v5  ;;  %v10850_v51 = vpop.permute.xlu2 %3821  ;;  %1932 = vmatmul.bf16.gmra.mxu2 %v1207_v45  ;;  %v2519_v60 = vpack.c.bf16 %v2478_v11, %v2477_v3  ;;  %v10854_v42 = vpop.permute.xlu1 %3785  ;;  %v15304_v1 = vld [vmem:[#allocation119_spill] sm:$0xff]  ;;  %v15305_v45 = vld [vmem:[#allocation244_spill] sm:$0xff] }
 0x33f   :  { %15299 = vst [vmem:[#allocation241_spill] sm:$0xff] %v10847_v54  ;;  %v3106_v25 = vmul.f32 %v10152_v58, %v10847_v54  ;;  %v10856_v47 = vpop.permute.xlu0 %3825  ;;  %v7523_v58 = vld [vmem:[%s14119_s1 + $0x180] sm:$0xff]  ;;  %v15306_v3 = vld [vmem:[#allocation139_spill] sm:$0xff] }
 0x340   :  { %15300 = vst [vmem:[#allocation202_spill] sm:$0xff] %v10850_v51  ;;  %v10858_v49 = vadd.f32 %v3550_v24, %v3412_v56  ;;  %v10860_v4 = vpop.f32.mrf.mxu0  ;;  %v1893_v8 = vpop.f32.mrf.mxu2  ;;  %2711 = vmatmul.bf16.gmra.mxu3 %v2519_v60  ;;  %v596_v24 = vpack.c.bf16 %v15197_v38, %v15201_v35 }
 0x341   :  { %15301 = vst [vmem:[#allocation259_spill] sm:$0xff] %v10854_v42  ;;  %v3158_v30 = vpack.c.bf16 %v3107_v12, %v3106_v25  ;;  %v1894_v29 = vadd.f32 %v1893_v8, %v15304_v1  ;;  %v7524_v12 = vld [vmem:[%s14119_s1 + $0x1d0] sm:$0xff] }
 0x342   :  { %15302 = vst [vmem:[#allocation341_spill] sm:$0xff] %v10856_v47  ;;  %v3553_v5 = vpop.f32.mrf.mxu1  ;;  %v15314_v47 = vld [vmem:[#allocation44_spill] sm:$0xff] }
 0x343   :  { %15303 = vst [vmem:[#allocation342_spill] sm:$0xff] %v10858_v49  ;;  %v2764_v11 = vadd.f32 %v15305_v45, %v1894_v29  ;;  %v15312_v45 = vld [vmem:[#allocation90_spill] sm:$0xff]  ;;  %v1155_v60 = vmul.f32 %v15314_v47, %v10565_v7  ;;  %v15321_v47 = vrot.slane %v15279_v19, 1 }
 0x344   :  { %3310 = vmatmul.bf16.gmra.mxu0 %v3158_v30  ;;  %3965 = vperm.xlu2 %7320, %v7523_v58   ;;  %v15308_v30 = vld [vmem:[#allocation184_spill] sm:$0xff]  ;;  %v2093_v58 = vrot.slane %v15312_v45, 1 }
 0x345   :  { %3961 = vperm.xlu1 %7319, %v15306_v3   ;;  %4005 = vperm.xlu0 %7321, %v7524_v12   ;;  %v10873_v56 = vpop.f32.mrf.mxu3  ;;  %v3413_v25 = vadd.f32 %v10590_v14, %v2764_v11  ;;  %v15315_v14 = vrot.slane %v15308_v30, 1  ;;  %v15319_v3 = vld [vmem:[#allocation20_spill] sm:$0xff] }
 0x346   :  { %15307 = vst [vmem:[#allocation119_spill] sm:$0xff] %v10873_v56  ;;  %3592 = vmatmul.bf16.gmra.mxu1 %v596_v24  ;;  %v10877_v8 = vpop.permute.xlu2 %3833  ;;  %v10879_v1 = vpop.permute.xlu1 %3793  ;;  %v15317_v24 = vld [vmem:[#allocation252_spill] sm:$0xff] }
 0x347   :  { %15309 = vst [vmem:[#allocation244_spill] sm:$0xff] %v10877_v8  ;;  %v10881_v29 = vpop.permute.xlu0 %3837  ;;  %v10885_v49 = vadd.f32 %v3553_v5, %v3413_v25  ;;  %v10895_v11 = vsel %vm2112_vm0, %v2093_v58, %v15315_v14  ;;  %v15318_v8 = vld [vmem:[#allocation194_spill] sm:$0xff]  ;;  %v1154_v5 = vmul.f32 %v15319_v3, %v10580_v31  ;;  %v15323_v14 = vrot.slane %v9784_v53, 7  ;;  %v7525_v3 = vld [vmem:[%s14119_s1 + $0x198] sm:$0xff] }
 0x348   :  { %15310 = vst [vmem:[#allocation139_spill] sm:$0xff] %v10879_v1  ;;  %v10887_v12 = vpop.f32.mrf.mxu0  ;;  %v1895_v51 = vpop.f32.mrf.mxu2  ;;  %v15320_v25 = vld [vmem:[#allocation210_spill] sm:$0xff]  ;;  %v10907_v1 = vsel %vm2112_vm0, %v15321_v47, %v2093_v58 }
 0x349   :  { %15311 = vst [vmem:[#allocation343_spill] sm:$0xff] %v10881_v29  ;;  %v645_v29 = vrot.slane %v15317_v24, 7  ;;  %v1896_v38 = vadd.f32 %v1895_v51, %v15318_v8  ;;  %v15325_v51 = vld [vmem:[#allocation253_spill] sm:$0xff]  ;;  %v10926_v47 = vld [vmem:[%s14119_s1 + $0x190] sm:$0xff] }
 0x34a   :  { %15313 = vst [vmem:[#allocation344_spill] sm:$0xff] %v10885_v49  ;;  %v2480_v49 = vmul.f32 %v15320_v25, %v10895_v11  ;;  %v3555_v35 = vpop.f32.mrf.mxu1  ;;  %v1208_v25 = vpack.c.bf16 %v1155_v60, %v1154_v5  ;;  %v15328_v60 = vrot.slane %v9689_v2, 7 }
 0x34b   :  { %15316 = vst [vmem:[#allocation44_spill] sm:$0xff] %v10895_v11  ;;  %v10913_v42 = vsel %vm685_vm1, %v645_v29, %v15323_v14  ;;  %v2765_v8 = vadd.f32 %v15325_v51, %v1896_v38  ;;  %v15326_v11 = vld [vmem:[#allocation195_spill] sm:$0xff]  ;;  %v7527_v38 = vld [vmem:[%s14119_s1 + $0x1e8] sm:$0xff] }
 0x34c   :  { %15322 = vst [vmem:[#allocation194_spill] sm:$0xff] %v10907_v1  ;;  %3977 = vperm.xlu2 %7320, %v7525_v3   ;;  %v2479_v7 = vmul.f32 %v15326_v11, %v10907_v1  ;;  %v3109_v58 = vmul.f32 %v10200_v39, %v10913_v42  ;;  %v10938_v11 = vsel %vm685_vm1, %v15328_v60, %v645_v29  ;;  %v15331_v3 = vld [vmem:[#allocation175_spill] sm:$0xff]  ;;  %v15335_v60 = vld [vmem:[#allocation117_spill] sm:$0xff] }
 0x34d   :  { %15324 = vst [vmem:[#allocation20_spill] sm:$0xff] %v10913_v42  ;;  %3973 = vperm.xlu1 %7319, %v10926_v47   ;;  %4017 = vperm.xlu0 %7321, %v7527_v38   ;;  %v10932_v14 = vpop.f32.mrf.mxu3  ;;  %v3414_v39 = vadd.f32 %v10620_v13, %v2765_v8  ;;  %v3108_v1 = vmul.f32 %v15331_v3, %v10938_v11  ;;  %v7254_v8 = vld [vmem:[%s14122_s4 + $0x1a0] sm:$0xff]  ;;  %v15339_v3 = vld [vmem:[#allocation183_spill] sm:$0xff] }
 0x34e   :  { %15327 = vst [vmem:[#allocation210_spill] sm:$0xff] %v10932_v14  ;;  %v10941_v5 = vpop.permute.xlu2 %3845  ;;  %1937 = vmatmul.bf16.gmra.mxu2 %v1208_v25  ;;  %v2520_v51 = vpack.c.bf16 %v2480_v49, %v2479_v7  ;;  %v10945_v31 = vpop.permute.xlu1 %3805  ;;  %v7246_v7 = vld [vmem:[%s14122_s4 + $0x160] sm:$0xff]  ;;  %4840 = vmatpush.bf16.msra.mxu3 %v7254_v8 }
 0x34f   :  { %15329 = vst [vmem:[#allocation253_spill] sm:$0xff] %v10938_v11  ;;  %v10947_v38 = vpop.permute.xlu0 %3849  ;;  %v10949_v14 = vadd.f32 %v3555_v35, %v3414_v39  ;;  %v3159_v40 = vpack.c.bf16 %v3109_v58, %v3108_v1  ;;  %v15336_v25 = vld [vmem:[#allocation256_spill] sm:$0xff]  ;;  %v7528_v1 = vld [vmem:[%s14119_s1 + $0x1b0] sm:$0xff]  ;;  %v597_v58 = vpack.c.bf16 %v15226_v26, %v15230_v22  ;;  %4191 = vmatpush.bf16.msra.mxu2 %v7246_v7  ;;  %v15337_v39 = vld [vmem:[#allocation265_spill] sm:$0xff] }
 0x350   :  { %15330 = vst [vmem:[#allocation195_spill] sm:$0xff] %v10941_v5  ;;  %v10951_v56 = vpop.f32.mrf.mxu0  ;;  %v1898_v29 = vpop.f32.mrf.mxu2  ;;  %2716 = vmatmul.bf16.gmra.mxu3 %v2520_v51  ;;  %v14421_v51 = vmov 6   ;;  %v15341_v7 = vld [vmem:[#allocation192_spill] sm:$0xff]  ;;  %v15350_v22 = vld [vmem:[#allocation43_spill] sm:$0xff] }
 0x351   :  { %15332 = vst [vmem:[#allocation175_spill] sm:$0xff] %v10945_v31  ;;  %v1899_v13 = vadd.f32 %v1898_v29, %v15335_v60  ;;  %v2095_v29 = vrot.slane %v15339_v3, 1 }
 0x352   :  { %15333 = vst [vmem:[#allocation345_spill] sm:$0xff] %v10947_v38  ;;  %v3558_v49 = vpop.f32.mrf.mxu1 }
 0x353   :  { %15334 = vst [vmem:[#allocation346_spill] sm:$0xff] %v10949_v14  ;;  %v2766_v35 = vadd.f32 %v15336_v25, %v1899_v13  ;;  %v7529_v13 = vld [vmem:[%s14119_s1] sm:$0xff] }
 0x354   :  { %3315 = vmatmul.bf16.gmra.mxu0 %v3159_v40  ;;  %3989 = vperm.xlu2 %7320, %v7528_v1  }
 0x355   :  { %3985 = vperm.xlu1 %7319, %v15337_v39   ;;  %7322 = vset.pattern.permute.xlu0 %v14421_v51  ;;  %v10968_v40 = vpop.f32.mrf.mxu3  ;;  %v3415_v60 = vadd.f32 %v10686_v20, %v2766_v35  ;;  %v15344_v51 = vld [vmem:[#allocation66_spill] sm:$0xff]  ;;  %v15346_v35 = vld [vmem:[#allocation25_spill] sm:$0xff] }
 0x356   :  { %15338 = vst [vmem:[#allocation117_spill] sm:$0xff] %v10968_v40  ;;  %3597 = vmatmul.bf16.gmra.mxu1 %v597_v58  ;;  %4422 = vperm.xlu0 %7322, %v7529_v13   ;;  %v10975_v25 = vpop.permute.xlu2 %3857  ;;  %v10978_v39 = vpop.permute.xlu1 %3817  ;;  %v647_v38 = vrot.slane %v15344_v51, 7  ;;  %v1157_v58 = vmul.f32 %v15346_v35, %v10652_v15  ;;  %v15347_v13 = vrot.slane %v15308_v30, 1  ;;  %v15351_v35 = vrot.slane %v15341_v7, 1  ;;  %v7530_v15 = vld [vmem:[%s14119_s1 + $0x1c8] sm:$0xff] }
 0x357   :  { %15340 = vst [vmem:[#allocation256_spill] sm:$0xff] %v10975_v25  ;;  %v10980_v14 = vpop.permute.xlu0 %3861  ;;  %v10983_v5 = vadd.f32 %v3558_v49, %v3415_v60  ;;  %v1156_v49 = vmul.f32 %v15350_v22, %v10676_v59  ;;  %v7262_v60 = vld [vmem:[%s14122_s4 + $0x1e0] sm:$0xff]  ;;  %v15354_v25 = vrot.slane %v9784_v53, 7 }
 0x358   :  { %15342 = vst [vmem:[#allocation265_spill] sm:$0xff] %v10978_v39  ;;  %v10985_v20 = vpop.f32.mrf.mxu0  ;;  %v1900_v26 = vpop.f32.mrf.mxu2  ;;  %v10993_v1 = vsel %vm2112_vm0, %v15347_v13, %v2095_v29  ;;  %v15353_v13 = vld [vmem:[#allocation223_spill] sm:$0xff]  ;;  %v15356_v22 = vld [vmem:[#allocation164_spill] sm:$0xff]  ;;  %5489 = vmatpush.bf16.msra.mxu0 %v7262_v60 }
 0x359   :  { %15343 = vst [vmem:[#allocation347_spill] sm:$0xff] %v10980_v14  ;;  %v15349_v14 = vld [vmem:[#allocation206_spill] sm:$0xff]  ;;  %v2481_v39 = vmul.f32 %v15353_v13, %v10993_v1  ;;  %v1209_v59 = vpack.c.bf16 %v1157_v58, %v1156_v49 }
 0x35a   :  { %15345 = vst [vmem:[#allocation348_spill] sm:$0xff] %v10983_v5  ;;  %v1901_v8 = vadd.f32 %v1900_v26, %v15349_v14  ;;  %v11006_v5 = vsel %vm2112_vm0, %v2095_v29, %v15351_v35  ;;  %v3560_v31 = vpop.f32.mrf.mxu1  ;;  %v11014_v26 = vsel %vm685_vm1, %v15354_v25, %v647_v38  ;;  %v15357_v29 = vld [vmem:[#allocation114_spill] sm:$0xff]  ;;  %v15360_v25 = vrot.slane %v9891_v33, 7 }
 0x35b   :  { %15348 = vst [vmem:[#allocation25_spill] sm:$0xff] %v10993_v1  ;;  %v2482_v35 = vmul.f32 %v15357_v29, %v11006_v5  ;;  %v3110_v13 = vmul.f32 %v10291_v16, %v11014_v26  ;;  %v15358_v1 = vld [vmem:[#allocation12_spill] sm:$0xff]  ;;  %v11037_v58 = vld [vmem:[%s14119_s1 + $0x28] sm:$0xff] }
 0x35c   :  { %15352 = vst [vmem:[#allocation206_spill] sm:$0xff] %v11006_v5  ;;  %v2767_v14 = vadd.f32 %v15356_v22, %v1901_v8  ;;  %4001 = vperm.xlu2 %7320, %v7530_v15   ;;  %v11031_v8 = vsel %vm685_vm1, %v647_v38, %v15360_v25 }
 0x35d   :  { %15355 = vst [vmem:[#allocation43_spill] sm:$0xff] %v11014_v26  ;;  %3997 = vperm.xlu1 %7319, %v15358_v1   ;;  %v11025_v40 = vpop.f32.mrf.mxu3  ;;  %v2521_v1 = vpack.c.bf16 %v2482_v35, %v2481_v39  ;;  %v3111_v49 = vmul.f32 %v10198_v34, %v11031_v8  ;;  %v15367_v34 = vld [vmem:[#allocation141_spill] sm:$0xff] }
 0x35e   :  { %15359 = vst [vmem:[#allocation223_spill] sm:$0xff] %v11025_v40  ;;  %v3416_v15 = vadd.f32 %v10720_v57, %v2767_v14  ;;  %4442 = vperm.xlu0 %7322, %v11037_v58   ;;  %v11040_v16 = vpop.permute.xlu2 %3869  ;;  %1942 = vmatmul.bf16.gmra.mxu2 %v1209_v59  ;;  %v11044_v60 = vpop.permute.xlu1 %3829  ;;  %v7270_v14 = vld [vmem:[%s14122_s4 + $0x220] sm:$0xff]  ;;  %v15366_v59 = vld [vmem:[#allocation123_spill] sm:$0xff]  ;;  %v15476_v40 = vld [vmem:[#allocation230_spill] sm:$0xff] }
 0x35f   :  { %15361 = vst [vmem:[#allocation164_spill] sm:$0xff] %v11031_v8  ;;  %v11046_v38 = vpop.permute.xlu0 %3873  ;;  %v3160_v29 = vpack.c.bf16 %v3111_v49, %v3110_v13  ;;  %6138 = vmatpush.bf16.msra.mxu1 %v7270_v14  ;;  %v15376_v49 = vld [vmem:[#allocation48_spill] sm:$0xff] }
 0x360   :  { %15362 = vst [vmem:[#allocation114_spill] sm:$0xff] %v11040_v16  ;;  %v11048_v22 = vadd.f32 %v3560_v31, %v3416_v15  ;;  %v11050_v57 = vpop.f32.mrf.mxu0  ;;  %v1903_v25 = vpop.f32.mrf.mxu2  ;;  %2721 = vmatmul.bf16.gmra.mxu3 %v2521_v1  ;;  %v7532_v31 = vld [vmem:[%s14119_s1 + $0x1e0] sm:$0xff]  ;;  %v598_v15 = vpack.c.bf16 %v15260_v27, %v15255_v63 }
 0x361   :  { %15363 = vst [vmem:[#allocation12_spill] sm:$0xff] %v11044_v60  ;;  %v1904_v39 = vadd.f32 %v1903_v25, %v15366_v59  ;;  %v15370_v1 = vld [vmem:[#allocation204_spill] sm:$0xff] }
 0x362   :  { %15364 = vst [vmem:[#allocation349_spill] sm:$0xff] %v11046_v38  ;;  %v3563_v35 = vpop.f32.mrf.mxu1  ;;  %v15368_v38 = vld [vmem:[#allocation273_spill] sm:$0xff] }
 0x363   :  { %15365 = vst [vmem:[#allocation350_spill] sm:$0xff] %v11048_v22  ;;  %v2768_v5 = vadd.f32 %v15367_v34, %v1904_v39  ;;  %v15374_v39 = vld [vmem:[#allocation193_spill] sm:$0xff] }
 0x364   :  { %3320 = vmatmul.bf16.gmra.mxu0 %v3160_v29  ;;  %4013 = vperm.xlu2 %7320, %v7532_v31   ;;  %v2097_v34 = vrot.slane %v15374_v39, 1  ;;  %v15380_v31 = vld [vmem:[#allocation49_spill] sm:$0xff] }
 0x365   :  { %4009 = vperm.xlu1 %7319, %v15368_v38   ;;  %v11063_v13 = vpop.f32.mrf.mxu3  ;;  %v3417_v14 = vadd.f32 %v10776_v18, %v2768_v5  ;;  %v1159_v18 = vmul.f32 %v15376_v49, %v10766_v32  ;;  %v15382_v49 = vrot.slane %v15341_v7, 1 }
 0x366   :  { %15369 = vst [vmem:[#allocation123_spill] sm:$0xff] %v11063_v13  ;;  %3602 = vmatmul.bf16.gmra.mxu1 %v598_v15  ;;  %4454 = vperm.xlu0 %7322, %v10341_v48   ;;  %v11068_v29 = vpop.permute.xlu2 %3881  ;;  %v11070_v25 = vpop.permute.xlu1 %3841  ;;  %v15377_v48 = vrot.slane %v15370_v1, 1 }
 0x367   :  { %15371 = vst [vmem:[#allocation141_spill] sm:$0xff] %v11068_v29  ;;  %v11072_v59 = vpop.permute.xlu0 %3885  ;;  %v11076_v38 = vadd.f32 %v3563_v35, %v3417_v14  ;;  %v15379_v29 = vld [vmem:[#allocation218_spill] sm:$0xff]  ;;  %v1158_v35 = vmul.f32 %v15380_v31, %v10747_v23  ;;  %v15381_v14 = vld [vmem:[#allocation229_spill] sm:$0xff]  ;;  %v11098_v63 = vsel %vm2112_vm0, %v15382_v49, %v2097_v34  ;;  %v7533_v31 = vld [vmem:[%s14119_s1 + $0x1f8] sm:$0xff] }
 0x368   :  { %15372 = vst [vmem:[#allocation273_spill] sm:$0xff] %v11070_v25  ;;  %v11078_v16 = vpop.f32.mrf.mxu0  ;;  %v1905_v5 = vpop.f32.mrf.mxu2  ;;  %v11086_v15 = vsel %vm2112_vm0, %v2097_v34, %v15377_v48  ;;  %v15384_v48 = vrot.slane %v9998_v62, 7  ;;  %v7534_v49 = vld [vmem:[%s14119_s1 + $0x1f0] sm:$0xff] }
 0x369   :  { %15373 = vst [vmem:[#allocation351_spill] sm:$0xff] %v11072_v59  ;;  %v649_v59 = vrot.slane %v10017_v50, 7  ;;  %v1906_v22 = vadd.f32 %v1905_v5, %v15379_v29  ;;  %v15386_v29 = vld [vmem:[#allocation80_spill] sm:$0xff] }
 0x36a   :  { %15375 = vst [vmem:[#allocation352_spill] sm:$0xff] %v11076_v38  ;;  %v2484_v38 = vmul.f32 %v15381_v14, %v11086_v15  ;;  %v3565_v25 = vpop.f32.mrf.mxu1  ;;  %v1210_v14 = vpack.c.bf16 %v1159_v18, %v1158_v35 }
 0x36b   :  { %15378 = vst [vmem:[#allocation48_spill] sm:$0xff] %v11086_v15  ;;  %v11104_v27 = vsel %vm685_vm1, %v649_v59, %v15384_v48  ;;  %v2769_v5 = vadd.f32 %v15386_v29, %v1906_v22  ;;  %v15387_v15 = vld [vmem:[#allocation215_spill] sm:$0xff]  ;;  %v15389_v22 = vrot.slane %v9891_v33, 7 }
 0x36c   :  { %15383 = vst [vmem:[#allocation218_spill] sm:$0xff] %v11098_v63  ;;  %4025 = vperm.xlu2 %7320, %v7533_v31   ;;  %v2483_v60 = vmul.f32 %v15387_v15, %v11098_v63  ;;  %v3113_v34 = vmul.f32 %v10347_v17, %v11104_v27 }
 0x36d   :  { %15385 = vst [vmem:[#allocation49_spill] sm:$0xff] %v11104_v27  ;;  %4021 = vperm.xlu1 %7319, %v7534_v49   ;;  %v11117_v48 = vpop.f32.mrf.mxu3  ;;  %v11123_v29 = vsel %vm685_vm1, %v15389_v22, %v649_v59  ;;  %v3418_v18 = vadd.f32 %v10803_v52, %v2769_v5  ;;  %v15395_v52 = vld [vmem:[#allocation29_spill] sm:$0xff] }
 0x36e   :  { %15388 = vst [vmem:[#allocation229_spill] sm:$0xff] %v11117_v48  ;;  %4466 = vperm.xlu0 %7322, %v10373_v21   ;;  %v11127_v15 = vpop.permute.xlu2 %3893  ;;  %1947 = vmatmul.bf16.gmra.mxu2 %v1210_v14  ;;  %v2522_v17 = vpack.c.bf16 %v2484_v38, %v2483_v60  ;;  %v3112_v35 = vmul.f32 %v10222_v0, %v11123_v29  ;;  %v11131_v31 = vpop.permute.xlu1 %3853  ;;  %v15396_v14 = vld [vmem:[#allocation24_spill] sm:$0xff]  ;;  %v15397_v38 = vmov 6  }
 0x36f   :  { %15390 = vst [vmem:[#allocation80_spill] sm:$0xff] %v11123_v29  ;;  %v11133_v49 = vpop.permute.xlu0 %3897  ;;  %v11135_v63 = vadd.f32 %v3565_v25, %v3418_v18  ;;  %v599_v0 = vpack.c.bf16 %v9689_v2, %v9719_v10  ;;  %v15399_v18 = vld [vmem:[#allocation217_spill] sm:$0xff] }
 0x370   :  { %15391 = vst [vmem:[#allocation215_spill] sm:$0xff] %v11127_v15  ;;  %v11137_v23 = vpop.f32.mrf.mxu0  ;;  %v3161_v59 = vpack.c.bf16 %v3113_v34, %v3112_v35  ;;  %v1908_v22 = vpop.f32.mrf.mxu2  ;;  %2726 = vmatmul.bf16.gmra.mxu3 %v2522_v17  ;;  %v11150_v34 = vld [vmem:[%s14119_s1 + $0x10] sm:$0xff] }
 0x371   :  { %15392 = vst [vmem:[#allocation353_spill] sm:$0xff] %v11131_v31  ;;  %v1909_v21 = vadd.f32 %v1908_v22, %v15395_v52 }
 0x372   :  { %15393 = vst [vmem:[#allocation354_spill] sm:$0xff] %v11133_v49  ;;  %v3568_v5 = vpop.f32.mrf.mxu1  ;;  %v15405_v49 = vld [vmem:[#allocation54_spill] sm:$0xff] }
 0x373   :  { %15394 = vst [vmem:[#allocation355_spill] sm:$0xff] %v11135_v63  ;;  %v2770_v60 = vadd.f32 %v15396_v14, %v1909_v21  ;;  %v15403_v14 = vld [vmem:[#allocation203_spill] sm:$0xff]  ;;  %v1161_v15 = vmul.f32 %v15405_v49, %v10827_v36  ;;  %v15411_v49 = vrot.slane %v15370_v1, 1 }
 0x374   :  { %3325 = vmatmul.bf16.gmra.mxu0 %v3161_v59  ;;  %7324 = vset.pattern.permute.xlu2 %v15397_v38  ;;  %v11158_v59 = vld [vmem:[%s14119_s1 + $0x8] sm:$0xff]  ;;  %v2099_v17 = vrot.slane %v15403_v14, 1 }
 0x375   :  { %7323 = vset.pattern.permute.xlu1 %v15397_v38  ;;  %v11145_v25 = vpop.f32.mrf.mxu3  ;;  %4430 = vperm.xlu2 %7324, %v11150_v34   ;;  %v3419_v35 = vadd.f32 %v10860_v4, %v2770_v60  ;;  %v15409_v4 = vld [vmem:[#allocation31_spill] sm:$0xff] }
 0x376   :  { %15398 = vst [vmem:[#allocation29_spill] sm:$0xff] %v11145_v25  ;;  %3607 = vmatmul.bf16.gmra.mxu1 %v599_v0  ;;  %4426 = vperm.xlu1 %7323, %v11158_v59   ;;  %v11161_v22 = vpop.permute.xlu2 %3905  ;;  %v11164_v52 = vpop.permute.xlu1 %3865  ;;  %v11192_v10 = vsel %vm2112_vm0, %v15411_v49, %v2099_v17  ;;  %v15418_v49 = vrot.slane %v9998_v62, 7  ;;  %v15469_v25 = vld [vmem:[#allocation59_spill] sm:$0xff] }
 0x377   :  { %15400 = vst [vmem:[#allocation24_spill] sm:$0xff] %v11161_v22  ;;  %4478 = vperm.xlu0 %7322, %v10421_v55   ;;  %v11166_v21 = vpop.permute.xlu0 %3909  ;;  %v11170_v60 = vadd.f32 %v3568_v5, %v3419_v35  ;;  %v15406_v22 = vrot.slane %v15399_v18, 1  ;;  %v1160_v5 = vmul.f32 %v15409_v4, %v10847_v54  ;;  %v15410_v35 = vld [vmem:[#allocation226_spill] sm:$0xff]  ;;  %v15416_v4 = vld [vmem:[#allocation207_spill] sm:$0xff] }
 0x378   :  { %15401 = vst [vmem:[#allocation356_spill] sm:$0xff] %v11164_v52  ;;  %v11172_v0 = vpop.f32.mrf.mxu0  ;;  %v1910_v63 = vpop.f32.mrf.mxu2  ;;  %v15408_v52 = vld [vmem:[#allocation236_spill] sm:$0xff]  ;;  %v2485_v54 = vmul.f32 %v15416_v4, %v11192_v10 }
 0x379   :  { %15402 = vst [vmem:[#allocation357_spill] sm:$0xff] %v11166_v21  ;;  %v11180_v55 = vsel %vm2112_vm0, %v2099_v17, %v15406_v22  ;;  %v651_v21 = vrot.slane %v15116_v6, 7  ;;  %v1911_v31 = vadd.f32 %v1910_v63, %v15408_v52  ;;  %v15413_v22 = vrot.slane %v15138_v37, 7  ;;  %v15415_v63 = vld [vmem:[#allocation162_spill] sm:$0xff]  ;;  %v11210_v17 = vld [vmem:[%s14119_s1 + $0x20] sm:$0xff] }
 0x37a   :  { %15404 = vst [vmem:[#allocation358_spill] sm:$0xff] %v11170_v60  ;;  %v2486_v60 = vmul.f32 %v15410_v35, %v11180_v55  ;;  %v3570_v2 = vpop.f32.mrf.mxu1  ;;  %v1211_v36 = vpack.c.bf16 %v1161_v15, %v1160_v5 }
 0x37b   :  { %15407 = vst [vmem:[#allocation54_spill] sm:$0xff] %v11180_v55  ;;  %v11198_v38 = vsel %vm685_vm1, %v651_v21, %v15413_v22  ;;  %v2771_v52 = vadd.f32 %v15415_v63, %v1911_v31  ;;  %v11217_v15 = vsel %vm685_vm1, %v15418_v49, %v651_v21  ;;  %v7539_v21 = vld [vmem:[%s14119_s1 + $0x88] sm:$0xff] }
 0x37c   :  { %15412 = vst [vmem:[#allocation236_spill] sm:$0xff] %v11192_v10  ;;  %v3115_v35 = vmul.f32 %v10268_v46, %v11198_v38  ;;  %v11223_v46 = vld [vmem:[%s14119_s1 + $0x18] sm:$0xff]  ;;  %v2523_v22 = vpack.c.bf16 %v2486_v60, %v2485_v54  ;;  %v3114_v63 = vmul.f32 %v10220_v9, %v11217_v15  ;;  %v15425_v9 = vld [vmem:[#allocation113_spill] sm:$0xff] }
 0x37d   :  { %15414 = vst [vmem:[#allocation31_spill] sm:$0xff] %v11198_v38  ;;  %v11205_v55 = vpop.f32.mrf.mxu3  ;;  %4438 = vperm.xlu2 %7324, %v11210_v17   ;;  %v3420_v31 = vadd.f32 %v10887_v12, %v2771_v52 }
 0x37e   :  { %15417 = vst [vmem:[#allocation226_spill] sm:$0xff] %v11205_v55  ;;  %4434 = vperm.xlu1 %7323, %v11223_v46   ;;  %v11226_v5 = vpop.permute.xlu2 %3917  ;;  %1952 = vmatmul.bf16.gmra.mxu2 %v1211_v36  ;;  %v11233_v12 = vpop.permute.xlu1 %3877  ;;  %v3162_v10 = vpack.c.bf16 %v3115_v35, %v3114_v63  ;;  %v15424_v36 = vld [vmem:[#allocation131_spill] sm:$0xff] }
 0x37f   :  { %15419 = vst [vmem:[#allocation162_spill] sm:$0xff] %v11217_v15  ;;  %4490 = vperm.xlu0 %7322, %v7539_v21   ;;  %v11235_v52 = vpop.permute.xlu0 %3921  ;;  %v11237_v4 = vadd.f32 %v3570_v2, %v3420_v31  ;;  %v600_v21 = vpack.c.bf16 %v9784_v53, %v15317_v24  ;;  %v7540_v2 = vld [vmem:[%s14119_s1 + $0x38] sm:$0xff]  ;;  %v15441_v24 = vrot.slane %v15138_v37, 7 }
 0x380   :  { %15420 = vst [vmem:[#allocation207_spill] sm:$0xff] %v11226_v5  ;;  %v11239_v49 = vpop.f32.mrf.mxu0  ;;  %v1913_v5 = vpop.f32.mrf.mxu2  ;;  %2731 = vmatmul.bf16.gmra.mxu3 %v2523_v22  ;;  %v15427_v31 = vld [vmem:[#allocation216_spill] sm:$0xff] }
 0x381   :  { %15421 = vst [vmem:[#allocation359_spill] sm:$0xff] %v11233_v12  ;;  %v1914_v54 = vadd.f32 %v1913_v5, %v15424_v36  ;;  %v2101_v35 = vrot.slane %v15427_v31, 1 }
 0x382   :  { %15422 = vst [vmem:[#allocation360_spill] sm:$0xff] %v11235_v52  ;;  %v3573_v60 = vpop.f32.mrf.mxu1  ;;  %v653_v52 = vrot.slane %v15141_v41, 7 }
 0x383   :  { %15423 = vst [vmem:[#allocation361_spill] sm:$0xff] %v11237_v4  ;;  %v2772_v32 = vadd.f32 %v15425_v9, %v1914_v54  ;;  %v15431_v54 = vld [vmem:[#allocation232_spill] sm:$0xff] }
 0x384   :  { %3330 = vmatmul.bf16.gmra.mxu0 %v3162_v10  ;;  %v11255_v10 = vld [vmem:[%s14119_s1 + $0x30] sm:$0xff]  ;;  %v15439_v53 = vrot.slane %v15431_v54, 1 }
 0x385   :  { %v11245_v55 = vpop.f32.mrf.mxu3  ;;  %4450 = vperm.xlu2 %7324, %v7540_v2   ;;  %v3421_v22 = vadd.f32 %v10951_v56, %v2772_v32  ;;  %v15433_v56 = vld [vmem:[#allocation37_spill] sm:$0xff] }
 0x386   :  { %15426 = vst [vmem:[#allocation131_spill] sm:$0xff] %v11245_v55  ;;  %3612 = vmatmul.bf16.gmra.mxu1 %v600_v21  ;;  %4446 = vperm.xlu1 %7323, %v11255_v10   ;;  %v11258_v5 = vpop.permute.xlu2 %3929  ;;  %v11261_v63 = vpop.permute.xlu1 %3889  ;;  %v1163_v21 = vmul.f32 %v15433_v56, %v10913_v42 }
 0x387   :  { %15428 = vst [vmem:[#allocation113_spill] sm:$0xff] %v11258_v5  ;;  %4502 = vperm.xlu0 %7322, %v10496_v43   ;;  %v11263_v36 = vpop.permute.xlu0 %3933  ;;  %v11266_v2 = vadd.f32 %v3573_v60, %v3421_v22  ;;  %v15434_v43 = vrot.slane %v15399_v18, 1  ;;  %v15437_v60 = vld [vmem:[#allocation53_spill] sm:$0xff]  ;;  %v11289_v5 = vsel %vm2112_vm0, %v2101_v35, %v15439_v53  ;;  %v11307_v53 = vld [vmem:[%s14119_s1 + $0x50] sm:$0xff] }
 0x388   :  { %15429 = vst [vmem:[#allocation362_spill] sm:$0xff] %v11261_v63  ;;  %v11268_v32 = vpop.f32.mrf.mxu0  ;;  %v1915_v4 = vpop.f32.mrf.mxu2  ;;  %v1162_v22 = vmul.f32 %v15437_v60, %v10938_v11  ;;  %v15444_v60 = vld [vmem:[#allocation121_spill] sm:$0xff] }
 0x389   :  { %15430 = vst [vmem:[#allocation363_spill] sm:$0xff] %v11263_v36  ;;  %v11278_v63 = vsel %vm2112_vm0, %v15434_v43, %v2101_v35  ;;  %v15436_v36 = vld [vmem:[#allocation247_spill] sm:$0xff]  ;;  %v11295_v43 = vsel %vm685_vm1, %v15441_v24, %v653_v52  ;;  %v2488_v11 = vmul.f32 %v15444_v60, %v11289_v5  ;;  %v15447_v24 = vrot.slane %v15164_v28, 7  ;;  %v15450_v60 = vld [vmem:[#allocation104_spill] sm:$0xff] }
 0x38a   :  { %15432 = vst [vmem:[#allocation364_spill] sm:$0xff] %v11266_v2  ;;  %v1916_v9 = vadd.f32 %v1915_v4, %v15436_v36  ;;  %v15438_v2 = vld [vmem:[#allocation239_spill] sm:$0xff]  ;;  %v3575_v56 = vpop.f32.mrf.mxu1  ;;  %v15443_v4 = vld [vmem:[#allocation169_spill] sm:$0xff]  ;;  %v1212_v42 = vpack.c.bf16 %v1163_v21, %v1162_v22 }
 0x38b   :  { %15435 = vst [vmem:[#allocation37_spill] sm:$0xff] %v11278_v63  ;;  %v2487_v12 = vmul.f32 %v15438_v2, %v11278_v63  ;;  %v15445_v2 = vld [vmem:[#allocation293_spill] sm:$0xff]  ;;  %v11314_v35 = vsel %vm685_vm1, %v653_v52, %v15447_v24  ;;  %v7544_v52 = vld [vmem:[%s14119_s1 + $0xb8] sm:$0xff] }
 0x38c   :  { %15440 = vst [vmem:[#allocation247_spill] sm:$0xff] %v11289_v5  ;;  %v2773_v36 = vadd.f32 %v15443_v4, %v1916_v9  ;;  %v3116_v63 = vmul.f32 %v15445_v2, %v11295_v43  ;;  %v11320_v21 = vld [vmem:[%s14119_s1 + $0x48] sm:$0xff]  ;;  %v3117_v2 = vmul.f32 %v15450_v60, %v11314_v35  ;;  %v7253_v60 = vld [vmem:[%s14122_s4 + $0x198] sm:$0xff] }
 0x38d   :  { %15442 = vst [vmem:[#allocation53_spill] sm:$0xff] %v11295_v43  ;;  %v11302_v55 = vpop.f32.mrf.mxu3  ;;  %4462 = vperm.xlu2 %7324, %v11307_v53   ;;  %v2524_v4 = vpack.c.bf16 %v2488_v11, %v2487_v12  ;;  %v7245_v12 = vld [vmem:[%s14122_s4 + $0x158] sm:$0xff]  ;;  %4841 = vmatpush.bf16.msra.mxu3 %v7253_v60 }
 0x38e   :  { %15446 = vst [vmem:[#allocation239_spill] sm:$0xff] %v11302_v55  ;;  %v3422_v9 = vadd.f32 %v10985_v20, %v2773_v36  ;;  %4458 = vperm.xlu1 %7323, %v11320_v21   ;;  %v11323_v22 = vpop.permute.xlu2 %3941  ;;  %1957 = vmatmul.bf16.gmra.mxu2 %v1212_v42  ;;  %v11330_v20 = vpop.permute.xlu1 %3901  ;;  %v3163_v55 = vpack.c.bf16 %v3117_v2, %v3116_v63  ;;  %v15454_v42 = vld [vmem:[#allocation132_spill] sm:$0xff]  ;;  %v15461_v2 = vld [vmem:[#allocation55_spill] sm:$0xff] }
 0x38f   :  { %15448 = vst [vmem:[#allocation169_spill] sm:$0xff] %v11314_v35  ;;  %4514 = vperm.xlu0 %7322, %v7544_v52   ;;  %v11332_v36 = vpop.permute.xlu0 %3945  ;;  %4192 = vmatpush.bf16.msra.mxu2 %v7245_v12  ;;  %v15471_v48 = vrot.slane %v15461_v2, 7 }
 0x390   :  { %15449 = vst [vmem:[#allocation121_spill] sm:$0xff] %v11323_v22  ;;  %v11334_v24 = vadd.f32 %v3575_v56, %v3422_v9  ;;  %v11336_v5 = vpop.f32.mrf.mxu0  ;;  %v1918_v22 = vpop.f32.mrf.mxu2  ;;  %2736 = vmatmul.bf16.gmra.mxu3 %v2524_v4  ;;  %v601_v9 = vpack.c.bf16 %v9891_v33, %v15344_v51  ;;  %v15457_v4 = vld [vmem:[#allocation140_spill] sm:$0xff] }
 0x391   :  { %15451 = vst [vmem:[#allocation293_spill] sm:$0xff] %v11330_v20  ;;  %v1919_v11 = vadd.f32 %v1918_v22, %v15454_v42  ;;  %v11353_v22 = vld [vmem:[%s14119_s1 + $0x68] sm:$0xff]  ;;  %v15465_v51 = vld [vmem:[#allocation8_spill] sm:$0xff] }
 0x392   :  { %15452 = vst [vmem:[#allocation104_spill] sm:$0xff] %v11332_v36  ;;  %v3578_v52 = vpop.f32.mrf.mxu1  ;;  %v15455_v36 = vld [vmem:[#allocation116_spill] sm:$0xff] }
 0x393   :  { %15453 = vst [vmem:[#allocation365_spill] sm:$0xff] %v11334_v24  ;;  %v2774_v56 = vadd.f32 %v15455_v36, %v1919_v11  ;;  %v7546_v36 = vld [vmem:[%s14119_s1 + $0x60] sm:$0xff]  ;;  %v7547_v11 = vld [vmem:[%s14119_s1 + $0xd0] sm:$0xff] }
 0x394   :  { %3335 = vmatmul.bf16.gmra.mxu0 %v3163_v55 }
 0x395   :  { %v11348_v63 = vpop.f32.mrf.mxu3  ;;  %4474 = vperm.xlu2 %7324, %v11353_v22   ;;  %v3423_v55 = vadd.f32 %v11050_v57, %v2774_v56  ;;  %v15462_v57 = vld [vmem:[#allocation233_spill] sm:$0xff] }
 0x396   :  { %15456 = vst [vmem:[#allocation132_spill] sm:$0xff] %v11348_v63  ;;  %3617 = vmatmul.bf16.gmra.mxu1 %v601_v9  ;;  %4470 = vperm.xlu1 %7323, %v7546_v36   ;;  %v11361_v42 = vpop.permute.xlu2 %3953  ;;  %v11366_v12 = vpop.permute.xlu1 %3913  ;;  %v2103_v56 = vrot.slane %v15462_v57, 1  ;;  %v15464_v36 = vld [vmem:[#allocation58_spill] sm:$0xff]  ;;  %v655_v63 = vrot.slane %v15465_v51, 7 }
 0x397   :  { %15458 = vst [vmem:[#allocation116_spill] sm:$0xff] %v11361_v42  ;;  %4526 = vperm.xlu0 %7322, %v7547_v11   ;;  %v11368_v60 = vpop.permute.xlu0 %3957  ;;  %v11372_v9 = vadd.f32 %v3578_v52, %v3423_v55  ;;  %v1165_v42 = vmul.f32 %v15464_v36, %v11031_v8  ;;  %v15466_v11 = vrot.slane %v15457_v4, 1  ;;  %v1164_v52 = vmul.f32 %v15469_v25, %v11014_v26  ;;  %v7261_v55 = vld [vmem:[%s14122_s4 + $0x1d8] sm:$0xff]  ;;  %v15475_v25 = vld [vmem:[#allocation181_spill] sm:$0xff] }
 0x398   :  { %15459 = vst [vmem:[#allocation366_spill] sm:$0xff] %v11366_v12  ;;  %v11374_v24 = vpop.f32.mrf.mxu0  ;;  %v1920_v33 = vpop.f32.mrf.mxu2  ;;  %v15470_v36 = vld [vmem:[#allocation127_spill] sm:$0xff]  ;;  %v11397_v13 = vsel %vm685_vm1, %v655_v63, %v15471_v48  ;;  %5490 = vmatpush.bf16.msra.mxu0 %v7261_v55  ;;  %v7548_v48 = vld [vmem:[%s14119_s1 + $0x80] sm:$0xff] }
 0x399   :  { %15460 = vst [vmem:[#allocation367_spill] sm:$0xff] %v11368_v60  ;;  %v11383_v12 = vsel %vm2112_vm0, %v2103_v56, %v15466_v11  ;;  %v15468_v60 = vld [vmem:[#allocation148_spill] sm:$0xff]  ;;  %v15473_v11 = vrot.slane %v15431_v54, 1  ;;  %v1213_v26 = vpack.c.bf16 %v1165_v42, %v1164_v52 }
 0x39a   :  { %15463 = vst [vmem:[#allocation368_spill] sm:$0xff] %v11372_v9  ;;  %v1921_v20 = vadd.f32 %v1920_v33, %v15468_v60  ;;  %v2490_v9 = vmul.f32 %v15470_v36, %v11383_v12  ;;  %v3580_v8 = vpop.f32.mrf.mxu1  ;;  %v15482_v55 = vld [vmem:[#allocation284_spill] sm:$0xff] }
 0x39b   :  { %15467 = vst [vmem:[#allocation58_spill] sm:$0xff] %v11383_v12  ;;  %v11403_v33 = vsel %vm2112_vm0, %v15473_v11, %v2103_v56  ;;  %v15477_v12 = vld [vmem:[#allocation220_spill] sm:$0xff]  ;;  %v15479_v56 = vrot.slane %v15164_v28, 7 }
 0x39c   :  { %15472 = vst [vmem:[#allocation148_spill] sm:$0xff] %v11397_v13  ;;  %v2775_v60 = vadd.f32 %v15475_v25, %v1921_v20  ;;  %v2489_v36 = vmul.f32 %v15476_v40, %v11403_v33  ;;  %v3119_v57 = vmul.f32 %v15477_v12, %v11397_v13  ;;  %v7549_v40 = vld [vmem:[%s14119_s1 + $0x78] sm:$0xff]  ;;  %v7550_v25 = vld [vmem:[%s14119_s1 + $0xe8] sm:$0xff] }
 0x39d   :  { %15474 = vst [vmem:[#allocation59_spill] sm:$0xff] %v11403_v33  ;;  %v11410_v31 = vpop.f32.mrf.mxu3  ;;  %4486 = vperm.xlu2 %7324, %v7548_v48   ;;  %v11419_v20 = vsel %vm685_vm1, %v15479_v56, %v655_v63  ;;  %v15486_v56 = vld [vmem:[#allocation34_spill] sm:$0xff] }
 0x39e   :  { %15478 = vst [vmem:[#allocation127_spill] sm:$0xff] %v11410_v31  ;;  %v3424_v42 = vadd.f32 %v11078_v16, %v2775_v60  ;;  %4482 = vperm.xlu1 %7323, %v7549_v40   ;;  %v11425_v12 = vpop.permute.xlu2 %3965  ;;  %1962 = vmatmul.bf16.gmra.mxu2 %v1213_v26  ;;  %v2525_v52 = vpack.c.bf16 %v2490_v9, %v2489_v36  ;;  %v11432_v63 = vpop.permute.xlu1 %3925  ;;  %v7269_v26 = vld [vmem:[%s14122_s4 + $0x218] sm:$0xff]  ;;  %v15507_v31 = vrot.slane %v15457_v4, 1 }
 0x39f   :  { %15480 = vst [vmem:[#allocation181_spill] sm:$0xff] %v11419_v20  ;;  %v3118_v11 = vmul.f32 %v15482_v55, %v11419_v20  ;;  %4538 = vperm.xlu0 %7322, %v7550_v25   ;;  %v11434_v16 = vpop.permute.xlu0 %3969  ;;  %6139 = vmatpush.bf16.msra.mxu1 %v7269_v26  ;;  %v15487_v25 = vld [vmem:[#allocation180_spill] sm:$0xff]  ;;  %v11457_v26 = vld [vmem:[%s14119_s1 + $0x90] sm:$0xff] }
 0x3a0   :  { %15481 = vst [vmem:[#allocation230_spill] sm:$0xff] %v11425_v12  ;;  %v11436_v60 = vadd.f32 %v3580_v8, %v3424_v42  ;;  %v11438_v48 = vpop.f32.mrf.mxu0  ;;  %v1923_v36 = vpop.f32.mrf.mxu2  ;;  %2741 = vmatmul.bf16.gmra.mxu3 %v2525_v52  ;;  %v602_v8 = vpack.c.bf16 %v9998_v62, %v10017_v50  ;;  %v15499_v50 = vld [vmem:[#allocation157_spill] sm:$0xff] }
 0x3a1   :  { %15483 = vst [vmem:[#allocation220_spill] sm:$0xff] %v11432_v63  ;;  %v3164_v9 = vpack.c.bf16 %v3119_v57, %v3118_v11  ;;  %v1924_v40 = vadd.f32 %v1923_v36, %v15486_v56  ;;  %v15489_v57 = vld [vmem:[#allocation143_spill] sm:$0xff]  ;;  %v15492_v36 = vld [vmem:[#allocation186_spill] sm:$0xff] }
 0x3a2   :  { %15484 = vst [vmem:[#allocation284_spill] sm:$0xff] %v11434_v16  ;;  %v3583_v55 = vpop.f32.mrf.mxu1  ;;  %v7551_v16 = vld [vmem:[%s14119_s1 + $0x98] sm:$0xff] }
 0x3a3   :  { %15485 = vst [vmem:[#allocation369_spill] sm:$0xff] %v11436_v60  ;;  %v2776_v12 = vadd.f32 %v15487_v25, %v1924_v40  ;;  %v15494_v40 = vld [vmem:[#allocation60_spill] sm:$0xff]  ;;  %v15495_v25 = vld [vmem:[#allocation245_spill] sm:$0xff] }
 0x3a4   :  { %3340 = vmatmul.bf16.gmra.mxu0 %v3164_v9  ;;  %15490 = vst [vmem:[#allocation180_spill] sm:$0xff] %v11457_v26  ;;  %v2105_v11 = vrot.slane %v15495_v25, 1 }
 0x3a5   :  { %v11447_v42 = vpop.f32.mrf.mxu3  ;;  %4498 = vperm.xlu2 %7324, %v7551_v16   ;;  %v3425_v52 = vadd.f32 %v11137_v23, %v2776_v12  ;;  %v15497_v12 = vld [vmem:[#allocation64_spill] sm:$0xff]  ;;  %v15502_v16 = vld [vmem:[#allocation51_spill] sm:$0xff] }
 0x3a6   :  { %15488 = vst [vmem:[#allocation34_spill] sm:$0xff] %v11447_v42  ;;  %3622 = vmatmul.bf16.gmra.mxu1 %v602_v8  ;;  %4494 = vperm.xlu1 %7323, %v11457_v26   ;;  %v11460_v9 = vpop.permute.xlu2 %3977  ;;  %v1167_v8 = vmul.f32 %v15497_v12, %v11104_v27 }
 0x3a7   :  { %15491 = vst [vmem:[#allocation370_spill] sm:$0xff] %v11460_v9  ;;  %4550 = vperm.xlu0 %7322, %v15492_v36   ;;  %v11463_v56 = vpop.permute.xlu1 %3937  ;;  %v11467_v63 = vadd.f32 %v3583_v55, %v3425_v52  ;;  %v11473_v33 = vpop.permute.xlu0 %3981  ;;  %v657_v9 = vrot.slane %v15499_v50, 7  ;;  %v15500_v36 = vrot.slane %v15489_v57, 1  ;;  %v15503_v55 = vld [vmem:[#allocation42_spill] sm:$0xff] }
 0x3a8   :  { %15493 = vst [vmem:[#allocation186_spill] sm:$0xff] %v11463_v56  ;;  %v11469_v23 = vpop.f32.mrf.mxu0  ;;  %v1925_v60 = vpop.f32.mrf.mxu2  ;;  %v1166_v52 = vmul.f32 %v15503_v55, %v11123_v29  ;;  %v15510_v55 = vld [vmem:[#allocation222_spill] sm:$0xff] }
 0x3a9   :  { %15496 = vst [vmem:[#allocation371_spill] sm:$0xff] %v11467_v63  ;;  %v11480_v56 = vsel %vm2112_vm0, %v2105_v11, %v15500_v36  ;;  %v1926_v62 = vadd.f32 %v1925_v60, %v15502_v16  ;;  %v15504_v63 = vld [vmem:[#allocation240_spill] sm:$0xff]  ;;  %v11497_v36 = vsel %vm2112_vm0, %v15507_v31, %v2105_v11  ;;  %v15509_v60 = vld [vmem:[#allocation182_spill] sm:$0xff]  ;;  %v15514_v31 = vrot.slane %v15461_v2, 7 }
 0x3aa   :  { %15498 = vst [vmem:[#allocation64_spill] sm:$0xff] %v11473_v33  ;;  %v2492_v42 = vmul.f32 %v15504_v63, %v11480_v56  ;;  %v3585_v12 = vpop.f32.mrf.mxu1  ;;  %v15505_v33 = vrot.slane %v15494_v40, 7  ;;  %v1214_v25 = vpack.c.bf16 %v1167_v8, %v1166_v52  ;;  %v2491_v29 = vmul.f32 %v15510_v55, %v11497_v36  ;;  %v15511_v63 = vld [vmem:[#allocation289_spill] sm:$0xff]  ;;  %v15518_v55 = vld [vmem:[#allocation283_spill] sm:$0xff] }
 0x3ab   :  { %15501 = vst [vmem:[#allocation372_spill] sm:$0xff] %v11480_v56  ;;  %v2777_v16 = vadd.f32 %v15509_v60, %v1926_v62  ;;  %v11516_v62 = vsel %vm685_vm1, %v15514_v31, %v657_v9  ;;  %v11522_v8 = vld [vmem:[%s14119_s1 + $0xa8] sm:$0xff] }
 0x3ac   :  { %v11491_v27 = vsel %vm685_vm1, %v657_v9, %v15505_v33  ;;  %15508 = vst [vmem:[#allocation42_spill] sm:$0xff] %v11497_v36  ;;  %v11509_v33 = vld [vmem:[%s14119_s1 + $0xb0] sm:$0xff]  ;;  %v2526_v60 = vpack.c.bf16 %v2492_v42, %v2491_v29  ;;  %v15519_v36 = vld [vmem:[#allocation329_spill] sm:$0xff]  ;;  %v15524_v29 = vld [vmem:[#allocation292_spill] sm:$0xff] }
 0x3ad   :  { %15506 = vst [vmem:[#allocation51_spill] sm:$0xff] %v11491_v27  ;;  %v3121_v56 = vmul.f32 %v15511_v63, %v11491_v27  ;;  %v11504_v26 = vpop.f32.mrf.mxu3  ;;  %4510 = vperm.xlu2 %7324, %v11509_v33   ;;  %v3426_v11 = vadd.f32 %v11172_v0, %v2777_v16  ;;  %v3120_v63 = vmul.f32 %v15518_v55, %v11516_v62 }
 0x3ae   :  { %15512 = vst [vmem:[#allocation240_spill] sm:$0xff] %v11504_v26  ;;  %4506 = vperm.xlu1 %7323, %v11522_v8   ;;  %v11525_v52 = vpop.permute.xlu2 %3989  ;;  %1967 = vmatmul.bf16.gmra.mxu2 %v1214_v25 }
 0x3af   :  { %15513 = vst [vmem:[#allocation182_spill] sm:$0xff] %v11509_v33  ;;  %4562 = vperm.xlu0 %7322, %v15519_v36   ;;  %v11530_v9 = vpop.permute.xlu1 %3949  ;;  %v11532_v31 = vadd.f32 %v3585_v12, %v3426_v11  ;;  %v3165_v16 = vpack.c.bf16 %v3121_v56, %v3120_v63  ;;  %v15522_v33 = vld [vmem:[#allocation138_spill] sm:$0xff]  ;;  %v603_v36 = vpack.c.bf16 %v15138_v37, %v15116_v6  ;;  %v15527_v56 = vld [vmem:[#allocation257_spill] sm:$0xff]  ;;  %v15535_v37 = vrot.slane %v15489_v57, 1 }
 0x3b0   :  { %15515 = vst [vmem:[#allocation222_spill] sm:$0xff] %v11516_v62  ;;  %v1928_v26 = vpop.f32.mrf.mxu2  ;;  %2746 = vmatmul.bf16.gmra.mxu3 %v2526_v60  ;;  %v11547_v12 = vld [vmem:[%s14119_s1 + $0xc8] sm:$0xff]  ;;  %v7557_v60 = vld [vmem:[%s14119_s1 + $0x130] sm:$0xff] }
 0x3b1   :  { %15516 = vst [vmem:[#allocation289_spill] sm:$0xff] %v11522_v8  ;;  %v11534_v0 = vpop.f32.mrf.mxu0  ;;  %v1929_v4 = vadd.f32 %v1928_v26, %v15522_v33  ;;  %v11537_v8 = vpop.permute.xlu0 %3993  ;;  %v2107_v26 = vrot.slane %v15527_v56, 1 }
 0x3b2   :  { %15517 = vst [vmem:[#allocation373_spill] sm:$0xff] %v11525_v52  ;;  %v15538_v52 = vld [vmem:[#allocation63_spill] sm:$0xff] }
 0x3b3   :  { %15520 = vst [vmem:[#allocation283_spill] sm:$0xff] %v11530_v9  ;;  %v3588_v25 = vpop.f32.mrf.mxu1  ;;  %v2778_v42 = vadd.f32 %v15524_v29, %v1929_v4  ;;  %v7556_v4 = vld [vmem:[%s14119_s1 + $0xc0] sm:$0xff] }
 0x3b4   :  { %15521 = vst [vmem:[#allocation329_spill] sm:$0xff] %v11532_v31  ;;  %3345 = vmatmul.bf16.gmra.mxu0 %v3165_v16  ;;  %v15530_v16 = vld [vmem:[#allocation70_spill] sm:$0xff] }
 0x3b5   :  { %15523 = vst [vmem:[#allocation138_spill] sm:$0xff] %v11537_v8  ;;  %v11542_v55 = vpop.f32.mrf.mxu3  ;;  %4522 = vperm.xlu2 %7324, %v11547_v12   ;;  %v3427_v33 = vadd.f32 %v11239_v49, %v2778_v42  ;;  %v659_v29 = vrot.slane %v15530_v16, 7  ;;  %v15531_v8 = vld [vmem:[#allocation110_spill] sm:$0xff] }
 0x3b6   :  { %15525 = vst [vmem:[#allocation292_spill] sm:$0xff] %v11542_v55  ;;  %3627 = vmatmul.bf16.gmra.mxu1 %v603_v36  ;;  %4518 = vperm.xlu1 %7323, %v7556_v4   ;;  %v11555_v11 = vpop.permute.xlu2 %4001  ;;  %v15533_v36 = vld [vmem:[#allocation47_spill] sm:$0xff] }
 0x3b7   :  { %15526 = vst [vmem:[#allocation374_spill] sm:$0xff] %v11547_v12  ;;  %4574 = vperm.xlu0 %7322, %v7557_v60   ;;  %v11560_v63 = vpop.permute.xlu1 %3961  ;;  %v11564_v49 = vadd.f32 %v3588_v25, %v3427_v33  ;;  %v1169_v4 = vmul.f32 %v15533_v36, %v11198_v38  ;;  %v11575_v60 = vsel %vm2112_vm0, %v15535_v37, %v2107_v26  ;;  %v15539_v33 = vld [vmem:[#allocation65_spill] sm:$0xff]  ;;  %v15540_v36 = vrot.slane %v15494_v40, 7 }
 0x3b8   :  { %15528 = vst [vmem:[#allocation375_spill] sm:$0xff] %v11555_v11  ;;  %v1930_v9 = vpop.f32.mrf.mxu2  ;;  %v15534_v11 = vld [vmem:[#allocation75_spill] sm:$0xff]  ;;  %v1168_v25 = vmul.f32 %v15538_v52, %v11217_v15  ;;  %v15542_v38 = vrot.slane %v15531_v8, 1 }
 0x3b9   :  { %15529 = vst [vmem:[#allocation376_spill] sm:$0xff] %v11560_v63  ;;  %v11566_v42 = vpop.f32.mrf.mxu0  ;;  %v15537_v63 = vld [vmem:[#allocation268_spill] sm:$0xff]  ;;  %v11586_v31 = vsel %vm685_vm1, %v15540_v36, %v659_v29  ;;  %v15545_v52 = vld [vmem:[#allocation35_spill] sm:$0xff]  ;;  %v11599_v57 = vpop.permute.xlu0 %4005 }
 0x3ba   :  { %15532 = vst [vmem:[#allocation377_spill] sm:$0xff] %v11564_v49  ;;  %v1931_v6 = vadd.f32 %v1930_v9, %v15537_v63  ;;  %v2493_v49 = vmul.f32 %v15539_v33, %v11575_v60  ;;  %v11592_v37 = vsel %vm2112_vm0, %v2107_v26, %v15542_v38  ;;  %v15544_v9 = vld [vmem:[#allocation177_spill] sm:$0xff]  ;;  %v1215_v56 = vpack.c.bf16 %v1169_v4, %v1168_v25  ;;  %v15546_v33 = vld [vmem:[#allocation302_spill] sm:$0xff]  ;;  %v7559_v4 = vld [vmem:[%s14119_s1 + $0xd8] sm:$0xff] }
 0x3bb   :  { %15536 = vst [vmem:[#allocation47_spill] sm:$0xff] %v11575_v60  ;;  %v3590_v55 = vpop.f32.mrf.mxu1  ;;  %v2494_v15 = vmul.f32 %v15545_v52, %v11592_v37  ;;  %v3122_v60 = vmul.f32 %v15546_v33, %v11586_v31  ;;  %v7558_v36 = vld [vmem:[%s14119_s1 + $0xe0] sm:$0xff]  ;;  %v15549_v38 = vrot.slane %v15534_v11, 7 }
 0x3bc   :  { %15541 = vst [vmem:[#allocation268_spill] sm:$0xff] %v11586_v31  ;;  %v2779_v63 = vadd.f32 %v15544_v9, %v1931_v6  ;;  %v15552_v52 = vld [vmem:[#allocation288_spill] sm:$0xff] }
 0x3bd   :  { %15543 = vst [vmem:[#allocation63_spill] sm:$0xff] %v11592_v37  ;;  %v11601_v12 = vpop.f32.mrf.mxu3  ;;  %4534 = vperm.xlu2 %7324, %v7558_v36   ;;  %v11610_v6 = vsel %vm685_vm1, %v659_v29, %v15549_v38  ;;  %v2527_v9 = vpack.c.bf16 %v2494_v15, %v2493_v49  ;;  %v7560_v36 = vld [vmem:[%s14119_s1 + $0x148] sm:$0xff]  ;;  %v7252_v15 = vld [vmem:[%s14122_s4 + $0x190] sm:$0xff] }
 0x3be   :  { %15547 = vst [vmem:[#allocation65_spill] sm:$0xff] %v11599_v57  ;;  %v3428_v26 = vadd.f32 %v11268_v32, %v2779_v63  ;;  %4530 = vperm.xlu1 %7323, %v7559_v4   ;;  %v11616_v25 = vpop.permute.xlu2 %4013  ;;  %1972 = vmatmul.bf16.gmra.mxu2 %v1215_v56  ;;  %v3123_v33 = vmul.f32 %v15552_v52, %v11610_v6  ;;  %v15556_v52 = vld [vmem:[#allocation200_spill] sm:$0xff] }
 0x3bf   :  { %15548 = vst [vmem:[#allocation177_spill] sm:$0xff] %v11601_v12  ;;  %4586 = vperm.xlu0 %7322, %v7560_v36   ;;  %v11623_v29 = vpop.permute.xlu1 %3973  ;;  %v604_v36 = vpack.c.bf16 %v15164_v28, %v15141_v41  ;;  %4842 = vmatpush.bf16.msra.mxu3 %v7252_v15  ;;  %v15569_v28 = vld [vmem:[#allocation167_spill] sm:$0xff] }
 0x3c0   :  { %15550 = vst [vmem:[#allocation35_spill] sm:$0xff] %v11610_v6  ;;  %v11625_v32 = vadd.f32 %v3590_v55, %v3428_v26  ;;  %v3166_v38 = vpack.c.bf16 %v3123_v33, %v3122_v60  ;;  %2751 = vmatmul.bf16.gmra.mxu3 %v2527_v9  ;;  %v7561_v60 = vld [vmem:[%s14119_s1 + $0xf8] sm:$0xff]  ;;  %v7251_v33 = vld [vmem:[%s14122_s4 + $0x188] sm:$0xff]  ;;  %v661_v15 = vrot.slane %v15569_v28, 7 }
 0x3c1   :  { %15551 = vst [vmem:[#allocation302_spill] sm:$0xff] %v11616_v25  ;;  %v11627_v63 = vpop.f32.mrf.mxu0  ;;  %v1933_v4 = vpop.f32.mrf.mxu2  ;;  %v15555_v25 = vld [vmem:[#allocation272_spill] sm:$0xff] }
 0x3c2   :  { %15553 = vst [vmem:[#allocation288_spill] sm:$0xff] %v11623_v29  ;;  %v1934_v56 = vadd.f32 %v1933_v4, %v15555_v25  ;;  %v11645_v25 = vld [vmem:[%s14119_s1 + $0xf0] sm:$0xff]  ;;  %v15565_v29 = vld [vmem:[#allocation68_spill] sm:$0xff] }
 0x3c3   :  { %15554 = vst [vmem:[#allocation378_spill] sm:$0xff] %v11625_v32  ;;  %v3593_v49 = vpop.f32.mrf.mxu1  ;;  %v15562_v4 = vld [vmem:[#allocation147_spill] sm:$0xff]  ;;  %4843 = vmatpush.bf16.msra.mxu3 %v7251_v33  ;;  %v1171_v37 = vmul.f32 %v15565_v29, %v11314_v35  ;;  %v15566_v32 = vld [vmem:[#allocation144_spill] sm:$0xff]  ;;  %v15572_v29 = vrot.slane %v15531_v8, 1 }
 0x3c4   :  { %3350 = vmatmul.bf16.gmra.mxu0 %v3166_v38  ;;  %v2780_v57 = vadd.f32 %v15556_v52, %v1934_v56  ;;  %15558 = vst [vmem:[#allocation200_spill] sm:$0xff] %v11645_v25  ;;  %v11653_v38 = vpop.permute.xlu0 %4017  ;;  %v2109_v56 = vrot.slane %v15562_v4, 1  ;;  %v15571_v33 = vld [vmem:[#allocation159_spill] sm:$0xff] }
 0x3c5   :  { %v11636_v55 = vpop.f32.mrf.mxu3  ;;  %4546 = vperm.xlu2 %7324, %v7561_v60   ;;  %15560 = vst [vmem:[#allocation380_spill] sm:$0xff] %v11653_v38  ;;  %v15564_v60 = vld [vmem:[#allocation69_spill] sm:$0xff] }
 0x3c6   :  { %15557 = vst [vmem:[#allocation272_spill] sm:$0xff] %v11636_v55  ;;  %v3429_v26 = vadd.f32 %v11336_v5, %v2780_v57  ;;  %3632 = vmatmul.bf16.gmra.mxu1 %v604_v36  ;;  %4542 = vperm.xlu1 %7323, %v11645_v25   ;;  %v11648_v9 = vpop.permute.xlu2 %4025  ;;  %v7563_v5 = vld [vmem:[%s14119_s1 + $0x160] sm:$0xff]  ;;  %v15577_v55 = vld [vmem:[#allocation243_spill] sm:$0xff] }
 0x3c7   :  { %15559 = vst [vmem:[#allocation379_spill] sm:$0xff] %v11648_v9  ;;  %4598 = vperm.xlu0 %7322, %v7563_v5   ;;  %v11658_v57 = vpop.permute.xlu1 %3985  ;;  %v1170_v9 = vmul.f32 %v15564_v60, %v11295_v43  ;;  %v15567_v5 = vrot.slane %v15566_v32, 1  ;;  %v11687_v43 = vsel %vm2112_vm0, %v15572_v29, %v2109_v56  ;;  %v15581_v29 = vrot.slane %v15534_v11, 7 }
 0x3c8   :  { %15561 = vst [vmem:[#allocation381_spill] sm:$0xff] %v11658_v57  ;;  %v11662_v52 = vadd.f32 %v3593_v49, %v3429_v26  ;;  %v15570_v49 = vld [vmem:[#allocation275_spill] sm:$0xff] }
 0x3c9   :  { %v11664_v36 = vpop.f32.mrf.mxu0  ;;  %v1935_v38 = vpop.f32.mrf.mxu2  ;;  %v11674_v57 = vsel %vm2112_vm0, %v2109_v56, %v15567_v5  ;;  %15573 = vst [vmem:[#allocation68_spill] sm:$0xff] %v11687_v43  ;;  %v15574_v5 = vrot.slane %v15283_v44, 7  ;;  %v1216_v32 = vpack.c.bf16 %v1171_v37, %v1170_v9  ;;  %v11705_v56 = vld [vmem:[%s14119_s1 + $0x110] sm:$0xff]  ;;  %v11712_v37 = vsel %vm685_vm1, %v15581_v29, %v661_v15  ;;  %v11718_v9 = vld [vmem:[%s14119_s1 + $0x108] sm:$0xff] }
 0x3ca   :  { %15563 = vst [vmem:[#allocation382_spill] sm:$0xff] %v11662_v52  ;;  %v1936_v26 = vadd.f32 %v1935_v38, %v15570_v49  ;;  %v7250_v52 = vld [vmem:[%s14122_s4 + $0x180] sm:$0xff]  ;;  %v2496_v60 = vmul.f32 %v15571_v33, %v11674_v57  ;;  %v15576_v38 = vld [vmem:[#allocation99_spill] sm:$0xff]  ;;  %v2495_v33 = vmul.f32 %v15577_v55, %v11687_v43 }
 0x3cb   :  { %15568 = vst [vmem:[#allocation69_spill] sm:$0xff] %v11674_v57  ;;  %v3595_v41 = vpop.f32.mrf.mxu1  ;;  %v11693_v35 = vsel %vm685_vm1, %v661_v15, %v15574_v5  ;;  %4844 = vmatpush.bf16.msra.mxu3 %v7250_v52  ;;  %v15578_v57 = vld [vmem:[#allocation307_spill] sm:$0xff] }
 0x3cc   :  { %15575 = vst [vmem:[#allocation275_spill] sm:$0xff] %v11693_v35  ;;  %v2781_v49 = vadd.f32 %v15576_v38, %v1936_v26  ;;  %v3125_v12 = vmul.f32 %v15578_v57, %v11693_v35  ;;  %v2528_v57 = vpack.c.bf16 %v2496_v60, %v2495_v33  ;;  %v15584_v52 = vld [vmem:[#allocation295_spill] sm:$0xff]  ;;  %v11737_v33 = vpop.permute.xlu0 %4422 }
 0x3cd   :  { %v11700_v25 = vpop.f32.mrf.mxu3  ;;  %15580 = vst [vmem:[#allocation99_spill] sm:$0xff] %v11705_v56  ;;  %4558 = vperm.xlu2 %7324, %v11705_v56   ;;  %v3124_v26 = vmul.f32 %v15584_v52, %v11712_v37  ;;  %v7566_v5 = vld [vmem:[%s14119_s1 + $0x178] sm:$0xff]  ;;  %v15587_v52 = vld [vmem:[#allocation278_spill] sm:$0xff] }
 0x3ce   :  { %15579 = vst [vmem:[#allocation159_spill] sm:$0xff] %v11700_v25  ;;  %v3430_v55 = vadd.f32 %v11374_v24, %v2781_v49  ;;  %4554 = vperm.xlu1 %7323, %v11718_v9   ;;  %1977 = vmatmul.bf16.gmra.mxu2 %v1216_v32  ;;  %v7244_v32 = vld [vmem:[%s14122_s4 + $0x150] sm:$0xff] }
 0x3cf   :  { %15582 = vst [vmem:[#allocation243_spill] sm:$0xff] %v11712_v37  ;;  %4610 = vperm.xlu0 %7322, %v7566_v5   ;;  %v11726_v15 = vpop.permute.xlu1 %3997  ;;  %v11728_v24 = vpop.permute.xlu2 %4430  ;;  %v3167_v60 = vpack.c.bf16 %v3125_v12, %v3124_v26  ;;  %4193 = vmatpush.bf16.msra.mxu2 %v7244_v32  ;;  %v11748_v12 = vld [vmem:[%s14119_s1 + $0x128] sm:$0xff]  ;;  %v7568_v26 = vld [vmem:[%s14119_s1 + $0x120] sm:$0xff] }
 0x3d0   :  { %15583 = vst [vmem:[#allocation307_spill] sm:$0xff] %v11718_v9  ;;  %v11730_v38 = vadd.f32 %v3595_v41, %v3430_v55  ;;  %2756 = vmatmul.bf16.gmra.mxu3 %v2528_v57  ;;  %v605_v41 = vpack.c.bf16 %v15461_v2, %v15465_v51  ;;  %v15592_v32 = vld [vmem:[#allocation74_spill] sm:$0xff]  ;;  %v15615_v9 = vrot.slane %v15312_v45, 7 }
 0x3d1   :  { %15585 = vst [vmem:[#allocation295_spill] sm:$0xff] %v11726_v15  ;;  %v11732_v49 = vpop.f32.mrf.mxu0  ;;  %v1938_v29 = vpop.f32.mrf.mxu2  ;;  %v15588_v15 = vld [vmem:[#allocation213_spill] sm:$0xff] }
 0x3d2   :  { %15586 = vst [vmem:[#allocation383_spill] sm:$0xff] %v11730_v38  ;;  %v1939_v43 = vadd.f32 %v1938_v29, %v15587_v52 }
 0x3d3   :  { %v3598_v5 = vpop.f32.mrf.mxu1  ;;  %15590 = vst [vmem:[#allocation213_spill] sm:$0xff] %v11748_v12 }
 0x3d4   :  { %3355 = vmatmul.bf16.gmra.mxu0 %v3167_v60  ;;  %v2782_v25 = vadd.f32 %v15588_v15, %v1939_v43  ;;  %v1173_v60 = vmul.f32 %v15592_v32, %v11397_v13  ;;  %v7260_v32 = vld [vmem:[%s14122_s4 + $0x1d0] sm:$0xff]  ;;  %v15599_v13 = vld [vmem:[#allocation300_spill] sm:$0xff] }
 0x3d5   :  { %v11743_v55 = vpop.f32.mrf.mxu3  ;;  %4570 = vperm.xlu2 %7324, %v11748_v12   ;;  %5491 = vmatpush.bf16.msra.mxu0 %v7260_v32  ;;  %v7571_v12 = vld [vmem:[%s14119_s1 + $0x158] sm:$0xff] }
 0x3d6   :  { %15589 = vst [vmem:[#allocation278_spill] sm:$0xff] %v11743_v55  ;;  %v3431_v57 = vadd.f32 %v11438_v48, %v2782_v25  ;;  %3637 = vmatmul.bf16.gmra.mxu1 %v605_v41  ;;  %4566 = vperm.xlu1 %7323, %v7568_v26   ;;  %v15594_v41 = vld [vmem:[#allocation52_spill] sm:$0xff]  ;;  %v663_v26 = vrot.slane %v15279_v19, 7 }
 0x3d7   :  { %4622 = vperm.xlu0 %7322, %v10926_v47   ;;  %v11756_v43 = vpop.permute.xlu1 %4009  ;;  %v11758_v15 = vpop.permute.xlu2 %4438  ;;  %v1172_v38 = vmul.f32 %v15594_v41, %v11419_v20  ;;  %v15595_v47 = vld [vmem:[#allocation280_spill] sm:$0xff] }
 0x3d8   :  { %15591 = vst [vmem:[#allocation384_spill] sm:$0xff] %v11756_v43  ;;  %v11763_v52 = vadd.f32 %v3598_v5, %v3431_v57  ;;  %v11771_v43 = vpop.permute.xlu0 %4442  ;;  %v15596_v5 = vrot.slane %v15312_v45, 7 }
 0x3d9   :  { %v11765_v48 = vpop.f32.mrf.mxu0  ;;  %v1940_v25 = vpop.f32.mrf.mxu2  ;;  %v1217_v29 = vpack.c.bf16 %v1173_v60, %v1172_v38  ;;  %v15601_v38 = vrot.slane %v15283_v44, 7 }
 0x3da   :  { %15593 = vst [vmem:[#allocation74_spill] sm:$0xff] %v11763_v52  ;;  %v1941_v2 = vadd.f32 %v1940_v25, %v15595_v47  ;;  %v11780_v57 = vsel %vm685_vm1, %v663_v26, %v15596_v5  ;;  %v15598_v52 = vld [vmem:[#allocation191_spill] sm:$0xff]  ;;  %v7569_v47 = vld [vmem:[%s14119_s1 + $0x140] sm:$0xff] }
 0x3db   :  { %v3600_v51 = vpop.f32.mrf.mxu1  ;;  %15597 = vst [vmem:[#allocation52_spill] sm:$0xff] %v11780_v57  ;;  %v3127_v20 = vmul.f32 %v15599_v13, %v11780_v57  ;;  %v11794_v60 = vsel %vm685_vm1, %v15601_v38, %v663_v26  ;;  %v7570_v13 = vld [vmem:[%s14119_s1 + $0x138] sm:$0xff] }
 0x3dc   :  { %v2783_v41 = vadd.f32 %v15598_v52, %v1941_v2  ;;  %15602 = vst [vmem:[#allocation191_spill] sm:$0xff] %v11794_v60  ;;  %v15603_v2 = vld [vmem:[#allocation294_spill] sm:$0xff] }
 0x3dd   :  { %v11785_v25 = vpop.f32.mrf.mxu3  ;;  %4582 = vperm.xlu2 %7324, %v7569_v47   ;;  %v3126_v52 = vmul.f32 %v15603_v2, %v11794_v60 }
 0x3de   :  { %15600 = vst [vmem:[#allocation280_spill] sm:$0xff] %v11785_v25  ;;  %v3432_v5 = vadd.f32 %v11469_v23, %v2783_v41  ;;  %4578 = vperm.xlu1 %7323, %v7570_v13   ;;  %1982 = vmatmul.bf16.gmra.mxu2 %v1217_v29  ;;  %v14499_v25 = vmov 7   ;;  %v7268_v29 = vld [vmem:[%s14122_s4 + $0x210] sm:$0xff] }
 0x3df   :  { %7326 = vset.pattern.permute.xlu0 %v14499_v25  ;;  %v11803_v32 = vpop.permute.xlu1 %4021  ;;  %v11805_v47 = vpop.permute.xlu2 %4450  ;;  %v3168_v41 = vpack.c.bf16 %v3127_v20, %v3126_v52  ;;  %v15606_v13 = vld [vmem:[#allocation282_spill] sm:$0xff]  ;;  %6140 = vmatpush.bf16.msra.mxu1 %v7268_v29  ;;  %v15609_v29 = vld [vmem:[#allocation73_spill] sm:$0xff] }
 0x3e0   :  { %15604 = vst [vmem:[#allocation300_spill] sm:$0xff] %v11803_v32  ;;  %v11807_v26 = vadd.f32 %v3600_v51, %v3432_v5  ;;  %5075 = vperm.xlu0 %7326, %v11158_v59   ;;  %v15607_v32 = vld [vmem:[#allocation227_spill] sm:$0xff]  ;;  %v606_v51 = vpack.c.bf16 %v15494_v40, %v15499_v50  ;;  %v11819_v5 = vpop.permute.xlu0 %4454  ;;  %v15612_v50 = vld [vmem:[#allocation120_spill] sm:$0xff] }
 0x3e1   :  { %v11810_v23 = vpop.f32.mrf.mxu0  ;;  %v1943_v38 = vpop.f32.mrf.mxu2  ;;  %v7572_v52 = vld [vmem:[%s14119_s1 + $0x150] sm:$0xff] }
 0x3e2   :  { %15605 = vst [vmem:[#allocation294_spill] sm:$0xff] %v11807_v26  ;;  %v1944_v2 = vadd.f32 %v1943_v38, %v15606_v13  ;;  %v665_v38 = vrot.slane %v15308_v30, 7 }
 0x3e3   :  { %v3603_v25 = vpop.f32.mrf.mxu1 }
 0x3e4   :  { %3360 = vmatmul.bf16.gmra.mxu0 %v3168_v41  ;;  %v2784_v55 = vadd.f32 %v15607_v32, %v1944_v2  ;;  %v1174_v41 = vmul.f32 %v15609_v29, %v11516_v62  ;;  %v14505_v2 = vmov 8   ;;  %v15613_v29 = vld [vmem:[#allocation57_spill] sm:$0xff] }
 0x3e5   :  { %v11821_v26 = vpop.f32.mrf.mxu3  ;;  %4594 = vperm.xlu2 %7324, %v7571_v12   ;;  %v1175_v62 = vmul.f32 %v15613_v29, %v11491_v27 }
 0x3e6   :  { %15608 = vst [vmem:[#allocation282_spill] sm:$0xff] %v11821_v26  ;;  %v3433_v20 = vadd.f32 %v11534_v0, %v2784_v55  ;;  %3642 = vmatmul.bf16.gmra.mxu1 %v606_v51  ;;  %4590 = vperm.xlu1 %7323, %v7572_v52   ;;  %v15611_v55 = vld [vmem:[#allocation261_spill] sm:$0xff] }
 0x3e7   :  { %v11830_v32 = vpop.permute.xlu2 %4462  ;;  %v4677_v51 = vmul.f32 %v11737_v33, %v15611_v55  ;;  %v1218_v56 = vpack.c.bf16 %v1175_v62, %v1174_v41  ;;  %v11852_v33 = vsel %vm685_vm1, %v15615_v9, %v665_v38  ;;  %v15618_v55 = vld [vmem:[#allocation310_spill] sm:$0xff] }
 0x3e8   :  { %v11835_v13 = vadd.f32 %v3603_v25, %v3433_v20  ;;  %7331 = vset.pattern.permute.xlu0 %v14505_v2  ;;  %v4427_v12 = vpop.permute.xlu1 %4426  ;;  %v666_v25 = vrot.slane %v15339_v3, 7  ;;  %v15614_v20 = vld [vmem:[#allocation286_spill] sm:$0xff]  ;;  %15616 = vst [vmem:[#allocation73_spill] sm:$0xff] %v11852_v33  ;;  %v3128_v4 = vmul.f32 %v15618_v55, %v11852_v33 }
 0x3e9   :  { %v11838_v0 = vpop.f32.mrf.mxu0  ;;  %v4678_v52 = vmul.f32 %v4427_v12, %v15612_v50  ;;  %5728 = vperm.xlu0 %7331, %v11150_v34   ;;  %v1945_v40 = vpop.f32.mrf.mxu2  ;;  %v15617_v50 = vld [vmem:[#allocation322_spill] sm:$0xff] }
 0x3ea   :  { %15610 = vst [vmem:[#allocation227_spill] sm:$0xff] %v11835_v13  ;;  %v1946_v13 = vadd.f32 %v1945_v40, %v15614_v20  ;;  %v7573_v40 = vld [vmem:[%s14119_s1 + $0x170] sm:$0xff]  ;;  %v11864_v62 = vsel %vm685_vm1, %v665_v38, %v666_v25  ;;  %v7574_v41 = vld [vmem:[%s14119_s1 + $0x168] sm:$0xff] }
 0x3eb   :  { %v4741_v26 = vpack.c.bf16 %v4678_v52, %v4677_v51  ;;  %v3605_v2 = vpop.f32.mrf.mxu1  ;;  %15619 = vst [vmem:[#allocation261_spill] sm:$0xff] %v11864_v62  ;;  %v11872_v51 = vpop.permute.xlu0 %4466 }
 0x3ec   :  { %v2785_v12 = vadd.f32 %v15617_v50, %v1946_v13  ;;  %v15620_v13 = vld [vmem:[#allocation299_spill] sm:$0xff] }
 0x3ed   :  { %v11857_v8 = vpop.f32.mrf.mxu3  ;;  %4845 = vmatmul.bf16.vlgmr.msra.gmra.mxu3 %v4741_v26  ;;  %4606 = vperm.xlu2 %7324, %v7573_v40   ;;  %v3129_v26 = vmul.f32 %v15620_v13, %v11864_v62  ;;  %v607_v13 = vpack.c.bf16 %v15534_v11, %v15530_v16  ;;  %v15631_v16 = vrot.slane %v15374_v39, 7 }
 0x3ee   :  { %v3434_v9 = vadd.f32 %v11566_v42, %v2785_v12  ;;  %4602 = vperm.xlu1 %7323, %v7574_v41   ;;  %1987 = vmatmul.bf16.gmra.mxu2 %v1218_v56  ;;  %v15622_v12 = vld [vmem:[#allocation291_spill] sm:$0xff]  ;;  %v15623_v56 = vld [vmem:[#allocation330_spill] sm:$0xff] }
 0x3ef   :  { %v11874_v52 = vpop.permute.xlu2 %4474  ;;  %v3169_v50 = vpack.c.bf16 %v3129_v26, %v3128_v4 }
 0x3f0   :  { %v11876_v29 = vadd.f32 %v3605_v2, %v3434_v9  ;;  %v4435_v20 = vpop.permute.xlu1 %4434  ;;  %v7575_v2 = vld [vmem:[%s14119_s1 + $0x188] sm:$0xff] }
 0x3f1   :  { %v11878_v38 = vpop.f32.mrf.mxu0  ;;  %5740 = vperm.xlu0 %7331, %v11037_v58   ;;  %v1948_v42 = vpop.f32.mrf.mxu2  ;;  %v7576_v58 = vld [vmem:[%s14119_s1 + $0x180] sm:$0xff] }
 0x3f2   :  { %15621 = vst [vmem:[#allocation120_spill] sm:$0xff] %v11876_v29  ;;  %v1949_v55 = vadd.f32 %v1948_v42, %v15622_v12  ;;  %v15625_v9 = vld [vmem:[#allocation85_spill] sm:$0xff]  ;;  %v15629_v29 = vld [vmem:[#allocation263_spill] sm:$0xff] }
 0x3f3   :  { %v3608_v40 = vpop.f32.mrf.mxu1  ;;  %v4680_v26 = vmul.f32 %v4435_v20, %v15625_v9  ;;  %v11910_v20 = vpop.permute.xlu0 %4478 }
 0x3f4   :  { %3365 = vmatmul.bf16.gmra.mxu0 %v3169_v50  ;;  %v2786_v41 = vadd.f32 %v15623_v56, %v1949_v55 }
 0x3f5   :  { %v11885_v27 = vpop.f32.mrf.mxu3  ;;  %4618 = vperm.xlu2 %7324, %v7575_v2  }
 0x3f6   :  { %15624 = vst [vmem:[#allocation57_spill] sm:$0xff] %v11885_v27  ;;  %v3435_v4 = vadd.f32 %v11627_v63, %v2786_v41  ;;  %3647 = vmatmul.bf16.gmra.mxu1 %v607_v13  ;;  %4614 = vperm.xlu1 %7323, %v7576_v58   ;;  %v15627_v63 = vld [vmem:[#allocation78_spill] sm:$0xff]  ;;  %v15628_v13 = vld [vmem:[#allocation79_spill] sm:$0xff]  ;;  %v4679_v58 = vmul.f32 %v11728_v24, %v15629_v29  ;;  %v15636_v27 = vmov 7  }
 0x3f7   :  { %v11895_v50 = vpop.permute.xlu2 %4486  ;;  %v1177_v41 = vmul.f32 %v15627_v63, %v11610_v6  ;;  %v1176_v2 = vmul.f32 %v15628_v13, %v11586_v31  ;;  %v15633_v13 = vld [vmem:[#allocation107_spill] sm:$0xff]  ;;  %v15634_v29 = vld [vmem:[#allocation314_spill] sm:$0xff] }
 0x3f8   :  { %v11898_v12 = vadd.f32 %v3608_v40, %v3435_v4  ;;  %v11900_v55 = vpop.permute.xlu1 %4446  ;;  %v667_v40 = vrot.slane %v15341_v7, 7  ;;  %v15630_v4 = vld [vmem:[#allocation297_spill] sm:$0xff] }
 0x3f9   :  { %v11902_v56 = vpop.f32.mrf.mxu0  ;;  %5744 = vperm.xlu0 %7331, %v11255_v10   ;;  %v1950_v9 = vpop.f32.mrf.mxu2  ;;  %v1219_v24 = vpack.c.bf16 %v1177_v41, %v1176_v2 }
 0x3fa   :  { %15626 = vst [vmem:[#allocation286_spill] sm:$0xff] %v11898_v12  ;;  %v1951_v42 = vadd.f32 %v1950_v9, %v15630_v4  ;;  %v4742_v12 = vpack.c.bf16 %v4680_v26, %v4679_v58  ;;  %v11919_v63 = vsel %vm685_vm1, %v667_v40, %v15631_v16  ;;  %v11929_v26 = vsel %vm685_vm1, %v666_v25, %v667_v40  ;;  %v7577_v16 = vld [vmem:[%s14119_s1 + $0x198] sm:$0xff]  ;;  %v15640_v4 = vld [vmem:[#allocation301_spill] sm:$0xff] }
 0x3fb   :  { %v3610_v11 = vpop.f32.mrf.mxu1  ;;  %15632 = vst [vmem:[#allocation322_spill] sm:$0xff] %v11919_v63  ;;  %v3131_v6 = vmul.f32 %v15634_v29, %v11919_v63  ;;  %v11951_v29 = vpop.permute.xlu0 %4490 }
 0x3fc   :  { %v2787_v31 = vadd.f32 %v15633_v13, %v1951_v42  ;;  %15637 = vst [vmem:[#allocation299_spill] sm:$0xff] %v11929_v26  ;;  %v7578_v42 = vld [vmem:[%s14119_s1] sm:$0xff] }
 0x3fd   :  { %v11924_v10 = vpop.f32.mrf.mxu3  ;;  %4850 = vmatmul.bf16.gmra.mxu3 %v4742_v12  ;;  %7325 = vset.pattern.permute.xlu2 %v15636_v27  ;;  %v15638_v12 = vld [vmem:[#allocation303_spill] sm:$0xff] }
 0x3fe   :  { %15635 = vst [vmem:[#allocation310_spill] sm:$0xff] %v11924_v10  ;;  %v3436_v58 = vadd.f32 %v11664_v36, %v2787_v31  ;;  %4626 = vperm.xlu1 %7323, %v7577_v16   ;;  %5071 = vperm.xlu2 %7325, %v7578_v42   ;;  %v3130_v41 = vmul.f32 %v15638_v12, %v11929_v26 }
 0x3ff   :  { %1992 = vmatmul.bf16.gmra.mxu2 %v1219_v24  ;;  %v11940_v2 = vpop.permute.xlu2 %4498  ;;  %v15641_v24 = vld [vmem:[#allocation103_spill] sm:$0xff] }
 0x400   :  { %v11942_v25 = vadd.f32 %v3610_v11, %v3436_v58  ;;  %v11944_v9 = vpop.permute.xlu1 %4458  ;;  %v3170_v36 = vpack.c.bf16 %v3131_v6, %v3130_v41  ;;  %v608_v11 = vpack.c.bf16 %v15283_v44, %v15569_v28  ;;  %v15643_v41 = vmov 8  }
 0x401   :  { %v11946_v31 = vpop.f32.mrf.mxu0  ;;  %7337 = vset.pattern.permute.xlu0 %v15636_v27  ;;  %v1953_v40 = vpop.f32.mrf.mxu2  ;;  %v15650_v28 = vrot.slane %v15403_v14, 7 }
 0x402   :  { %15639 = vst [vmem:[#allocation291_spill] sm:$0xff] %v11942_v25  ;;  %5107 = vperm.xlu0 %7337, %v11320_v21   ;;  %v1954_v13 = vadd.f32 %v1953_v40, %v15640_v4  ;;  %v15644_v25 = vld [vmem:[#allocation23_spill] sm:$0xff] }
 0x403   :  { %v3613_v16 = vpop.f32.mrf.mxu1  ;;  %v4681_v21 = vmul.f32 %v11758_v15, %v15644_v25  ;;  %v15647_v15 = vld [vmem:[#allocation84_spill] sm:$0xff]  ;;  %v11992_v10 = vpop.permute.xlu0 %4502 }
 0x404   :  { %3370 = vmatmul.bf16.gmra.mxu0 %v3170_v36  ;;  %v2788_v12 = vadd.f32 %v15641_v24, %v1954_v13  ;;  %v15646_v24 = vld [vmem:[#allocation270_spill] sm:$0xff]  ;;  %v1179_v25 = vmul.f32 %v15647_v15, %v11693_v35  ;;  %v15648_v36 = vld [vmem:[#allocation305_spill] sm:$0xff]  ;;  %v15653_v35 = vld [vmem:[#allocation264_spill] sm:$0xff] }
 0x405   :  { %v11956_v58 = vpop.f32.mrf.mxu3 }
 0x406   :  { %15642 = vst [vmem:[#allocation330_spill] sm:$0xff] %v11956_v58  ;;  %v3437_v6 = vadd.f32 %v11732_v49, %v2788_v12  ;;  %3652 = vmatmul.bf16.gmra.mxu1 %v608_v11  ;;  %7327 = vset.pattern.permute.xlu1 %v15643_v41  ;;  %v4682_v12 = vmul.f32 %v11771_v43, %v15646_v24  ;;  %v15652_v24 = vld [vmem:[#allocation214_spill] sm:$0xff] }
 0x407   :  { %7328 = vset.pattern.permute.xlu2 %v15643_v41  ;;  %5720 = vperm.xlu1 %7327, %v7578_v42   ;;  %v11963_v40 = vpop.permute.xlu2 %4510  ;;  %v669_v42 = vrot.slane %v15370_v1, 7 }
 0x408   :  { %v11966_v4 = vadd.f32 %v3613_v16, %v3437_v6  ;;  %5724 = vperm.xlu2 %7328, %v11158_v59   ;;  %v11969_v13 = vpop.permute.xlu1 %4470  ;;  %v4743_v6 = vpack.c.bf16 %v4682_v12, %v4681_v21  ;;  %v15657_v12 = vld [vmem:[#allocation228_spill] sm:$0xff] }
 0x409   :  { %v11971_v49 = vpop.f32.mrf.mxu0  ;;  %v1955_v11 = vpop.f32.mrf.mxu2  ;;  %v11987_v43 = vsel %vm685_vm1, %v669_v42, %v15650_v28 }
 0x40a   :  { %15645 = vst [vmem:[#allocation85_spill] sm:$0xff] %v11966_v4  ;;  %7341 = vset.pattern.permute.xlu0 %v15643_v41  ;;  %v1956_v16 = vadd.f32 %v1955_v11, %v15648_v36  ;;  %v15649_v4 = vld [vmem:[#allocation62_spill] sm:$0xff]  ;;  %v3133_v58 = vmul.f32 %v15653_v35, %v11987_v43  ;;  %v15655_v36 = vrot.slane %v15374_v39, 7 }
 0x40b   :  { %5760 = vperm.xlu0 %7341, %v11307_v53   ;;  %v3615_v59 = vpop.f32.mrf.mxu1  ;;  %v1178_v44 = vmul.f32 %v15649_v4, %v11712_v37  ;;  %15651 = vst [vmem:[#allocation78_spill] sm:$0xff] %v11987_v43 }
 0x40c   :  { %v2789_v15 = vadd.f32 %v15652_v24, %v1956_v16  ;;  %v12000_v4 = vsel %vm685_vm1, %v15655_v36, %v669_v42  ;;  %v15659_v24 = vld [vmem:[#allocation309_spill] sm:$0xff]  ;;  %v609_v36 = vpack.c.bf16 %v15312_v45, %v15279_v19  ;;  %v12053_v19 = vld [vmem:[%s14119_s1 + $0x70] sm:$0xff] }
 0x40d   :  { %v11994_v21 = vpop.f32.mrf.mxu3  ;;  %4855 = vmatmul.bf16.gmra.mxu3 %v4743_v6  ;;  %v1220_v53 = vpack.c.bf16 %v1179_v25, %v1178_v44  ;;  %15656 = vst [vmem:[#allocation263_spill] sm:$0xff] %v12000_v4  ;;  %v3132_v11 = vmul.f32 %v15657_v12, %v12000_v4 }
 0x40e   :  { %15654 = vst [vmem:[#allocation79_spill] sm:$0xff] %v11994_v21  ;;  %v3438_v28 = vadd.f32 %v11765_v48, %v2789_v15  ;;  %v7243_v48 = vld [vmem:[%s14122_s4 + $0x148] sm:$0xff] }
 0x40f   :  { %7329 = vset.pattern.permute.xlu1 %v15636_v27  ;;  %1997 = vmatmul.bf16.gmra.mxu2 %v1220_v53  ;;  %v12006_v35 = vpop.permute.xlu2 %4522  ;;  %v3171_v42 = vpack.c.bf16 %v3133_v58, %v3132_v11  ;;  %v15662_v58 = vld [vmem:[#allocation171_spill] sm:$0xff] }
 0x410   :  { %v12008_v16 = vadd.f32 %v3615_v59, %v3438_v28  ;;  %7330 = vset.pattern.permute.xlu2 %v15636_v27  ;;  %5079 = vperm.xlu1 %7329, %v11150_v34   ;;  %v12012_v44 = vpop.permute.xlu1 %4482  ;;  %v15660_v34 = vld [vmem:[#allocation119_spill] sm:$0xff]  ;;  %v4683_v11 = vmul.f32 %v11900_v55, %v15662_v58 }
 0x411   :  { %v12014_v25 = vpop.f32.mrf.mxu0  ;;  %5083 = vperm.xlu2 %7330, %v11223_v46   ;;  %v1958_v6 = vpop.f32.mrf.mxu2  ;;  %4194 = vmatpush.bf16.msra.mxu2 %v7243_v48 }
 0x412   :  { %15658 = vst [vmem:[#allocation297_spill] sm:$0xff] %v12008_v16  ;;  %v1959_v15 = vadd.f32 %v1958_v6, %v15659_v24  ;;  %v12030_v16 = vpop.permute.xlu0 %4514 }
 0x413   :  { %5772 = vperm.xlu0 %7341, %v11353_v22   ;;  %v3618_v59 = vpop.f32.mrf.mxu1  ;;  %v671_v22 = vrot.slane %v15399_v18, 7 }
 0x414   :  { %3375 = vmatmul.bf16.gmra.mxu0 %v3171_v42  ;;  %v2790_v53 = vadd.f32 %v15660_v34, %v1959_v15  ;;  %v15664_v15 = vld [vmem:[#allocation276_spill] sm:$0xff]  ;;  %v15665_v34 = vld [vmem:[#allocation67_spill] sm:$0xff] }
 0x415   :  { %v12025_v28 = vpop.f32.mrf.mxu3 }
 0x416   :  { %15661 = vst [vmem:[#allocation107_spill] sm:$0xff] %v12025_v28  ;;  %v3439_v12 = vadd.f32 %v11810_v23, %v2790_v53  ;;  %3657 = vmatmul.bf16.gmra.mxu1 %v609_v36  ;;  %v4684_v23 = vmul.f32 %v11805_v47, %v15664_v15  ;;  %v1181_v53 = vmul.f32 %v15665_v34, %v11780_v57  ;;  %v15666_v36 = vld [vmem:[#allocation216_spill] sm:$0xff]  ;;  %v7259_v15 = vld [vmem:[%s14122_s4 + $0x1c8] sm:$0xff]  ;;  %v15669_v34 = vrot.slane %v15403_v14, 7 }
 0x417   :  { %v12032_v48 = vpop.permute.xlu2 %4534  ;;  %5492 = vmatpush.bf16.msra.mxu0 %v7259_v15 }
 0x418   :  { %v12035_v42 = vadd.f32 %v3618_v59, %v3439_v12  ;;  %7332 = vset.pattern.permute.xlu1 %v15643_v41  ;;  %v12038_v6 = vpop.permute.xlu1 %4494  ;;  %v15667_v12 = vld [vmem:[#allocation313_spill] sm:$0xff] }
 0x419   :  { %v12040_v24 = vpop.f32.mrf.mxu0  ;;  %5087 = vperm.xlu2 %7330, %v11210_v17   ;;  %5732 = vperm.xlu1 %7332, %v11223_v46   ;;  %v1960_v55 = vpop.f32.mrf.mxu2  ;;  %v15668_v17 = vld [vmem:[#allocation83_spill] sm:$0xff] }
 0x41a   :  { %15663 = vst [vmem:[#allocation314_spill] sm:$0xff] %v12035_v42  ;;  %v1961_v58 = vadd.f32 %v1960_v55, %v15667_v12  ;;  %v4744_v42 = vpack.c.bf16 %v4684_v23, %v4683_v11  ;;  %v1180_v46 = vmul.f32 %v15668_v17, %v11794_v60  ;;  %v12065_v11 = vsel %vm685_vm1, %v15669_v34, %v671_v22  ;;  %v15671_v23 = vld [vmem:[#allocation210_spill] sm:$0xff] }
 0x41b   :  { %5776 = vperm.xlu0 %7341, %v12053_v19   ;;  %v3620_v47 = vpop.f32.mrf.mxu1  ;;  %15670 = vst [vmem:[#allocation303_spill] sm:$0xff] %v12065_v11  ;;  %v15672_v12 = vld [vmem:[#allocation318_spill] sm:$0xff]  ;;  %v15674_v17 = vrot.slane %v15666_v36, 7 }
 0x41c   :  { %v2791_v55 = vadd.f32 %v15671_v23, %v1961_v58  ;;  %v3134_v59 = vmul.f32 %v15672_v12, %v12065_v11  ;;  %v1221_v57 = vpack.c.bf16 %v1181_v53, %v1180_v46  ;;  %v15676_v34 = vld [vmem:[#allocation306_spill] sm:$0xff]  ;;  %v12092_v46 = vpop.permute.xlu0 %4526 }
 0x41d   :  { %v12070_v45 = vpop.f32.mrf.mxu3  ;;  %4860 = vmatmul.bf16.gmra.mxu3 %v4744_v42  ;;  %v12076_v60 = vsel %vm685_vm1, %v671_v22, %v15674_v17  ;;  %v7267_v53 = vld [vmem:[%s14122_s4 + $0x208] sm:$0xff] }
 0x41e   :  { %15673 = vst [vmem:[#allocation301_spill] sm:$0xff] %v12070_v45  ;;  %v3440_v37 = vadd.f32 %v11838_v0, %v2791_v55  ;;  %v3135_v28 = vmul.f32 %v15676_v34, %v12076_v60  ;;  %v7581_v0 = vld [vmem:[%s14119_s1 + $0x28] sm:$0xff]  ;;  %v610_v34 = vpack.c.bf16 %v15339_v3, %v15308_v30  ;;  %6141 = vmatpush.bf16.msra.mxu1 %v7267_v53  ;;  %v15686_v3 = vld [vmem:[#allocation187_spill] sm:$0xff] }
 0x41f   :  { %15675 = vst [vmem:[#allocation103_spill] sm:$0xff] %v12076_v60  ;;  %2002 = vmatmul.bf16.gmra.mxu2 %v1221_v57  ;;  %v12081_v58 = vpop.permute.xlu2 %4546  ;;  %v12108_v17 = vld [vmem:[%s14119_s1 + $0x88] sm:$0xff]  ;;  %v4685_v53 = vmul.f32 %v11819_v5, %v15686_v3  ;;  %v7584_v3 = vld [vmem:[%s14119_s1 + $0x38] sm:$0xff] }
 0x420   :  { %15677 = vst [vmem:[#allocation23_spill] sm:$0xff] %v12081_v58  ;;  %v12083_v23 = vadd.f32 %v3620_v47, %v3440_v37  ;;  %v12085_v12 = vpop.permute.xlu1 %4506  ;;  %v3172_v22 = vpack.c.bf16 %v3135_v28, %v3134_v59  ;;  %v7580_v37 = vld [vmem:[%s14119_s1 + $0x20] sm:$0xff] }
 0x421   :  { %v12087_v42 = vpop.f32.mrf.mxu0  ;;  %7334 = vset.pattern.permute.xlu2 %v15643_v41  ;;  %7333 = vset.pattern.permute.xlu1 %v15636_v27  ;;  %v1963_v57 = vpop.f32.mrf.mxu2  ;;  %v15679_v47 = vld [vmem:[#allocation317_spill] sm:$0xff] }
 0x422   :  { %15678 = vst [vmem:[#allocation270_spill] sm:$0xff] %v12083_v23  ;;  %5736 = vperm.xlu2 %7334, %v7580_v37   ;;  %5091 = vperm.xlu1 %7333, %v7581_v0   ;;  %v1964_v15 = vadd.f32 %v1963_v57, %v15679_v47  ;;  %v15680_v59 = vld [vmem:[#allocation117_spill] sm:$0xff]  ;;  %v15682_v0 = vld [vmem:[#allocation95_spill] sm:$0xff] }
 0x423   :  { %7347 = vset.pattern.permute.xlu0 %v15636_v27  ;;  %v3623_v28 = vpop.f32.mrf.mxu1  ;;  %v15685_v45 = vld [vmem:[#allocation233_spill] sm:$0xff] }
 0x424   :  { %3380 = vmatmul.bf16.gmra.mxu0 %v3172_v22  ;;  %v2792_v55 = vadd.f32 %v15680_v59, %v1964_v15  ;;  %5139 = vperm.xlu0 %7347, %v12108_v17   ;;  %v4686_v22 = vmul.f32 %v11944_v9, %v15682_v0  ;;  %v7583_v9 = vld [vmem:[%s14119_s1 + $0x30] sm:$0xff]  ;;  %v12137_v21 = vpop.permute.xlu0 %4538  ;;  %v15690_v5 = vld [vmem:[#allocation89_spill] sm:$0xff] }
 0x425   :  { %v12113_v37 = vpop.f32.mrf.mxu3  ;;  %15689 = vst [vmem:[#allocation214_spill] sm:$0xff] %v12137_v21 }
 0x426   :  { %15681 = vst [vmem:[#allocation84_spill] sm:$0xff] %v12113_v37  ;;  %v3441_v57 = vadd.f32 %v11878_v38, %v2792_v55  ;;  %3662 = vmatmul.bf16.gmra.mxu1 %v610_v34  ;;  %v15687_v38 = vld [vmem:[#allocation88_spill] sm:$0xff]  ;;  %v4745_v0 = vpack.c.bf16 %v4686_v22, %v4685_v53 }
 0x427   :  { %v12118_v47 = vpop.permute.xlu2 %4558  ;;  %v1183_v55 = vmul.f32 %v15687_v38, %v11864_v62  ;;  %v1182_v38 = vmul.f32 %v15690_v5, %v11852_v33  ;;  %v15691_v62 = vld [vmem:[#allocation223_spill] sm:$0xff]  ;;  %v15694_v53 = vld [vmem:[#allocation180_spill] sm:$0xff] }
 0x428   :  { %15683 = vst [vmem:[#allocation305_spill] sm:$0xff] %v12118_v47  ;;  %v12120_v15 = vadd.f32 %v3623_v28, %v3441_v57  ;;  %v12122_v59 = vpop.permute.xlu1 %4518  ;;  %v15688_v28 = vld [vmem:[#allocation321_spill] sm:$0xff]  ;;  %v673_v57 = vrot.slane %v15431_v54, 7  ;;  %v15696_v37 = vld [vmem:[#allocation324_spill] sm:$0xff] }
 0x429   :  { %v12124_v23 = vpop.f32.mrf.mxu0  ;;  %v1965_v30 = vpop.f32.mrf.mxu2 }
 0x42a   :  { %15684 = vst [vmem:[#allocation62_spill] sm:$0xff] %v12120_v15  ;;  %7335 = vset.pattern.permute.xlu2 %v15636_v27  ;;  %5095 = vperm.xlu1 %7333, %v7583_v9   ;;  %v1966_v34 = vadd.f32 %v1965_v30, %v15688_v28  ;;  %v15692_v30 = vrot.slane %v15685_v45, 7  ;;  %v1222_v28 = vpack.c.bf16 %v1183_v55, %v1182_v38 }
 0x42b   :  { %v3625_v15 = vpop.f32.mrf.mxu1  ;;  %5099 = vperm.xlu2 %7335, %v7584_v3  }
 0x42c   :  { %v2793_v47 = vadd.f32 %v15691_v62, %v1966_v34  ;;  %7351 = vset.pattern.permute.xlu0 %v15643_v41  ;;  %v12150_v22 = vsel %vm685_vm1, %v673_v57, %v15692_v30  ;;  %v15697_v62 = vrot.slane %v15666_v36, 7 }
 0x42d   :  { %15693 = vst [vmem:[#allocation264_spill] sm:$0xff] %v12150_v22  ;;  %5792 = vperm.xlu0 %7351, %v15694_v53   ;;  %v12153_v9 = vpop.f32.mrf.mxu3  ;;  %4865 = vmatmul.bf16.gmra.mxu3 %v4745_v0  ;;  %v3137_v58 = vmul.f32 %v15696_v37, %v12150_v22  ;;  %v15700_v53 = vld [vmem:[#allocation311_spill] sm:$0xff] }
 0x42e   :  { %15695 = vst [vmem:[#allocation228_spill] sm:$0xff] %v12153_v9  ;;  %v3442_v5 = vadd.f32 %v11902_v56, %v2793_v47  ;;  %v12162_v34 = vsel %vm685_vm1, %v15697_v62, %v673_v57  ;;  %v15702_v47 = vld [vmem:[#allocation328_spill] sm:$0xff]  ;;  %v15703_v62 = vld [vmem:[#allocation123_spill] sm:$0xff] }
 0x42f   :  { %15698 = vst [vmem:[#allocation309_spill] sm:$0xff] %v12162_v34  ;;  %2007 = vmatmul.bf16.gmra.mxu2 %v1222_v28  ;;  %v12164_v30 = vpop.permute.xlu2 %4570  ;;  %v3136_v33 = vmul.f32 %v15700_v53, %v12162_v34  ;;  %v7585_v28 = vld [vmem:[%s14119_s1 + $0x40] sm:$0xff]  ;;  %v12182_v53 = vpop.permute.xlu0 %4550 }
 0x430   :  { %15699 = vst [vmem:[#allocation119_spill] sm:$0xff] %v12164_v30  ;;  %v12168_v9 = vadd.f32 %v3625_v15, %v3442_v5  ;;  %v12170_v55 = vpop.permute.xlu1 %4530  ;;  %v611_v5 = vpack.c.bf16 %v15374_v39, %v15341_v7  ;;  %v15712_v39 = vld [vmem:[#allocation111_spill] sm:$0xff]  ;;  %v15717_v7 = vld [vmem:[#allocation229_spill] sm:$0xff] }
 0x431   :  { %v12172_v0 = vpop.f32.mrf.mxu0  ;;  %v1968_v37 = vpop.f32.mrf.mxu2  ;;  %v3173_v56 = vpack.c.bf16 %v3137_v58, %v3136_v33  ;;  %15704 = vst [vmem:[#allocation276_spill] sm:$0xff] %v12182_v53  ;;  %v15705_v33 = vld [vmem:[#allocation289_spill] sm:$0xff] }
 0x432   :  { %15701 = vst [vmem:[#allocation171_spill] sm:$0xff] %v12168_v9  ;;  %7336 = vset.pattern.permute.xlu1 %v15643_v41  ;;  %v1969_v38 = vadd.f32 %v1968_v37, %v15702_v47  ;;  %v15706_v37 = vld [vmem:[#allocation287_spill] sm:$0xff] }
 0x433   :  { %v3628_v57 = vpop.f32.mrf.mxu1  ;;  %5103 = vperm.xlu2 %7335, %v7585_v28   ;;  %5748 = vperm.xlu1 %7336, %v7584_v3   ;;  %v4687_v47 = vmul.f32 %v11830_v32, %v15706_v37  ;;  %v15714_v32 = vld [vmem:[#allocation335_spill] sm:$0xff] }
 0x434   :  { %v2794_v15 = vadd.f32 %v15703_v62, %v1969_v38  ;;  %3385 = vmatmul.bf16.gmra.mxu0 %v3173_v56  ;;  %v15711_v62 = vld [vmem:[#allocation245_spill] sm:$0xff] }
 0x435   :  { %5804 = vperm.xlu0 %7351, %v15705_v33   ;;  %v12188_v9 = vpop.f32.mrf.mxu3  ;;  %v4688_v33 = vmul.f32 %v11872_v51, %v15712_v39  ;;  %v7586_v39 = vld [vmem:[%s14119_s1 + $0x48] sm:$0xff]  ;;  %v15718_v51 = vrot.slane %v15711_v62, 7 }
 0x436   :  { %v3443_v58 = vadd.f32 %v11946_v31, %v2794_v15  ;;  %3667 = vmatmul.bf16.gmra.mxu1 %v611_v5  ;;  %15707 = vst [vmem:[#allocation67_spill] sm:$0xff] %v12188_v9  ;;  %v15713_v15 = vld [vmem:[#allocation94_spill] sm:$0xff]  ;;  %v15715_v9 = vld [vmem:[#allocation140_spill] sm:$0xff] }
 0x437   :  { %v12190_v30 = vpop.permute.xlu2 %4582  ;;  %v1185_v5 = vmul.f32 %v15713_v15, %v11919_v63  ;;  %v675_v53 = vrot.slane %v15715_v9, 7 }
 0x438   :  { %15708 = vst [vmem:[#allocation313_spill] sm:$0xff] %v12190_v30  ;;  %v12192_v3 = vadd.f32 %v3628_v57, %v3443_v58  ;;  %v12194_v56 = vpop.permute.xlu1 %4542  ;;  %v4746_v30 = vpack.c.bf16 %v4688_v33, %v4687_v47  ;;  %v15716_v58 = vld [vmem:[#allocation72_spill] sm:$0xff]  ;;  %v15720_v47 = vld [vmem:[#allocation182_spill] sm:$0xff]  ;;  %v15721_v33 = vld [vmem:[#allocation315_spill] sm:$0xff] }
 0x439   :  { %15710 = vst [vmem:[#allocation210_spill] sm:$0xff] %v12194_v56  ;;  %v12196_v38 = vpop.f32.mrf.mxu0  ;;  %v1970_v31 = vpop.f32.mrf.mxu2 }
 0x43a   :  { %15709 = vst [vmem:[#allocation83_spill] sm:$0xff] %v12192_v3  ;;  %v1971_v37 = vadd.f32 %v1970_v31, %v15714_v32  ;;  %v1184_v3 = vmul.f32 %v15716_v58, %v11929_v26  ;;  %v12216_v31 = vsel %vm685_vm1, %v675_v53, %v15718_v51  ;;  %v15722_v32 = vrot.slane %v15685_v45, 7  ;;  %v12228_v58 = vpop.permute.xlu0 %4562  ;;  %v15726_v51 = vld [vmem:[#allocation129_spill] sm:$0xff] }
 0x43b   :  { %v3630_v57 = vpop.f32.mrf.mxu1  ;;  %7338 = vset.pattern.permute.xlu2 %v15643_v41  ;;  %5752 = vperm.xlu1 %7336, %v7585_v28   ;;  %15719 = vst [vmem:[#allocation318_spill] sm:$0xff] %v12216_v31  ;;  %v3139_v15 = vmul.f32 %v15721_v33, %v12216_v31 }
 0x43c   :  { %v2795_v56 = vadd.f32 %v15717_v7, %v1971_v37  ;;  %5756 = vperm.xlu2 %7338, %v7586_v39   ;;  %v1223_v28 = vpack.c.bf16 %v1185_v5, %v1184_v3  ;;  %v12226_v37 = vsel %vm685_vm1, %v15722_v32, %v675_v53  ;;  %15724 = vst [vmem:[#allocation317_spill] sm:$0xff] %v12228_v58  ;;  %v15730_v53 = vld [vmem:[#allocation19_spill] sm:$0xff] }
 0x43d   :  { %5808 = vperm.xlu0 %7351, %v15720_v47   ;;  %4870 = vmatmul.bf16.gmra.mxu3 %v4746_v30  ;;  %15723 = vst [vmem:[#allocation306_spill] sm:$0xff] %v12226_v37  ;;  %v3138_v30 = vmul.f32 %v15726_v51, %v12226_v37  ;;  %v7588_v51 = vld [vmem:[%s14119_s1 + $0x58] sm:$0xff] }
 0x43e   :  { %v3444_v7 = vadd.f32 %v11971_v49, %v2795_v56  ;;  %v12240_v49 = vpop.f32.mrf.mxu3 }
 0x43f   :  { %2012 = vmatmul.bf16.gmra.mxu2 %v1223_v28  ;;  %v12230_v39 = vpop.permute.xlu2 %4594  ;;  %15729 = vst [vmem:[#allocation88_spill] sm:$0xff] %v12240_v49  ;;  %v3174_v33 = vpack.c.bf16 %v3139_v15, %v3138_v30  ;;  %v15731_v28 = vld [vmem:[#allocation29_spill] sm:$0xff]  ;;  %v612_v15 = vpack.c.bf16 %v15403_v14, %v15370_v1  ;;  %v15732_v30 = vld [vmem:[#allocation374_spill] sm:$0xff] }
 0x440   :  { %15725 = vst [vmem:[#allocation117_spill] sm:$0xff] %v12230_v39  ;;  %v12234_v3 = vadd.f32 %v3630_v57, %v3444_v7  ;;  %v12236_v5 = vpop.permute.xlu1 %4554  ;;  %v7587_v57 = vld [vmem:[%s14119_s1 + $0x50] sm:$0xff]  ;;  %v15739_v39 = vld [vmem:[#allocation77_spill] sm:$0xff] }
 0x441   :  { %15728 = vst [vmem:[#allocation187_spill] sm:$0xff] %v12236_v5  ;;  %v12238_v47 = vpop.f32.mrf.mxu0  ;;  %v1973_v56 = vpop.f32.mrf.mxu2  ;;  %v15743_v5 = vld [vmem:[#allocation226_spill] sm:$0xff] }
 0x442   :  { %15727 = vst [vmem:[#allocation95_spill] sm:$0xff] %v12234_v3  ;;  %v1974_v32 = vadd.f32 %v1973_v56, %v15730_v53  ;;  %v15733_v56 = vld [vmem:[#allocation298_spill] sm:$0xff]  ;;  %v15738_v3 = vld [vmem:[#allocation189_spill] sm:$0xff]  ;;  %v12270_v1 = vpop.permute.xlu0 %4574 }
 0x443   :  { %v3633_v63 = vpop.f32.mrf.mxu1  ;;  %7339 = vset.pattern.permute.xlu1 %v15636_v27  ;;  %v4690_v14 = vmul.f32 %v11874_v52, %v15738_v3  ;;  %v15744_v52 = vrot.slane %v15711_v62, 7 }
 0x444   :  { %v2796_v26 = vadd.f32 %v15731_v28, %v1974_v32  ;;  %3390 = vmatmul.bf16.gmra.mxu0 %v3174_v33  ;;  %7340 = vset.pattern.permute.xlu2 %v15636_v27  ;;  %v4689_v33 = vmul.f32 %v11969_v13, %v15733_v56  ;;  %v1187_v13 = vmul.f32 %v15739_v39, %v11987_v43  ;;  %v15762_v43 = vld [vmem:[#allocation98_spill] sm:$0xff] }
 0x445   :  { %5111 = vperm.xlu1 %7339, %v7587_v57   ;;  %7357 = vset.pattern.permute.xlu0 %v15636_v27 }
 0x446   :  { %v3445_v7 = vadd.f32 %v12014_v25, %v2796_v26  ;;  %5115 = vperm.xlu2 %7340, %v7588_v51   ;;  %5171 = vperm.xlu0 %7357, %v15732_v30   ;;  %v15737_v26 = vld [vmem:[#allocation143_spill] sm:$0xff] }
 0x447   :  { %3672 = vmatmul.bf16.gmra.mxu1 %v612_v15  ;;  %v12259_v53 = vpop.permute.xlu2 %4606  ;;  %v677_v25 = vrot.slane %v15737_v26, 7  ;;  %v15740_v15 = vld [vmem:[#allocation125_spill] sm:$0xff] }
 0x448   :  { %15734 = vst [vmem:[#allocation321_spill] sm:$0xff] %v12259_v53  ;;  %v12261_v32 = vadd.f32 %v3633_v63, %v3445_v7  ;;  %v12263_v28 = vpop.permute.xlu1 %4566  ;;  %v15741_v53 = vld [vmem:[#allocation257_spill] sm:$0xff]  ;;  %v4747_v7 = vpack.c.bf16 %v4690_v14, %v4689_v33  ;;  %v15746_v14 = vld [vmem:[#allocation331_spill] sm:$0xff] }
 0x449   :  { %15736 = vst [vmem:[#allocation223_spill] sm:$0xff] %v12263_v28  ;;  %v12265_v57 = vpop.f32.mrf.mxu0  ;;  %v1975_v30 = vpop.f32.mrf.mxu2  ;;  %v14533_v63 = vrot.slane %v15741_v53, 7  ;;  %v15742_v28 = vld [vmem:[#allocation93_spill] sm:$0xff]  ;;  %v12285_v3 = vsel %vm685_vm1, %v15744_v52, %v677_v25  ;;  %v15751_v52 = vld [vmem:[#allocation212_spill] sm:$0xff] }
 0x44a   :  { %15735 = vst [vmem:[#allocation89_spill] sm:$0xff] %v12261_v32  ;;  %v1976_v56 = vadd.f32 %v1975_v30, %v15740_v15  ;;  %v12276_v32 = vpop.f32.mrf.mxu3  ;;  %v1186_v58 = vmul.f32 %v15742_v28, %v12000_v4  ;;  %v3140_v33 = vmul.f32 %v15746_v14, %v12285_v3  ;;  %v7589_v28 = vld [vmem:[%s14119_s1 + $0x60] sm:$0xff]  ;;  %v12321_v14 = vpop.permute.xlu0 %4586  ;;  %v1188_v4 = vmul.f32 %v15762_v43, %v12065_v11 }
 0x44b   :  { %v3635_v49 = vpop.f32.mrf.mxu1  ;;  %15745 = vst [vmem:[#allocation180_spill] sm:$0xff] %v12285_v3 }
 0x44c   :  { %v2797_v21 = vadd.f32 %v15743_v5, %v1976_v56  ;;  %v1224_v39 = vpack.c.bf16 %v1187_v13, %v1186_v58  ;;  %v12298_v5 = vsel %vm685_vm1, %v677_v25, %v14533_v63  ;;  %v15749_v13 = vld [vmem:[#allocation250_spill] sm:$0xff]  ;;  %15752 = vst [vmem:[#allocation123_spill] sm:$0xff] %v12321_v14 }
 0x44d   :  { %7342 = vset.pattern.permute.xlu1 %v15643_v41  ;;  %4875 = vmatmul.bf16.gmra.mxu3 %v4747_v7  ;;  %15747 = vst [vmem:[#allocation324_spill] sm:$0xff] %v12298_v5 }
 0x44e   :  { %v3446_v30 = vadd.f32 %v12040_v24, %v2797_v21  ;;  %5119 = vperm.xlu2 %7340, %v7589_v28   ;;  %5764 = vperm.xlu1 %7342, %v7588_v51   ;;  %v3141_v21 = vmul.f32 %v15749_v13, %v12298_v5  ;;  %v12310_v51 = vld [vmem:[%s14119_s1 + $0xd0] sm:$0xff] }
 0x44f   :  { %7361 = vset.pattern.permute.xlu0 %v15643_v41  ;;  %2017 = vmatmul.bf16.gmra.mxu2 %v1224_v39  ;;  %v12301_v58 = vpop.permute.xlu2 %4618  ;;  %v15753_v13 = vld [vmem:[#allocation131_spill] sm:$0xff] }
 0x450   :  { %15748 = vst [vmem:[#allocation311_spill] sm:$0xff] %v12301_v58  ;;  %v12305_v24 = vadd.f32 %v3635_v49, %v3446_v30  ;;  %5824 = vperm.xlu0 %7361, %v12310_v51   ;;  %v12313_v15 = vpop.permute.xlu1 %4578  ;;  %v3175_v7 = vpack.c.bf16 %v3141_v21, %v3140_v33  ;;  %v7242_v49 = vld [vmem:[%s14122_s4 + $0x140] sm:$0xff]  ;;  %v613_v58 = vpack.c.bf16 %v15666_v36, %v15399_v18 }
 0x451   :  { %v12315_v25 = vpop.f32.mrf.mxu0  ;;  %v1978_v56 = vpop.f32.mrf.mxu2  ;;  %4195 = vmatpush.bf16.msra.mxu2 %v7242_v49  ;;  %v15755_v21 = vld [vmem:[#allocation237_spill] sm:$0xff] }
 0x452   :  { %15750 = vst [vmem:[#allocation328_spill] sm:$0xff] %v12305_v24  ;;  %v1979_v39 = vadd.f32 %v1978_v56, %v15751_v52  ;;  %v12324_v24 = vpop.f32.mrf.mxu3  ;;  %v4692_v56 = vmul.f32 %v12012_v44, %v15755_v21  ;;  %v15758_v44 = vld [vmem:[#allocation196_spill] sm:$0xff] }
 0x453   :  { %v3638_v30 = vpop.f32.mrf.mxu1  ;;  %15754 = vst [vmem:[#allocation289_spill] sm:$0xff] %v12324_v24 }
 0x454   :  { %v2798_v63 = vadd.f32 %v15753_v13, %v1979_v39  ;;  %3395 = vmatmul.bf16.gmra.mxu0 %v3175_v7  ;;  %v7591_v7 = vld [vmem:[%s14119_s1 + $0x68] sm:$0xff] }
 0x456   :  { %v3447_v33 = vadd.f32 %v12087_v42, %v2798_v63  ;;  %7344 = vset.pattern.permute.xlu2 %v15643_v41  ;;  %7343 = vset.pattern.permute.xlu1 %v15636_v27  ;;  %v12341_v42 = vld [vmem:[%s14119_s1 + $0xe8] sm:$0xff] }
 0x457   :  { %3677 = vmatmul.bf16.gmra.mxu1 %v613_v58  ;;  %5768 = vperm.xlu2 %7344, %v7589_v28   ;;  %v4691_v28 = vmul.f32 %v11910_v20, %v15758_v44  ;;  %v7258_v20 = vld [vmem:[%s14122_s4 + $0x1c0] sm:$0xff]  ;;  %v15764_v44 = vld [vmem:[#allocation147_spill] sm:$0xff] }
 0x458   :  { %v12333_v52 = vadd.f32 %v3638_v30, %v3447_v33  ;;  %5123 = vperm.xlu1 %7343, %v7591_v7   ;;  %5836 = vperm.xlu0 %7361, %v12341_v42   ;;  %v12344_v63 = vpop.permute.xlu1 %4590  ;;  %v12350_v58 = vpop.permute.xlu2 %5071  ;;  %v15759_v30 = vld [vmem:[#allocation97_spill] sm:$0xff]  ;;  %v15760_v33 = vld [vmem:[#allocation126_spill] sm:$0xff]  ;;  %v15765_v24 = vrot.slane %v15764_v44, 7 }
 0x459   :  { %15757 = vst [vmem:[#allocation111_spill] sm:$0xff] %v12344_v63  ;;  %v12346_v39 = vpop.f32.mrf.mxu0  ;;  %v1980_v49 = vpop.f32.mrf.mxu2  ;;  %v1189_v13 = vmul.f32 %v15759_v30, %v12076_v60  ;;  %v15761_v7 = vld [vmem:[#allocation110_spill] sm:$0xff]  ;;  %v4748_v18 = vpack.c.bf16 %v4692_v56, %v4691_v28  ;;  %v15763_v63 = vld [vmem:[#allocation239_spill] sm:$0xff]  ;;  %v15768_v28 = vld [vmem:[#allocation336_spill] sm:$0xff]  ;;  %5493 = vmatpush.bf16.msra.mxu0 %v7258_v20 }
 0x45a   :  { %15756 = vst [vmem:[#allocation287_spill] sm:$0xff] %v12333_v52  ;;  %v1981_v21 = vadd.f32 %v1980_v49, %v15760_v33  ;;  %v679_v52 = vrot.slane %v15761_v7, 7  ;;  %v12368_v49 = vpop.permute.xlu0 %4598  ;;  %v12379_v11 = vpop.f32.mrf.mxu3  ;;  %v7266_v20 = vld [vmem:[%s14122_s4 + $0x200] sm:$0xff]  ;;  %v15777_v60 = vld [vmem:[#allocation219_spill] sm:$0xff] }
 0x45b   :  { %v3640_v36 = vpop.f32.mrf.mxu1  ;;  %15767 = vst [vmem:[#allocation335_spill] sm:$0xff] %v12368_v49  ;;  %v1225_v56 = vpack.c.bf16 %v1189_v13, %v1188_v4  ;;  %6142 = vmatpush.bf16.msra.mxu1 %v7266_v20  ;;  %v4693_v49 = vmul.f32 %v11895_v50, %v15777_v60  ;;  %v15781_v20 = vld [vmem:[#allocation201_spill] sm:$0xff] }
 0x45c   :  { %v2799_v14 = vadd.f32 %v15763_v63, %v1981_v21  ;;  %v12366_v30 = vsel %vm685_vm1, %v679_v52, %v15765_v24  ;;  %v15769_v63 = vrot.slane %v15741_v53, 7  ;;  %v7594_v60 = vld [vmem:[%s14119_s1 + $0x80] sm:$0xff] }
 0x45d   :  { %15766 = vst [vmem:[#allocation94_spill] sm:$0xff] %v12366_v30  ;;  %4880 = vmatmul.bf16.gmra.mxu3 %v4748_v18  ;;  %v3143_v33 = vmul.f32 %v15768_v28, %v12366_v30  ;;  %v15771_v18 = vld [vmem:[#allocation319_spill] sm:$0xff] }
 0x45e   :  { %v3448_v43 = vadd.f32 %v12124_v23, %v2799_v14  ;;  %v12377_v21 = vsel %vm685_vm1, %v15769_v63, %v679_v52  ;;  %v15773_v23 = vld [vmem:[#allocation200_spill] sm:$0xff] }
 0x45f   :  { %15770 = vst [vmem:[#allocation72_spill] sm:$0xff] %v12377_v21  ;;  %7345 = vset.pattern.permute.xlu2 %v15636_v27  ;;  %2022 = vmatmul.bf16.gmra.mxu2 %v1225_v56  ;;  %v3142_v4 = vmul.f32 %v15771_v18, %v12377_v21  ;;  %v15776_v63 = vld [vmem:[#allocation132_spill] sm:$0xff] }
 0x460   :  { %v12384_v24 = vadd.f32 %v3640_v36, %v3448_v43  ;;  %5127 = vperm.xlu1 %7343, %v12053_v19   ;;  %5840 = vperm.xlu0 %7361, %v15773_v23   ;;  %v12388_v14 = vpop.permute.xlu1 %4602  ;;  %v15775_v19 = vld [vmem:[#allocation30_spill] sm:$0xff]  ;;  %v614_v23 = vpack.c.bf16 %v15685_v45, %v15431_v54 }
 0x461   :  { %15774 = vst [vmem:[#allocation182_spill] sm:$0xff] %v12388_v14  ;;  %v12390_v13 = vpop.f32.mrf.mxu0  ;;  %5131 = vperm.xlu2 %7345, %v7593_v61   ;;  %v1983_v52 = vpop.f32.mrf.mxu2  ;;  %v3176_v36 = vpack.c.bf16 %v3143_v33, %v3142_v4 }
 0x462   :  { %15772 = vst [vmem:[#allocation229_spill] sm:$0xff] %v12384_v24  ;;  %v12398_v56 = vpop.permute.xlu2 %5724  ;;  %v1984_v28 = vadd.f32 %v1983_v52, %v15775_v19  ;;  %v12407_v14 = vpop.permute.xlu0 %4610 }
 0x463   :  { %v3643_v43 = vpop.f32.mrf.mxu1  ;;  %15778 = vst [vmem:[#allocation315_spill] sm:$0xff] %v12407_v14  ;;  %v15789_v14 = vld [vmem:[#allocation326_spill] sm:$0xff] }
 0x464   :  { %v2800_v18 = vadd.f32 %v15776_v63, %v1984_v28  ;;  %3400 = vmatmul.bf16.gmra.mxu0 %v3176_v36  ;;  %v4694_v36 = vmul.f32 %v11951_v29, %v15781_v20  ;;  %v15784_v28 = vld [vmem:[#allocation307_spill] sm:$0xff]  ;;  %v15786_v29 = vld [vmem:[#allocation82_spill] sm:$0xff] }
 0x465   :  { %v1190_v20 = vmul.f32 %v15786_v29, %v12162_v34 }
 0x466   :  { %v3449_v24 = vadd.f32 %v12172_v0, %v2800_v18  ;;  %v12419_v0 = vpop.f32.mrf.mxu3  ;;  %v4749_v18 = vpack.c.bf16 %v4694_v36, %v4693_v49 }
 0x467   :  { %3682 = vmatmul.bf16.gmra.mxu1 %v614_v23  ;;  %15782 = vst [vmem:[#allocation29_spill] sm:$0xff] %v12419_v0 }
 0x468   :  { %v12409_v33 = vadd.f32 %v3643_v43, %v3449_v24  ;;  %7346 = vset.pattern.permute.xlu1 %v15643_v41  ;;  %7367 = vset.pattern.permute.xlu0 %v15636_v27  ;;  %v12413_v4 = vpop.permute.xlu1 %4614  ;;  %v15783_v24 = vld [vmem:[#allocation102_spill] sm:$0xff] }
 0x469   :  { %15780 = vst [vmem:[#allocation19_spill] sm:$0xff] %v12413_v4  ;;  %v12415_v52 = vpop.f32.mrf.mxu0  ;;  %5135 = vperm.xlu2 %7345, %v7594_v60   ;;  %5780 = vperm.xlu1 %7346, %v7593_v61   ;;  %v1985_v50 = vpop.f32.mrf.mxu2  ;;  %v1191_v19 = vmul.f32 %v15783_v24, %v12150_v22  ;;  %v15785_v43 = vld [vmem:[#allocation234_spill] sm:$0xff]  ;;  %v15791_v22 = vld [vmem:[#allocation133_spill] sm:$0xff] }
 0x46a   :  { %15779 = vst [vmem:[#allocation129_spill] sm:$0xff] %v12409_v33  ;;  %5203 = vperm.xlu0 %7367, %v15784_v28   ;;  %v1986_v63 = vadd.f32 %v1985_v50, %v15785_v43  ;;  %v15787_v33 = vld [vmem:[#allocation127_spill] sm:$0xff]  ;;  %v15788_v61 = vld [vmem:[#allocation170_spill] sm:$0xff] }
 0x46b   :  { %v3645_v23 = vpop.f32.mrf.mxu1  ;;  %v12431_v54 = vpop.permute.xlu2 %5083  ;;  %v1226_v4 = vpack.c.bf16 %v1191_v19, %v1190_v20  ;;  %v3145_v0 = vmul.f32 %v15789_v14, %v15788_v61  ;;  %v15790_v28 = vld [vmem:[#allocation266_spill] sm:$0xff]  ;;  %v15796_v14 = vld [vmem:[#allocation99_spill] sm:$0xff] }
 0x46c   :  { %v2801_v45 = vadd.f32 %v15787_v33, %v1986_v63  ;;  %v3144_v50 = vmul.f32 %v15791_v22, %v15790_v28  ;;  %v12450_v22 = vpop.permute.xlu0 %4622  ;;  %v15798_v20 = vld [vmem:[#allocation323_spill] sm:$0xff] }
 0x46d   :  { %4885 = vmatmul.bf16.gmra.mxu3 %v4749_v18  ;;  %15795 = vst [vmem:[#allocation189_spill] sm:$0xff] %v12450_v22  ;;  %v15797_v18 = vld [vmem:[#allocation34_spill] sm:$0xff] }
 0x46e   :  { %v3450_v24 = vadd.f32 %v12196_v38, %v2801_v45  ;;  %v3177_v63 = vpack.c.bf16 %v3145_v0, %v3144_v50  ;;  %v15794_v45 = vld [vmem:[#allocation28_spill] sm:$0xff] }
 0x46f   :  { %2027 = vmatmul.bf16.gmra.mxu2 %v1226_v4 }
 0x470   :  { %v12438_v49 = vadd.f32 %v3645_v23, %v3450_v24  ;;  %v12440_v36 = vpop.permute.xlu1 %4626  ;;  %v12445_v33 = vpop.f32.mrf.mxu3 }
 0x471   :  { %15793 = vst [vmem:[#allocation298_spill] sm:$0xff] %v12440_v36  ;;  %v12442_v43 = vpop.f32.mrf.mxu0  ;;  %7348 = vset.pattern.permute.xlu2 %v15643_v41  ;;  %5784 = vperm.xlu1 %7346, %v7594_v60   ;;  %v1988_v19 = vpop.f32.mrf.mxu2  ;;  %v615_v60 = vpack.c.bf16 %v15711_v62, %v15715_v9  ;;  %v15807_v62 = vld [vmem:[#allocation46_spill] sm:$0xff]  ;;  %v15849_v36 = vld [vmem:[#allocation161_spill] sm:$0xff] }
 0x472   :  { %15792 = vst [vmem:[#allocation374_spill] sm:$0xff] %v12438_v49  ;;  %7371 = vset.pattern.permute.xlu0 %v15643_v41  ;;  %5788 = vperm.xlu2 %7348, %v12108_v17   ;;  %v1989_v38 = vadd.f32 %v1988_v19, %v15794_v45  ;;  %v4695_v17 = vmul.f32 %v12038_v6, %v15798_v20  ;;  %v15800_v19 = vld [vmem:[#allocation198_spill] sm:$0xff]  ;;  %v15805_v49 = vld [vmem:[#allocation240_spill] sm:$0xff] }
 0x473   :  { %5856 = vperm.xlu0 %7371, %v15796_v14   ;;  %v3648_v4 = vpop.f32.mrf.mxu1  ;;  %v12454_v29 = vpop.permute.xlu2 %5087  ;;  %v4696_v45 = vmul.f32 %v11940_v2, %v15800_v19  ;;  %v7595_v6 = vld [vmem:[%s14119_s1 + $0x90] sm:$0xff]  ;;  %v7596_v2 = vld [vmem:[%s14119_s1 + $0x98] sm:$0xff]  ;;  %v15804_v19 = vld [vmem:[#allocation101_spill] sm:$0xff] }
 0x474   :  { %v2802_v23 = vadd.f32 %v15797_v18, %v1989_v38  ;;  %3405 = vmatmul.bf16.gmra.mxu0 %v3177_v63  ;;  %v15801_v63 = vld [vmem:[#allocation87_spill] sm:$0xff]  ;;  %v15802_v18 = vld [vmem:[#allocation213_spill] sm:$0xff] }
 0x475   :  { %v1193_v14 = vmul.f32 %v15801_v63, %v12216_v31  ;;  %v1192_v63 = vmul.f32 %v15804_v19, %v12226_v37 }
 0x476   :  { %v3451_v0 = vadd.f32 %v12238_v47, %v2802_v23 }
 0x477   :  { %3687 = vmatmul.bf16.gmra.mxu1 %v615_v60  ;;  %v15803_v60 = vld [vmem:[#allocation137_spill] sm:$0xff] }
 0x478   :  { %v12461_v24 = vadd.f32 %v3648_v4, %v3451_v0  ;;  %v4750_v4 = vpack.c.bf16 %v4696_v45, %v4695_v17  ;;  %v12477_v23 = vpop.f32.mrf.mxu3  ;;  %v1227_v45 = vpack.c.bf16 %v1193_v14, %v1192_v63  ;;  %v15811_v63 = vld [vmem:[#allocation249_spill] sm:$0xff] }
 0x479   :  { %v12463_v50 = vpop.f32.mrf.mxu0  ;;  %7349 = vset.pattern.permute.xlu1 %v15636_v27  ;;  %v12468_v38 = vpop.permute.xlu1 %5720 }
 0x47a   :  { %15799 = vst [vmem:[#allocation77_spill] sm:$0xff] %v12461_v24  ;;  %7350 = vset.pattern.permute.xlu2 %v15636_v27  ;;  %5143 = vperm.xlu1 %7349, %v7595_v6   ;;  %v1990_v47 = vpop.f32.mrf.mxu2  ;;  %v5076_v6 = vpop.permute.xlu0 %5075 }
 0x47b   :  { %5868 = vperm.xlu0 %7371, %v15802_v18   ;;  %5147 = vperm.xlu2 %7350, %v7596_v2   ;;  %v1991_v0 = vadd.f32 %v1990_v47, %v15803_v60  ;;  %v3650_v20 = vpop.f32.mrf.mxu1  ;;  %v15806_v18 = vld [vmem:[#allocation151_spill] sm:$0xff]  ;;  %v5327_v9 = vmul.f32 %v5076_v6, %v15807_v62  ;;  %v7598_v62 = vld [vmem:[%s14119_s1 + $0xa0] sm:$0xff]  ;;  %v4698_v6 = vmul.f32 %v12085_v12, %v15811_v63  ;;  %v15816_v12 = vld [vmem:[#allocation106_spill] sm:$0xff] }
 0x47c   :  { %v12485_v24 = vpop.permute.xlu2 %5736  ;;  %v5326_v61 = vmul.f32 %v12350_v58, %v15806_v18  ;;  %v15814_v18 = vld [vmem:[#allocation208_spill] sm:$0xff]  ;;  %v15817_v63 = vld [vmem:[#allocation177_spill] sm:$0xff] }
 0x47d   :  { %v2803_v17 = vadd.f32 %v15805_v49, %v1991_v0  ;;  %4890 = vmatmul.bf16.gmra.mxu3 %v4750_v4  ;;  %v12500_v49 = vld [vmem:[%s14119_s1 + $0x130] sm:$0xff]  ;;  %v616_v0 = vpack.c.bf16 %v15741_v53, %v15737_v26 }
 0x47e   :  { %v5390_v19 = vpack.c.bf16 %v5327_v9, %v5326_v61  ;;  %v15810_v61 = vld [vmem:[#allocation292_spill] sm:$0xff] }
 0x47f   :  { %v3452_v28 = vadd.f32 %v12265_v57, %v2803_v17  ;;  %2032 = vmatmul.bf16.gmra.mxu2 %v1227_v45  ;;  %v15809_v57 = vld [vmem:[#allocation134_spill] sm:$0xff] }
 0x480   :  { %v12507_v9 = vpop.f32.mrf.mxu3 }
 0x481   :  { %v12492_v47 = vpop.f32.mrf.mxu0  ;;  %v12494_v60 = vadd.f32 %v3650_v20, %v3452_v28 }
 0x482   :  { %7352 = vset.pattern.permute.xlu1 %v15643_v41  ;;  %v5080_v37 = vpop.permute.xlu1 %5079  ;;  %v1993_v31 = vpop.f32.mrf.mxu2 }
 0x483   :  { %15808 = vst [vmem:[#allocation125_spill] sm:$0xff] %v12494_v60  ;;  %5872 = vperm.xlu0 %7371, %v12500_v49   ;;  %5151 = vperm.xlu2 %7350, %v7598_v62   ;;  %v1994_v58 = vadd.f32 %v1993_v31, %v15809_v57  ;;  %v3653_v28 = vpop.f32.mrf.mxu1 }
 0x484   :  { %5796 = vperm.xlu1 %7352, %v7596_v2   ;;  %5494 = vmatmul.bf16.vlgmr.msra.gmra.mxu0 %v5390_v19  ;;  %v15813_v2 = vld [vmem:[#allocation105_spill] sm:$0xff]  ;;  %v4697_v19 = vmul.f32 %v11992_v10, %v15814_v18 }
 0x485   :  { %v2804_v14 = vadd.f32 %v15810_v61, %v1994_v58  ;;  %v12510_v4 = vpop.permute.xlu2 %5099  ;;  %v1195_v45 = vmul.f32 %v15813_v2, %v12298_v5  ;;  %v12536_v10 = vld [vmem:[%s14119_s1 + $0x148] sm:$0xff]  ;;  %v15846_v5 = vld [vmem:[#allocation280_spill] sm:$0xff] }
 0x487   :  { %v3453_v20 = vadd.f32 %v12315_v25, %v2804_v14  ;;  %3692 = vmatmul.bf16.gmra.mxu1 %v616_v0  ;;  %v15815_v25 = vld [vmem:[#allocation61_spill] sm:$0xff]  ;;  %v4751_v0 = vpack.c.bf16 %v4698_v6, %v4697_v19  ;;  %v15818_v19 = vld [vmem:[#allocation152_spill] sm:$0xff] }
 0x489   :  { %v12517_v17 = vpop.f32.mrf.mxu0  ;;  %v12519_v31 = vadd.f32 %v3653_v28, %v3453_v20  ;;  %v1194_v28 = vmul.f32 %v15816_v12, %v12285_v3  ;;  %v7600_v20 = vld [vmem:[%s14119_s1 + $0xa8] sm:$0xff] }
 0x48a   :  { %v1995_v57 = vpop.f32.mrf.mxu2 }
 0x48b   :  { %15812 = vst [vmem:[#allocation93_spill] sm:$0xff] %v12519_v31  ;;  %7377 = vset.pattern.permute.xlu0 %v15636_v27  ;;  %7354 = vset.pattern.permute.xlu2 %v15643_v41  ;;  %v1996_v58 = vadd.f32 %v1995_v57, %v15815_v25  ;;  %v3655_v61 = vpop.f32.mrf.mxu1  ;;  %v12528_v14 = vpop.permute.xlu1 %5732  ;;  %v1228_v6 = vpack.c.bf16 %v1195_v45, %v1194_v28  ;;  %v15819_v31 = vld [vmem:[#allocation56_spill] sm:$0xff]  ;;  %v12567_v28 = vld [vmem:[%s14119_s1 + $0x150] sm:$0xff] }
 0x48c   :  { %7353 = vset.pattern.permute.xlu1 %v15636_v27  ;;  %5235 = vperm.xlu0 %7377, %v12536_v10   ;;  %v5328_v57 = vmul.f32 %v5080_v37, %v15818_v19  ;;  %v12546_v25 = vpop.f32.mrf.mxu3  ;;  %v15823_v19 = vld [vmem:[#allocation241_spill] sm:$0xff] }
 0x48d   :  { %5800 = vperm.xlu2 %7354, %v7598_v62   ;;  %5155 = vperm.xlu1 %7353, %v7600_v20   ;;  %v2805_v2 = vadd.f32 %v15817_v63, %v1996_v58  ;;  %v12543_v18 = vpop.permute.xlu2 %5103  ;;  %v5329_v62 = vmul.f32 %v12431_v54, %v15819_v31  ;;  %v15821_v63 = vld [vmem:[#allocation135_spill] sm:$0xff]  ;;  %v15822_v54 = vld [vmem:[#allocation272_spill] sm:$0xff] }
 0x48e   :  { %4895 = vmatmul.bf16.gmra.mxu3 %v4751_v0  ;;  %v7603_v0 = vld [vmem:[%s14119_s1 + $0xb8] sm:$0xff] }
 0x48f   :  { %v3454_v12 = vadd.f32 %v12346_v39, %v2805_v2  ;;  %2037 = vmatmul.bf16.gmra.mxu2 %v1228_v6  ;;  %v5391_v20 = vpack.c.bf16 %v5329_v62, %v5328_v57  ;;  %v7601_v39 = vld [vmem:[%s14119_s1 + $0xb0] sm:$0xff]  ;;  %v4699_v57 = vmul.f32 %v11963_v40, %v15823_v19 }
 0x490   :  { %v15830_v40 = vld [vmem:[#allocation159_spill] sm:$0xff] }
 0x491   :  { %v12551_v60 = vpop.f32.mrf.mxu0  ;;  %v12553_v26 = vadd.f32 %v3655_v61, %v3454_v12  ;;  %v617_v61 = vpack.c.bf16 %v15764_v44, %v15761_v7 }
 0x492   :  { %v1998_v58 = vpop.f32.mrf.mxu2 }
 0x493   :  { %15820 = vst [vmem:[#allocation226_spill] sm:$0xff] %v12553_v26  ;;  %v1999_v53 = vadd.f32 %v1998_v58, %v15821_v63  ;;  %v3658_v45 = vpop.f32.mrf.mxu1  ;;  %v15826_v58 = vld [vmem:[#allocation109_spill] sm:$0xff]  ;;  %v15828_v26 = vld [vmem:[#allocation50_spill] sm:$0xff] }
 0x494   :  { %7381 = vset.pattern.permute.xlu0 %v15643_v41  ;;  %5499 = vmatmul.bf16.gmra.mxu0 %v5391_v20  ;;  %v5092_v37 = vpop.permute.xlu1 %5091  ;;  %v12580_v12 = vpop.f32.mrf.mxu3  ;;  %v1197_v63 = vmul.f32 %v15826_v58, %v12366_v30  ;;  %v12597_v58 = vld [vmem:[%s14119_s1 + $0x168] sm:$0xff] }
 0x495   :  { %7355 = vset.pattern.permute.xlu2 %v15636_v27  ;;  %5159 = vperm.xlu1 %7353, %v7601_v39   ;;  %v2806_v31 = vadd.f32 %v15822_v54, %v1999_v53  ;;  %15824 = vst [vmem:[#allocation331_spill] sm:$0xff] %v12580_v12  ;;  %v15827_v39 = vld [vmem:[#allocation39_spill] sm:$0xff] }
 0x496   :  { %5888 = vperm.xlu0 %7381, %v12567_v28   ;;  %5163 = vperm.xlu2 %7355, %v7603_v0   ;;  %v12573_v2 = vpop.permute.xlu2 %5756  ;;  %v4700_v54 = vmul.f32 %v12030_v16, %v15827_v39  ;;  %v7605_v16 = vld [vmem:[%s14119_s1 + $0xc0] sm:$0xff] }
 0x497   :  { %v3455_v6 = vadd.f32 %v12390_v13, %v2806_v31  ;;  %3697 = vmatmul.bf16.gmra.mxu1 %v617_v61  ;;  %v15829_v61 = vld [vmem:[#allocation92_spill] sm:$0xff] }
 0x498   :  { %v1196_v7 = vmul.f32 %v15829_v61, %v12377_v21  ;;  %v4752_v3 = vpack.c.bf16 %v4700_v54, %v4699_v57  ;;  %v12603_v57 = vpop.permute.xlu0 %5728 }
 0x499   :  { %v12576_v53 = vpop.f32.mrf.mxu0  ;;  %v12582_v62 = vadd.f32 %v3658_v45, %v3455_v6  ;;  %v15831_v6 = vld [vmem:[#allocation155_spill] sm:$0xff] }
 0x49a   :  { %v2000_v20 = vpop.f32.mrf.mxu2  ;;  %v5331_v19 = vmul.f32 %v5092_v37, %v15831_v6 }
 0x49b   :  { %15825 = vst [vmem:[#allocation250_spill] sm:$0xff] %v12582_v62  ;;  %v2001_v44 = vadd.f32 %v2000_v20, %v15828_v26  ;;  %v3660_v13 = vpop.f32.mrf.mxu1  ;;  %v1229_v26 = vpack.c.bf16 %v1197_v63, %v1196_v7  ;;  %v15835_v7 = vld [vmem:[#allocation5_spill] sm:$0xff] }
 0x49c   :  { %v5096_v31 = vpop.permute.xlu1 %5095  ;;  %v12614_v62 = vpop.f32.mrf.mxu3 }
 0x49d   :  { %7356 = vset.pattern.permute.xlu1 %v15643_v41  ;;  %v2807_v45 = vadd.f32 %v15830_v40, %v2001_v44  ;;  %v15832_v44 = vld [vmem:[#allocation154_spill] sm:$0xff]  ;;  %15834 = vst [vmem:[#allocation131_spill] sm:$0xff] %v12614_v62  ;;  %v15864_v62 = vld [vmem:[#allocation165_spill] sm:$0xff] }
 0x49e   :  { %5900 = vperm.xlu0 %7381, %v12597_v58   ;;  %5167 = vperm.xlu2 %7355, %v7605_v16   ;;  %v5330_v37 = vmul.f32 %v12454_v29, %v15832_v44  ;;  %v12623_v29 = vld [vmem:[%s14119_s1 + $0x170] sm:$0xff] }
 0x49f   :  { %v3456_v20 = vadd.f32 %v12415_v52, %v2807_v45  ;;  %5812 = vperm.xlu1 %7356, %v7603_v0   ;;  %4900 = vmatmul.bf16.gmra.mxu3 %v4752_v3  ;;  %v15836_v52 = vld [vmem:[#allocation278_spill] sm:$0xff] }
 0x4a0   :  { %v12608_v39 = vpop.permute.xlu2 %5115  ;;  %2042 = vmatmul.bf16.gmra.mxu2 %v1229_v26  ;;  %v5392_v40 = vpack.c.bf16 %v5331_v19, %v5330_v37  ;;  %v15838_v45 = vld [vmem:[#allocation146_spill] sm:$0xff] }
 0x4a1   :  { %v12610_v54 = vpop.f32.mrf.mxu0  ;;  %v12612_v61 = vadd.f32 %v3660_v13, %v3456_v20  ;;  %v15837_v13 = vld [vmem:[#allocation144_spill] sm:$0xff]  ;;  %v7607_v20 = vld [vmem:[%s14119_s1 + $0xc8] sm:$0xff] }
 0x4a2   :  { %v2003_v6 = vpop.f32.mrf.mxu2  ;;  %v618_v19 = vpack.c.bf16 %v15838_v45, %v15837_v13  ;;  %v15843_v45 = vld [vmem:[#allocation136_spill] sm:$0xff] }
 0x4a3   :  { %15833 = vst [vmem:[#allocation212_spill] sm:$0xff] %v12612_v61  ;;  %v2004_v63 = vadd.f32 %v2003_v6, %v15835_v7  ;;  %v3663_v30 = vpop.f32.mrf.mxu1  ;;  %v15842_v61 = vld [vmem:[#allocation76_spill] sm:$0xff] }
 0x4a4   :  { %5504 = vmatmul.bf16.gmra.mxu0 %v5392_v40  ;;  %v12637_v40 = vpop.permute.xlu0 %5740  ;;  %v4028_v13 = vmul.f32 %v15843_v45, %v15842_v61  ;;  %v12648_v21 = vpop.f32.mrf.mxu3  ;;  %v15850_v45 = vld [vmem:[#allocation160_spill] sm:$0xff]  ;;  %v15862_v61 = vld [vmem:[#allocation166_spill] sm:$0xff] }
 0x4a5   :  { %v2808_v3 = vadd.f32 %v15836_v52, %v2004_v63  ;;  %v12618_v0 = vpop.permute.xlu1 %5748  ;;  %v15840_v63 = vld [vmem:[#allocation253_spill] sm:$0xff]  ;;  %15845 = vst [vmem:[#allocation196_spill] sm:$0xff] %v12648_v21 }
 0x4a6   :  { %5904 = vperm.xlu0 %7381, %v12623_v29   ;;  %7358 = vset.pattern.permute.xlu2 %v15643_v41  ;;  %v4701_v52 = vmul.f32 %v12122_v59, %v15840_v63  ;;  %v5332_v59 = vmul.f32 %v5096_v31, %v15849_v36 }
 0x4a7   :  { %v3457_v26 = vadd.f32 %v12442_v43, %v2808_v3  ;;  %5816 = vperm.xlu1 %7356, %v7605_v16   ;;  %5820 = vperm.xlu2 %7358, %v7607_v20   ;;  %v15841_v43 = vld [vmem:[#allocation15_spill] sm:$0xff]  ;;  %v15844_v20 = vld [vmem:[#allocation20_spill] sm:$0xff] }
 0x4a8   :  { %3702 = vmatmul.bf16.gmra.mxu1 %v618_v19  ;;  %v12633_v44 = vpop.permute.xlu2 %5119  ;;  %v4702_v19 = vmul.f32 %v12006_v35, %v15844_v20  ;;  %v12662_v35 = vld [vmem:[%s14119_s1 + $0x188] sm:$0xff] }
 0x4a9   :  { %v12635_v37 = vpop.f32.mrf.mxu0  ;;  %v12639_v6 = vadd.f32 %v3663_v30, %v3457_v26  ;;  %v15847_v30 = vld [vmem:[#allocation81_spill] sm:$0xff] }
 0x4aa   :  { %v2005_v7 = vpop.f32.mrf.mxu2  ;;  %v15848_v26 = vld [vmem:[#allocation325_spill] sm:$0xff] }
 0x4ab   :  { %15839 = vst [vmem:[#allocation237_spill] sm:$0xff] %v12639_v6  ;;  %v2006_v16 = vadd.f32 %v2005_v7, %v15841_v43  ;;  %v3665_v3 = vpop.f32.mrf.mxu1  ;;  %v4029_v6 = vmul.f32 %v15848_v26, %v15847_v30  ;;  %v4753_v7 = vpack.c.bf16 %v4702_v19, %v4701_v52  ;;  %v5333_v43 = vmul.f32 %v12510_v4, %v15850_v45  ;;  %v15852_v52 = vld [vmem:[#allocation271_spill] sm:$0xff]  ;;  %v15854_v19 = vld [vmem:[#allocation282_spill] sm:$0xff] }
 0x4ac   :  { %v12678_v4 = vpop.permute.xlu0 %5744  ;;  %v12686_v45 = vpop.f32.mrf.mxu3  ;;  %v15861_v30 = vld [vmem:[#allocation43_spill] sm:$0xff] }
 0x4ad   :  { %v2809_v34 = vadd.f32 %v15846_v5, %v2006_v16  ;;  %v12651_v22 = vpop.permute.xlu1 %5752  ;;  %v4092_v5 = vpack.c.bf16 %v4029_v6, %v4028_v13  ;;  %v5393_v13 = vpack.c.bf16 %v5333_v43, %v5332_v59  ;;  %15856 = vst [vmem:[#allocation126_spill] sm:$0xff] %v12686_v45 }
 0x4ae   :  { %7387 = vset.pattern.permute.xlu0 %v15636_v27 }
 0x4af   :  { %v3458_v63 = vadd.f32 %v12463_v50, %v2809_v34  ;;  %7359 = vset.pattern.permute.xlu1 %v15636_v27  ;;  %5267 = vperm.xlu0 %7387, %v12662_v35   ;;  %v7609_v34 = vld [vmem:[%s14119_s1 + $0xd8] sm:$0xff] }
 0x4b0   :  { %7360 = vset.pattern.permute.xlu2 %v15636_v27  ;;  %5175 = vperm.xlu1 %7359, %v12310_v51  }
 0x4b1   :  { %v12669_v36 = vadd.f32 %v3665_v3, %v3458_v63  ;;  %5179 = vperm.xlu2 %7360, %v7609_v34   ;;  %4905 = vmatmul.bf16.gmra.mxu3 %v4753_v7  ;;  %v12674_v50 = vpop.permute.xlu2 %5768  ;;  %v12676_v31 = vpop.f32.mrf.mxu0  ;;  %v15853_v3 = vld [vmem:[#allocation86_spill] sm:$0xff]  ;;  %v15855_v63 = vld [vmem:[#allocation91_spill] sm:$0xff] }
 0x4b2   :  { %4196 = vmatmul.bf16.vlgmr.msra.gmra.mxu2 %v4092_v5  ;;  %v2008_v6 = vpop.f32.mrf.mxu2  ;;  %v5975_v20 = vmul.f32 %v12468_v38, %v15853_v3  ;;  %v5976_v7 = vmul.f32 %v12398_v56, %v15855_v63  ;;  %v12696_v38 = vld [vmem:[%s14119_s1 + $0x190] sm:$0xff]  ;;  %v7611_v56 = vld [vmem:[%s14119_s1 + $0xe0] sm:$0xff] }
 0x4b3   :  { %15851 = vst [vmem:[#allocation97_spill] sm:$0xff] %v12669_v36  ;;  %v2009_v16 = vadd.f32 %v2008_v6, %v15852_v52  ;;  %v3668_v51 = vpop.f32.mrf.mxu1 }
 0x4b4   :  { %5509 = vmatmul.bf16.gmra.mxu0 %v5393_v13  ;;  %v6039_v43 = vpack.c.bf16 %v5976_v7, %v5975_v20 }
 0x4b5   :  { %v2810_v26 = vadd.f32 %v15854_v19, %v2009_v16  ;;  %v15858_v16 = vld [vmem:[#allocation11_spill] sm:$0xff] }
 0x4b7   :  { %v3459_v59 = vadd.f32 %v12492_v47, %v2810_v26  ;;  %7391 = vset.pattern.permute.xlu0 %v15643_v41  ;;  %v12690_v5 = vpop.permute.xlu1 %5111  ;;  %v15859_v26 = vld [vmem:[#allocation164_spill] sm:$0xff] }
 0x4b8   :  { %7362 = vset.pattern.permute.xlu1 %v15643_v41  ;;  %5920 = vperm.xlu0 %7391, %v12696_v38   ;;  %v4704_v7 = vmul.f32 %v12170_v55, %v15859_v26  ;;  %v15870_v26 = vld [vmem:[#allocation96_spill] sm:$0xff] }
 0x4b9   :  { %v12699_v13 = vadd.f32 %v3668_v51, %v3459_v59  ;;  %5183 = vperm.xlu2 %7360, %v7611_v56   ;;  %5828 = vperm.xlu1 %7362, %v7609_v34   ;;  %v12704_v47 = vpop.f32.mrf.mxu0  ;;  %v5108_v51 = vpop.permute.xlu0 %5107  ;;  %v4703_v34 = vmul.f32 %v12092_v46, %v15861_v30 }
 0x4ba   :  { %6143 = vmatmul.bf16.vlgmr.msra.gmra.mxu1 %v6039_v43  ;;  %v2010_v6 = vpop.f32.mrf.mxu2  ;;  %v5334_v43 = vmul.f32 %v12543_v18, %v15862_v61  ;;  %v5335_v55 = vmul.f32 %v5108_v51, %v15864_v62  ;;  %v12736_v62 = vld [vmem:[%s14119_s1 + $0x1a8] sm:$0xff] }
 0x4bb   :  { %15857 = vst [vmem:[#allocation98_spill] sm:$0xff] %v12699_v13  ;;  %v12706_v52 = vpop.permute.xlu2 %5131  ;;  %v2011_v20 = vadd.f32 %v2010_v6, %v15858_v16  ;;  %v3670_v19 = vpop.f32.mrf.mxu1  ;;  %v15860_v13 = vld [vmem:[#allocation259_spill] sm:$0xff]  ;;  %v15863_v6 = vld [vmem:[#allocation333_spill] sm:$0xff]  ;;  %v4754_v21 = vpack.c.bf16 %v4704_v7, %v4703_v34  ;;  %v5977_v7 = vmul.f32 %v12603_v57, %v15870_v26 }
 0x4bc   :  { %v4031_v36 = vmul.f32 %v15860_v13, %v15855_v63  ;;  %v4030_v16 = vmul.f32 %v15863_v6, %v15853_v3  ;;  %v5394_v18 = vpack.c.bf16 %v5335_v55, %v5334_v43  ;;  %15867 = vst [vmem:[#allocation319_spill] sm:$0xff] %v12736_v62  ;;  %v15868_v3 = vld [vmem:[#allocation100_spill] sm:$0xff]  ;;  %v15871_v51 = vld [vmem:[#allocation57_spill] sm:$0xff] }
 0x4bd   :  { %v2811_v59 = vadd.f32 %v11857_v8, %v2011_v20  ;;  %v12725_v20 = vpop.f32.mrf.mxu3 }
 0x4be   :  { %15865 = vst [vmem:[#allocation239_spill] sm:$0xff] %v12725_v20  ;;  %v15883_v20 = vld [vmem:[#allocation173_spill] sm:$0xff] }
 0x4bf   :  { %v3460_v45 = vadd.f32 %v12517_v17, %v2811_v59  ;;  %v4093_v17 = vpack.c.bf16 %v4031_v36, %v4030_v16  ;;  %v15869_v36 = vld [vmem:[#allocation277_spill] sm:$0xff]  ;;  %v15875_v16 = vld [vmem:[#allocation80_spill] sm:$0xff] }
 0x4c0   :  { %7396 = vset.pattern.permute.xlu0 %v15636_v27  ;;  %v12723_v8 = vpop.permute.xlu1 %5764  ;;  %v4705_v55 = vmul.f32 %v12032_v48, %v15875_v16 }
 0x4c1   :  { %v12727_v63 = vadd.f32 %v3670_v19, %v3460_v45  ;;  %7364 = vset.pattern.permute.xlu2 %v15643_v41  ;;  %7363 = vset.pattern.permute.xlu1 %v15636_v27  ;;  %v12731_v46 = vpop.f32.mrf.mxu0  ;;  %v5978_v45 = vmul.f32 %v12528_v14, %v15868_v3  ;;  %v12756_v14 = vld [vmem:[%s14119_s1 + $0x1b0] sm:$0xff] }
 0x4c2   :  { %5283 = vperm.xlu0 %7396, %v12736_v62   ;;  %4910 = vmatmul.bf16.gmra.mxu3 %v4754_v21  ;;  %v2013_v30 = vpop.f32.mrf.mxu2  ;;  %15873 = vst [vmem:[#allocation30_spill] sm:$0xff] %v12756_v14 }
 0x4c3   :  { %15866 = vst [vmem:[#allocation336_spill] sm:$0xff] %v12727_v63  ;;  %5832 = vperm.xlu2 %7364, %v7611_v56   ;;  %5187 = vperm.xlu1 %7363, %v12341_v42   ;;  %v12740_v61 = vpop.permute.xlu2 %5135  ;;  %v2014_v13 = vadd.f32 %v2013_v30, %v15869_v36  ;;  %v6040_v21 = vpack.c.bf16 %v5978_v45, %v5977_v7  ;;  %v15876_v30 = vld [vmem:[#allocation7_spill] sm:$0xff]  ;;  %v15882_v63 = vld [vmem:[#allocation332_spill] sm:$0xff] }
 0x4c4   :  { %4201 = vmatmul.bf16.gmra.mxu2 %v4093_v17  ;;  %v3673_v19 = vpop.f32.mrf.mxu1  ;;  %5514 = vmatmul.bf16.gmra.mxu0 %v5394_v18  ;;  %v7615_v17 = vld [vmem:[%s14119_s1 + $0xf8] sm:$0xff] }
 0x4c5   :  { %v2812_v59 = vadd.f32 %v15871_v51, %v2014_v13  ;;  %v12761_v57 = vpop.f32.mrf.mxu3  ;;  %v15877_v13 = vld [vmem:[#allocation49_spill] sm:$0xff]  ;;  %v15879_v51 = vld [vmem:[#allocation310_spill] sm:$0xff] }
 0x4c6   :  { %15874 = vst [vmem:[#allocation132_spill] sm:$0xff] %v12761_v57  ;;  %v4032_v57 = vmul.f32 %v15882_v63, %v15870_v26  ;;  %v7617_v26 = vld [vmem:[%s14119_s1 + $0x100] sm:$0xff] }
 0x4c7   :  { %v3461_v56 = vadd.f32 %v12551_v60, %v2812_v59  ;;  %v7614_v60 = vld [vmem:[%s14119_s1 + $0xf0] sm:$0xff] }
 0x4c9   :  { %v12749_v42 = vpop.f32.mrf.mxu0  ;;  %v12751_v34 = vadd.f32 %v3673_v19, %v3461_v56  ;;  %v15878_v19 = vld [vmem:[#allocation214_spill] sm:$0xff] }
 0x4ca   :  { %5287 = vperm.xlu0 %7396, %v12756_v14   ;;  %6148 = vmatmul.bf16.gmra.mxu1 %v6040_v21  ;;  %v12759_v43 = vpop.permute.xlu1 %5123  ;;  %v2015_v6 = vpop.f32.mrf.mxu2  ;;  %v4706_v7 = vmul.f32 %v15878_v19, %v15877_v13  ;;  %v15880_v21 = vld [vmem:[#allocation139_spill] sm:$0xff]  ;;  %v15888_v19 = vld [vmem:[#allocation108_spill] sm:$0xff] }
 0x4cb   :  { %15872 = vst [vmem:[#allocation200_spill] sm:$0xff] %v12751_v34  ;;  %7365 = vset.pattern.permute.xlu2 %v15636_v27  ;;  %5191 = vperm.xlu1 %7363, %v7614_v60   ;;  %v2016_v45 = vadd.f32 %v2015_v6, %v15876_v30  ;;  %v4033_v56 = vmul.f32 %v15880_v21, %v15868_v3  ;;  %v15881_v60 = vld [vmem:[#allocation172_spill] sm:$0xff]  ;;  %v12814_v21 = vpop.permute.xlu0 %5760 }
 0x4cc   :  { %5195 = vperm.xlu2 %7365, %v7615_v17   ;;  %v12772_v18 = vpop.permute.xlu2 %5788  ;;  %v3675_v36 = vpop.f32.mrf.mxu1  ;;  %v5336_v48 = vmul.f32 %v12690_v5, %v15881_v60  ;;  %v4755_v16 = vpack.c.bf16 %v4706_v7, %v4705_v55  ;;  %v5337_v6 = vmul.f32 %v12608_v39, %v15883_v20  ;;  %v15886_v20 = vld [vmem:[#allocation176_spill] sm:$0xff]  ;;  %v5980_v7 = vmul.f32 %v12637_v40, %v15888_v19 }
 0x4cd   :  { %v2813_v59 = vadd.f32 %v15879_v51, %v2016_v45  ;;  %v4094_v45 = vpack.c.bf16 %v4033_v56, %v4032_v57  ;;  %v5979_v63 = vmul.f32 %v12485_v24, %v15886_v20  ;;  %v12811_v51 = vpop.f32.mrf.mxu3 }
 0x4ce   :  { %v5395_v5 = vpack.c.bf16 %v5337_v6, %v5336_v48  ;;  %15889 = vst [vmem:[#allocation102_spill] sm:$0xff] %v12811_v51  ;;  %v15893_v6 = vld [vmem:[#allocation162_spill] sm:$0xff] }
 0x4cf   :  { %v3462_v34 = vadd.f32 %v12576_v53, %v2813_v59  ;;  %v12798_v53 = vld [vmem:[%s14119_s1 + $0x1b8] sm:$0xff]  ;;  %v15890_v59 = vld [vmem:[#allocation330_spill] sm:$0xff]  ;;  %v6041_v56 = vpack.c.bf16 %v5980_v7, %v5979_v63  ;;  %v15895_v63 = vld [vmem:[#allocation17_spill] sm:$0xff] }
 0x4d0   :  { %15885 = vst [vmem:[#allocation201_spill] sm:$0xff] %v12798_v53  ;;  %v15896_v7 = vld [vmem:[#allocation31_spill] sm:$0xff] }
 0x4d1   :  { %v12787_v30 = vpop.f32.mrf.mxu0  ;;  %v12789_v13 = vadd.f32 %v3675_v36, %v3462_v34  ;;  %v15887_v34 = vld [vmem:[#allocation281_spill] sm:$0xff] }
 0x4d2   :  { %7403 = vset.pattern.permute.xlu0 %v15643_v41  ;;  %4915 = vmatmul.bf16.gmra.mxu3 %v4755_v16  ;;  %v12792_v3 = vpop.permute.xlu1 %5127  ;;  %v2018_v39 = vpop.f32.mrf.mxu2  ;;  %v12824_v16 = vld [vmem:[%s14119_s1 + $0x1c0] sm:$0xff] }
 0x4d3   :  { %15884 = vst [vmem:[#allocation219_spill] sm:$0xff] %v12789_v13  ;;  %7366 = vset.pattern.permute.xlu1 %v15643_v41  ;;  %5940 = vperm.xlu0 %7403, %v12798_v53   ;;  %v2019_v57 = vadd.f32 %v2018_v39, %v15887_v34  ;;  %v7619_v39 = vld [vmem:[%s14119_s1 + $0x108] sm:$0xff] }
 0x4d4   :  { %5199 = vperm.xlu2 %7365, %v7617_v26   ;;  %5844 = vperm.xlu1 %7366, %v7615_v17   ;;  %v3678_v55 = vpop.f32.mrf.mxu1  ;;  %15892 = vst [vmem:[#allocation234_spill] sm:$0xff] %v12824_v16 }
 0x4d5   :  { %4206 = vmatmul.bf16.gmra.mxu2 %v4094_v45  ;;  %v12807_v36 = vpop.permute.xlu2 %5147  ;;  %5519 = vmatmul.bf16.gmra.mxu0 %v5395_v5  ;;  %v2814_v24 = vadd.f32 %v15890_v59, %v2019_v57  ;;  %v15894_v45 = vld [vmem:[#allocation210_spill] sm:$0xff]  ;;  %v15897_v59 = vld [vmem:[#allocation23_spill] sm:$0xff]  ;;  %v12845_v51 = vpop.f32.mrf.mxu3 }
 0x4d6   :  { %v4707_v5 = vmul.f32 %v15894_v45, %v15893_v6  ;;  %v15899_v6 = vld [vmem:[#allocation338_spill] sm:$0xff]  ;;  %v15900_v45 = vld [vmem:[#allocation79_spill] sm:$0xff]  ;;  %15901 = vst [vmem:[#allocation82_spill] sm:$0xff] %v12845_v51 }
 0x4d7   :  { %v3463_v60 = vadd.f32 %v12610_v54, %v2814_v24  ;;  %v4708_v24 = vmul.f32 %v15897_v59, %v15896_v7  ;;  %v15920_v51 = vld [vmem:[#allocation190_spill] sm:$0xff] }
 0x4d8   :  { %v5340_v14 = vmul.f32 %v12792_v3, %v15920_v51  ;;  %v7625_v3 = vld [vmem:[%s14119_s1 + $0x1e8] sm:$0xff]  ;;  %v15924_v51 = vld [vmem:[#allocation163_spill] sm:$0xff] }
 0x4d9   :  { %v12817_v17 = vpop.f32.mrf.mxu0  ;;  %v12819_v48 = vadd.f32 %v3678_v55, %v3463_v60  ;;  %v4756_v13 = vpack.c.bf16 %v4708_v24, %v4707_v5  ;;  %v15906_v24 = vld [vmem:[#allocation115_spill] sm:$0xff] }
 0x4da   :  { %6153 = vmatmul.bf16.gmra.mxu1 %v6041_v56  ;;  %v2020_v54 = vpop.f32.mrf.mxu2  ;;  %v15898_v56 = vld [vmem:[#allocation337_spill] sm:$0xff] }
 0x4db   :  { %15891 = vst [vmem:[#allocation307_spill] sm:$0xff] %v12819_v48  ;;  %5944 = vperm.xlu0 %7403, %v12824_v16   ;;  %v12827_v40 = vpop.permute.xlu1 %5780  ;;  %v2021_v34 = vadd.f32 %v2020_v54, %v15895_v63  ;;  %v4034_v60 = vmul.f32 %v15898_v56, %v15886_v20  ;;  %v15902_v54 = vld [vmem:[#allocation178_spill] sm:$0xff]  ;;  %v15903_v20 = vld [vmem:[#allocation179_spill] sm:$0xff]  ;;  %v5982_v56 = vmul.f32 %v12618_v0, %v15906_v24 }
 0x4dc   :  { %7368 = vset.pattern.permute.xlu2 %v15643_v41  ;;  %5848 = vperm.xlu1 %7366, %v7617_v26   ;;  %v3680_v57 = vpop.f32.mrf.mxu1  ;;  %v4035_v26 = vmul.f32 %v15899_v6, %v15888_v19  ;;  %v5339_v63 = vmul.f32 %v12759_v43, %v15902_v54  ;;  %v5338_v59 = vmul.f32 %v12633_v44, %v15903_v20  ;;  %v15907_v44 = vld [vmem:[#allocation290_spill] sm:$0xff]  ;;  %v7622_v6 = vld [vmem:[%s14119_s1 + $0x118] sm:$0xff] }
 0x4dd   :  { %5852 = vperm.xlu2 %7368, %v7619_v39   ;;  %v12836_v55 = vpop.permute.xlu2 %5151  ;;  %v2815_v48 = vadd.f32 %v15900_v45, %v2021_v34  ;;  %v12847_v39 = vpop.permute.xlu0 %5772  ;;  %v15905_v34 = vmov 6   ;;  %v7621_v0 = vld [vmem:[%s14119_s1 + $0x110] sm:$0xff] }
 0x4de   :  { %v4095_v7 = vpack.c.bf16 %v4035_v26, %v4034_v60  ;;  %v15909_v26 = vld [vmem:[#allocation107_spill] sm:$0xff] }
 0x4df   :  { %v3464_v16 = vadd.f32 %v12635_v37, %v2815_v48  ;;  %v7620_v37 = vld [vmem:[%s14119_s1 + $0x1d8] sm:$0xff] }
 0x4e1   :  { %v12852_v53 = vpop.f32.mrf.mxu0  ;;  %v12856_v19 = vadd.f32 %v3680_v57, %v3464_v16  ;;  %v15908_v57 = vld [vmem:[#allocation112_spill] sm:$0xff] }
 0x4e2   :  { %4920 = vmatmul.bf16.gmra.mxu3 %v4756_v13  ;;  %v2023_v43 = vpop.f32.mrf.mxu2  ;;  %v5396_v13 = vpack.c.bf16 %v5339_v63, %v5338_v59  ;;  %v5981_v60 = vmul.f32 %v12678_v4, %v15908_v57  ;;  %v12883_v4 = vpop.f32.mrf.mxu3 }
 0x4e3   :  { %15904 = vst [vmem:[#allocation127_spill] sm:$0xff] %v12856_v19  ;;  %7410 = vset.pattern.permute.xlu0 %v15905_v34  ;;  %v12859_v5 = vpop.permute.xlu1 %5784  ;;  %v2024_v48 = vadd.f32 %v2023_v43, %v15907_v44  ;;  %v15912_v43 = vld [vmem:[#allocation169_spill] sm:$0xff]  ;;  %v15913_v44 = vld [vmem:[#allocation187_spill] sm:$0xff] }
 0x4e4   :  { %7369 = vset.pattern.permute.xlu1 %v15636_v27  ;;  %4658 = vperm.xlu0 %7410, %v7620_v37   ;;  %v3683_v16 = vpop.f32.mrf.mxu1  ;;  %v6042_v63 = vpack.c.bf16 %v5982_v56, %v5981_v60  ;;  %15910 = vst [vmem:[#allocation326_spill] sm:$0xff] %v12883_v4 }
 0x4e5   :  { %4211 = vmatmul.bf16.gmra.mxu2 %v4095_v7  ;;  %7370 = vset.pattern.permute.xlu2 %v15636_v27  ;;  %v2816_v45 = vadd.f32 %v15909_v26, %v2024_v48  ;;  %v12885_v59 = vpop.permute.xlu0 %5776  ;;  %v15914_v48 = vld [vmem:[#allocation22_spill] sm:$0xff] }
 0x4e6   :  { %5207 = vperm.xlu1 %7369, %v7621_v0   ;;  %5211 = vperm.xlu2 %7370, %v7622_v6   ;;  %v4710_v0 = vmul.f32 %v15913_v44, %v15912_v43  ;;  %v15918_v44 = vld [vmem:[#allocation301_spill] sm:$0xff] }
 0x4e7   :  { %5524 = vmatmul.bf16.gmra.mxu0 %v5396_v13  ;;  %v12878_v54 = vpop.permute.xlu2 %5800  ;;  %v3465_v7 = vadd.f32 %v12676_v31, %v2816_v45  ;;  %v7623_v13 = vld [vmem:[%s14119_s1 + $0x1e0] sm:$0xff] }
 0x4e8   :  { %v15915_v45 = vld [vmem:[#allocation53_spill] sm:$0xff] }
 0x4e9   :  { %v12881_v20 = vpop.f32.mrf.mxu0  ;;  %v12887_v37 = vadd.f32 %v3683_v16, %v3465_v7  ;;  %v7624_v16 = vld [vmem:[%s14119_s1 + $0x120] sm:$0xff]  ;;  %v15917_v7 = vld [vmem:[#allocation175_spill] sm:$0xff] }
 0x4ea   :  { %6158 = vmatmul.bf16.gmra.mxu1 %v6042_v63  ;;  %v2025_v31 = vpop.f32.mrf.mxu2  ;;  %v15916_v63 = vld [vmem:[#allocation276_spill] sm:$0xff]  ;;  %v4036_v43 = vmul.f32 %v15917_v7, %v15908_v57  ;;  %v15922_v57 = vld [vmem:[#allocation118_spill] sm:$0xff] }
 0x4eb   :  { %15911 = vst [vmem:[#allocation133_spill] sm:$0xff] %v12887_v37  ;;  %v2026_v60 = vadd.f32 %v2025_v31, %v15914_v48  ;;  %v4709_v19 = vmul.f32 %v15916_v63, %v15915_v45  ;;  %v15919_v31 = vld [vmem:[#allocation231_spill] sm:$0xff]  ;;  %v15925_v7 = vld [vmem:[#allocation122_spill] sm:$0xff] }
 0x4ec   :  { %4662 = vperm.xlu0 %7410, %v7623_v13   ;;  %v12894_v56 = vpop.permute.xlu1 %5143  ;;  %v3685_v26 = vpop.f32.mrf.mxu1  ;;  %v4037_v48 = vmul.f32 %v15919_v31, %v15906_v24  ;;  %v7626_v31 = vld [vmem:[%s14119_s1 + $0x128] sm:$0xff] }
 0x4ed   :  { %v2817_v13 = vadd.f32 %v15918_v44, %v2026_v60  ;;  %v4757_v37 = vpack.c.bf16 %v4710_v0, %v4709_v19  ;;  %v15923_v19 = vld [vmem:[#allocation188_spill] sm:$0xff]  ;;  %v12921_v60 = vpop.f32.mrf.mxu3 }
 0x4ee   :  { %7372 = vset.pattern.permute.xlu1 %v15643_v41  ;;  %5215 = vperm.xlu2 %7370, %v7624_v16   ;;  %v4096_v62 = vpack.c.bf16 %v4037_v48, %v4036_v43  ;;  %v5341_v0 = vmul.f32 %v12706_v52, %v15923_v19  ;;  %v15928_v19 = vld [vmem:[#allocation181_spill] sm:$0xff] }
 0x4ef   :  { %5860 = vperm.xlu1 %7372, %v7622_v6   ;;  %v3466_v45 = vadd.f32 %v12704_v47, %v2817_v13  ;;  %v5983_v6 = vmul.f32 %v12651_v22, %v15922_v57  ;;  %v5984_v22 = vmul.f32 %v12573_v2, %v15925_v7 }
 0x4f0   :  { %v12906_v4 = vpop.permute.xlu2 %5163  ;;  %v5397_v43 = vpack.c.bf16 %v5341_v0, %v5340_v14 }
 0x4f1   :  { %v12911_v63 = vpop.f32.mrf.mxu0  ;;  %v12915_v12 = vadd.f32 %v3685_v26, %v3466_v45  ;;  %v5140_v26 = vpop.permute.xlu0 %5139  ;;  %v6043_v13 = vpack.c.bf16 %v5984_v22, %v5983_v6  ;;  %v7627_v6 = vld [vmem:[%s14119_s1 + $0x1f0] sm:$0xff]  ;;  %v15931_v22 = vld [vmem:[#allocation148_spill] sm:$0xff] }
 0x4f2   :  { %4925 = vmatmul.bf16.gmra.mxu3 %v4757_v37  ;;  %v2028_v47 = vpop.f32.mrf.mxu2 }
 0x4f3   :  { %15921 = vst [vmem:[#allocation28_spill] sm:$0xff] %v12915_v12  ;;  %v2029_v24 = vadd.f32 %v2028_v47, %v15924_v51  ;;  %v15940_v12 = vld [vmem:[#allocation199_spill] sm:$0xff] }
 0x4f4   :  { %7417 = vset.pattern.permute.xlu0 %v15636_v27  ;;  %v3688_v37 = vpop.f32.mrf.mxu1 }
 0x4f5   :  { %4216 = vmatmul.bf16.gmra.mxu2 %v4096_v62  ;;  %5315 = vperm.xlu0 %7417, %v7625_v3   ;;  %v15926_v62 = vld [vmem:[#allocation84_spill] sm:$0xff]  ;;  %v15930_v3 = vld [vmem:[#allocation10_spill] sm:$0xff] }
 0x4f6   :  { %7374 = vset.pattern.permute.xlu2 %v15643_v41  ;;  %v12931_v52 = vpop.permute.xlu1 %5796  ;;  %v2818_v44 = vadd.f32 %v15926_v62, %v2029_v24  ;;  %v12953_v62 = vpop.f32.mrf.mxu3 }
 0x4f7   :  { %7373 = vset.pattern.permute.xlu1 %v15636_v27  ;;  %5864 = vperm.xlu2 %7374, %v7624_v16   ;;  %v15929_v16 = vld [vmem:[#allocation305_spill] sm:$0xff]  ;;  %15933 = vst [vmem:[#allocation34_spill] sm:$0xff] %v12953_v62  ;;  %v5343_v62 = vmul.f32 %v5140_v26, %v15940_v12 }
 0x4f8   :  { %5219 = vperm.xlu1 %7373, %v7626_v31   ;;  %5529 = vmatmul.bf16.gmra.mxu0 %v5397_v43  ;;  %v12938_v48 = vpop.permute.xlu2 %5167  ;;  %v3467_v2 = vadd.f32 %v12731_v46, %v2818_v44  ;;  %v4711_v0 = vmul.f32 %v15929_v16, %v15928_v19  ;;  %v15932_v43 = vld [vmem:[#allocation317_spill] sm:$0xff] }
 0x4f9   :  { %v12941_v14 = vpop.f32.mrf.mxu0  ;;  %v4712_v46 = vmul.f32 %v15932_v43, %v15931_v22  ;;  %v12961_v16 = vpop.permute.xlu0 %5792  ;;  %v15937_v43 = vld [vmem:[#allocation197_spill] sm:$0xff] }
 0x4fa   :  { %6163 = vmatmul.bf16.gmra.mxu1 %v6043_v13  ;;  %v12943_v45 = vadd.f32 %v3688_v37, %v3467_v2  ;;  %v2030_v47 = vpop.f32.mrf.mxu2  ;;  %v15934_v37 = vld [vmem:[#allocation265_spill] sm:$0xff]  ;;  %v15935_v13 = vld [vmem:[#allocation228_spill] sm:$0xff] }
 0x4fb   :  { %v2031_v51 = vadd.f32 %v2030_v47, %v15930_v3  ;;  %v4039_v44 = vmul.f32 %v15934_v37, %v15925_v7  ;;  %v4758_v19 = vpack.c.bf16 %v4712_v46, %v4711_v0  ;;  %v7628_v47 = vld [vmem:[%s14119_s1 + $0x138] sm:$0xff]  ;;  %v5342_v46 = vmul.f32 %v12740_v61, %v15937_v43  ;;  %v15939_v37 = vld [vmem:[#allocation205_spill] sm:$0xff] }
 0x4fc   :  { %15927 = vst [vmem:[#allocation99_spill] sm:$0xff] %v12943_v45  ;;  %v3690_v24 = vpop.f32.mrf.mxu1  ;;  %v7629_v61 = vld [vmem:[%s14119_s1 + $0x1f8] sm:$0xff] }
 0x4fd   :  { %5319 = vperm.xlu0 %7417, %v7627_v6   ;;  %v2819_v31 = vadd.f32 %v15935_v13, %v2031_v51  ;;  %v15936_v6 = vld [vmem:[#allocation339_spill] sm:$0xff]  ;;  %v5986_v13 = vmul.f32 %v12723_v8, %v15939_v37 }
 0x4fe   :  { %v4038_v3 = vmul.f32 %v15936_v6, %v15922_v57  ;;  %v15942_v6 = vld [vmem:[#allocation124_spill] sm:$0xff]  ;;  %v12991_v26 = vpop.f32.mrf.mxu3 }
 0x4ff   :  { %7375 = vset.pattern.permute.xlu2 %v15636_v27  ;;  %v12959_v2 = vpop.permute.xlu1 %5155  ;;  %v3468_v7 = vadd.f32 %v12749_v42, %v2819_v31  ;;  %v15941_v42 = vld [vmem:[#allocation308_spill] sm:$0xff]  ;;  %15944 = vst [vmem:[#allocation198_spill] sm:$0xff] %v12991_v26  ;;  %v15952_v26 = vld [vmem:[#allocation341_spill] sm:$0xff] }
 0x500   :  { %5223 = vperm.xlu1 %7373, %v12500_v49   ;;  %5227 = vperm.xlu2 %7375, %v7628_v47   ;;  %v4097_v0 = vpack.c.bf16 %v4039_v44, %v4038_v3  ;;  %v5985_v44 = vmul.f32 %v12814_v21, %v15942_v6 }
 0x501   :  { %v12970_v22 = vpop.permute.xlu2 %5820  ;;  %v12972_v51 = vpop.f32.mrf.mxu0  ;;  %v12976_v49 = vadd.f32 %v3690_v24, %v3468_v7  ;;  %v5398_v24 = vpack.c.bf16 %v5343_v62, %v5342_v46  ;;  %v15946_v46 = vld [vmem:[#allocation222_spill] sm:$0xff] }
 0x502   :  { %4930 = vmatmul.bf16.gmra.mxu3 %v4758_v19  ;;  %v2033_v45 = vpop.f32.mrf.mxu2  ;;  %v15943_v19 = vld [vmem:[#allocation67_spill] sm:$0xff]  ;;  %v6044_v12 = vpack.c.bf16 %v5986_v13, %v5985_v44  ;;  %v13000_v62 = vpop.permute.xlu0 %5804  ;;  %v15948_v44 = vld [vmem:[#allocation26_spill] sm:$0xff] }
 0x503   :  { %15938 = vst [vmem:[#allocation323_spill] sm:$0xff] %v12976_v49  ;;  %v2034_v57 = vadd.f32 %v2033_v45, %v15941_v42  ;;  %v7630_v45 = vld [vmem:[%s14119_s1 + $0x140] sm:$0xff]  ;;  %v15947_v13 = vld [vmem:[#allocation223_spill] sm:$0xff] }
 0x504   :  { %v3693_v31 = vpop.f32.mrf.mxu1  ;;  %v4713_v42 = vmul.f32 %v15947_v13, %v15946_v46  ;;  %v15949_v49 = vld [vmem:[#allocation51_spill] sm:$0xff] }
 0x505   :  { %4221 = vmatmul.bf16.gmra.mxu2 %v4097_v0  ;;  %7424 = vset.pattern.permute.xlu0 %v15643_v41  ;;  %v2820_v8 = vadd.f32 %v15943_v19, %v2034_v57 }
 0x506   :  { %5972 = vperm.xlu0 %7424, %v7629_v61  }
 0x507   :  { %v12989_v3 = vpop.permute.xlu1 %5159  ;;  %v3469_v21 = vadd.f32 %v12787_v30, %v2820_v8  ;;  %v15950_v30 = vld [vmem:[#allocation119_spill] sm:$0xff] }
 0x508   :  { %7376 = vset.pattern.permute.xlu1 %v15643_v41  ;;  %5231 = vperm.xlu2 %7375, %v7630_v45  }
 0x509   :  { %5876 = vperm.xlu1 %7376, %v7628_v47   ;;  %5534 = vmatmul.bf16.gmra.mxu0 %v5398_v24  ;;  %v12998_v7 = vpop.f32.mrf.mxu0  ;;  %v13002_v0 = vadd.f32 %v3693_v31, %v3469_v21  ;;  %v4714_v47 = vmul.f32 %v15950_v30, %v15949_v49  ;;  %v15951_v24 = vld [vmem:[#allocation202_spill] sm:$0xff]  ;;  %v15953_v31 = vld [vmem:[#allocation88_spill] sm:$0xff]  ;;  %v13023_v49 = vpop.f32.mrf.mxu3  ;;  %v15957_v30 = vld [vmem:[#allocation209_spill] sm:$0xff] }
 0x50a   :  { %6168 = vmatmul.bf16.gmra.mxu1 %v6044_v12  ;;  %v2035_v57 = vpop.f32.mrf.mxu2  ;;  %v4040_v8 = vmul.f32 %v15951_v24, %v15942_v6  ;;  %v4041_v12 = vmul.f32 %v15952_v26, %v15939_v37  ;;  %v15958_v24 = vld [vmem:[#allocation316_spill] sm:$0xff] }
 0x50b   :  { %15945 = vst [vmem:[#allocation87_spill] sm:$0xff] %v13002_v0  ;;  %v13004_v43 = vpop.permute.xlu2 %5179  ;;  %v2036_v61 = vadd.f32 %v2035_v57, %v15948_v44  ;;  %v4759_v0 = vpack.c.bf16 %v4714_v47, %v4713_v42  ;;  %v15954_v44 = vld [vmem:[#allocation211_spill] sm:$0xff]  ;;  %v5345_v47 = vmul.f32 %v12807_v36, %v15957_v30  ;;  %v15960_v36 = vld [vmem:[#allocation274_spill] sm:$0xff] }
 0x50c   :  { %v3695_v19 = vpop.f32.mrf.mxu1  ;;  %v4098_v6 = vpack.c.bf16 %v4041_v12, %v4040_v8  ;;  %v5344_v37 = vmul.f32 %v12894_v56, %v15954_v44  ;;  %v15959_v12 = vld [vmem:[#allocation128_spill] sm:$0xff] }
 0x50d   :  { %v2821_v21 = vadd.f32 %v15953_v31, %v2036_v61  ;;  %v13031_v61 = vpop.permute.xlu0 %5808  ;;  %v5988_v56 = vmul.f32 %v12847_v39, %v15959_v12  ;;  %v15961_v39 = vld [vmem:[#allocation14_spill] sm:$0xff] }
 0x50f   :  { %v3470_v46 = vadd.f32 %v12817_v17, %v2821_v21 }
 0x510   :  { %7378 = vset.pattern.permute.xlu2 %v15643_v41 }
 0x511   :  { %5880 = vperm.xlu1 %7376, %v7630_v45   ;;  %5884 = vperm.xlu2 %7378, %v12536_v10   ;;  %v13019_v13 = vpop.permute.xlu1 %5812  ;;  %v13021_v57 = vpop.f32.mrf.mxu0  ;;  %v13027_v26 = vadd.f32 %v3695_v19, %v3470_v46  ;;  %v15956_v45 = vld [vmem:[#allocation221_spill] sm:$0xff]  ;;  %v5399_v19 = vpack.c.bf16 %v5345_v47, %v5344_v37 }
 0x512   :  { %4935 = vmatmul.bf16.gmra.mxu3 %v4759_v0  ;;  %v2038_v17 = vpop.f32.mrf.mxu2  ;;  %v5987_v10 = vmul.f32 %v12674_v50, %v15956_v45 }
 0x513   :  { %15955 = vst [vmem:[#allocation213_spill] sm:$0xff] %v13027_v26  ;;  %v13029_v42 = vpop.permute.xlu2 %5183  ;;  %v2039_v0 = vadd.f32 %v2038_v17, %v15958_v24  ;;  %v15963_v17 = vld [vmem:[#allocation35_spill] sm:$0xff]  ;;  %v15965_v24 = vld [vmem:[#allocation33_spill] sm:$0xff] }
 0x514   :  { %v3698_v8 = vpop.f32.mrf.mxu1  ;;  %v6045_v21 = vpack.c.bf16 %v5988_v56, %v5987_v10  ;;  %v4716_v10 = vmul.f32 %v12313_v15, %v15963_v17  ;;  %v15966_v56 = vld [vmem:[#allocation268_spill] sm:$0xff]  ;;  %v15968_v15 = vld [vmem:[#allocation289_spill] sm:$0xff] }
 0x515   :  { %4226 = vmatmul.bf16.gmra.mxu2 %v4098_v6  ;;  %v2822_v31 = vadd.f32 %v12276_v32, %v2039_v0  ;;  %v13047_v6 = vmul.f32 %v12970_v22, %v15960_v36  ;;  %v13061_v22 = vpop.f32.mrf.mxu3 }
 0x516   :  { %15964 = vst [vmem:[#allocation101_spill] sm:$0xff] %v13061_v22 }
 0x517   :  { %v3471_v46 = vadd.f32 %v12852_v53, %v2822_v31  ;;  %v7631_v53 = vld [vmem:[%s14119_s1 + $0x158] sm:$0xff]  ;;  %v13070_v31 = vpop.permute.xlu0 %5171 }
 0x519   :  { %7379 = vset.pattern.permute.xlu1 %v15636_v27  ;;  %5539 = vmatmul.bf16.gmra.mxu0 %v5399_v19  ;;  %v5817_v50 = vpop.permute.xlu1 %5816  ;;  %v13043_v44 = vpop.f32.mrf.mxu0  ;;  %v13054_v32 = vadd.f32 %v3698_v8, %v3471_v46  ;;  %v4715_v19 = vmul.f32 %v12270_v1, %v15966_v56 }
 0x51a   :  { %7380 = vset.pattern.permute.xlu2 %v15636_v27  ;;  %5239 = vperm.xlu1 %7379, %v12567_v28   ;;  %v13052_v37 = vmul.f32 %v5817_v50, %v15961_v39  ;;  %v2040_v28 = vpop.f32.mrf.mxu2 }
 0x51b   :  { %15962 = vst [vmem:[#allocation137_spill] sm:$0xff] %v13054_v32  ;;  %5243 = vperm.xlu2 %7380, %v7631_v53   ;;  %6173 = vmatmul.bf16.gmra.mxu1 %v6045_v21  ;;  %v2041_v0 = vadd.f32 %v2040_v28, %v15965_v24  ;;  %v15967_v21 = vld [vmem:[#allocation12_spill] sm:$0xff]  ;;  %v4760_v17 = vpack.c.bf16 %v4716_v10, %v4715_v19  ;;  %v15970_v24 = vld [vmem:[#allocation225_spill] sm:$0xff] }
 0x51c   :  { %v3700_v8 = vpop.f32.mrf.mxu1  ;;  %v4042_v46 = vmul.f32 %v15967_v21, %v15956_v45  ;;  %v15969_v32 = vld [vmem:[#allocation244_spill] sm:$0xff]  ;;  %v5347_v56 = vmul.f32 %v12959_v2, %v15970_v24 }
 0x51d   :  { %v13065_v47 = vpop.permute.xlu2 %5832  ;;  %v2823_v50 = vadd.f32 %v15968_v15, %v2041_v0  ;;  %v4043_v30 = vmul.f32 %v15969_v32, %v15959_v12  ;;  %v7632_v10 = vld [vmem:[%s14119_s1 + $0x160] sm:$0xff]  ;;  %v15973_v0 = vld [vmem:[#allocation327_spill] sm:$0xff]  ;;  %v13095_v2 = vpop.f32.mrf.mxu3 }
 0x51e   :  { %v15972_v12 = vld [vmem:[#allocation224_spill] sm:$0xff]  ;;  %15975 = vst [vmem:[#allocation151_spill] sm:$0xff] %v13095_v2 }
 0x51f   :  { %v3472_v26 = vadd.f32 %v12881_v20, %v2823_v50  ;;  %v4099_v1 = vpack.c.bf16 %v4043_v30, %v4042_v46  ;;  %v5346_v32 = vmul.f32 %v12836_v55, %v15972_v12  ;;  %v15974_v30 = vld [vmem:[#allocation238_spill] sm:$0xff]  ;;  %v15976_v50 = vld [vmem:[#allocation235_spill] sm:$0xff] }
 0x520   :  { %v5990_v46 = vmul.f32 %v12827_v40, %v15974_v30 }
 0x521   :  { %v13078_v22 = vpop.f32.mrf.mxu0  ;;  %v13085_v45 = vadd.f32 %v3700_v8, %v3472_v26  ;;  %v5400_v8 = vpack.c.bf16 %v5347_v56, %v5346_v32  ;;  %v15979_v56 = vld [vmem:[#allocation313_spill] sm:$0xff] }
 0x522   :  { %7382 = vset.pattern.permute.xlu1 %v15643_v41  ;;  %4940 = vmatmul.bf16.gmra.mxu3 %v4760_v17  ;;  %v13081_v28 = vpop.permute.xlu1 %5175  ;;  %v13102_v17 = vpop.permute.xlu0 %5824 }
 0x523   :  { %15971 = vst [vmem:[#allocation240_spill] sm:$0xff] %v13085_v45  ;;  %5247 = vperm.xlu2 %7380, %v7632_v10   ;;  %5892 = vperm.xlu1 %7382, %v7631_v53   ;;  %v2043_v20 = vpop.f32.mrf.mxu2  ;;  %v5989_v53 = vmul.f32 %v12885_v59, %v15976_v50 }
 0x524   :  { %v2044_v19 = vadd.f32 %v2043_v20, %v15973_v0 }
 0x525   :  { %4231 = vmatmul.bf16.gmra.mxu2 %v4099_v1  ;;  %v3703_v21 = vpop.f32.mrf.mxu1  ;;  %v6046_v24 = vpack.c.bf16 %v5990_v46, %v5989_v53 }
 0x526   :  { %v13097_v26 = vpop.permute.xlu2 %5195  ;;  %v2824_v15 = vadd.f32 %v12379_v11, %v2044_v19  ;;  %v15978_v11 = vld [vmem:[#allocation243_spill] sm:$0xff] }
 0x527   :  { %v4717_v12 = vmul.f32 %v15979_v56, %v15978_v11  ;;  %v15981_v19 = vld [vmem:[#allocation275_spill] sm:$0xff]  ;;  %v13124_v11 = vpop.f32.mrf.mxu3 }
 0x528   :  { %v3473_v55 = vadd.f32 %v12911_v63, %v2824_v15  ;;  %v15980_v63 = vld [vmem:[#allocation16_spill] sm:$0xff]  ;;  %v15983_v15 = vld [vmem:[#allocation29_spill] sm:$0xff]  ;;  %15985 = vst [vmem:[#allocation134_spill] sm:$0xff] %v13124_v11 }
 0x529   :  { %5544 = vmatmul.bf16.gmra.mxu0 %v5400_v8  ;;  %v13105_v1 = vpop.f32.mrf.mxu0 }
 0x52a   :  { %v13107_v20 = vadd.f32 %v3703_v21, %v3473_v55  ;;  %v15982_v21 = vld [vmem:[#allocation123_spill] sm:$0xff]  ;;  %v15984_v55 = vld [vmem:[#allocation273_spill] sm:$0xff] }
 0x52b   :  { %7384 = vset.pattern.permute.xlu2 %v15643_v41  ;;  %7383 = vset.pattern.permute.xlu1 %v15636_v27  ;;  %v13111_v40 = vpop.permute.xlu1 %5828  ;;  %v2045_v59 = vpop.f32.mrf.mxu2  ;;  %v4718_v46 = vmul.f32 %v15982_v21, %v15981_v19 }
 0x52c   :  { %15977 = vst [vmem:[#allocation46_spill] sm:$0xff] %v13107_v20  ;;  %6178 = vmatmul.bf16.gmra.mxu1 %v6046_v24  ;;  %5896 = vperm.xlu2 %7384, %v7632_v10   ;;  %v2046_v32 = vadd.f32 %v2045_v59, %v15980_v63  ;;  %v4045_v20 = vmul.f32 %v15984_v55, %v15974_v30  ;;  %v13131_v59 = vpop.permute.xlu0 %5836  ;;  %v15987_v63 = vld [vmem:[#allocation242_spill] sm:$0xff] }
 0x52d   :  { %5251 = vperm.xlu1 %7383, %v12597_v58   ;;  %v3705_v0 = vpop.f32.mrf.mxu1  ;;  %v4761_v45 = vpack.c.bf16 %v4718_v46, %v4717_v12  ;;  %v15986_v58 = vld [vmem:[#allocation343_spill] sm:$0xff]  ;;  %v5348_v19 = vmul.f32 %v12989_v3, %v15987_v63  ;;  %v15989_v30 = vld [vmem:[#allocation130_spill] sm:$0xff] }
 0x52e   :  { %v13119_v8 = vpop.permute.xlu2 %5199  ;;  %v2825_v53 = vadd.f32 %v15983_v15, %v2046_v32  ;;  %v4044_v56 = vmul.f32 %v15986_v58, %v15976_v50  ;;  %v5349_v12 = vmul.f32 %v12906_v4, %v15989_v30  ;;  %v15990_v46 = vld [vmem:[#allocation251_spill] sm:$0xff]  ;;  %v15992_v55 = vld [vmem:[#allocation246_spill] sm:$0xff] }
 0x52f   :  { %v5991_v3 = vmul.f32 %v12859_v5, %v15990_v46  ;;  %v13156_v63 = vpop.f32.mrf.mxu3  ;;  %v15995_v30 = vld [vmem:[#allocation111_spill] sm:$0xff] }
 0x530   :  { %v3474_v10 = vadd.f32 %v12941_v14, %v2825_v53  ;;  %v4100_v21 = vpack.c.bf16 %v4045_v20, %v4044_v56  ;;  %v7633_v14 = vld [vmem:[%s14119_s1 + $0x178] sm:$0xff]  ;;  %v5401_v15 = vpack.c.bf16 %v5349_v12, %v5348_v19  ;;  %15993 = vst [vmem:[#allocation249_spill] sm:$0xff] %v13156_v63  ;;  %v13182_v63 = vld [vmem:[%s14123_s5] ss:$0 sm:$0xff] }
 0x531   :  { %v13127_v24 = vpop.f32.mrf.mxu0  ;;  %v15991_v20 = vld [vmem:[#allocation340_spill] sm:$0xff] }
 0x532   :  { %4945 = vmatmul.bf16.gmra.mxu3 %v4761_v45  ;;  %v13135_v32 = vadd.f32 %v3705_v0, %v3474_v10 }
 0x534   :  { %15988 = vst [vmem:[#allocation292_spill] sm:$0xff] %v13135_v32  ;;  %7385 = vset.pattern.permute.xlu2 %v15636_v27  ;;  %v13161_v19 = vpop.permute.xlu0 %5840 }
 0x535   :  { %5255 = vperm.xlu1 %7383, %v12623_v29   ;;  %5259 = vperm.xlu2 %7385, %v7633_v14   ;;  %v13144_v50 = vpop.permute.xlu1 %5187  ;;  %v4197_v45 = vpop.f32.mrf.mxu2  ;;  %v5992_v29 = vmul.f32 %v12772_v18, %v15992_v55  ;;  %v7281_v18 = vld [vmem:[%s14124_s6 + $0x38] sm:$0xff] }
 0x536   :  { %4236 = vmatmul.bf16.gmra.mxu2 %v4100_v21  ;;  %v4357_v0 = vadd.f32 %v4197_v45, %v15991_v20  ;;  %v15994_v21 = vld [vmem:[#allocation191_spill] sm:$0xff]  ;;  %v15996_v20 = vld [vmem:[#allocation52_spill] sm:$0xff] }
 0x537   :  { %v13149_v53 = vpop.permute.xlu2 %5852  ;;  %v6144_v4 = vpop.f32.mrf.mxu1  ;;  %v6047_v56 = vpack.c.bf16 %v5992_v29, %v5991_v3  ;;  %v4719_v45 = vmul.f32 %v15995_v30, %v15994_v21  ;;  %6652 = vmatpush.bf16.msrb.mxu2 %v7281_v18  ;;  %v16000_v21 = vld [vmem:[#allocation345_spill] sm:$0xff] }
 0x538   :  { %v5006_v10 = vadd.f32 %v12445_v33, %v4357_v0  ;;  %v7634_v33 = vld [vmem:[%s14119_s1 + $0x180] sm:$0xff]  ;;  %v4047_v30 = vmul.f32 %v16000_v21, %v15992_v55  ;;  %v13192_v55 = vpop.f32.mrf.mxu3 }
 0x539   :  { %5549 = vmatmul.bf16.gmra.mxu0 %v5401_v15  ;;  %v13154_v58 = vpop.f32.mrf.mxu0  ;;  %v15997_v0 = vld [vmem:[#allocation117_spill] sm:$0xff]  ;;  %16002 = vst [vmem:[#allocation105_spill] sm:$0xff] %v13192_v55 }
 0x53a   :  { %v5655_v5 = vadd.f32 %v12972_v51, %v5006_v10  ;;  %v4720_v15 = vmul.f32 %v15997_v0, %v15996_v20 }
 0x53c   :  { %v6304_v12 = vadd.f32 %v6144_v4, %v5655_v5  ;;  %6183 = vmatmul.bf16.gmra.mxu1 %v6047_v56  ;;  %v15998_v4 = vld [vmem:[#allocation342_spill] sm:$0xff]  ;;  %v15999_v56 = vld [vmem:[#allocation195_spill] sm:$0xff]  ;;  %v4762_v32 = vpack.c.bf16 %v4720_v15, %v4719_v45 }
 0x53d   :  { %7386 = vset.pattern.permute.xlu1 %v15643_v41  ;;  %5263 = vperm.xlu2 %7385, %v7634_v33   ;;  %v13170_v3 = vpop.permute.xlu1 %5191  ;;  %v4199_v51 = vpop.f32.mrf.mxu2  ;;  %v4046_v5 = vmul.f32 %v15999_v56, %v15990_v46 }
 0x53e   :  { %5908 = vperm.xlu1 %7386, %v7633_v14   ;;  %v4358_v29 = vadd.f32 %v4199_v51, %v15998_v4  ;;  %v16001_v51 = vld [vmem:[#allocation252_spill] sm:$0xff]  ;;  %v6372_v45 = vadd.f32 %v13182_v63, %v6304_v12 }
 0x53f   :  { %v6146_v10 = vpop.f32.mrf.mxu1  ;;  %v5350_v46 = vmul.f32 %v12938_v48, %v16001_v51  ;;  %v4101_v0 = vpack.c.bf16 %v4047_v30, %v4046_v5  ;;  %v16003_v4 = vld [vmem:[#allocation248_spill] sm:$0xff] }
 0x540   :  { %v5007_v11 = vadd.f32 %v12477_v23, %v4358_v29  ;;  %v13185_v20 = vpop.permute.xlu2 %5211  ;;  %v5351_v56 = vmul.f32 %v13070_v31, %v16003_v4  ;;  %v13198_v23 = vpop.permute.xlu0 %5203  ;;  %v16004_v29 = vld [vmem:[#allocation142_spill] sm:$0xff]  ;;  %v16005_v5 = vld [vmem:[#allocation260_spill] sm:$0xff]  ;;  %v6436_v21 = vmax.f32 %v6372_v45, 0.0  ;;  %v16010_v45 = vld [vmem:[#allocation335_spill] sm:$0xff] }
 0x541   :  { %v13187_v14 = vpop.f32.mrf.mxu0  ;;  %v5993_v31 = vmul.f32 %v12961_v16, %v16005_v5  ;;  %v16009_v16 = vld [vmem:[#allocation73_spill] sm:$0xff]  ;;  %v13219_v2 = vpop.f32.mrf.mxu3 }
 0x542   :  { %v5656_v18 = vadd.f32 %v12998_v7, %v5007_v11  ;;  %4950 = vmatmul.bf16.gmra.mxu3 %v4762_v32  ;;  %v5994_v7 = vmul.f32 %v12931_v52, %v16004_v29  ;;  %v5402_v32 = vpack.c.bf16 %v5351_v56, %v5350_v46  ;;  %16011 = vst [vmem:[#allocation208_spill] sm:$0xff] %v13219_v2  ;;  %v16020_v2 = vld [vmem:[#allocation258_spill] sm:$0xff] }
 0x544   :  { %v6305_v15 = vadd.f32 %v6146_v10, %v5656_v18  ;;  %v16006_v18 = vld [vmem:[#allocation344_spill] sm:$0xff] }
 0x545   :  { %7388 = vset.pattern.permute.xlu2 %v15643_v41 }
 0x546   :  { %v6373_v11 = vadd.f32 %v13182_v63, %v6305_v15  ;;  %5912 = vperm.xlu1 %7386, %v7634_v33   ;;  %4241 = vmatmul.bf16.gmra.mxu2 %v4101_v0  ;;  %v13203_v48 = vpop.permute.xlu1 %5844  ;;  %v6048_v33 = vpack.c.bf16 %v5994_v7, %v5993_v31  ;;  %v16007_v15 = vld [vmem:[#allocation261_spill] sm:$0xff] }
 0x547   :  { %5916 = vperm.xlu2 %7388, %v12662_v35   ;;  %v4202_v12 = vpop.f32.mrf.mxu2  ;;  %v6149_v10 = vpop.f32.mrf.mxu1  ;;  %v16008_v35 = vld [vmem:[#allocation182_spill] sm:$0xff] }
 0x548   :  { %v6437_v30 = vmax.f32 %v6373_v11, 0.0  ;;  %v4359_v51 = vadd.f32 %v4202_v12, %v16006_v18  ;;  %v13209_v4 = vpop.permute.xlu2 %5215  ;;  %v4722_v56 = vmul.f32 %v16008_v35, %v16007_v15  ;;  %v4721_v11 = vmul.f32 %v16010_v45, %v16009_v16  ;;  %v16012_v18 = vld [vmem:[#allocation21_spill] sm:$0xff]  ;;  %v13238_v15 = vpop.permute.xlu0 %5856  ;;  %v16018_v16 = vld [vmem:[#allocation256_spill] sm:$0xff] }
 0x549   :  { %5554 = vmatmul.bf16.gmra.mxu0 %v5402_v32  ;;  %v13211_v52 = vpop.f32.mrf.mxu0  ;;  %v13224_v7 = vmul.f32 %v13149_v53, %v16012_v18  ;;  %v7635_v53 = vld [vmem:[%s14119_s1 + $0x198] sm:$0xff]  ;;  %16016 = vst [vmem:[#allocation61_spill] sm:$0xff] %v13238_v15 }
 0x54a   :  { %v6500_v0 = vadd.f32 %v6437_v30, %v6436_v21  ;;  %v5008_v46 = vadd.f32 %v12507_v9, %v4359_v51  ;;  %v16013_v9 = vld [vmem:[#allocation304_spill] sm:$0xff]  ;;  %v16014_v30 = vld [vmem:[#allocation353_spill] sm:$0xff] }
 0x54b   :  { %v4048_v51 = vmul.f32 %v16014_v30, %v16005_v5  ;;  %v4049_v5 = vmul.f32 %v16018_v16, %v16004_v29 }
 0x54c   :  { %v5657_v55 = vadd.f32 %v13021_v57, %v5008_v46  ;;  %6188 = vmatmul.bf16.gmra.mxu1 %v6048_v33  ;;  %v16015_v33 = vld [vmem:[#allocation346_spill] sm:$0xff] }
 0x54e   :  { %v6306_v12 = vadd.f32 %v6149_v10, %v5657_v55  ;;  %7389 = vset.pattern.permute.xlu1 %v15636_v27  ;;  %v5849_v32 = vpop.permute.xlu1 %5848  ;;  %v4763_v55 = vpack.c.bf16 %v4722_v56, %v4721_v11 }
 0x54f   :  { %7390 = vset.pattern.permute.xlu2 %v15636_v27  ;;  %5271 = vperm.xlu1 %7389, %v12696_v38   ;;  %v13229_v57 = vmul.f32 %v5849_v32, %v16013_v9  ;;  %v4204_v31 = vpop.f32.mrf.mxu2  ;;  %v6151_v21 = vpop.f32.mrf.mxu1  ;;  %v5353_v38 = vmul.f32 %v13004_v43, %v16020_v2 }
 0x550   :  { %v6374_v10 = vadd.f32 %v13182_v63, %v6306_v12  ;;  %5275 = vperm.xlu2 %7390, %v7635_v53   ;;  %v4360_v46 = vadd.f32 %v4204_v31, %v16015_v33  ;;  %v16019_v12 = vld [vmem:[#allocation66_spill] sm:$0xff]  ;;  %v4102_v31 = vpack.c.bf16 %v4049_v5, %v4048_v51  ;;  %v13263_v2 = vpop.f32.mrf.mxu3  ;;  %v16026_v5 = vld [vmem:[#allocation331_spill] sm:$0xff] }
 0x551   :  { %v13242_v35 = vpop.permute.xlu2 %5864  ;;  %v5352_v32 = vmul.f32 %v13081_v28, %v16019_v12  ;;  %16023 = vst [vmem:[#allocation177_spill] sm:$0xff] %v13263_v2  ;;  %v16028_v12 = vld [vmem:[#allocation321_spill] sm:$0xff] }
 0x552   :  { %16017 = vst [vmem:[#allocation106_spill] sm:$0xff] %v13242_v35  ;;  %v6438_v56 = vmax.f32 %v6374_v10, 0.0  ;;  %v5009_v45 = vadd.f32 %v12546_v25, %v4360_v46  ;;  %4955 = vmatmul.bf16.gmra.mxu3 %v4763_v55  ;;  %v13247_v11 = vpop.f32.mrf.mxu0  ;;  %v16021_v35 = vld [vmem:[#allocation145_spill] sm:$0xff]  ;;  %v16022_v55 = vld [vmem:[#allocation156_spill] sm:$0xff] }
 0x553   :  { %v5995_v15 = vmul.f32 %v12878_v54, %v16021_v35  ;;  %v5403_v10 = vpack.c.bf16 %v5353_v38, %v5352_v32  ;;  %v5996_v46 = vmul.f32 %v13000_v62, %v16022_v55  ;;  %v7636_v54 = vld [vmem:[%s14119_s1 + $0x1a0] sm:$0xff] }
 0x554   :  { %v6501_v30 = vadd.f32 %v6500_v0, %v6438_v56  ;;  %v5658_v33 = vadd.f32 %v13043_v44, %v5009_v45  ;;  %v16024_v0 = vld [vmem:[#allocation348_spill] sm:$0xff]  ;;  %v16027_v45 = vld [vmem:[#allocation299_spill] sm:$0xff] }
 0x555   :  { %v6049_v51 = vpack.c.bf16 %v5996_v46, %v5995_v15  ;;  %v4723_v32 = vmul.f32 %v16028_v12, %v16027_v45 }
 0x556   :  { %v6307_v29 = vadd.f32 %v6151_v21, %v5658_v33  ;;  %4246 = vmatmul.bf16.gmra.mxu2 %v4102_v31 }
 0x557   :  { %7392 = vset.pattern.permute.xlu1 %v15643_v41  ;;  %v6154_v25 = vpop.f32.mrf.mxu1 }
 0x558   :  { %v6375_v28 = vadd.f32 %v13182_v63, %v6307_v29  ;;  %7393 = vset.pattern.permute.xlu2 %v15905_v34  ;;  %5924 = vperm.xlu1 %7392, %v7635_v53   ;;  %v13261_v44 = vpop.permute.xlu1 %5207  ;;  %v4207_v43 = vpop.f32.mrf.mxu2  ;;  %v16029_v29 = vld [vmem:[#allocation322_spill] sm:$0xff] }
 0x559   :  { %4630 = vperm.xlu2 %7393, %v7636_v54   ;;  %v4361_v21 = vadd.f32 %v4207_v43, %v16024_v0  ;;  %5559 = vmatmul.bf16.gmra.mxu0 %v5403_v10  ;;  %v13273_v53 = vpop.permute.xlu0 %5868  ;;  %v16030_v43 = vld [vmem:[#allocation315_spill] sm:$0xff] }
 0x55a   :  { %v6439_v62 = vmax.f32 %v6375_v28, 0.0  ;;  %v13269_v38 = vpop.permute.xlu2 %5227  ;;  %v13271_v16 = vpop.f32.mrf.mxu0  ;;  %16025 = vst [vmem:[#allocation152_spill] sm:$0xff] %v13273_v53  ;;  %v4724_v10 = vmul.f32 %v16030_v43, %v16029_v29  ;;  %v16031_v28 = vld [vmem:[#allocation356_spill] sm:$0xff] }
 0x55b   :  { %v5010_v56 = vadd.f32 %v16026_v5, %v4361_v21  ;;  %v4051_v0 = vmul.f32 %v16031_v28, %v16022_v55  ;;  %v16035_v55 = vld [vmem:[#allocation262_spill] sm:$0xff]  ;;  %v13297_v43 = vpop.f32.mrf.mxu3 }
 0x55c   :  { %v6502_v31 = vadd.f32 %v6501_v30, %v6439_v62  ;;  %6193 = vmatmul.bf16.gmra.mxu1 %v6049_v51  ;;  %v4764_v2 = vpack.c.bf16 %v4724_v10, %v4723_v32  ;;  %v16032_v30 = vld [vmem:[#allocation319_spill] sm:$0xff]  ;;  %v16033_v51 = vld [vmem:[#allocation350_spill] sm:$0xff]  ;;  %v5355_v45 = vmul.f32 %v13144_v50, %v16035_v55  ;;  %16037 = vst [vmem:[#allocation56_spill] sm:$0xff] %v13297_v43  ;;  %v16041_v43 = vld [vmem:[#allocation352_spill] sm:$0xff] }
 0x55d   :  { %v5659_v33 = vadd.f32 %v13078_v22, %v5010_v56  ;;  %v16036_v32 = vld [vmem:[#allocation131_spill] sm:$0xff] }
 0x55f   :  { %v6308_v15 = vadd.f32 %v6154_v25, %v5659_v33  ;;  %v6156_v46 = vpop.f32.mrf.mxu1  ;;  %v16034_v25 = vld [vmem:[#allocation347_spill] sm:$0xff] }
 0x560   :  { %7394 = vset.pattern.permute.xlu1 %v15905_v34  ;;  %v4209_v53 = vpop.f32.mrf.mxu2  ;;  %v4050_v5 = vmul.f32 %v16034_v25, %v16021_v35 }
 0x561   :  { %v6376_v21 = vadd.f32 %v13182_v63, %v6308_v15  ;;  %7395 = vset.pattern.permute.xlu2 %v15636_v27  ;;  %4634 = vperm.xlu1 %7394, %v16032_v30   ;;  %v4362_v22 = vadd.f32 %v4209_v53, %v16033_v51  ;;  %v13288_v62 = vpop.permute.xlu1 %5860  ;;  %v13301_v53 = vpop.permute.xlu0 %5872  ;;  %v16038_v15 = vld [vmem:[#allocation158_spill] sm:$0xff] }
 0x562   :  { %5279 = vperm.xlu2 %7395, %v7636_v54   ;;  %v13292_v56 = vpop.permute.xlu2 %5231  ;;  %4960 = vmatmul.bf16.gmra.mxu3 %v4764_v2  ;;  %v4103_v29 = vpack.c.bf16 %v4051_v0, %v4050_v5  ;;  %v5354_v35 = vmul.f32 %v13029_v42, %v16038_v15  ;;  %v16039_v2 = vld [vmem:[#allocation267_spill] sm:$0xff]  ;;  %v16040_v0 = vld [vmem:[#allocation269_spill] sm:$0xff] }
 0x563   :  { %v6440_v12 = vmax.f32 %v6376_v21, 0.0  ;;  %v5011_v33 = vadd.f32 %v16036_v32, %v4362_v22  ;;  %v5998_v25 = vmul.f32 %v13019_v13, %v16039_v2  ;;  %v5997_v5 = vmul.f32 %v13031_v61, %v16040_v0 }
 0x564   :  { %v13299_v10 = vpop.f32.mrf.mxu0  ;;  %v5404_v50 = vpack.c.bf16 %v5355_v45, %v5354_v35 }
 0x565   :  { %v6503_v28 = vadd.f32 %v6502_v31, %v6440_v12  ;;  %v5660_v51 = vadd.f32 %v13105_v1, %v5011_v33  ;;  %v6050_v31 = vpack.c.bf16 %v5998_v25, %v5997_v5  ;;  %v16043_v12 = vld [vmem:[#allocation263_spill] sm:$0xff] }
 0x566   :  { %4251 = vmatmul.bf16.gmra.mxu2 %v4103_v29  ;;  %v16044_v33 = vld [vmem:[#allocation19_spill] sm:$0xff] }
 0x567   :  { %v6309_v21 = vadd.f32 %v6156_v46, %v5660_v51  ;;  %v6159_v22 = vpop.f32.mrf.mxu1  ;;  %v16042_v46 = vld [vmem:[#allocation196_spill] sm:$0xff]  ;;  %v4725_v29 = vmul.f32 %v16044_v33, %v16043_v12  ;;  %v16045_v51 = vld [vmem:[#allocation78_spill] sm:$0xff]  ;;  %v16051_v33 = vld [vmem:[#allocation149_spill] sm:$0xff] }
 0x568   :  { %v4212_v55 = vpop.f32.mrf.mxu2 }
 0x569   :  { %v6377_v32 = vadd.f32 %v13182_v63, %v6309_v21  ;;  %7397 = vset.pattern.permute.xlu1 %v15643_v41  ;;  %v4363_v42 = vadd.f32 %v4212_v55, %v16041_v43  ;;  %5564 = vmatmul.bf16.gmra.mxu0 %v5404_v50  ;;  %v13327_v50 = vpop.f32.mrf.mxu3  ;;  %v13329_v21 = vpop.permute.xlu0 %5235  ;;  %v16048_v55 = vld [vmem:[#allocation114_spill] sm:$0xff] }
 0x56a   :  { %7398 = vset.pattern.permute.xlu2 %v15643_v41  ;;  %5928 = vperm.xlu1 %7397, %v7636_v54   ;;  %v13314_v13 = vpop.permute.xlu1 %5219  ;;  %v16046_v54 = vld [vmem:[#allocation311_spill] sm:$0xff]  ;;  %16047 = vst [vmem:[#allocation135_spill] sm:$0xff] %v13327_v50 }
 0x56b   :  { %v6441_v1 = vmax.f32 %v6377_v32, 0.0  ;;  %v5012_v45 = vadd.f32 %v16042_v46, %v4363_v42  ;;  %5932 = vperm.xlu2 %7398, %v16032_v30   ;;  %v13318_v61 = vpop.permute.xlu2 %5884  ;;  %v4726_v25 = vmul.f32 %v16046_v54, %v16045_v51  ;;  %v4052_v32 = vmul.f32 %v16048_v55, %v16040_v0  ;;  %v16049_v42 = vld [vmem:[#allocation349_spill] sm:$0xff]  ;;  %v16052_v51 = vld [vmem:[#allocation126_spill] sm:$0xff] }
 0x56c   :  { %6198 = vmatmul.bf16.gmra.mxu1 %v6050_v31  ;;  %v13322_v15 = vpop.f32.mrf.mxu0  ;;  %v4053_v31 = vmul.f32 %v16049_v42, %v16039_v2  ;;  %v16053_v2 = vld [vmem:[#allocation30_spill] sm:$0xff]  ;;  %v16054_v54 = vld [vmem:[#allocation201_spill] sm:$0xff] }
 0x56d   :  { %v6504_v43 = vadd.f32 %v6503_v28, %v6441_v1  ;;  %v5661_v35 = vadd.f32 %v13127_v24, %v5012_v45  ;;  %v4765_v46 = vpack.c.bf16 %v4726_v25, %v4725_v29  ;;  %v16050_v24 = vld [vmem:[#allocation355_spill] sm:$0xff]  ;;  %v16055_v25 = vld [vmem:[#allocation150_spill] sm:$0xff] }
 0x56e   :  { %v4104_v29 = vpack.c.bf16 %v4053_v31, %v4052_v32 }
 0x56f   :  { %v6310_v5 = vadd.f32 %v6159_v22, %v5661_v35  ;;  %v6161_v30 = vpop.f32.mrf.mxu1  ;;  %v5356_v22 = vmul.f32 %v13170_v3, %v16051_v33 }
 0x570   :  { %v4214_v12 = vpop.f32.mrf.mxu2 }
 0x571   :  { %v6378_v28 = vadd.f32 %v13182_v63, %v6310_v5  ;;  %v4364_v1 = vadd.f32 %v4214_v12, %v16050_v24  ;;  %v5357_v5 = vmul.f32 %v13097_v26, %v16055_v25  ;;  %v13355_v32 = vpop.permute.xlu0 %5888 }
 0x572   :  { %7399 = vset.pattern.permute.xlu1 %v15905_v34  ;;  %v13338_v45 = vpop.permute.xlu1 %5223  ;;  %4965 = vmatmul.bf16.gmra.mxu3 %v4765_v46 }
 0x573   :  { %v6442_v35 = vmax.f32 %v6378_v28, 0.0  ;;  %v5013_v0 = vadd.f32 %v16052_v51, %v4364_v1  ;;  %7400 = vset.pattern.permute.xlu2 %v15905_v34  ;;  %4638 = vperm.xlu1 %7399, %v16053_v2   ;;  %v5405_v12 = vpack.c.bf16 %v5357_v5, %v5356_v22  ;;  %v13353_v1 = vpop.f32.mrf.mxu3  ;;  %v16057_v51 = vld [vmem:[#allocation358_spill] sm:$0xff]  ;;  %v16059_v22 = vld [vmem:[#allocation103_spill] sm:$0xff]  ;;  %v16061_v5 = vpack.c.bf16 %v13047_v6, %v13052_v37 }
 0x574   :  { %4642 = vperm.xlu2 %7400, %v16054_v54   ;;  %16056 = vst [vmem:[#allocation272_spill] sm:$0xff] %v13353_v1  ;;  %v16064_v6 = vld [vmem:[#allocation359_spill] sm:$0xff] }
 0x575   :  { %v6505_v55 = vadd.f32 %v6504_v43, %v6442_v35  ;;  %v5662_v42 = vadd.f32 %v13154_v58, %v5013_v0  ;;  %v13349_v46 = vpop.permute.xlu2 %5243  ;;  %v13351_v3 = vpop.f32.mrf.mxu0  ;;  %v16058_v58 = vld [vmem:[#allocation239_spill] sm:$0xff]  ;;  %v4054_v37 = vmul.f32 %v16064_v6, %v15961_v39  ;;  %v16071_v6 = vld [vmem:[#allocation185_spill] sm:$0xff] }
 0x576   :  { %4256 = vmatmul.bf16.gmra.mxu2 %v4104_v29 }
 0x577   :  { %v6311_v28 = vadd.f32 %v6161_v30, %v5662_v42  ;;  %v6164_v24 = vpop.f32.mrf.mxu1  ;;  %v16060_v30 = vld [vmem:[#allocation298_spill] sm:$0xff] }
 0x578   :  { %v4217_v33 = vpop.f32.mrf.mxu2  ;;  %v4728_v2 = vmul.f32 %v16060_v30, %v16059_v22  ;;  %v7637_v42 = vld [vmem:[%s14119_s1 + $0x1b0] sm:$0xff]  ;;  %v16066_v30 = vld [vmem:[#allocation141_spill] sm:$0xff] }
 0x579   :  { %v6379_v31 = vadd.f32 %v13182_v63, %v6311_v28  ;;  %v4365_v26 = vadd.f32 %v4217_v33, %v16057_v51  ;;  %5569 = vmatmul.bf16.gmra.mxu0 %v5405_v12  ;;  %v7280_v28 = vld [vmem:[%s14124_s6 + $0x30] sm:$0xff] }
 0x57a   :  { %v16062_v33 = vld [vmem:[#allocation303_spill] sm:$0xff]  ;;  %6653 = vmatpush.bf16.msrb.mxu2 %v7280_v28  ;;  %v16069_v28 = vld [vmem:[#allocation132_spill] sm:$0xff] }
 0x57b   :  { %v6443_v43 = vmax.f32 %v6379_v31, 0.0  ;;  %v5014_v35 = vadd.f32 %v16058_v58, %v4365_v26  ;;  %7401 = vset.pattern.permute.xlu1 %v15636_v27  ;;  %v13361_v0 = vpop.permute.xlu1 %5876 }
 0x57c   :  { %7402 = vset.pattern.permute.xlu2 %v15643_v41  ;;  %5291 = vperm.xlu1 %7401, %v16054_v54   ;;  %v16063_v54 = vld [vmem:[#allocation189_spill] sm:$0xff] }
 0x57d   :  { %v6506_v29 = vadd.f32 %v6505_v55, %v6443_v43  ;;  %v5663_v25 = vadd.f32 %v13187_v14, %v5014_v35  ;;  %6203 = vmatmul.bf16.gmra.mxu1 %v16061_v5  ;;  %5936 = vperm.xlu2 %7402, %v7637_v42   ;;  %v13374_v12 = vpop.permute.xlu2 %5247  ;;  %v4727_v55 = vmul.f32 %v16063_v54, %v16062_v33  ;;  %v13381_v31 = vpop.f32.mrf.mxu0  ;;  %v16065_v35 = vld [vmem:[#allocation361_spill] sm:$0xff]  ;;  %v16068_v54 = vld [vmem:[#allocation40_spill] sm:$0xff] }
 0x57e   :  { %v4055_v5 = vmul.f32 %v16066_v30, %v15960_v36  ;;  %v13389_v42 = vpop.f32.mrf.mxu3  ;;  %v5901_v33 = vpop.permute.xlu0 %5900  ;;  %v7638_v30 = vld [vmem:[%s14119_s1 + $0x1c8] sm:$0xff] }
 0x57f   :  { %v6312_v14 = vadd.f32 %v6164_v24, %v5663_v25  ;;  %v6166_v51 = vpop.f32.mrf.mxu1  ;;  %v4766_v26 = vpack.c.bf16 %v4728_v2, %v4727_v55  ;;  %16067 = vst [vmem:[#allocation241_spill] sm:$0xff] %v13389_v42  ;;  %v5358_v24 = vmul.f32 %v13119_v8, %v16068_v54  ;;  %v16070_v55 = vld [vmem:[#allocation38_spill] sm:$0xff] }
 0x580   :  { %v4219_v43 = vpop.f32.mrf.mxu2  ;;  %v4105_v2 = vpack.c.bf16 %v4055_v5, %v4054_v37  ;;  %v16074_v37 = vld [vmem:[#allocation206_spill] sm:$0xff] }
 0x581   :  { %v6380_v58 = vadd.f32 %v13182_v63, %v6312_v14  ;;  %v4366_v22 = vadd.f32 %v4219_v43, %v16065_v35  ;;  %v13396_v14 = vmul.f32 %v13318_v61, %v16070_v55  ;;  %v16072_v43 = vld [vmem:[#allocation45_spill] sm:$0xff] }
 0x582   :  { %4970 = vmatmul.bf16.gmra.mxu3 %v4766_v26  ;;  %v5359_v26 = vmul.f32 %v13198_v23, %v16072_v43  ;;  %v16079_v43 = vld [vmem:[#allocation279_spill] sm:$0xff] }
 0x583   :  { %v6444_v25 = vmax.f32 %v6380_v58, 0.0  ;;  %v5015_v1 = vadd.f32 %v16069_v28, %v4366_v22  ;;  %v5881_v39 = vpop.permute.xlu1 %5880  ;;  %v16073_v58 = vld [vmem:[#allocation234_spill] sm:$0xff]  ;;  %v13408_v22 = vmul.f32 %v5901_v33, %v16074_v37  ;;  %v16080_v37 = vld [vmem:[#allocation364_spill] sm:$0xff] }
 0x584   :  { %7404 = vset.pattern.permute.xlu1 %v15905_v34  ;;  %v13400_v36 = vmul.f32 %v5881_v39, %v16071_v6  ;;  %v5406_v5 = vpack.c.bf16 %v5359_v26, %v5358_v24  ;;  %v16081_v24 = vld [vmem:[#allocation102_spill] sm:$0xff] }
 0x585   :  { %v6507_v35 = vadd.f32 %v6506_v29, %v6444_v25  ;;  %v5664_v8 = vadd.f32 %v13211_v52, %v5015_v1  ;;  %7405 = vset.pattern.permute.xlu2 %v15905_v34  ;;  %4646 = vperm.xlu1 %7404, %v16073_v58   ;;  %16075 = vst [vmem:[#allocation109_spill] sm:$0xff] %v13408_v22  ;;  %v16076_v52 = vld [vmem:[#allocation6_spill] sm:$0xff]  ;;  %v16077_v25 = vld [vmem:[#allocation25_spill] sm:$0xff] }
 0x586   :  { %4650 = vperm.xlu2 %7405, %v7638_v30   ;;  %4261 = vmatmul.bf16.gmra.mxu2 %v4105_v2  ;;  %v5897_v23 = vpop.permute.xlu2 %5896  ;;  %v13415_v29 = vpop.f32.mrf.mxu0  ;;  %v6002_v1 = vmul.f32 %v13111_v40, %v16076_v52  ;;  %v6001_v58 = vmul.f32 %v13102_v17, %v16079_v43  ;;  %v16082_v26 = vld [vmem:[#allocation90_spill] sm:$0xff] }
 0x587   :  { %v6313_v54 = vadd.f32 %v6166_v51, %v5664_v8  ;;  %v13420_v33 = vmul.f32 %v5897_v23, %v16077_v25  ;;  %v6169_v28 = vpop.f32.mrf.mxu1  ;;  %v13431_v8 = vmul.f32 %v13349_v46, %v16082_v26  ;;  %v16087_v26 = vld [vmem:[#allocation8_spill] sm:$0xff] }
 0x588   :  { %v4222_v39 = vpop.f32.mrf.mxu2  ;;  %v6052_v50 = vpack.c.bf16 %v6002_v1, %v6001_v58  ;;  %v16085_v58 = vld [vmem:[#allocation365_spill] sm:$0xff] }
 0x589   :  { %16078 = vst [vmem:[#allocation39_spill] sm:$0xff] %v13420_v33  ;;  %v6381_v61 = vadd.f32 %v13182_v63, %v6313_v54  ;;  %v4367_v42 = vadd.f32 %v4222_v39, %v16080_v37  ;;  %5574 = vmatmul.bf16.gmra.mxu0 %v5406_v5  ;;  %v16083_v54 = vld [vmem:[#allocation174_spill] sm:$0xff] }
 0x58b   :  { %v6445_v40 = vmax.f32 %v6381_v61, 0.0  ;;  %v5016_v51 = vadd.f32 %v16081_v24, %v4367_v42  ;;  %v7639_v42 = vld [vmem:[%s14119_s1 + $0x1c0] sm:$0xff]  ;;  %v16084_v61 = vld [vmem:[#allocation362_spill] sm:$0xff]  ;;  %v16086_v24 = vld [vmem:[#allocation351_spill] sm:$0xff] }
 0x58c   :  { %v5240_v23 = vpop.permute.xlu1 %5239  ;;  %v4057_v1 = vmul.f32 %v16084_v61, %v16076_v52 }
 0x58d   :  { %v6508_v25 = vadd.f32 %v6507_v35, %v6445_v40  ;;  %v5665_v17 = vadd.f32 %v13247_v11, %v5016_v51  ;;  %6208 = vmatmul.bf16.gmra.mxu1 %v6052_v50  ;;  %7406 = vset.pattern.permute.xlu1 %v15636_v27  ;;  %v13436_v2 = vmul.f32 %v5240_v23, %v16083_v54  ;;  %v16089_v35 = vld [vmem:[#allocation55_spill] sm:$0xff] }
 0x58e   :  { %7407 = vset.pattern.permute.xlu2 %v15636_v27  ;;  %5295 = vperm.xlu1 %7406, %v7639_v42   ;;  %v13442_v37 = vpop.f32.mrf.mxu0  ;;  %v4056_v51 = vmul.f32 %v16086_v24, %v16079_v43  ;;  %v5361_v33 = vmul.f32 %v13185_v20, %v16089_v35  ;;  %v16091_v43 = vld [vmem:[#allocation44_spill] sm:$0xff]  ;;  %v7640_v35 = vld [vmem:[%s14119_s1 + $0x1d0] sm:$0xff] }
 0x58f   :  { %v6314_v46 = vadd.f32 %v6169_v28, %v5665_v17  ;;  %5299 = vperm.xlu2 %7407, %v7638_v30   ;;  %v13446_v11 = vpop.permute.xlu2 %5259  ;;  %v6171_v50 = vpop.f32.mrf.mxu1  ;;  %v5360_v28 = vmul.f32 %v13261_v44, %v16087_v26  ;;  %v16088_v17 = vld [vmem:[#allocation82_spill] sm:$0xff] }
 0x590   :  { %v4224_v5 = vpop.f32.mrf.mxu2  ;;  %v4106_v42 = vpack.c.bf16 %v4057_v1, %v4056_v51  ;;  %v16092_v1 = vld [vmem:[#allocation18_spill] sm:$0xff]  ;;  %v16093_v51 = vld [vmem:[#allocation285_spill] sm:$0xff] }
 0x591   :  { %v6382_v39 = vadd.f32 %v13182_v63, %v6314_v46  ;;  %v4368_v40 = vadd.f32 %v4224_v5, %v16085_v58  ;;  %v16090_v46 = vld [vmem:[#allocation194_spill] sm:$0xff]  ;;  %v5407_v20 = vpack.c.bf16 %v5361_v33, %v5360_v28 }
 0x592   :  { %v13462_v5 = vmul.f32 %v13355_v32, %v16090_v46 }
 0x593   :  { %v6446_v23 = vmax.f32 %v6382_v39, 0.0  ;;  %v5017_v54 = vadd.f32 %v16088_v17, %v4368_v40  ;;  %v6003_v39 = vmul.f32 %v13065_v47, %v16092_v1  ;;  %v6004_v47 = vmul.f32 %v13131_v59, %v16093_v51 }
 0x595   :  { %v6509_v22 = vadd.f32 %v6508_v25, %v6446_v23  ;;  %v5666_v52 = vadd.f32 %v13271_v16, %v5017_v54  ;;  %v5893_v61 = vpop.permute.xlu1 %5892  ;;  %v16095_v23 = vld [vmem:[#allocation326_spill] sm:$0xff] }
 0x596   :  { %7408 = vset.pattern.permute.xlu1 %v15643_v41  ;;  %v13466_v58 = vmul.f32 %v5893_v61, %v16091_v43  ;;  %4266 = vmatmul.bf16.gmra.mxu2 %v4106_v42  ;;  %v13468_v44 = vpop.f32.mrf.mxu0  ;;  %v16096_v61 = vld [vmem:[#allocation215_spill] sm:$0xff] }
 0x597   :  { %v6315_v25 = vadd.f32 %v6171_v50, %v5666_v52  ;;  %7409 = vset.pattern.permute.xlu2 %v15905_v34  ;;  %5948 = vperm.xlu1 %7408, %v7638_v30   ;;  %v13473_v16 = vpop.permute.xlu2 %5263  ;;  %v16094_v50 = vld [vmem:[#allocation368_spill] sm:$0xff]  ;;  %v6053_v30 = vpack.c.bf16 %v6004_v47, %v6003_v39  ;;  %v4058_v32 = vmul.f32 %v16096_v61, %v16092_v1 }
 0x598   :  { %4654 = vperm.xlu2 %7409, %v7640_v35   ;;  %v4227_v40 = vpop.f32.mrf.mxu2  ;;  %v6174_v24 = vpop.f32.mrf.mxu1  ;;  %v16098_v39 = vld [vmem:[#allocation184_spill] sm:$0xff] }
 0x599   :  { %v6383_v33 = vadd.f32 %v13182_v63, %v6315_v25  ;;  %v4369_v26 = vadd.f32 %v4227_v40, %v16094_v50  ;;  %5579 = vmatmul.bf16.gmra.mxu0 %v5407_v20  ;;  %v16097_v25 = vld [vmem:[#allocation354_spill] sm:$0xff]  ;;  %v13495_v40 = vmul.f32 %v13374_v12, %v16098_v39  ;;  %v16100_v50 = vld [vmem:[#allocation369_spill] sm:$0xff] }
 0x59a   :  { %v4059_v20 = vmul.f32 %v16097_v25, %v16093_v51  ;;  %v16102_v25 = vld [vmem:[#allocation157_spill] sm:$0xff] }
 0x59b   :  { %v6447_v28 = vmax.f32 %v6383_v33, 0.0  ;;  %v5018_v17 = vadd.f32 %v16095_v23, %v4369_v26  ;;  %v5905_v26 = vpop.permute.xlu0 %5904  ;;  %v5362_v39 = vmul.f32 %v13209_v4, %v16102_v25  ;;  %v16106_v4 = vld [vmem:[#allocation9_spill] sm:$0xff] }
 0x59d   :  { %v6510_v54 = vadd.f32 %v6509_v22, %v6447_v28  ;;  %v5667_v42 = vadd.f32 %v13299_v10, %v5018_v17  ;;  %6213 = vmatmul.bf16.gmra.mxu1 %v6053_v30  ;;  %v16099_v22 = vld [vmem:[#allocation183_spill] sm:$0xff]  ;;  %v4107_v17 = vpack.c.bf16 %v4059_v20, %v4058_v32  ;;  %v6005_v20 = vmul.f32 %v13161_v19, %v16106_v4 }
 0x59e   :  { %v13486_v52 = vpop.f32.mrf.mxu0 }
 0x59f   :  { %v6316_v43 = vadd.f32 %v6174_v24, %v5667_v42  ;;  %7411 = vset.pattern.permute.xlu1 %v15636_v27  ;;  %v5252_v59 = vpop.permute.xlu1 %5251  ;;  %v7641_v24 = vld [vmem:[%s14119_s1 + $0x1d8] sm:$0xff] }
 0x5a0   :  { %v13498_v47 = vmul.f32 %v5252_v59, %v16099_v22  ;;  %7412 = vset.pattern.permute.xlu2 %v15636_v27  ;;  %5303 = vperm.xlu1 %7411, %v7640_v35   ;;  %v4229_v10 = vpop.f32.mrf.mxu2  ;;  %v6176_v33 = vpop.f32.mrf.mxu1  ;;  %v16101_v42 = vld [vmem:[#allocation60_spill] sm:$0xff] }
 0x5a1   :  { %v6384_v1 = vadd.f32 %v13182_v63, %v6316_v43  ;;  %5307 = vperm.xlu2 %7412, %v7641_v24   ;;  %v13505_v51 = vpop.permute.xlu2 %5916  ;;  %v4370_v12 = vadd.f32 %v4229_v10, %v16100_v50  ;;  %v5363_v43 = vmul.f32 %v13314_v13, %v16101_v42  ;;  %v16103_v10 = vld [vmem:[#allocation296_spill] sm:$0xff] }
 0x5a2   :  { %v6006_v50 = vmul.f32 %v13203_v48, %v16103_v10  ;;  %v16105_v13 = vld [vmem:[#allocation192_spill] sm:$0xff]  ;;  %v16107_v48 = vld [vmem:[#allocation371_spill] sm:$0xff] }
 0x5a3   :  { %v6448_v28 = vmax.f32 %v6384_v1, 0.0  ;;  %v5019_v23 = vadd.f32 %v12921_v60, %v4370_v12  ;;  %v5408_v46 = vpack.c.bf16 %v5363_v43, %v5362_v39  ;;  %v16104_v60 = vld [vmem:[#allocation193_spill] sm:$0xff]  ;;  %v16108_v43 = vld [vmem:[#allocation34_spill] sm:$0xff]  ;;  %v13538_v19 = vpop.permute.xlu0 %5267 }
 0x5a4   :  { %v13522_v32 = vmul.f32 %v13446_v11, %v16104_v60 }
 0x5a5   :  { %v6511_v61 = vadd.f32 %v6510_v54, %v6448_v28  ;;  %v5668_v59 = vadd.f32 %v13322_v15, %v5019_v23 }
 0x5a6   :  { %4271 = vmatmul.bf16.gmra.mxu2 %v4107_v17  ;;  %v13516_v22 = vpop.f32.mrf.mxu0  ;;  %v6054_v17 = vpack.c.bf16 %v6006_v50, %v6005_v20  ;;  %v16111_v20 = vld [vmem:[#allocation48_spill] sm:$0xff] }
 0x5a7   :  { %v6317_v30 = vadd.f32 %v6176_v33, %v5668_v59  ;;  %v5256_v1 = vpop.permute.xlu1 %5255 }
 0x5a8   :  { %v13525_v54 = vmul.f32 %v5256_v1, %v16105_v13  ;;  %7413 = vset.pattern.permute.xlu1 %v15643_v41  ;;  %v4232_v15 = vpop.f32.mrf.mxu2  ;;  %v16109_v1 = vld [vmem:[#allocation293_spill] sm:$0xff] }
 0x5a9   :  { %v6385_v12 = vadd.f32 %v13182_v63, %v6317_v30  ;;  %7414 = vset.pattern.permute.xlu2 %v15643_v41  ;;  %5952 = vperm.xlu1 %7413, %v7640_v35   ;;  %v4371_v33 = vadd.f32 %v4232_v15, %v16107_v48  ;;  %v6179_v28 = vpop.f32.mrf.mxu1  ;;  %v4060_v60 = vmul.f32 %v16109_v1, %v16106_v4  ;;  %v16110_v15 = vld [vmem:[#allocation218_spill] sm:$0xff] }
 0x5aa   :  { %5956 = vperm.xlu2 %7414, %v7641_v24   ;;  %v13535_v23 = vpop.permute.xlu2 %5275  ;;  %5584 = vmatmul.bf16.gmra.mxu0 %v5408_v46  ;;  %v13546_v46 = vmul.f32 %v5905_v26, %v16110_v15  ;;  %v7642_v26 = vld [vmem:[%s14119_s1 + $0x1e8] sm:$0xff] }
 0x5ab   :  { %v6449_v42 = vmax.f32 %v6385_v12, 0.0  ;;  %v5020_v59 = vadd.f32 %v16108_v43, %v4371_v33  ;;  %v16113_v33 = vld [vmem:[#allocation24_spill] sm:$0xff] }
 0x5ad   :  { %v6512_v30 = vadd.f32 %v6511_v61, %v6449_v42  ;;  %v5669_v25 = vadd.f32 %v13351_v3, %v5020_v59  ;;  %6218 = vmatmul.bf16.gmra.mxu1 %v6054_v17  ;;  %v16112_v3 = vld [vmem:[#allocation329_spill] sm:$0xff]  ;;  %v16114_v42 = vld [vmem:[#allocation198_spill] sm:$0xff] }
 0x5ae   :  { %v13541_v35 = vpop.f32.mrf.mxu0  ;;  %v7643_v59 = vld [vmem:[%s14119_s1 + $0x1e0] sm:$0xff] }
 0x5af   :  { %v6318_v39 = vadd.f32 %v6179_v28, %v5669_v25  ;;  %v4061_v28 = vmul.f32 %v16113_v33, %v16103_v10 }
 0x5b0   :  { %v5909_v24 = vpop.permute.xlu1 %5908  ;;  %v4234_v13 = vpop.f32.mrf.mxu2 }
 0x5b1   :  { %v6386_v50 = vadd.f32 %v13182_v63, %v6318_v39  ;;  %v13550_v12 = vmul.f32 %v5909_v24, %v16111_v20  ;;  %7415 = vset.pattern.permute.xlu1 %v15905_v34  ;;  %v4372_v61 = vadd.f32 %v4234_v13, %v16112_v3  ;;  %v6181_v48 = vpop.f32.mrf.mxu1  ;;  %v4108_v10 = vpack.c.bf16 %v4061_v28, %v4060_v60  ;;  %v16115_v39 = vld [vmem:[#allocation70_spill] sm:$0xff]  ;;  %v16116_v3 = vld [vmem:[#allocation75_spill] sm:$0xff] }
 0x5b2   :  { %7416 = vset.pattern.permute.xlu2 %v15636_v27  ;;  %4666 = vperm.xlu1 %7415, %v7642_v26   ;;  %v5364_v1 = vmul.f32 %v13338_v45, %v16115_v39  ;;  %v5365_v33 = vmul.f32 %v13269_v38, %v16116_v3  ;;  %v16117_v20 = vld [vmem:[#allocation54_spill] sm:$0xff] }
 0x5b3   :  { %v6450_v4 = vmax.f32 %v6386_v50, 0.0  ;;  %v5021_v43 = vadd.f32 %v16114_v42, %v4372_v61  ;;  %5311 = vperm.xlu2 %7416, %v7643_v59   ;;  %v13566_v25 = vpop.permute.xlu2 %4630  ;;  %v13571_v50 = vpop.permute.xlu0 %5920  ;;  %v13579_v60 = vmul.f32 %v13505_v51, %v16117_v20  ;;  %v7279_v3 = vld [vmem:[%s14124_s6 + $0x28] sm:$0xff] }
 0x5b4   :  { %v5409_v17 = vpack.c.bf16 %v5365_v33, %v5364_v1  ;;  %v16121_v1 = vpack.c.bf16 %v13224_v7, %v13229_v57  ;;  %6654 = vmatpush.bf16.msrb.mxu2 %v7279_v3 }
 0x5b5   :  { %v6513_v24 = vadd.f32 %v6512_v30, %v6450_v4  ;;  %v5670_v13 = vadd.f32 %v13381_v31, %v5021_v43  ;;  %v16118_v30 = vld [vmem:[#allocation236_spill] sm:$0xff]  ;;  %v16120_v43 = vld [vmem:[#allocation377_spill] sm:$0xff] }
 0x5b6   :  { %4276 = vmatmul.bf16.gmra.mxu2 %v4108_v10  ;;  %v13575_v61 = vpop.f32.mrf.mxu0 }
 0x5b7   :  { %v6319_v42 = vadd.f32 %v6181_v48, %v5670_v13 }
 0x5b8   :  { %v5913_v11 = vpop.permute.xlu1 %5912 }
 0x5b9   :  { %v6387_v45 = vadd.f32 %v13182_v63, %v6319_v42  ;;  %v13583_v28 = vmul.f32 %v5913_v11, %v16118_v30  ;;  %v4237_v31 = vpop.f32.mrf.mxu2  ;;  %v6184_v4 = vpop.f32.mrf.mxu1  ;;  %v16133_v30 = vld [vmem:[#allocation382_spill] sm:$0xff] }
 0x5ba   :  { %v4373_v39 = vadd.f32 %v4237_v31, %v16120_v43  ;;  %7418 = vset.pattern.permute.xlu1 %v15643_v41  ;;  %5589 = vmatmul.bf16.gmra.mxu0 %v5409_v17  ;;  %v16125_v43 = vld [vmem:[#allocation217_spill] sm:$0xff] }
 0x5bb   :  { %16119 = vst [vmem:[#allocation50_spill] sm:$0xff] %v13583_v28  ;;  %v6451_v38 = vmax.f32 %v6387_v45, 0.0  ;;  %7419 = vset.pattern.permute.xlu2 %v15643_v41  ;;  %5960 = vperm.xlu1 %7418, %v7643_v59   ;;  %v16122_v59 = vld [vmem:[#allocation366_spill] sm:$0xff]  ;;  %v16124_v45 = vld [vmem:[#allocation216_spill] sm:$0xff] }
 0x5bc   :  { %v5022_v51 = vadd.f32 %v13023_v49, %v4373_v39  ;;  %5964 = vperm.xlu2 %7419, %v7642_v26   ;;  %v13591_v10 = vpop.permute.xlu2 %5279  ;;  %v4063_v33 = vmul.f32 %v16122_v59, %v16012_v18  ;;  %v13604_v49 = vpop.permute.xlu0 %5283 }
 0x5bd   :  { %v6514_v11 = vadd.f32 %v6513_v24, %v6451_v38  ;;  %6223 = vmatmul.bf16.gmra.mxu1 %v16121_v1  ;;  %v16123_v24 = vld [vmem:[#allocation357_spill] sm:$0xff]  ;;  %v16126_v38 = vld [vmem:[#allocation378_spill] sm:$0xff] }
 0x5be   :  { %v5671_v13 = vadd.f32 %v13415_v29, %v5022_v51  ;;  %v13597_v17 = vpop.f32.mrf.mxu0  ;;  %v4062_v42 = vmul.f32 %v16123_v24, %v16013_v9  ;;  %v13610_v29 = vmul.f32 %v13535_v23, %v16124_v45  ;;  %v16128_v23 = vld [vmem:[#allocation101_spill] sm:$0xff]  ;;  %v13627_v24 = vpop.f32.mrf.mxu3 }
 0x5c0   :  { %v6320_v26 = vadd.f32 %v6184_v4, %v5671_v13  ;;  %v4109_v1 = vpack.c.bf16 %v4063_v33, %v4062_v42  ;;  %v16127_v4 = vld [vmem:[#allocation167_spill] sm:$0xff]  ;;  %v16129_v42 = vld [vmem:[#allocation168_spill] sm:$0xff] }
 0x5c1   :  { %v5272_v7 = vpop.permute.xlu1 %5271  ;;  %v4239_v57 = vpop.f32.mrf.mxu2  ;;  %v5366_v9 = vmul.f32 %v13292_v56, %v16127_v4  ;;  %v7645_v33 = vld [vmem:[%s14119_s1 + $0x1f8] sm:$0xff] }
 0x5c2   :  { %v6388_v31 = vadd.f32 %v13182_v63, %v6320_v26  ;;  %v13614_v39 = vmul.f32 %v5272_v7, %v16125_v43  ;;  %v4374_v18 = vadd.f32 %v4239_v57, %v16126_v38  ;;  %v6186_v51 = vpop.f32.mrf.mxu1  ;;  %v7644_v26 = vld [vmem:[%s14119_s1 + $0x1f0] sm:$0xff]  ;;  %v5367_v7 = vmul.f32 %v13329_v21, %v16129_v42 }
 0x5c3   :  { %7420 = vset.pattern.permute.xlu1 %v15905_v34  ;;  %v16131_v4 = vld [vmem:[#allocation27_spill] sm:$0xff] }
 0x5c4   :  { %v6452_v13 = vmax.f32 %v6388_v31, 0.0  ;;  %v5023_v59 = vadd.f32 %v16128_v23, %v4374_v18  ;;  %7421 = vset.pattern.permute.xlu2 %v15905_v34  ;;  %4670 = vperm.xlu1 %7420, %v7644_v26   ;;  %v16130_v31 = vld [vmem:[#allocation312_spill] sm:$0xff]  ;;  %v5410_v38 = vpack.c.bf16 %v5367_v7, %v5366_v9  ;;  %v16132_v23 = vld [vmem:[#allocation61_spill] sm:$0xff]  ;;  %v16135_v9 = vld [vmem:[#allocation247_spill] sm:$0xff] }
 0x5c5   :  { %4674 = vperm.xlu2 %7421, %v7645_v33   ;;  %v13632_v56 = vpop.permute.xlu2 %5932  ;;  %v6010_v43 = vmul.f32 %v13288_v62, %v16130_v31  ;;  %v6009_v48 = vmul.f32 %v16132_v23, %v16131_v4  ;;  %v16136_v42 = vld [vmem:[#allocation151_spill] sm:$0xff] }
 0x5c6   :  { %v6515_v57 = vadd.f32 %v6514_v11, %v6452_v13  ;;  %v5672_v34 = vadd.f32 %v13442_v37, %v5023_v59  ;;  %4281 = vmatmul.bf16.gmra.mxu2 %v4109_v1  ;;  %v13637_v45 = vpop.f32.mrf.mxu0  ;;  %v16134_v37 = vld [vmem:[#allocation37_spill] sm:$0xff]  ;;  %v13649_v13 = vpop.permute.xlu0 %5287 }
 0x5c7   :  { %v13647_v1 = vmul.f32 %v13571_v50, %v16134_v37  ;;  %v6056_v62 = vpack.c.bf16 %v6010_v43, %v6009_v48  ;;  %v16145_v37 = vld [vmem:[#allocation372_spill] sm:$0xff] }
 0x5c8   :  { %v6321_v18 = vadd.f32 %v6186_v51, %v5672_v34 }
 0x5c9   :  { %v4242_v3 = vpop.f32.mrf.mxu2 }
 0x5ca   :  { %v6389_v20 = vadd.f32 %v13182_v63, %v6321_v18  ;;  %v4375_v28 = vadd.f32 %v4242_v3, %v16133_v30  ;;  %v6189_v21 = vpop.f32.mrf.mxu1  ;;  %v5925_v11 = vpop.permute.xlu1 %5924  ;;  %5594 = vmatmul.bf16.gmra.mxu0 %v5410_v38 }
 0x5cb   :  { %v13652_v51 = vmul.f32 %v5925_v11, %v16135_v9  ;;  %v13666_v38 = vpop.f32.mrf.mxu3 }
 0x5cc   :  { %v6453_v59 = vmax.f32 %v6389_v20, 0.0  ;;  %v5024_v7 = vadd.f32 %v16136_v42, %v4375_v28  ;;  %7422 = vset.pattern.permute.xlu1 %v15636_v27  ;;  %v16137_v20 = vld [vmem:[#allocation207_spill] sm:$0xff]  ;;  %v16138_v28 = vld [vmem:[#allocation360_spill] sm:$0xff] }
 0x5cd   :  { %6228 = vmatmul.bf16.gmra.mxu1 %v6056_v62  ;;  %7423 = vset.pattern.permute.xlu2 %v15643_v41  ;;  %v4064_v43 = vmul.f32 %v16137_v20, %v16131_v4  ;;  %v4065_v27 = vmul.f32 %v16138_v28, %v16130_v31  ;;  %v16140_v62 = vld [vmem:[#allocation309_spill] sm:$0xff]  ;;  %v16142_v20 = vld [vmem:[#allocation264_spill] sm:$0xff] }
 0x5ce   :  { %v6516_v3 = vadd.f32 %v6515_v57, %v6453_v59  ;;  %v5673_v50 = vadd.f32 %v13468_v44, %v5024_v7  ;;  %5323 = vperm.xlu1 %7422, %v7645_v33   ;;  %5968 = vperm.xlu2 %7423, %v7644_v26   ;;  %v4643_v48 = vpop.permute.xlu2 %4642  ;;  %v13660_v34 = vpop.f32.mrf.mxu0  ;;  %v16139_v57 = vld [vmem:[#allocation383_spill] sm:$0xff]  ;;  %v4729_v59 = vmul.f32 %v13566_v25, %v16140_v62  ;;  %v16141_v7 = vld [vmem:[#allocation134_spill] sm:$0xff] }
 0x5cf   :  { %v4110_v33 = vpack.c.bf16 %v4065_v27, %v4064_v43  ;;  %v5941_v31 = vpop.permute.xlu0 %5940 }
 0x5d0   :  { %v6322_v18 = vadd.f32 %v6189_v21, %v5673_v50  ;;  %v13680_v9 = vmul.f32 %v5941_v31, %v16145_v37 }
 0x5d1   :  { %v4244_v23 = vpop.f32.mrf.mxu2 }
 0x5d2   :  { %v6390_v41 = vadd.f32 %v13182_v63, %v6322_v18  ;;  %v4376_v11 = vadd.f32 %v4244_v23, %v16139_v57  ;;  %v6191_v44 = vpop.f32.mrf.mxu1  ;;  %v16143_v23 = vld [vmem:[#allocation13_spill] sm:$0xff]  ;;  %v16144_v57 = vld [vmem:[#allocation106_spill] sm:$0xff]  ;;  %16146 = vst [vmem:[#allocation92_spill] sm:$0xff] %v13680_v9 }
 0x5d3   :  { %v4635_v26 = vpop.permute.xlu1 %4634  ;;  %v6011_v43 = vmul.f32 %v16144_v57, %v16143_v23 }
 0x5d4   :  { %v6454_v42 = vmax.f32 %v6390_v41, 0.0  ;;  %v5025_v4 = vadd.f32 %v16141_v7, %v4376_v11  ;;  %v4730_v30 = vmul.f32 %v4635_v26, %v16142_v20  ;;  %v16147_v41 = vld [vmem:[#allocation42_spill] sm:$0xff]  ;;  %v16149_v26 = vld [vmem:[#allocation320_spill] sm:$0xff] }
 0x5d6   :  { %v6517_v28 = vadd.f32 %v6516_v3, %v6454_v42  ;;  %v5674_v21 = vadd.f32 %v13486_v52, %v5025_v4  ;;  %v4767_v50 = vpack.c.bf16 %v4730_v30, %v4729_v59  ;;  %4286 = vmatmul.bf16.gmra.mxu2 %v4110_v33  ;;  %v13675_v18 = vpop.f32.mrf.mxu0  ;;  %v16150_v3 = vld [vmem:[#allocation152_spill] sm:$0xff]  ;;  %v13687_v52 = vpop.f32.mrf.mxu3  ;;  %v16151_v42 = vld [vmem:[#allocation74_spill] sm:$0xff] }
 0x5d7   :  { %v5937_v27 = vpop.permute.xlu2 %5936  ;;  %v6012_v62 = vmul.f32 %v16150_v3, %v16149_v26 }
 0x5d8   :  { %v6323_v25 = vadd.f32 %v6191_v44, %v5674_v21  ;;  %v13683_v11 = vmul.f32 %v5937_v27, %v16147_v41  ;;  %4975 = vmatmul.bf16.gmra.mxu3 %v4767_v50  ;;  %v16152_v44 = vpack.c.bf16 %v13431_v8, %v13436_v2  ;;  %v16153_v21 = vld [vmem:[#allocation249_spill] sm:$0xff]  ;;  %v16154_v27 = vld [vmem:[#allocation58_spill] sm:$0xff]  ;;  %v16156_v8 = vld [vmem:[#allocation220_spill] sm:$0xff] }
 0x5d9   :  { %v4247_v30 = vpop.f32.mrf.mxu2  ;;  %v6057_v20 = vpack.c.bf16 %v6012_v62, %v6011_v43  ;;  %v13699_v3 = vmul.f32 %v13632_v56, %v16154_v27  ;;  %v4066_v43 = vmul.f32 %v16156_v8, %v16143_v23  ;;  %v16157_v56 = vld [vmem:[#allocation113_spill] sm:$0xff] }
 0x5da   :  { %16148 = vst [vmem:[#allocation159_spill] sm:$0xff] %v13683_v11  ;;  %v6391_v33 = vadd.f32 %v13182_v63, %v6323_v25  ;;  %v4377_v7 = vadd.f32 %v4247_v30, %v16151_v42  ;;  %v6194_v4 = vpop.f32.mrf.mxu1  ;;  %5599 = vmatmul.bf16.gmra.mxu0 %v16152_v44  ;;  %v16155_v25 = vld [vmem:[#allocation59_spill] sm:$0xff]  ;;  %v16160_v11 = vld [vmem:[#allocation318_spill] sm:$0xff] }
 0x5db   :  { %v4732_v9 = vmul.f32 %v4643_v48, %v16160_v11  ;;  %v13730_v48 = vld [vmem:[%s14123_s5] ss:$0 sm:$0xff] }
 0x5dc   :  { %v6455_v31 = vmax.f32 %v6391_v33, 0.0  ;;  %v5026_v50 = vadd.f32 %v16153_v21, %v4377_v7  ;;  %v5929_v57 = vpop.permute.xlu1 %5928  ;;  %v4067_v7 = vmul.f32 %v16157_v56, %v16149_v26  ;;  %v16158_v21 = vld [vmem:[#allocation294_spill] sm:$0xff] }
 0x5dd   :  { %v13702_v37 = vmul.f32 %v5929_v57, %v16155_v25  ;;  %6233 = vmatmul.bf16.gmra.mxu1 %v6057_v20  ;;  %v16159_v57 = vld [vmem:[#allocation105_spill] sm:$0xff] }
 0x5de   :  { %v6518_v59 = vadd.f32 %v6517_v28, %v6455_v31  ;;  %v5675_v30 = vadd.f32 %v13516_v22, %v5026_v50  ;;  %v13705_v42 = vpop.f32.mrf.mxu0  ;;  %v13715_v31 = vpop.f32.mrf.mxu3  ;;  %v4111_v22 = vpack.c.bf16 %v4067_v7, %v4066_v43  ;;  %v16163_v43 = vld [vmem:[#allocation334_spill] sm:$0xff] }
 0x5df   :  { %v6013_v7 = vmul.f32 %v13301_v53, %v16163_v43 }
 0x5e0   :  { %v6324_v62 = vadd.f32 %v6194_v4, %v5675_v30  ;;  %v16161_v30 = vld [vmem:[#allocation306_spill] sm:$0xff] }
 0x5e1   :  { %v4249_v33 = vpop.f32.mrf.mxu2 }
 0x5e2   :  { %v6392_v44 = vadd.f32 %v13182_v63, %v6324_v62  ;;  %v4378_v20 = vadd.f32 %v4249_v33, %v16158_v21  ;;  %v6196_v28 = vpop.f32.mrf.mxu1  ;;  %v16162_v63 = vld [vmem:[#allocation32_spill] sm:$0xff] }
 0x5e3   :  { %v6014_v62 = vmul.f32 %v13361_v0, %v16162_v63  ;;  %v16165_v0 = vpack.c.bf16 %v13498_v47, %v13495_v40  ;;  %v16166_v21 = vld [vmem:[#allocation208_spill] sm:$0xff]  ;;  %v16168_v40 = vld [vmem:[#allocation245_spill] sm:$0xff] }
 0x5e4   :  { %v6456_v50 = vmax.f32 %v6392_v44, 0.0  ;;  %v5027_v41 = vadd.f32 %v16159_v57, %v4378_v20 }
 0x5e5   :  { %v4639_v2 = vpop.permute.xlu1 %4638 }
 0x5e6   :  { %v6519_v23 = vadd.f32 %v6518_v59, %v6456_v50  ;;  %v5676_v4 = vadd.f32 %v13541_v35, %v5027_v41  ;;  %v4731_v8 = vmul.f32 %v4639_v2, %v16161_v30  ;;  %4291 = vmatmul.bf16.gmra.mxu2 %v4111_v22  ;;  %v13721_v26 = vpop.f32.mrf.mxu0  ;;  %v16164_v41 = vld [vmem:[#allocation227_spill] sm:$0xff]  ;;  %v13738_v20 = vpop.f32.mrf.mxu3  ;;  %v16167_v30 = vld [vmem:[#allocation140_spill] sm:$0xff] }
 0x5e8   :  { %v6325_v33 = vadd.f32 %v6196_v28, %v5676_v4  ;;  %v4768_v56 = vpack.c.bf16 %v4732_v9, %v4731_v8  ;;  %v6058_v9 = vpack.c.bf16 %v6014_v62, %v6013_v7  ;;  %v4651_v28 = vpop.permute.xlu2 %4650  ;;  %v13745_v8 = vmul.f32 %v13649_v13, %v16167_v30  ;;  %v16169_v62 = vld [vmem:[#allocation186_spill] sm:$0xff]  ;;  %v16173_v30 = vld [vmem:[#allocation324_spill] sm:$0xff] }
 0x5e9   :  { %v4252_v44 = vpop.f32.mrf.mxu2  ;;  %v16213_v7 = vld [vmem:[#allocation266_spill] sm:$0xff] }
 0x5ea   :  { %v6393_v35 = vadd.f32 %v13730_v48, %v6325_v33  ;;  %v4379_v11 = vadd.f32 %v4252_v44, %v16164_v41  ;;  %v6199_v59 = vpop.f32.mrf.mxu1  ;;  %4980 = vmatmul.bf16.gmra.mxu3 %v4768_v56  ;;  %5604 = vmatmul.bf16.gmra.mxu0 %v16165_v0  ;;  %v4069_v33 = vmul.f32 %v16169_v62, %v16162_v63  ;;  %v16171_v41 = vld [vmem:[#allocation120_spill] sm:$0xff] }
 0x5ec   :  { %v6457_v2 = vmax.f32 %v6393_v35, 0.0  ;;  %v5028_v53 = vadd.f32 %v16166_v21, %v4379_v11 }
 0x5ed   :  { %6238 = vmatmul.bf16.gmra.mxu1 %v6058_v9 }
 0x5ee   :  { %v6520_v22 = vadd.f32 %v6519_v23, %v6457_v2  ;;  %v5677_v50 = vadd.f32 %v13575_v61, %v5028_v53  ;;  %v5292_v57 = vpop.permute.xlu1 %5291  ;;  %v13741_v4 = vpop.f32.mrf.mxu0  ;;  %v16170_v61 = vld [vmem:[#allocation363_spill] sm:$0xff]  ;;  %v16172_v2 = vld [vmem:[#allocation177_spill] sm:$0xff] }
 0x5ef   :  { %v13748_v47 = vmul.f32 %v5292_v57, %v16168_v40  ;;  %v4068_v44 = vmul.f32 %v16170_v61, %v16163_v43  ;;  %v4734_v43 = vmul.f32 %v4651_v28, %v16173_v30  ;;  %v16178_v28 = vpack.c.bf16 %v13396_v14, %v13400_v36  ;;  %v16180_v30 = vld [vmem:[#allocation104_spill] sm:$0xff]  ;;  %v16181_v36 = vld [vmem:[#allocation257_spill] sm:$0xff] }
 0x5f0   :  { %v6326_v56 = vadd.f32 %v6199_v59, %v5677_v50  ;;  %v13762_v50 = vpop.f32.mrf.mxu3  ;;  %v5300_v40 = vpop.permute.xlu2 %5299 }
 0x5f1   :  { %v4254_v23 = vpop.f32.mrf.mxu2  ;;  %v4112_v0 = vpack.c.bf16 %v4069_v33, %v4068_v44 }
 0x5f2   :  { %v6394_v35 = vadd.f32 %v13730_v48, %v6326_v56  ;;  %v4380_v11 = vadd.f32 %v4254_v23, %v16171_v41  ;;  %v6201_v13 = vpop.f32.mrf.mxu1  ;;  %v16174_v56 = vld [vmem:[#allocation180_spill] sm:$0xff] }
 0x5f4   :  { %v6458_v9 = vmax.f32 %v6394_v35, 0.0  ;;  %v5029_v21 = vadd.f32 %v16172_v2, %v4380_v11  ;;  %v16175_v35 = vld [vmem:[#allocation286_spill] sm:$0xff]  ;;  %v5945_v11 = vpop.permute.xlu0 %5944 }
 0x5f6   :  { %v6521_v53 = vadd.f32 %v6520_v22, %v6458_v9  ;;  %v5678_v63 = vadd.f32 %v13597_v17, %v5029_v21  ;;  %4296 = vmatmul.bf16.gmra.mxu2 %v4112_v0  ;;  %v13760_v59 = vpop.f32.mrf.mxu0  ;;  %v16176_v17 = vpack.c.bf16 %v13522_v32, %v13525_v54  ;;  %v16177_v9 = vld [vmem:[#allocation56_spill] sm:$0xff]  ;;  %v16179_v32 = vld [vmem:[#allocation121_spill] sm:$0xff] }
 0x5f7   :  { %v4647_v57 = vpop.permute.xlu1 %4646  ;;  %v4070_v54 = vmul.f32 %v16179_v32, %v16071_v6  ;;  %v16187_v32 = vld [vmem:[#allocation72_spill] sm:$0xff] }
 0x5f8   :  { %v6327_v62 = vadd.f32 %v6201_v13, %v5678_v63  ;;  %v4733_v23 = vmul.f32 %v4647_v57, %v16174_v56  ;;  %v7278_v57 = vld [vmem:[%s14124_s6 + $0x20] sm:$0xff]  ;;  %v13785_v14 = vpop.f32.mrf.mxu3 }
 0x5f9   :  { %v4257_v61 = vpop.f32.mrf.mxu2  ;;  %6655 = vmatpush.bf16.msrb.mxu2 %v7278_v57 }
 0x5fa   :  { %v6395_v33 = vadd.f32 %v13730_v48, %v6327_v62  ;;  %v4769_v44 = vpack.c.bf16 %v4734_v43, %v4733_v23  ;;  %v4381_v22 = vadd.f32 %v4257_v61, %v16175_v35  ;;  %v6204_v41 = vpop.f32.mrf.mxu1  ;;  %5609 = vmatmul.bf16.gmra.mxu0 %v16176_v17  ;;  %v4071_v43 = vmul.f32 %v16180_v30, %v16070_v55  ;;  %v16183_v35 = vld [vmem:[#allocation291_spill] sm:$0xff]  ;;  %v16184_v17 = vld [vmem:[#allocation204_spill] sm:$0xff] }
 0x5fc   :  { %v6459_v0 = vmax.f32 %v6395_v33, 0.0  ;;  %v5030_v2 = vadd.f32 %v16177_v9, %v4381_v22  ;;  %4985 = vmatmul.bf16.gmra.mxu3 %v4769_v44  ;;  %v4655_v33 = vpop.permute.xlu2 %4654 }
 0x5fd   :  { %6243 = vmatmul.bf16.gmra.mxu1 %v16178_v28  ;;  %v4659_v28 = vpop.permute.xlu0 %4658  ;;  %v4735_v30 = vmul.f32 %v4655_v33, %v16187_v32 }
 0x5fe   :  { %v6522_v13 = vadd.f32 %v6521_v53, %v6459_v0  ;;  %v5679_v21 = vadd.f32 %v13637_v45, %v5030_v2  ;;  %v13776_v63 = vpop.f32.mrf.mxu0  ;;  %v13788_v53 = vmul.f32 %v5300_v40, %v16181_v36  ;;  %v16182_v45 = vld [vmem:[#allocation143_spill] sm:$0xff]  ;;  %v5374_v0 = vmul.f32 %v13473_v16, %v16184_v17 }
 0x5ff   :  { %v16185_v40 = vld [vmem:[#allocation135_spill] sm:$0xff] }
 0x600   :  { %v6328_v62 = vadd.f32 %v6204_v41, %v5679_v21  ;;  %v5296_v56 = vpop.permute.xlu1 %5295  ;;  %v4113_v41 = vpack.c.bf16 %v4071_v43, %v4070_v54  ;;  %v16186_v21 = vld [vmem:[#allocation203_spill] sm:$0xff] }
 0x601   :  { %v13791_v23 = vmul.f32 %v5296_v56, %v16182_v45  ;;  %v4259_v61 = vpop.f32.mrf.mxu2  ;;  %v5375_v57 = vmul.f32 %v13538_v19, %v16186_v21  ;;  %v16188_v45 = vld [vmem:[#allocation94_spill] sm:$0xff]  ;;  %v16189_v16 = vld [vmem:[#allocation47_spill] sm:$0xff]  ;;  %v16193_v21 = vpack.c.bf16 %v13466_v58, %v13462_v5 }
 0x602   :  { %v6396_v44 = vadd.f32 %v13730_v48, %v6328_v62  ;;  %v4382_v6 = vadd.f32 %v4259_v61, %v16183_v35  ;;  %v6206_v22 = vpop.f32.mrf.mxu1  ;;  %v4736_v54 = vmul.f32 %v4659_v28, %v16188_v45  ;;  %v16195_v45 = vld [vmem:[#allocation283_spill] sm:$0xff] }
 0x603   :  { %v5414_v43 = vpack.c.bf16 %v5375_v57, %v5374_v0  ;;  %v16192_v0 = vld [vmem:[#allocation272_spill] sm:$0xff] }
 0x604   :  { %v6460_v9 = vmax.f32 %v6396_v44, 0.0  ;;  %v5031_v2 = vadd.f32 %v16185_v40, %v4382_v6  ;;  %v13808_v44 = vmul.f32 %v5945_v11, %v16189_v16  ;;  %v4770_v17 = vpack.c.bf16 %v4736_v54, %v4735_v30  ;;  %v16190_v40 = vld [vmem:[#allocation63_spill] sm:$0xff] }
 0x606   :  { %v6523_v62 = vadd.f32 %v6522_v13, %v6460_v9  ;;  %v5680_v56 = vadd.f32 %v13660_v34, %v5031_v2  ;;  %4301 = vmatmul.bf16.gmra.mxu2 %v4113_v41  ;;  %v13804_v36 = vpop.f32.mrf.mxu0  ;;  %v16191_v13 = vld [vmem:[#allocation85_spill] sm:$0xff]  ;;  %v13815_v9 = vpop.f32.mrf.mxu3 }
 0x607   :  { %v13817_v2 = vpop.permute.xlu2 %5307 }
 0x608   :  { %v6329_v61 = vadd.f32 %v6206_v22, %v5680_v56  ;;  %v16194_v56 = vld [vmem:[#allocation194_spill] sm:$0xff] }
 0x609   :  { %v5949_v35 = vpop.permute.xlu1 %5948  ;;  %v4262_v6 = vpop.f32.mrf.mxu2  ;;  %v4072_v54 = vmul.f32 %v16195_v45, %v16194_v56 }
 0x60a   :  { %v6397_v19 = vadd.f32 %v13730_v48, %v6329_v61  ;;  %v13812_v33 = vmul.f32 %v5949_v35, %v16190_v40  ;;  %v4383_v34 = vadd.f32 %v4262_v6, %v16191_v13  ;;  %v6209_v41 = vpop.f32.mrf.mxu1  ;;  %5614 = vmatmul.bf16.gmra.mxu0 %v5414_v43  ;;  %v16196_v35 = vld [vmem:[#allocation44_spill] sm:$0xff] }
 0x60b   :  { %v16197_v6 = vld [vmem:[#allocation116_spill] sm:$0xff] }
 0x60c   :  { %v6461_v22 = vmax.f32 %v6397_v19, 0.0  ;;  %v5032_v28 = vadd.f32 %v16192_v0, %v4383_v34  ;;  %4990 = vmatmul.bf16.gmra.mxu3 %v4770_v17  ;;  %v4073_v19 = vmul.f32 %v16197_v6, %v16196_v35  ;;  %v16198_v17 = vld [vmem:[#allocation297_spill] sm:$0xff]  ;;  %v16200_v35 = vld [vmem:[#allocation314_spill] sm:$0xff] }
 0x60d   :  { %6248 = vmatmul.bf16.gmra.mxu1 %v16193_v21 }
 0x60e   :  { %v6524_v57 = vadd.f32 %v6523_v62, %v6461_v22  ;;  %v5681_v32 = vadd.f32 %v13675_v18, %v5032_v28  ;;  %v13826_v30 = vpop.f32.mrf.mxu0  ;;  %v4114_v58 = vpack.c.bf16 %v4073_v19, %v4072_v54  ;;  %v16199_v18 = vld [vmem:[#allocation241_spill] sm:$0xff]  ;;  %v16201_v54 = vpack.c.bf16 %v13610_v29, %v13614_v39 }
 0x60f   :  { %v5957_v28 = vpop.permute.xlu2 %5956 }
 0x610   :  { %v6330_v43 = vadd.f32 %v6209_v41, %v5681_v32 }
 0x611   :  { %v4264_v61 = vpop.f32.mrf.mxu2 }
 0x612   :  { %v6398_v13 = vadd.f32 %v13730_v48, %v6330_v43  ;;  %v4384_v34 = vadd.f32 %v4264_v61, %v16198_v17  ;;  %v6211_v0 = vpop.f32.mrf.mxu1  ;;  %v13834_v5 = vpop.permute.xlu1 %5303 }
 0x614   :  { %v6462_v62 = vmax.f32 %v6398_v13, 0.0  ;;  %v5033_v22 = vadd.f32 %v16199_v18, %v4384_v34  ;;  %v13845_v13 = vpop.f32.mrf.mxu3  ;;  %v16205_v18 = vld [vmem:[#allocation39_spill] sm:$0xff] }
 0x616   :  { %v6525_v21 = vadd.f32 %v6524_v57, %v6462_v62  ;;  %v5682_v56 = vadd.f32 %v13705_v42, %v5033_v22  ;;  %4306 = vmatmul.bf16.gmra.mxu2 %v4114_v58  ;;  %v13838_v41 = vpop.f32.mrf.mxu0  ;;  %v16202_v57 = vld [vmem:[#allocation69_spill] sm:$0xff] }
 0x617   :  { %v13848_v17 = vmul.f32 %v5957_v28, %v16202_v57  ;;  %v16204_v62 = vld [vmem:[#allocation109_spill] sm:$0xff]  ;;  %v16207_v28 = vld [vmem:[#allocation206_spill] sm:$0xff] }
 0x618   :  { %v6331_v32 = vadd.f32 %v6211_v0, %v5682_v56  ;;  %v16203_v0 = vld [vmem:[#allocation68_spill] sm:$0xff]  ;;  %v16206_v22 = vpack.c.bf16 %v16204_v62, %v16205_v18  ;;  %v4663_v62 = vpop.permute.xlu0 %4662 }
 0x619   :  { %v4267_v45 = vpop.f32.mrf.mxu2 }
 0x61a   :  { %v6399_v43 = vadd.f32 %v13730_v48, %v6331_v32  ;;  %v4385_v61 = vadd.f32 %v4267_v45, %v16200_v35  ;;  %v6214_v6 = vpop.f32.mrf.mxu1  ;;  %5619 = vmatmul.bf16.gmra.mxu0 %v16201_v54  ;;  %v16208_v45 = vld [vmem:[#allocation376_spill] sm:$0xff]  ;;  %v13864_v35 = vpop.permute.xlu2 %5311  ;;  %v16209_v54 = vld [vmem:[#allocation25_spill] sm:$0xff] }
 0x61b   :  { %v5953_v19 = vpop.permute.xlu1 %5952 }
 0x61c   :  { %v6463_v42 = vmax.f32 %v6399_v43, 0.0  ;;  %v5034_v34 = vadd.f32 %v13627_v24, %v4385_v61  ;;  %v13852_v58 = vmul.f32 %v5953_v19, %v16203_v0  ;;  %v4075_v43 = vmul.f32 %v16208_v45, %v16207_v28  ;;  %v16210_v19 = vld [vmem:[#allocation367_spill] sm:$0xff]  ;;  %v16215_v0 = vld [vmem:[#allocation233_spill] sm:$0xff] }
 0x61d   :  { %6253 = vmatmul.bf16.gmra.mxu1 %v16206_v22  ;;  %v4074_v11 = vmul.f32 %v16210_v19, %v16209_v54  ;;  %v16212_v22 = vld [vmem:[#allocation232_spill] sm:$0xff]  ;;  %v5379_v54 = vmul.f32 %v13604_v49, %v16215_v0  ;;  %v13877_v19 = vpop.f32.mrf.mxu3  ;;  %v16218_v0 = vld [vmem:[#allocation153_spill] sm:$0xff] }
 0x61e   :  { %v6526_v56 = vadd.f32 %v6525_v21, %v6463_v42  ;;  %v5683_v29 = vadd.f32 %v13721_v26, %v5034_v34  ;;  %v13860_v32 = vpop.f32.mrf.mxu0  ;;  %v16211_v42 = vld [vmem:[#allocation270_spill] sm:$0xff]  ;;  %v5378_v39 = vmul.f32 %v13591_v10, %v16212_v22 }
 0x61f   :  { %v4115_v18 = vpack.c.bf16 %v4075_v43, %v4074_v11 }
 0x620   :  { %v6332_v24 = vadd.f32 %v6214_v6, %v5683_v29  ;;  %v4737_v6 = vmul.f32 %v4663_v62, %v16213_v7  ;;  %v16214_v29 = vld [vmem:[#allocation170_spill] sm:$0xff]  ;;  %v5416_v10 = vpack.c.bf16 %v5379_v54, %v5378_v39  ;;  %v16222_v54 = vld [vmem:[#allocation284_spill] sm:$0xff] }
 0x621   :  { %v4269_v61 = vpop.f32.mrf.mxu2  ;;  %v16216_v62 = vld [vmem:[#allocation62_spill] sm:$0xff] }
 0x622   :  { %v6400_v21 = vadd.f32 %v13730_v48, %v6332_v24  ;;  %v4386_v26 = vadd.f32 %v4269_v61, %v16211_v42  ;;  %v6216_v34 = vpop.f32.mrf.mxu1  ;;  %v5965_v42 = vpop.permute.xlu2 %5964 }
 0x624   :  { %v6464_v55 = vmax.f32 %v6400_v21, 0.0  ;;  %v5035_v28 = vadd.f32 %v13666_v38, %v4386_v26  ;;  %v4667_v45 = vpop.permute.xlu1 %4666 }
 0x625   :  { %v4738_v57 = vmul.f32 %v4667_v45, %v16214_v29  ;;  %v16220_v45 = vld [vmem:[#allocation230_spill] sm:$0xff]  ;;  %v16221_v29 = vld [vmem:[#allocation48_spill] sm:$0xff] }
 0x626   :  { %v6527_v24 = vadd.f32 %v6526_v56, %v6464_v55  ;;  %v5684_v61 = vadd.f32 %v13741_v4, %v5035_v28  ;;  %4311 = vmatmul.bf16.gmra.mxu2 %v4115_v18  ;;  %v16217_v4 = vpack.c.bf16 %v13550_v12, %v13546_v46  ;;  %v13889_v56 = vmul.f32 %v5965_v42, %v16218_v0  ;;  %v16219_v18 = vld [vmem:[#allocation71_spill] sm:$0xff] }
 0x627   :  { %v4771_v11 = vpack.c.bf16 %v4738_v57, %v4737_v6  ;;  %v13880_v43 = vpop.f32.mrf.mxu0  ;;  %v4076_v6 = vmul.f32 %v16220_v45, %v16110_v15 }
 0x628   :  { %v6333_v21 = vadd.f32 %v6216_v34, %v5684_v61  ;;  %v13899_v61 = vpop.f32.mrf.mxu3 }
 0x629   :  { %v4272_v38 = vpop.f32.mrf.mxu2  ;;  %4995 = vmatmul.bf16.gmra.mxu3 %v4771_v11 }
 0x62a   :  { %v6401_v7 = vadd.f32 %v13730_v48, %v6333_v21  ;;  %v4387_v26 = vadd.f32 %v4272_v38, %v16216_v62  ;;  %v6219_v22 = vpop.f32.mrf.mxu1  ;;  %5624 = vmatmul.bf16.gmra.mxu0 %v5416_v10  ;;  %v16223_v10 = vld [vmem:[#allocation171_spill] sm:$0xff] }
 0x62c   :  { %v6465_v49 = vmax.f32 %v6401_v7, 0.0  ;;  %v5036_v55 = vadd.f32 %v13687_v52, %v4387_v26  ;;  %v4077_v52 = vmul.f32 %v16222_v54, %v16221_v29  ;;  %v4675_v7 = vpop.permute.xlu2 %4674 }
 0x62d   :  { %6258 = vmatmul.bf16.gmra.mxu1 %v16217_v4  ;;  %v5961_v57 = vpop.permute.xlu1 %5960 }
 0x62e   :  { %v6528_v39 = vadd.f32 %v6527_v24, %v6465_v49  ;;  %v5685_v34 = vadd.f32 %v13760_v59, %v5036_v55  ;;  %v13893_v28 = vmul.f32 %v5961_v57, %v16219_v18  ;;  %v4116_v42 = vpack.c.bf16 %v4077_v52, %v4076_v6  ;;  %v16224_v55 = vld [vmem:[#allocation255_spill] sm:$0xff]  ;;  %v16225_v57 = vld [vmem:[#allocation254_spill] sm:$0xff] }
 0x62f   :  { %v13903_v11 = vpop.f32.mrf.mxu0  ;;  %v4740_v4 = vmul.f32 %v4675_v7, %v16224_v55  ;;  %v16232_v55 = vld [vmem:[#allocation54_spill] sm:$0xff] }
 0x630   :  { %v6334_v46 = vadd.f32 %v6219_v22, %v5685_v34  ;;  %v6069_v12 = vpack.c.bf16 %v13889_v56, %v13893_v28 }
 0x631   :  { %v4274_v24 = vpop.f32.mrf.mxu2 }
 0x632   :  { %v6402_v59 = vadd.f32 %v13730_v48, %v6334_v46  ;;  %v4388_v21 = vadd.f32 %v4274_v24, %v16223_v10  ;;  %v6221_v38 = vpop.f32.mrf.mxu1  ;;  %v16226_v24 = vld [vmem:[#allocation83_spill] sm:$0xff] }
 0x634   :  { %v6466_v15 = vmax.f32 %v6402_v59, 0.0  ;;  %v5037_v62 = vadd.f32 %v13715_v31, %v4388_v21  ;;  %v16227_v31 = vpack.c.bf16 %v13748_v47, %v13745_v8  ;;  %v16228_v21 = vld [vmem:[#allocation50_spill] sm:$0xff]  ;;  %v7277_v8 = vld [vmem:[%s14124_s6 + $0x18] sm:$0xff]  ;;  %v5969_v56 = vpop.permute.xlu2 %5968 }
 0x635   :  { %v16230_v47 = vld [vmem:[#allocation236_spill] sm:$0xff]  ;;  %6656 = vmatpush.bf16.msrb.mxu2 %v7277_v8 }
 0x636   :  { %v6529_v26 = vadd.f32 %v6528_v39, %v6466_v15  ;;  %v5686_v49 = vadd.f32 %v13776_v63, %v5037_v62  ;;  %v4671_v22 = vpop.permute.xlu1 %4670  ;;  %4316 = vmatmul.bf16.gmra.mxu2 %v4116_v42  ;;  %v13916_v39 = vpop.f32.mrf.mxu3  ;;  %v16231_v15 = vld [vmem:[#allocation288_spill] sm:$0xff] }
 0x637   :  { %v4739_v34 = vmul.f32 %v4671_v22, %v16225_v57  ;;  %v13918_v63 = vpop.f32.mrf.mxu0  ;;  %v4078_v62 = vmul.f32 %v16231_v15, %v16230_v47  ;;  %v16234_v57 = vld [vmem:[#allocation95_spill] sm:$0xff] }
 0x638   :  { %v6335_v45 = vadd.f32 %v6221_v38, %v5686_v49  ;;  %v16229_v38 = vpack.c.bf16 %v13579_v60, %v16228_v21  ;;  %v16238_v15 = vld [vmem:[#allocation247_spill] sm:$0xff] }
 0x639   :  { %v4772_v29 = vpack.c.bf16 %v4740_v4, %v4739_v34  ;;  %v4277_v54 = vpop.f32.mrf.mxu2 }
 0x63a   :  { %v6403_v46 = vadd.f32 %v13730_v48, %v6335_v45  ;;  %v4389_v6 = vadd.f32 %v4277_v54, %v16226_v24  ;;  %v6224_v52 = vpop.f32.mrf.mxu1  ;;  %5629 = vmatmul.bf16.gmra.mxu0 %v16227_v31 }
 0x63b   :  { %5000 = vmatmul.bf16.gmra.mxu3 %v4772_v29 }
 0x63c   :  { %v6467_v59 = vmax.f32 %v6403_v46, 0.0  ;;  %v5038_v10 = vadd.f32 %v13738_v20, %v4389_v6  ;;  %v16233_v20 = vld [vmem:[#allocation370_spill] sm:$0xff] }
 0x63d   :  { %6263 = vmatmul.bf16.gmra.mxu1 %v16229_v38  ;;  %v4079_v4 = vmul.f32 %v16233_v20, %v16232_v55 }
 0x63e   :  { %v13924_v42 = vadd.f32 %v6529_v26, %v6467_v59  ;;  %v5687_v7 = vadd.f32 %v13804_v36, %v5038_v10  ;;  %v16236_v10 = vpack.c.bf16 %v13788_v53, %v13791_v23  ;;  %v16240_v53 = vld [vmem:[#allocation37_spill] sm:$0xff]  ;;  %v16241_v23 = vld [vmem:[#allocation64_spill] sm:$0xff] }
 0x63f   :  { %v4117_v26 = vpack.c.bf16 %v4079_v4, %v4078_v62  ;;  %v13936_v36 = vpop.f32.mrf.mxu0  ;;  %v16239_v62 = vld [vmem:[#allocation381_spill] sm:$0xff]  ;;  %v4080_v20 = vmul.f32 %v16241_v23, %v16240_v53 }
 0x640   :  { %v6336_v49 = vadd.f32 %v6224_v52, %v5687_v7  ;;  %v16235_v52 = vld [vmem:[#allocation89_spill] sm:$0xff] }
 0x641   :  { %v4279_v22 = vpop.f32.mrf.mxu2 }
 0x642   :  { %v4390_v60 = vadd.f32 %v4279_v22, %v16234_v57  ;;  %v6226_v34 = vpop.f32.mrf.mxu1  ;;  %v6404_v54 = vadd.f32 %v13730_v48, %v6336_v49  ;;  %v4081_v49 = vmul.f32 %v16239_v62, %v16238_v15  ;;  %v16248_v15 = vld [vmem:[#allocation138_spill] sm:$0xff] }
 0x643   :  { %v4083_v62 = vmul.f32 %v16248_v15, %v16154_v27  ;;  %v16251_v27 = vld [vmem:[#allocation146_spill] sm:$0xff] }
 0x644   :  { %v5039_v45 = vadd.f32 %v13762_v50, %v4390_v60  ;;  %v6468_v21 = vmax.f32 %v6404_v54, 0.0 }
 0x646   :  { %v5688_v29 = vadd.f32 %v13826_v30, %v5039_v45  ;;  %4321 = vmatmul.bf16.gmra.mxu2 %v4117_v26  ;;  %v16237_v30 = vpack.c.bf16 %v13652_v51, %v13647_v1  ;;  %v4118_v1 = vpack.c.bf16 %v4081_v49, %v4080_v20  ;;  %v16243_v51 = vld [vmem:[#allocation110_spill] sm:$0xff]  ;;  %v13961_v45 = vpop.f32.mrf.mxu3 }
 0x647   :  { %v13950_v47 = vpop.f32.mrf.mxu0 }
 0x648   :  { %v6337_v46 = vadd.f32 %v6226_v34, %v5688_v29  ;;  %v5384_v34 = vmul.f32 %v13834_v5, %v16243_v51  ;;  %v16244_v29 = vld [vmem:[#allocation147_spill] sm:$0xff] }
 0x649   :  { %v4282_v24 = vpop.f32.mrf.mxu2  ;;  %v5385_v54 = vmul.f32 %v13817_v2, %v16244_v29  ;;  %v16245_v5 = vld [vmem:[#allocation287_spill] sm:$0xff]  ;;  %v16246_v2 = vpack.c.bf16 %v13699_v3, %v13702_v37  ;;  %v5316_v37 = vpop.permute.xlu0 %5315 }
 0x64a   :  { %v6405_v6 = vadd.f32 %v13730_v48, %v6337_v46  ;;  %v4391_v31 = vadd.f32 %v4282_v24, %v16235_v52  ;;  %v6229_v59 = vpop.f32.mrf.mxu1  ;;  %5634 = vmatmul.bf16.gmra.mxu0 %v16236_v10 }
 0x64c   :  { %v6469_v50 = vmax.f32 %v6405_v6, 0.0  ;;  %v5040_v38 = vadd.f32 %v13785_v14, %v4391_v31  ;;  %v16242_v14 = vld [vmem:[#allocation328_spill] sm:$0xff]  ;;  %v5419_v6 = vpack.c.bf16 %v5385_v54, %v5384_v34 }
 0x64d   :  { %6268 = vmatmul.bf16.gmra.mxu1 %v16237_v30 }
 0x64e   :  { %v6537_v7 = vadd.f32 %v6469_v50, %v6468_v21  ;;  %v5689_v8 = vadd.f32 %v13838_v41, %v5040_v38  ;;  %v13979_v49 = vpop.f32.mrf.mxu3 }
 0x64f   :  { %v13966_v31 = vpop.f32.mrf.mxu0 }
 0x650   :  { %v6338_v22 = vadd.f32 %v6229_v59, %v5689_v8 }
 0x651   :  { %v4284_v55 = vpop.f32.mrf.mxu2 }
 0x652   :  { %v6406_v4 = vadd.f32 %v13730_v48, %v6338_v22  ;;  %v4392_v57 = vadd.f32 %v4284_v55, %v16242_v14  ;;  %v6231_v60 = vpop.f32.mrf.mxu1 }
 0x654   :  { %v6470_v41 = vmax.f32 %v6406_v4, 0.0  ;;  %v5041_v26 = vadd.f32 %v13815_v9, %v4392_v57 }
 0x656   :  { %v6538_v46 = vadd.f32 %v6537_v7, %v6470_v41  ;;  %v5690_v24 = vadd.f32 %v13860_v32, %v5041_v26  ;;  %4326 = vmatmul.bf16.gmra.mxu2 %v4118_v1  ;;  %v16247_v7 = vld [vmem:[#allocation373_spill] sm:$0xff]  ;;  %v13990_v29 = vpop.f32.mrf.mxu3 }
 0x657   :  { %v4082_v8 = vmul.f32 %v16247_v7, %v16155_v25  ;;  %v13983_v3 = vpop.f32.mrf.mxu0  ;;  %v16258_v7 = vld [vmem:[#allocation372_spill] sm:$0xff] }
 0x658   :  { %v6339_v52 = vadd.f32 %v6231_v60, %v5690_v24  ;;  %v5387_v60 = vmul.f32 %v5316_v37, %v16251_v27 }
 0x659   :  { %v4287_v59 = vpop.f32.mrf.mxu2  ;;  %v4119_v4 = vpack.c.bf16 %v4083_v62, %v4082_v8  ;;  %v16259_v8 = vld [vmem:[#allocation375_spill] sm:$0xff]  ;;  %v16260_v62 = vld [vmem:[#allocation374_spill] sm:$0xff] }
 0x65a   :  { %v6407_v10 = vadd.f32 %v13730_v48, %v6339_v52  ;;  %v4393_v21 = vadd.f32 %v4287_v59, %v16245_v5  ;;  %v6234_v50 = vpop.f32.mrf.mxu1  ;;  %5639 = vmatmul.bf16.gmra.mxu0 %v5419_v6  ;;  %v16253_v59 = vld [vmem:[#allocation92_spill] sm:$0xff]  ;;  %v4085_v15 = vmul.f32 %v16259_v8, %v16258_v7 }
 0x65c   :  { %v6471_v9 = vmax.f32 %v6407_v10, 0.0  ;;  %v5042_v38 = vadd.f32 %v13845_v13, %v4393_v21  ;;  %v16249_v13 = vld [vmem:[#allocation229_spill] sm:$0xff]  ;;  %v16254_v10 = vld [vmem:[#allocation159_spill] sm:$0xff] }
 0x65d   :  { %6273 = vmatmul.bf16.gmra.mxu1 %v16246_v2 }
 0x65e   :  { %v6539_v32 = vadd.f32 %v6538_v46, %v6471_v9  ;;  %v5691_v30 = vadd.f32 %v13880_v43, %v5042_v38  ;;  %v16250_v43 = vld [vmem:[#allocation144_spill] sm:$0xff]  ;;  %v16252_v46 = vld [vmem:[#allocation129_spill] sm:$0xff]  ;;  %v16257_v9 = vld [vmem:[#allocation295_spill] sm:$0xff] }
 0x65f   :  { %v5386_v14 = vmul.f32 %v13864_v35, %v16250_v43  ;;  %v13995_v52 = vpop.f32.mrf.mxu0  ;;  %v16262_v43 = vld [vmem:[#allocation36_spill] sm:$0xff] }
 0x660   :  { %v6340_v22 = vadd.f32 %v6234_v50, %v5691_v30  ;;  %v16256_v50 = vld [vmem:[#allocation42_spill] sm:$0xff] }
 0x661   :  { %v4289_v55 = vpop.f32.mrf.mxu2  ;;  %v5420_v34 = vpack.c.bf16 %v5387_v60, %v5386_v14  ;;  %v4084_v38 = vmul.f32 %v16257_v9, %v16256_v50  ;;  %v16267_v50 = vld [vmem:[#allocation125_spill] sm:$0xff] }
 0x662   :  { %v6408_v53 = vadd.f32 %v13730_v48, %v6340_v22  ;;  %v4394_v23 = vadd.f32 %v4289_v55, %v16249_v13  ;;  %v6236_v20 = vpop.f32.mrf.mxu1 }
 0x663   :  { %v4120_v13 = vpack.c.bf16 %v4085_v15, %v4084_v38 }
 0x664   :  { %v6472_v25 = vmax.f32 %v6408_v53, 0.0  ;;  %v5043_v57 = vadd.f32 %v13877_v19, %v4394_v23  ;;  %v5320_v53 = vpop.permute.xlu0 %5319  ;;  %v4953_v23 = vpop.f32.mrf.mxu3 }
 0x665   :  { %v5388_v14 = vmul.f32 %v5320_v53, %v16262_v43  ;;  %v16272_v43 = vld [vmem:[#allocation69_spill] sm:$0xff] }
 0x666   :  { %v6540_v1 = vadd.f32 %v6539_v32, %v6472_v25  ;;  %v5692_v51 = vadd.f32 %v13903_v11, %v5043_v57  ;;  %4331 = vmatmul.bf16.gmra.mxu2 %v4119_v4  ;;  %v16255_v11 = vpack.c.bf16 %v16253_v59, %v16254_v10  ;;  %v5324_v32 = vpop.permute.xlu1 %5323  ;;  %v16265_v59 = vld [vmem:[#allocation384_spill] sm:$0xff] }
 0x667   :  { %v14011_v27 = vpop.f32.mrf.mxu0  ;;  %v4087_v10 = vmul.f32 %v16265_v59, %v16190_v40 }
 0x668   :  { %v6341_v41 = vadd.f32 %v6236_v20, %v5692_v51  ;;  %v16261_v20 = vld [vmem:[#allocation41_spill] sm:$0xff] }
 0x669   :  { %v4292_v26 = vpop.f32.mrf.mxu2  ;;  %v5389_v37 = vmul.f32 %v5324_v32, %v16261_v20  ;;  %v16269_v20 = vpack.c.bf16 %v13848_v17, %v13852_v58 }
 0x66a   :  { %v6409_v54 = vadd.f32 %v13730_v48, %v6341_v41  ;;  %v4395_v24 = vadd.f32 %v4292_v26, %v16252_v46  ;;  %v6239_v6 = vpop.f32.mrf.mxu1  ;;  %5644 = vmatmul.bf16.gmra.mxu0 %v5420_v34  ;;  %v16263_v41 = vld [vmem:[#allocation77_spill] sm:$0xff] }
 0x66b   :  { %v5421_v60 = vpack.c.bf16 %v5389_v37, %v5388_v14  ;;  %v16270_v37 = vld [vmem:[#allocation68_spill] sm:$0xff] }
 0x66c   :  { %v6473_v35 = vmax.f32 %v6409_v54, 0.0  ;;  %v5044_v19 = vadd.f32 %v13899_v61, %v4395_v24  ;;  %v16264_v24 = vpack.c.bf16 %v13812_v33, %v13808_v44  ;;  %v16273_v14 = vld [vmem:[#allocation380_spill] sm:$0xff] }
 0x66d   :  { %6278 = vmatmul.bf16.gmra.mxu1 %v16255_v11 }
 0x66e   :  { %v6541_v5 = vadd.f32 %v6540_v1, %v6473_v35  ;;  %v5693_v21 = vadd.f32 %v13918_v63, %v5044_v19  ;;  %v7276_v19 = vld [vmem:[%s14124_s6 + $0x10] sm:$0xff] }
 0x66f   :  { %6657 = vmatpush.bf16.msrb.mxu2 %v7276_v19 }
 0x670   :  { %v6342_v2 = vadd.f32 %v6239_v6, %v5693_v21  ;;  %v16266_v21 = vld [vmem:[#allocation65_spill] sm:$0xff] }
 0x671   :  { %v4294_v30 = vpop.f32.mrf.mxu2  ;;  %v4086_v44 = vmul.f32 %v16266_v21, %v16189_v16 }
 0x672   :  { %v6410_v61 = vadd.f32 %v13730_v48, %v6342_v2  ;;  %v4396_v22 = vadd.f32 %v4294_v30, %v16260_v62  ;;  %v6241_v55 = vpop.f32.mrf.mxu1  ;;  %v16268_v62 = vld [vmem:[#allocation93_spill] sm:$0xff] }
 0x673   :  { %v4121_v38 = vpack.c.bf16 %v4087_v10, %v4086_v44 }
 0x674   :  { %v6474_v63 = vmax.f32 %v6410_v61, 0.0  ;;  %v5045_v4 = vadd.f32 %v13916_v39, %v4396_v22 }
 0x676   :  { %v6542_v25 = vadd.f32 %v6541_v5, %v6474_v63  ;;  %v5694_v57 = vadd.f32 %v13936_v36, %v5045_v4  ;;  %4336 = vmatmul.bf16.gmra.mxu2 %v4120_v13  ;;  %v4956_v36 = vpop.f32.mrf.mxu3  ;;  %v14025_v5 = vpop.f32.mrf.mxu0  ;;  %v16271_v63 = vld [vmem:[#allocation302_spill] sm:$0xff] }
 0x677   :  { %v4088_v4 = vmul.f32 %v16271_v63, %v16270_v37 }
 0x678   :  { %v6343_v1 = vadd.f32 %v6241_v55, %v5694_v57 }
 0x679   :  { %v4297_v51 = vpop.f32.mrf.mxu2 }
 0x67a   :  { %v6411_v34 = vadd.f32 %v13730_v48, %v6343_v1  ;;  %v4397_v26 = vadd.f32 %v4297_v51, %v16263_v41  ;;  %v6244_v54 = vpop.f32.mrf.mxu1  ;;  %5649 = vmatmul.bf16.gmra.mxu0 %v5421_v60 }
 0x67c   :  { %v6475_v46 = vmax.f32 %v6411_v34, 0.0  ;;  %v5046_v39 = vadd.f32 %v13961_v45, %v4397_v26  ;;  %v16274_v34 = vld [vmem:[#allocation226_spill] sm:$0xff] }
 0x67d   :  { %6283 = vmatmul.bf16.gmra.mxu1 %v16264_v24 }
 0x67e   :  { %v6543_v6 = vadd.f32 %v6542_v25, %v6475_v46  ;;  %v5695_v35 = vadd.f32 %v13950_v47, %v5046_v39  ;;  %v4958_v7 = vpop.f32.mrf.mxu3  ;;  %v5610_v55 = vpop.f32.mrf.mxu0  ;;  %v4089_v25 = vmul.f32 %v16273_v14, %v16272_v43 }
 0x680   :  { %v6344_v11 = vadd.f32 %v6244_v54, %v5695_v35  ;;  %v4122_v26 = vpack.c.bf16 %v4089_v25, %v4088_v4  ;;  %v16275_v35 = vld [vmem:[#allocation250_spill] sm:$0xff] }
 0x681   :  { %v4299_v45 = vpop.f32.mrf.mxu2 }
 0x682   :  { %v6412_v33 = vadd.f32 %v13730_v48, %v6344_v11  ;;  %v4398_v9 = vadd.f32 %v4299_v45, %v16267_v50  ;;  %v6246_v47 = vpop.f32.mrf.mxu1 }
 0x684   :  { %v6476_v2 = vmax.f32 %v6412_v33, 0.0  ;;  %v5047_v32 = vadd.f32 %v13979_v49, %v4398_v9 }
 0x686   :  { %v6544_v30 = vadd.f32 %v6543_v6, %v6476_v2  ;;  %v5696_v40 = vadd.f32 %v13966_v31, %v5047_v32  ;;  %4341 = vmatmul.bf16.gmra.mxu2 %v4121_v38  ;;  %v4961_v1 = vpop.f32.mrf.mxu3  ;;  %v5612_v54 = vpop.f32.mrf.mxu0  ;;  %v16278_v32 = vld [vmem:[#allocation212_spill] sm:$0xff] }
 0x688   :  { %v6345_v8 = vadd.f32 %v6246_v47, %v5696_v40  ;;  %v16277_v47 = vld [vmem:[#allocation379_spill] sm:$0xff] }
 0x689   :  { %v4302_v15 = vpop.f32.mrf.mxu2  ;;  %v4091_v38 = vmul.f32 %v16277_v47, %v16218_v0 }
 0x68a   :  { %v6413_v61 = vadd.f32 %v13730_v48, %v6345_v8  ;;  %v4399_v16 = vadd.f32 %v4302_v15, %v16268_v62  ;;  %v6249_v22 = vpop.f32.mrf.mxu1  ;;  %v5973_v8 = vpop.permute.xlu0 %5972 }
 0x68c   :  { %v6477_v53 = vmax.f32 %v6413_v61, 0.0  ;;  %v5048_v13 = vadd.f32 %v13990_v29, %v4399_v16 }
 0x68d   :  { %6288 = vmatmul.bf16.gmra.mxu1 %v16269_v20 }
 0x68e   :  { %v6545_v49 = vadd.f32 %v6544_v30, %v6477_v53  ;;  %v5697_v31 = vadd.f32 %v13983_v3, %v5048_v13  ;;  %v4963_v10 = vpop.f32.mrf.mxu3  ;;  %v5615_v44 = vpop.f32.mrf.mxu0 }
 0x690   :  { %v6346_v57 = vadd.f32 %v6249_v22, %v5697_v31  ;;  %v16280_v22 = vld [vmem:[#allocation81_spill] sm:$0xff] }
 0x691   :  { %v4304_v60 = vpop.f32.mrf.mxu2  ;;  %v6038_v0 = vmul.f32 %v5973_v8, %v16280_v22 }
 0x692   :  { %v6414_v51 = vadd.f32 %v13730_v48, %v6346_v57  ;;  %v4400_v29 = vadd.f32 %v4304_v60, %v16274_v34  ;;  %v6251_v41 = vpop.f32.mrf.mxu1 }
 0x694   :  { %v6478_v17 = vmax.f32 %v6414_v51, 0.0  ;;  %v5049_v58 = vadd.f32 %v4953_v23, %v4400_v29  ;;  %v16282_v51 = vld [vmem:[#allocation97_spill] sm:$0xff] }
 0x696   :  { %v6546_v46 = vadd.f32 %v6545_v49, %v6478_v17  ;;  %v5698_v3 = vadd.f32 %v13995_v52, %v5049_v58  ;;  %4346 = vmatmul.bf16.gmra.mxu2 %v4122_v26  ;;  %v16276_v52 = vld [vmem:[#allocation300_spill] sm:$0xff]  ;;  %v5617_v53 = vpop.f32.mrf.mxu0  ;;  %v16281_v49 = vld [vmem:[#allocation237_spill] sm:$0xff] }
 0x697   :  { %v4090_v33 = vmul.f32 %v16276_v52, %v16219_v18  ;;  %v16279_v18 = vld [vmem:[#allocation76_spill] sm:$0xff] }
 0x698   :  { %v6347_v39 = vadd.f32 %v6251_v41, %v5698_v3  ;;  %v6037_v62 = vmul.f32 %v5969_v56, %v16279_v18 }
 0x699   :  { %v4307_v24 = vpop.f32.mrf.mxu2  ;;  %v4123_v40 = vpack.c.bf16 %v4091_v38, %v4090_v33  ;;  %v16284_v33 = vld [vmem:[#allocation336_spill] sm:$0xff] }
 0x69a   :  { %v6415_v6 = vadd.f32 %v13730_v48, %v6347_v39  ;;  %v4401_v19 = vadd.f32 %v4307_v24, %v16275_v35  ;;  %v6254_v59 = vpop.f32.mrf.mxu1  ;;  %v6070_v63 = vpack.c.bf16 %v6038_v0, %v6037_v62 }
 0x69c   :  { %v6479_v11 = vmax.f32 %v6415_v6, 0.0  ;;  %v5050_v45 = vadd.f32 %v4956_v36, %v4401_v19  ;;  %v16283_v6 = vld [vmem:[#allocation98_spill] sm:$0xff] }
 0x69d   :  { %6293 = vmatmul.bf16.gmra.mxu1 %v6069_v12 }
 0x69e   :  { %v6547_v23 = vadd.f32 %v6546_v46, %v6479_v11  ;;  %v5699_v21 = vadd.f32 %v14011_v27, %v5050_v45  ;;  %v4966_v27 = vpop.f32.mrf.mxu3  ;;  %v5620_v41 = vpop.f32.mrf.mxu0 }
 0x6a0   :  { %v6348_v50 = vadd.f32 %v6254_v59, %v5699_v21  ;;  %v7275_v21 = vld [vmem:[%s14124_s6 + $0x8] sm:$0xff] }
 0x6a1   :  { %v4309_v9 = vpop.f32.mrf.mxu2  ;;  %6658 = vmatpush.bf16.msrb.mxu2 %v7275_v21 }
 0x6a2   :  { %v6416_v2 = vadd.f32 %v13730_v48, %v6348_v50  ;;  %v4402_v36 = vadd.f32 %v4309_v9, %v16278_v32  ;;  %v6256_v30 = vpop.f32.mrf.mxu1 }
 0x6a4   :  { %v6480_v28 = vmax.f32 %v6416_v2, 0.0  ;;  %v5051_v12 = vadd.f32 %v4958_v7, %v4402_v36 }
 0x6a6   :  { %v6548_v15 = vadd.f32 %v6547_v23, %v6480_v28  ;;  %v5700_v61 = vadd.f32 %v14025_v5, %v5051_v12  ;;  %4351 = vmatmul.bf16.gmra.mxu2 %v4123_v40  ;;  %v4968_v5 = vpop.f32.mrf.mxu3  ;;  %v5622_v11 = vpop.f32.mrf.mxu0  ;;  %v16285_v28 = vld [vmem:[#allocation200_spill] sm:$0xff] }
 0x6a8   :  { %v6349_v16 = vadd.f32 %v6256_v30, %v5700_v61 }
 0x6a9   :  { %v4312_v13 = vpop.f32.mrf.mxu2 }
 0x6aa   :  { %v6417_v20 = vadd.f32 %v13730_v48, %v6349_v16  ;;  %v4403_v31 = vadd.f32 %v4312_v13, %v16281_v49  ;;  %v6259_v37 = vpop.f32.mrf.mxu1 }
 0x6ac   :  { %v6481_v7 = vmax.f32 %v6417_v20, 0.0  ;;  %v5052_v4 = vadd.f32 %v4961_v1, %v4403_v31  ;;  %v16286_v20 = vld [vmem:[#allocation219_spill] sm:$0xff] }
 0x6ad   :  { %6298 = vmatmul.bf16.gmra.mxu1 %v6070_v63 }
 0x6ae   :  { %v6549_v43 = vadd.f32 %v6548_v15, %v6481_v7  ;;  %v5701_v14 = vadd.f32 %v5610_v55, %v5052_v4  ;;  %v4971_v24 = vpop.f32.mrf.mxu3  ;;  %v5625_v30 = vpop.f32.mrf.mxu0 }
 0x6b0   :  { %v6350_v25 = vadd.f32 %v6259_v37, %v5701_v14 }
 0x6b1   :  { %v4314_v57 = vpop.f32.mrf.mxu2 }
 0x6b2   :  { %v6418_v60 = vadd.f32 %v13730_v48, %v6350_v25  ;;  %v4404_v34 = vadd.f32 %v4314_v57, %v16282_v51  ;;  %v6261_v29 = vpop.f32.mrf.mxu1  ;;  %v16287_v25 = vld [vmem:[#allocation307_spill] sm:$0xff] }
 0x6b4   :  { %v6482_v26 = vmax.f32 %v6418_v60, 0.0  ;;  %v5053_v17 = vadd.f32 %v4963_v10, %v4404_v34 }
 0x6b6   :  { %v6550_v58 = vadd.f32 %v6549_v43, %v6482_v26  ;;  %v5702_v46 = vadd.f32 %v5612_v54, %v5053_v17  ;;  %v4973_v47 = vpop.f32.mrf.mxu3  ;;  %v5627_v22 = vpop.f32.mrf.mxu0 }
 0x6b8   :  { %v6351_v3 = vadd.f32 %v6261_v29, %v5702_v46 }
 0x6b9   :  { %v4317_v39 = vpop.f32.mrf.mxu2 }
 0x6ba   :  { %v6419_v1 = vadd.f32 %v13730_v48, %v6351_v3  ;;  %v4405_v55 = vadd.f32 %v4317_v39, %v16283_v6  ;;  %v6264_v35 = vpop.f32.mrf.mxu1  ;;  %v16288_v39 = vld [vmem:[#allocation127_spill] sm:$0xff] }
 0x6bc   :  { %v6483_v19 = vmax.f32 %v6419_v1, 0.0  ;;  %v5054_v59 = vadd.f32 %v4966_v27, %v4405_v55 }
 0x6be   :  { %v6551_v45 = vadd.f32 %v6550_v58, %v6483_v19  ;;  %v5703_v23 = vadd.f32 %v5615_v44, %v5054_v59  ;;  %v4976_v27 = vpop.f32.mrf.mxu3  ;;  %v5630_v51 = vpop.f32.mrf.mxu0 }
 0x6c0   :  { %v6352_v10 = vadd.f32 %v6264_v35, %v5703_v23 }
 0x6c1   :  { %v4319_v54 = vpop.f32.mrf.mxu2 }
 0x6c2   :  { %v6420_v52 = vadd.f32 %v13730_v48, %v6352_v10  ;;  %v4406_v50 = vadd.f32 %v4319_v54, %v16284_v33  ;;  %v6266_v9 = vpop.f32.mrf.mxu1  ;;  %v16289_v10 = vld [vmem:[#allocation133_spill] sm:$0xff] }
 0x6c4   :  { %v6484_v38 = vmax.f32 %v6420_v52, 0.0  ;;  %v5055_v2 = vadd.f32 %v4968_v5, %v4406_v50 }
 0x6c6   :  { %v6552_v32 = vadd.f32 %v6551_v45, %v6484_v38  ;;  %v5704_v36 = vadd.f32 %v5617_v53, %v5055_v2  ;;  %v4978_v63 = vpop.f32.mrf.mxu3  ;;  %v5632_v35 = vpop.f32.mrf.mxu0 }
 0x6c8   :  { %v6353_v40 = vadd.f32 %v6266_v9, %v5704_v36 }
 0x6c9   :  { %v4322_v44 = vpop.f32.mrf.mxu2 }
 0x6ca   :  { %v6421_v56 = vadd.f32 %v13730_v48, %v6353_v40  ;;  %v4407_v12 = vadd.f32 %v4322_v44, %v16285_v28  ;;  %v6269_v8 = vpop.f32.mrf.mxu1  ;;  %v16290_v40 = vld [vmem:[#allocation28_spill] sm:$0xff] }
 0x6cc   :  { %v6485_v15 = vmax.f32 %v6421_v56, 0.0  ;;  %v5056_v61 = vadd.f32 %v4971_v24, %v4407_v12 }
 0x6ce   :  { %v6553_v18 = vadd.f32 %v6552_v32, %v6485_v15  ;;  %v5705_v62 = vadd.f32 %v5620_v41, %v5056_v61  ;;  %v4981_v41 = vpop.f32.mrf.mxu3  ;;  %v5635_v38 = vpop.f32.mrf.mxu0 }
 0x6d0   :  { %v6354_v16 = vadd.f32 %v6269_v8, %v5705_v62 }
 0x6d1   :  { %v4324_v0 = vpop.f32.mrf.mxu2 }
 0x6d2   :  { %v6422_v13 = vadd.f32 %v13730_v48, %v6354_v16  ;;  %v4408_v53 = vadd.f32 %v4324_v0, %v16286_v20  ;;  %v6271_v49 = vpop.f32.mrf.mxu1  ;;  %v14088_v16 = vld [vmem:[%s14123_s5] ss:$0 sm:$0xff]  ;;  %v16291_v0 = vld [vmem:[#allocation99_spill] sm:$0xff] }
 0x6d4   :  { %v6486_v31 = vmax.f32 %v6422_v13, 0.0  ;;  %v5057_v37 = vadd.f32 %v4973_v47, %v4408_v53 }
 0x6d6   :  { %v6554_v7 = vadd.f32 %v6553_v18, %v6486_v31  ;;  %v5706_v4 = vadd.f32 %v5622_v11, %v5057_v37  ;;  %v4983_v11 = vpop.f32.mrf.mxu3  ;;  %v5637_v61 = vpop.f32.mrf.mxu0  ;;  %v7274_v37 = vld [vmem:[%s14124_s6] sm:$0xff] }
 0x6d7   :  { %6659 = vmatpush.bf16.msrb.mxu2 %v7274_v37 }
 0x6d8   :  { %v6355_v43 = vadd.f32 %v6271_v49, %v5706_v4 }
 0x6d9   :  { %v4327_v14 = vpop.f32.mrf.mxu2 }
 0x6da   :  { %v6423_v5 = vadd.f32 %v13730_v48, %v6355_v43  ;;  %v4409_v57 = vadd.f32 %v4327_v14, %v16287_v25  ;;  %v6274_v60 = vpop.f32.mrf.mxu1  ;;  %v16292_v43 = vld [vmem:[#allocation323_spill] sm:$0xff] }
 0x6dc   :  { %v6487_v34 = vmax.f32 %v6423_v5, 0.0  ;;  %v5058_v29 = vadd.f32 %v4976_v27, %v4409_v57 }
 0x6de   :  { %v6555_v26 = vadd.f32 %v6554_v7, %v6487_v34  ;;  %v5707_v17 = vadd.f32 %v5625_v30, %v5058_v29  ;;  %v4986_v2 = vpop.f32.mrf.mxu3  ;;  %v5640_v25 = vpop.f32.mrf.mxu0 }
 0x6e0   :  { %v6356_v58 = vadd.f32 %v6274_v60, %v5707_v17 }
 0x6e1   :  { %v4329_v46 = vpop.f32.mrf.mxu2 }
 0x6e2   :  { %v6424_v3 = vadd.f32 %v13730_v48, %v6356_v58  ;;  %v4410_v24 = vadd.f32 %v4329_v46, %v16288_v39  ;;  %v6276_v1 = vpop.f32.mrf.mxu1  ;;  %v16293_v58 = vld [vmem:[#allocation87_spill] sm:$0xff] }
 0x6e4   :  { %v6488_v6 = vmax.f32 %v6424_v3, 0.0  ;;  %v5059_v55 = vadd.f32 %v4978_v63, %v4410_v24 }
 0x6e6   :  { %v6556_v19 = vadd.f32 %v6555_v26, %v6488_v6  ;;  %v5708_v59 = vadd.f32 %v5627_v22, %v5059_v55  ;;  %v4988_v62 = vpop.f32.mrf.mxu3 }
 0x6e8   :  { %v6357_v45 = vadd.f32 %v6276_v1, %v5708_v59  ;;  %v5642_v1 = vpop.f32.mrf.mxu0 }
 0x6e9   :  { %v4332_v23 = vpop.f32.mrf.mxu2 }
 0x6ea   :  { %v6425_v21 = vadd.f32 %v13730_v48, %v6357_v45  ;;  %v4411_v54 = vadd.f32 %v4332_v23, %v16289_v10  ;;  %v6279_v52 = vpop.f32.mrf.mxu1  ;;  %v16294_v45 = vld [vmem:[#allocation213_spill] sm:$0xff] }
 0x6ec   :  { %v6489_v33 = vmax.f32 %v6425_v21, 0.0  ;;  %v5060_v50 = vadd.f32 %v4981_v41, %v4411_v54 }
 0x6ee   :  { %v6557_v9 = vadd.f32 %v6556_v19, %v6489_v33  ;;  %v5709_v47 = vadd.f32 %v5630_v51, %v5060_v50  ;;  %v4991_v57 = vpop.f32.mrf.mxu3 }
 0x6f0   :  { %v6358_v32 = vadd.f32 %v6279_v52, %v5709_v47 }
 0x6f1   :  { %v4334_v36 = vpop.f32.mrf.mxu2 }
 0x6f2   :  { %v6426_v30 = vadd.f32 %v13730_v48, %v6358_v32  ;;  %v4412_v44 = vadd.f32 %v4334_v36, %v16290_v40  ;;  %v6281_v56 = vpop.f32.mrf.mxu1  ;;  %v16295_v32 = vld [vmem:[#allocation137_spill] sm:$0xff] }
 0x6f4   :  { %v6490_v28 = vmax.f32 %v6426_v30, 0.0  ;;  %v5061_v12 = vadd.f32 %v4983_v11, %v4412_v44 }
 0x6f6   :  { %v6558_v8 = vadd.f32 %v6557_v9, %v6490_v28  ;;  %v5710_v27 = vadd.f32 %v5632_v35, %v5061_v12  ;;  %v4993_v6 = vpop.f32.mrf.mxu3  ;;  %v5645_v9 = vpop.f32.mrf.mxu0 }
 0x6f8   :  { %v6359_v15 = vadd.f32 %v6281_v56, %v5710_v27 }
 0x6f9   :  { %v4337_v18 = vpop.f32.mrf.mxu2 }
 0x6fa   :  { %v6427_v22 = vadd.f32 %v14088_v16, %v6359_v15  ;;  %v4413_v48 = vadd.f32 %v4337_v18, %v16291_v0  ;;  %v6284_v13 = vpop.f32.mrf.mxu1  ;;  %v16296_v18 = vld [vmem:[#allocation240_spill] sm:$0xff] }
 0x6fc   :  { %v6491_v20 = vmax.f32 %v6427_v22, 0.0  ;;  %v5062_v53 = vadd.f32 %v4986_v2, %v4413_v48 }
 0x6fe   :  { %v6559_v49 = vadd.f32 %v6558_v8, %v6491_v20  ;;  %v5711_v31 = vadd.f32 %v5635_v38, %v5062_v53  ;;  %v4996_v52 = vpop.f32.mrf.mxu3  ;;  %v5647_v27 = vpop.f32.mrf.mxu0 }
 0x700   :  { %v6360_v63 = vadd.f32 %v6284_v13, %v5711_v31 }
 0x701   :  { %v4339_v7 = vpop.f32.mrf.mxu2 }
 0x702   :  { %v6428_v4 = vadd.f32 %v14088_v16, %v6360_v63  ;;  %v4414_v14 = vadd.f32 %v4339_v7, %v16292_v43  ;;  %v6286_v5 = vpop.f32.mrf.mxu1  ;;  %v16297_v63 = vld [vmem:[#allocation46_spill] sm:$0xff] }
 0x704   :  { %v6492_v60 = vmax.f32 %v6428_v4, 0.0  ;;  %v5063_v51 = vadd.f32 %v4988_v62, %v4414_v14 }
 0x706   :  { %v6560_v34 = vadd.f32 %v6559_v49, %v6492_v60  ;;  %v5712_v29 = vadd.f32 %v5637_v61, %v5063_v51  ;;  %v4998_v12 = vpop.f32.mrf.mxu3  ;;  %v5650_v4 = vpop.f32.mrf.mxu0 }
 0x708   :  { %v6361_v41 = vadd.f32 %v6286_v5, %v5712_v29 }
 0x709   :  { %v4342_v26 = vpop.f32.mrf.mxu2 }
 0x70a   :  { %v6429_v17 = vadd.f32 %v14088_v16, %v6361_v41  ;;  %v4415_v46 = vadd.f32 %v4342_v26, %v16293_v58  ;;  %v6289_v3 = vpop.f32.mrf.mxu1  ;;  %v16298_v41 = vld [vmem:[#allocation292_spill] sm:$0xff] }
 0x70c   :  { %v6493_v39 = vmax.f32 %v6429_v17, 0.0  ;;  %v5064_v24 = vadd.f32 %v4991_v57, %v4415_v46 }
 0x70e   :  { %v6561_v55 = vadd.f32 %v6560_v34, %v6493_v39  ;;  %v5713_v35 = vadd.f32 %v5640_v25, %v5064_v24  ;;  %v5001_v49 = vpop.f32.mrf.mxu3  ;;  %v6531_v34 = vrot.slane %v13924_v42, 4 }
 0x710   :  { %v6362_v19 = vadd.f32 %v6289_v3, %v5713_v35  ;;  %v5652_v3 = vpop.f32.mrf.mxu0  ;;  %v6532_v39 = vadd.f32 %v6531_v34, %v13924_v42 }
 0x711   :  { %v4344_v59 = vpop.f32.mrf.mxu2 }
 0x712   :  { %v6430_v11 = vadd.f32 %v14088_v16, %v6362_v19  ;;  %v4416_v23 = vadd.f32 %v4344_v59, %v16294_v45  ;;  %v6291_v21 = vpop.f32.mrf.mxu1  ;;  %v6533_v35 = vrot.slane %v6532_v39, 2 }
 0x714   :  { %v6494_v10 = vmax.f32 %v6430_v11, 0.0  ;;  %v5065_v54 = vadd.f32 %v4993_v6, %v4416_v23  ;;  %v6534_v11 = vadd.f32 %v6533_v35, %v6532_v39 }
 0x716   :  { %v6562_v33 = vadd.f32 %v6561_v55, %v6494_v10  ;;  %v5714_v50 = vadd.f32 %v5642_v1, %v5065_v54  ;;  %v5003_v17 = vpop.f32.mrf.mxu3 }
 0x718   :  { %v6363_v47 = vadd.f32 %v6291_v21, %v5714_v50  ;;  %v6535_v21 = vrot.slane %v6534_v11, 1 }
 0x719   :  { %v4347_v38 = vpop.f32.mrf.mxu2 }
 0x71a   :  { %v6431_v2 = vadd.f32 %v14088_v16, %v6363_v47  ;;  %v4417_v36 = vadd.f32 %v4347_v38, %v16295_v32  ;;  %v6294_v30 = vpop.f32.mrf.mxu1 }
 0x71c   :  { %v6495_v40 = vmax.f32 %v6431_v2, 0.0  ;;  %v5066_v44 = vadd.f32 %v4996_v52, %v4417_v36  ;;  %v6536_v52 = vadd.f32 %v6535_v21, %v6534_v11 }
 0x71e   :  { %v6563_v56 = vadd.f32 %v6562_v33, %v6495_v40  ;;  %v5715_v28 = vadd.f32 %v5645_v9, %v5066_v44  ;;  %v6574_v9 = vpack.c.bf16 %v6536_v52, %v6536_v52 }
 0x720   :  { %v6364_v8 = vadd.f32 %v6294_v30, %v5715_v28  ;;  %v6598_v38 = vunpack.c.l.b16 %v6574_v9 }
 0x721   :  { %v4349_v15 = vpop.f32.mrf.mxu2 }
 0x722   :  { %v6432_v61 = vadd.f32 %v14088_v16, %v6364_v8  ;;  %v4418_v62 = vadd.f32 %v4349_v15, %v16296_v18  ;;  %v6296_v22 = vpop.f32.mrf.mxu1 }
 0x724   :  { %v6496_v0 = vmax.f32 %v6432_v61, 0.0  ;;  %v5067_v48 = vadd.f32 %v4998_v12, %v4418_v62 }
 0x726   :  { %v6564_v13 = vadd.f32 %v6563_v56, %v6496_v0  ;;  %v5716_v20 = vadd.f32 %v5647_v27, %v5067_v48 }
 0x728   :  { %v6365_v53 = vadd.f32 %v6296_v22, %v5716_v20 }
 0x729   :  { %v4352_v31 = vpop.f32.mrf.mxu2 }
 0x72a   :  { %v6433_v37 = vadd.f32 %v14088_v16, %v6365_v53  ;;  %v4419_v7 = vadd.f32 %v4352_v31, %v16297_v63  ;;  %v6299_v5 = vpop.f32.mrf.mxu1 }
 0x72c   :  { %v6497_v43 = vmax.f32 %v6433_v37, 0.0  ;;  %v5068_v14 = vadd.f32 %v5001_v49, %v4419_v7 }
 0x72e   :  { %v6565_v25 = vadd.f32 %v6564_v13, %v6497_v43  ;;  %v5717_v57 = vadd.f32 %v5650_v4, %v5068_v14 }
 0x730   :  { %v6366_v60 = vadd.f32 %v6299_v5, %v5717_v57 }
 0x731   :  { %v4354_v51 = vpop.f32.mrf.mxu2 }
 0x732   :  { %v6434_v29 = vadd.f32 %v14088_v16, %v6366_v60  ;;  %v4420_v26 = vadd.f32 %v4354_v51, %v16298_v41  ;;  %v6301_v6 = vpop.f32.mrf.mxu1 }
 0x734   :  { %v6498_v58 = vmax.f32 %v6434_v29, 0.0  ;;  %v5069_v46 = vadd.f32 %v5003_v17, %v4420_v26 }
 0x736   :  { %v6566_v24 = vadd.f32 %v6565_v25, %v6498_v58  ;;  %v5718_v1 = vadd.f32 %v5652_v3, %v5069_v46 }
 0x738   :  { %v6367_v55 = vadd.f32 %v6301_v6, %v5718_v1 }
 0x73a   :  { %v6435_v19 = vadd.f32 %v14088_v16, %v6367_v55  ;;  %v7427_v16 = vld [vmem:[%s14125_s7] ss:$0 sm:$0xff] }
 0x73c   :  { %v6499_v59 = vmax.f32 %v6435_v19, 0.0 }
 0x73e   :  { %v6567_v45 = vadd.f32 %v6566_v24, %v6499_v59 }
 0x740   :  { %v6568_v23 = vrot.slane %v6567_v45, 4 }
 0x742   :  { %v6569_v10 = vadd.f32 %v6568_v23, %v6567_v45 }
 0x744   :  { %v6570_v54 = vrot.slane %v6569_v10, 2 }
 0x746   :  { %v6571_v33 = vadd.f32 %v6570_v54, %v6569_v10 }
 0x748   :  { %v6572_v50 = vrot.slane %v6571_v33, 1 }
 0x74a   :  { %v6573_v47 = vadd.f32 %v6572_v50, %v6571_v33 }
 0x74c   :  { %v6575_v42 = vpack.c.bf16 %v6573_v47, %v6573_v47 }
 0x74e   :  { %v6599_v2 = vunpack.c.l.b16 %v6575_v42 }
 0x750   :  { %v6601_v32 = vsel %vm6600_vm2, %v6599_v2, %v6598_v38 }
 0x751   :  { %v6602_v36 = vpack.c.b16 %v6601_v32, %v6601_v32 }
 0x753   :  { %6660 = vmatmul.bf16.vlgmr.msrb.gmra.mxu2 %v6602_v36 }
 0x7d6   :  { %v6661_v30 = vpop.f32.mrf.mxu2 }
 0x7d7   :  { %v6662_v40 = vadd.f32 %v7427_v16, %v6661_v30 }
 0x7d9   :  { %6665 = vst [vmem:[#allocation2] sm:$0x3] %v6662_v40 }
 0x7da   :  { %6676 = dma.vmem_to_hbm [thread:$0]  %s6672_s12, 32, %s6674_s15, [#allocation3]  }
 0x7de   :  { %v6663_v44 = vpop.f32.mrf.mxu2 }
 0x7df   :  { %7672 = dma.done.wait [#allocation3], 32  }
 0x7e0   :  { %7673 = vsyncadd [#allocation3], 4294967264 }
 0x7e1   :  { %6681 = vsyncpa [#allocation3], 1 }

</bundles_post_ra>
